<compile_context>
chip_gen: v5e
topology: v5e:2x2
jax: 0.10.0
libtpu: 0.0.40
codegen_flags: <defaults>
</compile_context>

<pallas_src>
import functools
import math

import jax
import jax.numpy as jnp
from jax import lax
from jax.experimental import pallas as pl
from jax.experimental.pallas import tpu as pltpu

# ---- small, TPU-friendly hyperparameters (scaled down from the original) ----
N_EMBEDDING = 128          # original: 384
BLOCK_SIZE = 64            # original: 256  (forward requires T == block_size)
NUM_HEADS = 4              # original: 8
HEAD_SIZE = N_EMBEDDING // NUM_HEADS
N_LAYER = 2                # original: 8
FF_HIDDEN = 4 * N_EMBEDDING
VOCAB_SIZE = 64            # original: len(chars)
VOCAB_PAD = 128            # pad LM-head output width to a full 128-lane store
LN_EPS = 1e-5              # PyTorch nn.LayerNorm default
# approx=True uses the EUP reciprocal (free slot); flip to False when diffing
# against an f32 PyTorch reference with tight tolerances.
SOFTMAX_APPROX_RECIP = True

# rows of the packed (L, 8, C) per-layer vector block
ROW_LN1_G, ROW_LN1_B, ROW_LN2_G, ROW_LN2_B, ROW_PROJ_B, ROW_FF_B2 = range(6)


# --------------------------- in-kernel helpers --------------------------------

def _layernorm(x, g, b):
    mean = jnp.mean(x, axis=-1, keepdims=True)
    var = jnp.mean(jnp.square(x - mean), axis=-1, keepdims=True)
    return (x - mean) * lax.rsqrt(var + LN_EPS) * g + b


# --------------------------- fused Pallas kernel -------------------------------

def fused_lm_kernel(x_ref, wqkv_ref, proj_w_ref, ff_w1_ref, ff_w2_ref,
                    vecs_ref, ff_b1_ref, lnf_ref, lm_w_ref, lm_b_ref,
                    o_ref, *, num_layers, num_heads, head_size):
    """All transformer layers + final LN + LM head for one batch element."""
    x = x_ref[0]                                                   # (T, C) f32
    T, _ = x.shape
    H, hs = num_heads, head_size
    hh = H * hs

    # additive causal bias, built once per grid step, shared by all layers/heads
    row = lax.broadcasted_iota(jnp.int32, (T, T), 0)
    col = lax.broadcasted_iota(jnp.int32, (T, T), 1)
    # -inf is safe: the diagonal guarantees a finite row max before exp.
    causal_bias = jnp.where(col <= row, jnp.float32(0.0),
                            jnp.float32(-jnp.inf))                 # (T, T) f32

    for l in range(num_layers):                 # static loop; weights stay in VMEM
        vecs = vecs_ref[l]                                          # (8, C) f32
        ln1_g, ln1_b = vecs[ROW_LN1_G:ROW_LN1_G + 1], vecs[ROW_LN1_B:ROW_LN1_B + 1]
        ln2_g, ln2_b = vecs[ROW_LN2_G:ROW_LN2_G + 1], vecs[ROW_LN2_B:ROW_LN2_B + 1]
        proj_b, ff_b2 = vecs[ROW_PROJ_B:ROW_PROJ_B + 1], vecs[ROW_FF_B2:ROW_FF_B2 + 1]

        # ---- ln1 -> fused 384-wide QKV matmul (sqrt(B) already folded in) ----
        xn = _layernorm(x, ln1_g, ln1_b)
        qkv = jnp.dot(xn.astype(jnp.bfloat16), wqkv_ref[l],
                      preferred_element_type=jnp.float32)           # (T, 3*hh)
        qkv = qkv.astype(jnp.bfloat16)          # single cast, sliced per head below

        proj_w_l = proj_w_ref[l]                                    # (hh, C) bf16

        # ---- per-head attention; head outputs accumulate straight into the
        #      residual through proj_w slices (no concat, no (T,hh) temp) -------
        # TODO(synk): a head-major (H,T,hs) batched dot_general would remove the
        # 32-lane slices; kept per-head for lowering robustness at this scale.
        x1 = x + proj_b                                             # (T, C) f32
        for h in range(H):
            sl = slice(h * hs, (h + 1) * hs)
            qh = qkv[:, sl]                                         # (T, hs) bf16
            kh = qkv[:, hh + h * hs: hh + (h + 1) * hs]
            vh = qkv[:, 2 * hh + h * hs: 2 * hh + (h + 1) * hs]
            # contract hs directly (no materialized k transpose)
            wei = lax.dot_general(qh, kh, (((1,), (1,)), ((), ())),
                                  preferred_element_type=jnp.float32)  # (T, T)
            wei = wei + causal_bias
            wei = wei - jnp.max(wei, axis=-1, keepdims=True)
            p = jnp.exp(wei)
            p = p * pl.reciprocal(jnp.sum(p, axis=-1, keepdims=True),
                                  approx=SOFTMAX_APPROX_RECIP)
            # attention dropout: eval-mode identity
            out_h = jnp.dot(p.astype(jnp.bfloat16), vh,
                            preferred_element_type=jnp.float32)     # (T, hs)
            x1 = x1 + jnp.dot(out_h.astype(jnp.bfloat16), proj_w_l[sl, :],
                              preferred_element_type=jnp.float32)   # += head @ proj_w[h]

        # ---- ln2 -> FFN (relu) -> residual (projection dropout: identity) ----
        xn2 = _layernorm(x1, ln2_g, ln2_b)
        h1 = jnp.dot(xn2.astype(jnp.bfloat16), ff_w1_ref[l],
                     preferred_element_type=jnp.float32) + ff_b1_ref[l]
        h1 = jnp.maximum(h1, 0.0)
        h2 = jnp.dot(h1.astype(jnp.bfloat16), ff_w2_ref[l],
                     preferred_element_type=jnp.float32) + ff_b2
        x = x1 + h2                                  # FFN dropout: identity

    # ---- final LayerNorm + LM head (128-lane padded logits) -------------------
    lnf = lnf_ref[...]                                              # (8, C) f32
    xn_f = _layernorm(x, lnf[0:1], lnf[1:2])
    o_ref[0] = (jnp.dot(xn_f.astype(jnp.bfloat16), lm_w_ref[...],
                        preferred_element_type=jnp.float32)
                + lm_b_ref[...])                                    # (T, VOCAB_PAD)


# --------------------------- kernel wrapper -------------------------------------

def _full_spec(shape):
    # whole-array block, same (constant) block for every grid step
    return pl.BlockSpec(shape, lambda b, _n=len(shape): (0,) * _n)


def fused_transformer_lm(packed, x_emb):
    B, T, C = x_emb.shape
    L, H, hs = N_LAYER, NUM_HEADS, HEAD_SIZE
    kern = functools.partial(fused_lm_kernel,
                             num_layers=L, num_heads=H, head_size=hs)
    return pl.pallas_call(
        kern,
        out_shape=jax.ShapeDtypeStruct((B, T, VOCAB_PAD), jnp.float32),
        grid=(B,),
        in_specs=[
            pl.BlockSpec((1, T, C), lambda b: (b, 0, 0)),     # x (per batch element)
            _full_spec((L, C, 3 * H * hs)),                   # fused QKV weights (bf16)
            _full_spec((L, H * hs, C)),                       # attn proj weights (bf16)
            _full_spec((L, C, FF_HIDDEN)),                    # ffn w1 (bf16)
            _full_spec((L, FF_HIDDEN, C)),                    # ffn w2 (bf16)
            _full_spec((L, 8, C)),                            # packed ln/bias vectors
            _full_spec((L, 1, FF_HIDDEN)),                    # ffn b1
            _full_spec((8, C)),                               # final LN g/b (rows 0,1)
            _full_spec((C, VOCAB_PAD)),                       # lm head weight (bf16)
            _full_spec((1, VOCAB_PAD)),                       # lm head bias
        ],
        out_specs=pl.BlockSpec((1, T, VOCAB_PAD), lambda b: (b, 0, 0)),
        compiler_params=pltpu.CompilerParams(
            dimension_semantics=("parallel",)),
    )(x_emb, packed["wqkv"], packed["proj_w"], packed["ff_w1"], packed["ff_w2"],
      packed["vecs"], packed["ff_b1"], packed["lnf"], packed["lm_w"], packed["lm_b"])


# --------------------------- parameters -----------------------------------------

def init_params(key):
    """f32 'PyTorch-like' parameters; matmul weights stored as (in, out) = W.T."""
    C, H, hs, V = N_EMBEDDING, NUM_HEADS, HEAD_SIZE, VOCAB_SIZE
    keys = iter(jax.random.split(key, 2 + 4 * N_LAYER))

    def nrm(k, shape):
        return 0.02 * jax.random.normal(k, shape, dtype=jnp.float32)

    params = {
        "tok_emb": nrm(next(keys), (V, C)),
        "lnf_g": jnp.ones((C,), jnp.float32),
        "lnf_b": jnp.zeros((C,), jnp.float32),
        "lm_w": nrm(next(keys), (C, V)),
        "lm_b": jnp.zeros((V,), jnp.float32),
        "layers": [],
    }
    for _ in range(N_LAYER):
        params["layers"].append({
            "ln1_g": jnp.ones((C,), jnp.float32),
            "ln1_b": jnp.zeros((C,), jnp.float32),
            # fused QKV, columns laid out [q_heads | k_heads | v_heads]
            "wqkv": nrm(next(keys), (C, 3 * H * hs)),
            "proj_w": nrm(next(keys), (H * hs, C)),
            "proj_b": jnp.zeros((C,), jnp.float32),
            "ln2_g": jnp.ones((C,), jnp.float32),
            "ln2_b": jnp.zeros((C,), jnp.float32),
            "ff_w1": nrm(next(keys), (C, FF_HIDDEN)),
            "ff_b1": jnp.zeros((FF_HIDDEN,), jnp.float32),
            "ff_w2": nrm(next(keys), (FF_HIDDEN, C)),
            "ff_b2": jnp.zeros((C,), jnp.float32),
        })
    return params


def sinusoidal_pe():
    pos = jnp.arange(BLOCK_SIZE, dtype=jnp.float32)[:, None]
    div_term = jnp.exp(jnp.arange(0, N_EMBEDDING, 2, dtype=jnp.float32)
                       * (-math.log(10000.0) / N_EMBEDDING))
    pe = jnp.zeros((BLOCK_SIZE, N_EMBEDDING), jnp.float32)
    pe = pe.at[:, 0::2].set(jnp.sin(pos * div_term))
    pe = pe.at[:, 1::2].set(jnp.cos(pos * div_term))
    return pe


def pack_params(params, batch_size):
    """One-time host-side packing: stack per-layer weights on a layer axis, pack
    the small (C,) vectors into (L, 8, C), cast matmul weights to bf16, and fold
    the (buggy) sqrt(B) score scale into the q columns of wqkv.

    NOTE: because of the reference's `/ k.shape[0] ** (-0.5)` bug, the packed
    weights are specific to `batch_size`."""
    C, H, hs = N_EMBEDDING, NUM_HEADS, HEAD_SIZE
    hh = H * hs
    scale = math.sqrt(float(batch_size))
    col_scale = jnp.concatenate([jnp.full((hh,), scale, jnp.float32),
                                 jnp.ones((2 * hh,), jnp.float32)])[None, :]

    wqkv, proj_w, ff_w1, ff_w2, vecs, ff_b1 = [], [], [], [], [], []
    for lyr in params["layers"]:
        wqkv.append((lyr["wqkv"] * col_scale).astype(jnp.bfloat16))
        proj_w.append(lyr["proj_w"].astype(jnp.bfloat16))
        ff_w1.append(lyr["ff_w1"].astype(jnp.bfloat16))
        ff_w2.append(lyr["ff_w2"].astype(jnp.bfloat16))
        ff_b1.append(lyr["ff_b1"][None, :])
        v = jnp.zeros((8, C), jnp.float32)
        v = v.at[ROW_LN1_G].set(lyr["ln1_g"])
        v = v.at[ROW_LN1_B].set(lyr["ln1_b"])
        v = v.at[ROW_LN2_G].set(lyr["ln2_g"])
        v = v.at[ROW_LN2_B].set(lyr["ln2_b"])
        v = v.at[ROW_PROJ_B].set(lyr["proj_b"])
        v = v.at[ROW_FF_B2].set(lyr["ff_b2"])
        vecs.append(v)

    lnf = jnp.zeros((8, C), jnp.float32)
    lnf = lnf.at[0].set(params["lnf_g"]).at[1].set(params["lnf_b"])
    lm_w = jnp.zeros((C, VOCAB_PAD), jnp.float32).at[:, :VOCAB_SIZE].set(params["lm_w"])
    lm_b = jnp.zeros((1, VOCAB_PAD), jnp.float32).at[0, :VOCAB_SIZE].set(params["lm_b"])

    return {
        "tok_emb": params["tok_emb"],
        "pe": sinusoidal_pe(),
        "wqkv": jnp.stack(wqkv),          # (L, C, 3*hh)   bf16
        "proj_w": jnp.stack(proj_w),      # (L, hh, C)     bf16
        "ff_w1": jnp.stack(ff_w1),        # (L, C, 4C)     bf16
        "ff_w2": jnp.stack(ff_w2),        # (L, 4C, C)     bf16
        "vecs": jnp.stack(vecs),          # (L, 8, C)      f32
        "ff_b1": jnp.stack(ff_b1),        # (L, 1, 4C)     f32
        "lnf": lnf,                       # (8, C)         f32
        "lm_w": lm_w.astype(jnp.bfloat16),  # (C, 128)     bf16, zero-padded
        "lm_b": lm_b,                     # (1, 128)       f32
    }


# --------------------------- forward ---------------------------------------------

def language_model_forward(packed, idx, targets=None):
    B, T = idx.shape
    assert T == BLOCK_SIZE, "forward requires T == block_size (PE table add)"
    # embedding lookup + positional encoding: XLA glue (gather + add)
    tok = jnp.take(packed["tok_emb"], idx, axis=0)            # (B, T, C)
    x = tok + packed["pe"][None, :, :]

    # ONE fused kernel: all layers + final LN + LM head
    logits = fused_transformer_lm(packed, x)[:, :, :VOCAB_SIZE]

    loss = None
    if targets is not None:
        # cross-entropy as XLA glue (not exercised in this test: targets=None)
        BT = B * T
        lg = logits.reshape(BT, VOCAB_SIZE)
        lse = jax.nn.logsumexp(lg, axis=-1)
        picked = jnp.take_along_axis(lg, targets.reshape(BT, 1), axis=-1)[:, 0]
        loss = jnp.mean(lse - picked)
    return logits, loss


# --------------------------- main -------------------------------------------------

if __name__ == "__main__":
    root = jax.random.PRNGKey(0)
    k_params, k_idx = jax.random.split(root)

    B = 2
    params = init_params(k_params)
    packed = pack_params(params, B)          # one-time host-side packing
    idx = jax.random.randint(k_idx, (B, BLOCK_SIZE), 0, VOCAB_SIZE, dtype=jnp.int32)

    fwd = jax.jit(lambda p, i: language_model_forward(p, i, None))
    logits, loss = fwd(packed, idx)
    jax.block_until_ready(logits)
    assert logits.shape == (B, BLOCK_SIZE, VOCAB_SIZE)
    assert loss is None
    print("KERNEL_OK")
</pallas_src>

<mosaic_0001>
module attributes {stable_mosaic.version = 11 : i64} {
  func.func @fused_lm_kernel(%arg0: i32, %arg1: memref<1x64x128xf32, #tpu.memory_space<vmem>>, %arg2: memref<2x128x384xbf16, #tpu.memory_space<vmem>>, %arg3: memref<2x128x128xbf16, #tpu.memory_space<vmem>>, %arg4: memref<2x128x512xbf16, #tpu.memory_space<vmem>>, %arg5: memref<2x512x128xbf16, #tpu.memory_space<vmem>>, %arg6: memref<2x8x128xf32, #tpu.memory_space<vmem>>, %arg7: memref<2x1x512xf32, #tpu.memory_space<vmem>>, %arg8: memref<8x128xf32, #tpu.memory_space<vmem>>, %arg9: memref<128x128xbf16, #tpu.memory_space<vmem>>, %arg10: memref<1x128xf32, #tpu.memory_space<vmem>>, %arg11: memref<1x64x128xf32, #tpu.memory_space<vmem>>) attributes {dimension_semantics = [#tpu.dimension_semantics<parallel>], iteration_bounds = array<i64: 2>, scalar_prefetch = 0 : i64, scratch_operands = 0 : i64, tpu.core_type = #tpu.core_type<tc>, window_params = [{transform_indices = @transform_0, window_bounds = array<i64: 1, 64, 128>}, {pipeline_mode = #tpu.pipeline_mode<synchronous>, transform_indices = @transform_1, window_bounds = array<i64: 2, 128, 384>}, {pipeline_mode = #tpu.pipeline_mode<synchronous>, transform_indices = @transform_2, window_bounds = array<i64: 2, 128, 128>}, {pipeline_mode = #tpu.pipeline_mode<synchronous>, transform_indices = @transform_3, window_bounds = array<i64: 2, 128, 512>}, {pipeline_mode = #tpu.pipeline_mode<synchronous>, transform_indices = @transform_4, window_bounds = array<i64: 2, 512, 128>}, {pipeline_mode = #tpu.pipeline_mode<synchronous>, transform_indices = @transform_5, window_bounds = array<i64: 2, 8, 128>}, {pipeline_mode = #tpu.pipeline_mode<synchronous>, transform_indices = @transform_6, window_bounds = array<i64: 2, 1, 512>}, {pipeline_mode = #tpu.pipeline_mode<synchronous>, transform_indices = @transform_7, window_bounds = array<i64: 8, 128>}, {pipeline_mode = #tpu.pipeline_mode<synchronous>, transform_indices = @transform_8, window_bounds = array<i64: 128, 128>}, {pipeline_mode = #tpu.pipeline_mode<synchronous>, transform_indices = @transform_9, window_bounds = array<i64: 1, 128>}, {transform_indices = @transform_10, window_bounds = array<i64: 1, 64, 128>}]} {
    %c0 = arith.constant 0 : index
    %c0_0 = arith.constant 0 : index
    %c0_1 = arith.constant 0 : index
    %0 = vector.load %arg1[%c0, %c0_0, %c0_1] : memref<1x64x128xf32, #tpu.memory_space<vmem>>, vector<1x64x128xf32>
    %1 = vector.shape_cast %0 : vector<1x64x128xf32> to vector<64x128xf32>
    %2 = tpu.iota {dimensions = array<i32: 0>} : vector<64x64xi32>
    %3 = tpu.iota {dimensions = array<i32: 1>} : vector<64x64xi32>
    %4 = arith.cmpi sle, %3, %2 : vector<64x64xi32>
    %cst = arith.constant 0.000000e+00 : f32
    %cst_2 = arith.constant 0xFF800000 : f32
    %5 = vector.broadcast %cst : f32 to vector<64x64xf32>
    %6 = vector.broadcast %cst_2 : f32 to vector<64x64xf32>
    %7 = arith.select %4, %5, %6 : vector<64x64xi1>, vector<64x64xf32>
    %c0_3 = arith.constant 0 : index
    %c0_4 = arith.constant 0 : index
    %c0_5 = arith.constant 0 : index
    %8 = vector.load %arg6[%c0_3, %c0_4, %c0_5] : memref<2x8x128xf32, #tpu.memory_space<vmem>>, vector<1x8x128xf32>
    %9 = vector.shape_cast %8 : vector<1x8x128xf32> to vector<8x128xf32>
    %10 = vector.extract_strided_slice %9 {offsets = [0, 0], sizes = [1, 128], strides = [1, 1]} : vector<8x128xf32> to vector<1x128xf32>
    %11 = vector.extract_strided_slice %9 {offsets = [1, 0], sizes = [1, 128], strides = [1, 1]} : vector<8x128xf32> to vector<1x128xf32>
    %12 = vector.extract_strided_slice %9 {offsets = [2, 0], sizes = [1, 128], strides = [1, 1]} : vector<8x128xf32> to vector<1x128xf32>
    %13 = vector.extract_strided_slice %9 {offsets = [3, 0], sizes = [1, 128], strides = [1, 1]} : vector<8x128xf32> to vector<1x128xf32>
    %14 = vector.extract_strided_slice %9 {offsets = [4, 0], sizes = [1, 128], strides = [1, 1]} : vector<8x128xf32> to vector<1x128xf32>
    %15 = vector.extract_strided_slice %9 {offsets = [5, 0], sizes = [1, 128], strides = [1, 1]} : vector<8x128xf32> to vector<1x128xf32>
    %cst_6 = arith.constant dense<0.000000e+00> : vector<64xf32>
    %16 = vector.multi_reduction <add>, %1, %cst_6 [1] : vector<64x128xf32> to vector<64xf32>
    %17 = vector.shape_cast %16 : vector<64xf32> to vector<64x1xf32>
    %cst_7 = arith.constant 1.280000e+02 : f32
    %18 = vector.broadcast %cst_7 : f32 to vector<64x1xf32>
    %19 = arith.divf %17, %18 : vector<64x1xf32>
    %20 = vector.broadcast %19 : vector<64x1xf32> to vector<64x128xf32>
    %21 = arith.subf %1, %20 : vector<64x128xf32>
    %22 = arith.mulf %21, %21 : vector<64x128xf32>
    %cst_8 = arith.constant dense<0.000000e+00> : vector<64xf32>
    %23 = vector.multi_reduction <add>, %22, %cst_8 [1] : vector<64x128xf32> to vector<64xf32>
    %24 = vector.shape_cast %23 : vector<64xf32> to vector<64x1xf32>
    %cst_9 = arith.constant 1.280000e+02 : f32
    %25 = vector.broadcast %cst_9 : f32 to vector<64x1xf32>
    %26 = arith.divf %24, %25 : vector<64x1xf32>
    %27 = vector.broadcast %19 : vector<64x1xf32> to vector<64x128xf32>
    %28 = arith.subf %1, %27 : vector<64x128xf32>
    %cst_10 = arith.constant 9.99999974E-6 : f32
    %29 = vector.broadcast %cst_10 : f32 to vector<64x1xf32>
    %30 = arith.addf %26, %29 : vector<64x1xf32>
    %31 = math.rsqrt %30 : vector<64x1xf32>
    %32 = vector.broadcast %31 : vector<64x1xf32> to vector<64x128xf32>
    %33 = arith.mulf %28, %32 : vector<64x128xf32>
    %34 = vector.broadcast %10 : vector<1x128xf32> to vector<64x128xf32>
    %35 = arith.mulf %33, %34 : vector<64x128xf32>
    %36 = vector.broadcast %11 : vector<1x128xf32> to vector<64x128xf32>
    %37 = arith.addf %35, %36 : vector<64x128xf32>
    %38 = arith.truncf %37 : vector<64x128xf32> to vector<64x128xbf16>
    %c0_11 = arith.constant 0 : index
    %c0_12 = arith.constant 0 : index
    %c0_13 = arith.constant 0 : index
    %39 = vector.load %arg2[%c0_11, %c0_12, %c0_13] : memref<2x128x384xbf16, #tpu.memory_space<vmem>>, vector<1x128x384xbf16>
    %40 = vector.shape_cast %39 : vector<1x128x384xbf16> to vector<128x384xbf16>
    %cst_14 = arith.constant dense<0.000000e+00> : vector<64x384xf32>
    %41 = tpu.matmul %38, %40, %cst_14 {dimension_numbers = #tpu.dot_dimension_numbers<[1], [0], [0], [1], [0, 0, 1, 1], [], []>} : vector<64x128xbf16>, vector<128x384xbf16>, vector<64x384xf32> -> vector<64x384xf32>
    %42 = arith.truncf %41 : vector<64x384xf32> to vector<64x384xbf16>
    %c0_15 = arith.constant 0 : index
    %c0_16 = arith.constant 0 : index
    %c0_17 = arith.constant 0 : index
    %43 = vector.load %arg3[%c0_15, %c0_16, %c0_17] : memref<2x128x128xbf16, #tpu.memory_space<vmem>>, vector<1x128x128xbf16>
    %44 = vector.shape_cast %43 : vector<1x128x128xbf16> to vector<128x128xbf16>
    %45 = vector.broadcast %14 : vector<1x128xf32> to vector<64x128xf32>
    %46 = arith.addf %1, %45 : vector<64x128xf32>
    %47 = vector.extract_strided_slice %42 {offsets = [0, 0], sizes = [64, 32], strides = [1, 1]} : vector<64x384xbf16> to vector<64x32xbf16>
    %48 = vector.extract_strided_slice %42 {offsets = [0, 128], sizes = [64, 32], strides = [1, 1]} : vector<64x384xbf16> to vector<64x32xbf16>
    %49 = vector.extract_strided_slice %42 {offsets = [0, 256], sizes = [64, 32], strides = [1, 1]} : vector<64x384xbf16> to vector<64x32xbf16>
    %cst_18 = arith.constant dense<0.000000e+00> : vector<64x64xf32>
    %50 = tpu.matmul %47, %48, %cst_18 {dimension_numbers = #tpu.dot_dimension_numbers<[1], [1], [0], [0], [0, 0, 1, 0], [], []>} : vector<64x32xbf16>, vector<64x32xbf16>, vector<64x64xf32> -> vector<64x64xf32>
    %51 = arith.addf %50, %7 : vector<64x64xf32>
    %cst_19 = arith.constant dense<0xFF800000> : vector<64xf32>
    %52 = vector.multi_reduction <maximumf>, %51, %cst_19 [1] : vector<64x64xf32> to vector<64xf32>
    %53 = vector.shape_cast %52 : vector<64xf32> to vector<64x1xf32>
    %54 = vector.broadcast %53 : vector<64x1xf32> to vector<64x64xf32>
    %55 = arith.subf %51, %54 : vector<64x64xf32>
    %56 = math.exp %55 : vector<64x64xf32>
    %cst_20 = arith.constant dense<0.000000e+00> : vector<64xf32>
    %57 = vector.multi_reduction <add>, %56, %cst_20 [1] : vector<64x64xf32> to vector<64xf32>
    %58 = vector.shape_cast %57 : vector<64xf32> to vector<64x1xf32>
    %59 = tpu.reciprocal %58 {approx = true} : vector<64x1xf32> -> vector<64x1xf32>
    %60 = vector.broadcast %59 : vector<64x1xf32> to vector<64x64xf32>
    %61 = arith.mulf %56, %60 : vector<64x64xf32>
    %62 = arith.truncf %61 : vector<64x64xf32> to vector<64x64xbf16>
    %cst_21 = arith.constant dense<0.000000e+00> : vector<64x32xf32>
    %63 = tpu.matmul %62, %49, %cst_21 {dimension_numbers = #tpu.dot_dimension_numbers<[1], [0], [0], [1], [0, 0, 1, 1], [], []>} : vector<64x64xbf16>, vector<64x32xbf16>, vector<64x32xf32> -> vector<64x32xf32>
    %64 = arith.truncf %63 : vector<64x32xf32> to vector<64x32xbf16>
    %65 = vector.extract_strided_slice %44 {offsets = [0, 0], sizes = [32, 128], strides = [1, 1]} : vector<128x128xbf16> to vector<32x128xbf16>
    %cst_22 = arith.constant dense<0.000000e+00> : vector<64x128xf32>
    %66 = tpu.matmul %64, %65, %cst_22 {dimension_numbers = #tpu.dot_dimension_numbers<[1], [0], [0], [1], [0, 0, 1, 1], [], []>} : vector<64x32xbf16>, vector<32x128xbf16>, vector<64x128xf32> -> vector<64x128xf32>
    %67 = arith.addf %46, %66 : vector<64x128xf32>
    %68 = vector.extract_strided_slice %42 {offsets = [0, 32], sizes = [64, 32], strides = [1, 1]} : vector<64x384xbf16> to vector<64x32xbf16>
    %69 = vector.extract_strided_slice %42 {offsets = [0, 160], sizes = [64, 32], strides = [1, 1]} : vector<64x384xbf16> to vector<64x32xbf16>
    %70 = vector.extract_strided_slice %42 {offsets = [0, 288], sizes = [64, 32], strides = [1, 1]} : vector<64x384xbf16> to vector<64x32xbf16>
    %cst_23 = arith.constant dense<0.000000e+00> : vector<64x64xf32>
    %71 = tpu.matmul %68, %69, %cst_23 {dimension_numbers = #tpu.dot_dimension_numbers<[1], [1], [0], [0], [0, 0, 1, 0], [], []>} : vector<64x32xbf16>, vector<64x32xbf16>, vector<64x64xf32> -> vector<64x64xf32>
    %72 = arith.addf %71, %7 : vector<64x64xf32>
    %cst_24 = arith.constant dense<0xFF800000> : vector<64xf32>
    %73 = vector.multi_reduction <maximumf>, %72, %cst_24 [1] : vector<64x64xf32> to vector<64xf32>
    %74 = vector.shape_cast %73 : vector<64xf32> to vector<64x1xf32>
    %75 = vector.broadcast %74 : vector<64x1xf32> to vector<64x64xf32>
    %76 = arith.subf %72, %75 : vector<64x64xf32>
    %77 = math.exp %76 : vector<64x64xf32>
    %cst_25 = arith.constant dense<0.000000e+00> : vector<64xf32>
    %78 = vector.multi_reduction <add>, %77, %cst_25 [1] : vector<64x64xf32> to vector<64xf32>
    %79 = vector.shape_cast %78 : vector<64xf32> to vector<64x1xf32>
    %80 = tpu.reciprocal %79 {approx = true} : vector<64x1xf32> -> vector<64x1xf32>
    %81 = vector.broadcast %80 : vector<64x1xf32> to vector<64x64xf32>
    %82 = arith.mulf %77, %81 : vector<64x64xf32>
    %83 = arith.truncf %82 : vector<64x64xf32> to vector<64x64xbf16>
    %cst_26 = arith.constant dense<0.000000e+00> : vector<64x32xf32>
    %84 = tpu.matmul %83, %70, %cst_26 {dimension_numbers = #tpu.dot_dimension_numbers<[1], [0], [0], [1], [0, 0, 1, 1], [], []>} : vector<64x64xbf16>, vector<64x32xbf16>, vector<64x32xf32> -> vector<64x32xf32>
    %85 = arith.truncf %84 : vector<64x32xf32> to vector<64x32xbf16>
    %86 = vector.extract_strided_slice %44 {offsets = [32, 0], sizes = [32, 128], strides = [1, 1]} : vector<128x128xbf16> to vector<32x128xbf16>
    %cst_27 = arith.constant dense<0.000000e+00> : vector<64x128xf32>
    %87 = tpu.matmul %85, %86, %cst_27 {dimension_numbers = #tpu.dot_dimension_numbers<[1], [0], [0], [1], [0, 0, 1, 1], [], []>} : vector<64x32xbf16>, vector<32x128xbf16>, vector<64x128xf32> -> vector<64x128xf32>
    %88 = arith.addf %67, %87 : vector<64x128xf32>
    %89 = vector.extract_strided_slice %42 {offsets = [0, 64], sizes = [64, 32], strides = [1, 1]} : vector<64x384xbf16> to vector<64x32xbf16>
    %90 = vector.extract_strided_slice %42 {offsets = [0, 192], sizes = [64, 32], strides = [1, 1]} : vector<64x384xbf16> to vector<64x32xbf16>
    %91 = vector.extract_strided_slice %42 {offsets = [0, 320], sizes = [64, 32], strides = [1, 1]} : vector<64x384xbf16> to vector<64x32xbf16>
    %cst_28 = arith.constant dense<0.000000e+00> : vector<64x64xf32>
    %92 = tpu.matmul %89, %90, %cst_28 {dimension_numbers = #tpu.dot_dimension_numbers<[1], [1], [0], [0], [0, 0, 1, 0], [], []>} : vector<64x32xbf16>, vector<64x32xbf16>, vector<64x64xf32> -> vector<64x64xf32>
    %93 = arith.addf %92, %7 : vector<64x64xf32>
    %cst_29 = arith.constant dense<0xFF800000> : vector<64xf32>
    %94 = vector.multi_reduction <maximumf>, %93, %cst_29 [1] : vector<64x64xf32> to vector<64xf32>
    %95 = vector.shape_cast %94 : vector<64xf32> to vector<64x1xf32>
    %96 = vector.broadcast %95 : vector<64x1xf32> to vector<64x64xf32>
    %97 = arith.subf %93, %96 : vector<64x64xf32>
    %98 = math.exp %97 : vector<64x64xf32>
    %cst_30 = arith.constant dense<0.000000e+00> : vector<64xf32>
    %99 = vector.multi_reduction <add>, %98, %cst_30 [1] : vector<64x64xf32> to vector<64xf32>
    %100 = vector.shape_cast %99 : vector<64xf32> to vector<64x1xf32>
    %101 = tpu.reciprocal %100 {approx = true} : vector<64x1xf32> -> vector<64x1xf32>
    %102 = vector.broadcast %101 : vector<64x1xf32> to vector<64x64xf32>
    %103 = arith.mulf %98, %102 : vector<64x64xf32>
    %104 = arith.truncf %103 : vector<64x64xf32> to vector<64x64xbf16>
    %cst_31 = arith.constant dense<0.000000e+00> : vector<64x32xf32>
    %105 = tpu.matmul %104, %91, %cst_31 {dimension_numbers = #tpu.dot_dimension_numbers<[1], [0], [0], [1], [0, 0, 1, 1], [], []>} : vector<64x64xbf16>, vector<64x32xbf16>, vector<64x32xf32> -> vector<64x32xf32>
    %106 = arith.truncf %105 : vector<64x32xf32> to vector<64x32xbf16>
    %107 = vector.extract_strided_slice %44 {offsets = [64, 0], sizes = [32, 128], strides = [1, 1]} : vector<128x128xbf16> to vector<32x128xbf16>
    %cst_32 = arith.constant dense<0.000000e+00> : vector<64x128xf32>
    %108 = tpu.matmul %106, %107, %cst_32 {dimension_numbers = #tpu.dot_dimension_numbers<[1], [0], [0], [1], [0, 0, 1, 1], [], []>} : vector<64x32xbf16>, vector<32x128xbf16>, vector<64x128xf32> -> vector<64x128xf32>
    %109 = arith.addf %88, %108 : vector<64x128xf32>
    %110 = vector.extract_strided_slice %42 {offsets = [0, 96], sizes = [64, 32], strides = [1, 1]} : vector<64x384xbf16> to vector<64x32xbf16>
    %111 = vector.extract_strided_slice %42 {offsets = [0, 224], sizes = [64, 32], strides = [1, 1]} : vector<64x384xbf16> to vector<64x32xbf16>
    %112 = vector.extract_strided_slice %42 {offsets = [0, 352], sizes = [64, 32], strides = [1, 1]} : vector<64x384xbf16> to vector<64x32xbf16>
    %cst_33 = arith.constant dense<0.000000e+00> : vector<64x64xf32>
    %113 = tpu.matmul %110, %111, %cst_33 {dimension_numbers = #tpu.dot_dimension_numbers<[1], [1], [0], [0], [0, 0, 1, 0], [], []>} : vector<64x32xbf16>, vector<64x32xbf16>, vector<64x64xf32> -> vector<64x64xf32>
    %114 = arith.addf %113, %7 : vector<64x64xf32>
    %cst_34 = arith.constant dense<0xFF800000> : vector<64xf32>
    %115 = vector.multi_reduction <maximumf>, %114, %cst_34 [1] : vector<64x64xf32> to vector<64xf32>
    %116 = vector.shape_cast %115 : vector<64xf32> to vector<64x1xf32>
    %117 = vector.broadcast %116 : vector<64x1xf32> to vector<64x64xf32>
    %118 = arith.subf %114, %117 : vector<64x64xf32>
    %119 = math.exp %118 : vector<64x64xf32>
    %cst_35 = arith.constant dense<0.000000e+00> : vector<64xf32>
    %120 = vector.multi_reduction <add>, %119, %cst_35 [1] : vector<64x64xf32> to vector<64xf32>
    %121 = vector.shape_cast %120 : vector<64xf32> to vector<64x1xf32>
    %122 = tpu.reciprocal %121 {approx = true} : vector<64x1xf32> -> vector<64x1xf32>
    %123 = vector.broadcast %122 : vector<64x1xf32> to vector<64x64xf32>
    %124 = arith.mulf %119, %123 : vector<64x64xf32>
    %125 = arith.truncf %124 : vector<64x64xf32> to vector<64x64xbf16>
    %cst_36 = arith.constant dense<0.000000e+00> : vector<64x32xf32>
    %126 = tpu.matmul %125, %112, %cst_36 {dimension_numbers = #tpu.dot_dimension_numbers<[1], [0], [0], [1], [0, 0, 1, 1], [], []>} : vector<64x64xbf16>, vector<64x32xbf16>, vector<64x32xf32> -> vector<64x32xf32>
    %127 = arith.truncf %126 : vector<64x32xf32> to vector<64x32xbf16>
    %128 = vector.extract_strided_slice %44 {offsets = [96, 0], sizes = [32, 128], strides = [1, 1]} : vector<128x128xbf16> to vector<32x128xbf16>
    %cst_37 = arith.constant dense<0.000000e+00> : vector<64x128xf32>
    %129 = tpu.matmul %127, %128, %cst_37 {dimension_numbers = #tpu.dot_dimension_numbers<[1], [0], [0], [1], [0, 0, 1, 1], [], []>} : vector<64x32xbf16>, vector<32x128xbf16>, vector<64x128xf32> -> vector<64x128xf32>
    %130 = arith.addf %109, %129 : vector<64x128xf32>
    %cst_38 = arith.constant dense<0.000000e+00> : vector<64xf32>
    %131 = vector.multi_reduction <add>, %130, %cst_38 [1] : vector<64x128xf32> to vector<64xf32>
    %132 = vector.shape_cast %131 : vector<64xf32> to vector<64x1xf32>
    %cst_39 = arith.constant 1.280000e+02 : f32
    %133 = vector.broadcast %cst_39 : f32 to vector<64x1xf32>
    %134 = arith.divf %132, %133 : vector<64x1xf32>
    %135 = vector.broadcast %134 : vector<64x1xf32> to vector<64x128xf32>
    %136 = arith.subf %130, %135 : vector<64x128xf32>
    %137 = arith.mulf %136, %136 : vector<64x128xf32>
    %cst_40 = arith.constant dense<0.000000e+00> : vector<64xf32>
    %138 = vector.multi_reduction <add>, %137, %cst_40 [1] : vector<64x128xf32> to vector<64xf32>
    %139 = vector.shape_cast %138 : vector<64xf32> to vector<64x1xf32>
    %cst_41 = arith.constant 1.280000e+02 : f32
    %140 = vector.broadcast %cst_41 : f32 to vector<64x1xf32>
    %141 = arith.divf %139, %140 : vector<64x1xf32>
    %142 = vector.broadcast %134 : vector<64x1xf32> to vector<64x128xf32>
    %143 = arith.subf %130, %142 : vector<64x128xf32>
    %cst_42 = arith.constant 9.99999974E-6 : f32
    %144 = vector.broadcast %cst_42 : f32 to vector<64x1xf32>
    %145 = arith.addf %141, %144 : vector<64x1xf32>
    %146 = math.rsqrt %145 : vector<64x1xf32>
    %147 = vector.broadcast %146 : vector<64x1xf32> to vector<64x128xf32>
    %148 = arith.mulf %143, %147 : vector<64x128xf32>
    %149 = vector.broadcast %12 : vector<1x128xf32> to vector<64x128xf32>
    %150 = arith.mulf %148, %149 : vector<64x128xf32>
    %151 = vector.broadcast %13 : vector<1x128xf32> to vector<64x128xf32>
    %152 = arith.addf %150, %151 : vector<64x128xf32>
    %153 = arith.truncf %152 : vector<64x128xf32> to vector<64x128xbf16>
    %c0_43 = arith.constant 0 : index
    %c0_44 = arith.constant 0 : index
    %c0_45 = arith.constant 0 : index
    %154 = vector.load %arg4[%c0_43, %c0_44, %c0_45] : memref<2x128x512xbf16, #tpu.memory_space<vmem>>, vector<1x128x512xbf16>
    %155 = vector.shape_cast %154 : vector<1x128x512xbf16> to vector<128x512xbf16>
    %cst_46 = arith.constant dense<0.000000e+00> : vector<64x512xf32>
    %156 = tpu.matmul %153, %155, %cst_46 {dimension_numbers = #tpu.dot_dimension_numbers<[1], [0], [0], [1], [0, 0, 1, 1], [], []>} : vector<64x128xbf16>, vector<128x512xbf16>, vector<64x512xf32> -> vector<64x512xf32>
    %c0_47 = arith.constant 0 : index
    %c0_48 = arith.constant 0 : index
    %c0_49 = arith.constant 0 : index
    %157 = vector.load %arg7[%c0_47, %c0_48, %c0_49] : memref<2x1x512xf32, #tpu.memory_space<vmem>>, vector<1x1x512xf32>
    %158 = vector.shape_cast %157 : vector<1x1x512xf32> to vector<1x512xf32>
    %159 = vector.broadcast %158 : vector<1x512xf32> to vector<64x512xf32>
    %160 = arith.addf %156, %159 : vector<64x512xf32>
    %cst_50 = arith.constant 0.000000e+00 : f32
    %161 = vector.broadcast %cst_50 : f32 to vector<64x512xf32>
    %162 = arith.maximumf %160, %161 : vector<64x512xf32>
    %163 = arith.truncf %162 : vector<64x512xf32> to vector<64x512xbf16>
    %c0_51 = arith.constant 0 : index
    %c0_52 = arith.constant 0 : index
    %c0_53 = arith.constant 0 : index
    %164 = vector.load %arg5[%c0_51, %c0_52, %c0_53] : memref<2x512x128xbf16, #tpu.memory_space<vmem>>, vector<1x512x128xbf16>
    %165 = vector.shape_cast %164 : vector<1x512x128xbf16> to vector<512x128xbf16>
    %cst_54 = arith.constant dense<0.000000e+00> : vector<64x128xf32>
    %166 = tpu.matmul %163, %165, %cst_54 {dimension_numbers = #tpu.dot_dimension_numbers<[1], [0], [0], [1], [0, 0, 1, 1], [], []>} : vector<64x512xbf16>, vector<512x128xbf16>, vector<64x128xf32> -> vector<64x128xf32>
    %167 = vector.broadcast %15 : vector<1x128xf32> to vector<64x128xf32>
    %168 = arith.addf %166, %167 : vector<64x128xf32>
    %169 = arith.addf %130, %168 : vector<64x128xf32>
    %c1 = arith.constant 1 : index
    %c0_55 = arith.constant 0 : index
    %c0_56 = arith.constant 0 : index
    %170 = vector.load %arg6[%c1, %c0_55, %c0_56] : memref<2x8x128xf32, #tpu.memory_space<vmem>>, vector<1x8x128xf32>
    %171 = vector.shape_cast %170 : vector<1x8x128xf32> to vector<8x128xf32>
    %172 = vector.extract_strided_slice %171 {offsets = [0, 0], sizes = [1, 128], strides = [1, 1]} : vector<8x128xf32> to vector<1x128xf32>
    %173 = vector.extract_strided_slice %171 {offsets = [1, 0], sizes = [1, 128], strides = [1, 1]} : vector<8x128xf32> to vector<1x128xf32>
    %174 = vector.extract_strided_slice %171 {offsets = [2, 0], sizes = [1, 128], strides = [1, 1]} : vector<8x128xf32> to vector<1x128xf32>
    %175 = vector.extract_strided_slice %171 {offsets = [3, 0], sizes = [1, 128], strides = [1, 1]} : vector<8x128xf32> to vector<1x128xf32>
    %176 = vector.extract_strided_slice %171 {offsets = [4, 0], sizes = [1, 128], strides = [1, 1]} : vector<8x128xf32> to vector<1x128xf32>
    %177 = vector.extract_strided_slice %171 {offsets = [5, 0], sizes = [1, 128], strides = [1, 1]} : vector<8x128xf32> to vector<1x128xf32>
    %cst_57 = arith.constant dense<0.000000e+00> : vector<64xf32>
    %178 = vector.multi_reduction <add>, %169, %cst_57 [1] : vector<64x128xf32> to vector<64xf32>
    %179 = vector.shape_cast %178 : vector<64xf32> to vector<64x1xf32>
    %cst_58 = arith.constant 1.280000e+02 : f32
    %180 = vector.broadcast %cst_58 : f32 to vector<64x1xf32>
    %181 = arith.divf %179, %180 : vector<64x1xf32>
    %182 = vector.broadcast %181 : vector<64x1xf32> to vector<64x128xf32>
    %183 = arith.subf %169, %182 : vector<64x128xf32>
    %184 = arith.mulf %183, %183 : vector<64x128xf32>
    %cst_59 = arith.constant dense<0.000000e+00> : vector<64xf32>
    %185 = vector.multi_reduction <add>, %184, %cst_59 [1] : vector<64x128xf32> to vector<64xf32>
    %186 = vector.shape_cast %185 : vector<64xf32> to vector<64x1xf32>
    %cst_60 = arith.constant 1.280000e+02 : f32
    %187 = vector.broadcast %cst_60 : f32 to vector<64x1xf32>
    %188 = arith.divf %186, %187 : vector<64x1xf32>
    %189 = vector.broadcast %181 : vector<64x1xf32> to vector<64x128xf32>
    %190 = arith.subf %169, %189 : vector<64x128xf32>
    %cst_61 = arith.constant 9.99999974E-6 : f32
    %191 = vector.broadcast %cst_61 : f32 to vector<64x1xf32>
    %192 = arith.addf %188, %191 : vector<64x1xf32>
    %193 = math.rsqrt %192 : vector<64x1xf32>
    %194 = vector.broadcast %193 : vector<64x1xf32> to vector<64x128xf32>
    %195 = arith.mulf %190, %194 : vector<64x128xf32>
    %196 = vector.broadcast %172 : vector<1x128xf32> to vector<64x128xf32>
    %197 = arith.mulf %195, %196 : vector<64x128xf32>
    %198 = vector.broadcast %173 : vector<1x128xf32> to vector<64x128xf32>
    %199 = arith.addf %197, %198 : vector<64x128xf32>
    %200 = arith.truncf %199 : vector<64x128xf32> to vector<64x128xbf16>
    %c1_62 = arith.constant 1 : index
    %c0_63 = arith.constant 0 : index
    %c0_64 = arith.constant 0 : index
    %201 = vector.load %arg2[%c1_62, %c0_63, %c0_64] : memref<2x128x384xbf16, #tpu.memory_space<vmem>>, vector<1x128x384xbf16>
    %202 = vector.shape_cast %201 : vector<1x128x384xbf16> to vector<128x384xbf16>
    %cst_65 = arith.constant dense<0.000000e+00> : vector<64x384xf32>
    %203 = tpu.matmul %200, %202, %cst_65 {dimension_numbers = #tpu.dot_dimension_numbers<[1], [0], [0], [1], [0, 0, 1, 1], [], []>} : vector<64x128xbf16>, vector<128x384xbf16>, vector<64x384xf32> -> vector<64x384xf32>
    %204 = arith.truncf %203 : vector<64x384xf32> to vector<64x384xbf16>
    %c1_66 = arith.constant 1 : index
    %c0_67 = arith.constant 0 : index
    %c0_68 = arith.constant 0 : index
    %205 = vector.load %arg3[%c1_66, %c0_67, %c0_68] : memref<2x128x128xbf16, #tpu.memory_space<vmem>>, vector<1x128x128xbf16>
    %206 = vector.shape_cast %205 : vector<1x128x128xbf16> to vector<128x128xbf16>
    %207 = vector.broadcast %176 : vector<1x128xf32> to vector<64x128xf32>
    %208 = arith.addf %169, %207 : vector<64x128xf32>
    %209 = vector.extract_strided_slice %204 {offsets = [0, 0], sizes = [64, 32], strides = [1, 1]} : vector<64x384xbf16> to vector<64x32xbf16>
    %210 = vector.extract_strided_slice %204 {offsets = [0, 128], sizes = [64, 32], strides = [1, 1]} : vector<64x384xbf16> to vector<64x32xbf16>
    %211 = vector.extract_strided_slice %204 {offsets = [0, 256], sizes = [64, 32], strides = [1, 1]} : vector<64x384xbf16> to vector<64x32xbf16>
    %cst_69 = arith.constant dense<0.000000e+00> : vector<64x64xf32>
    %212 = tpu.matmul %209, %210, %cst_69 {dimension_numbers = #tpu.dot_dimension_numbers<[1], [1], [0], [0], [0, 0, 1, 0], [], []>} : vector<64x32xbf16>, vector<64x32xbf16>, vector<64x64xf32> -> vector<64x64xf32>
    %213 = arith.addf %212, %7 : vector<64x64xf32>
    %cst_70 = arith.constant dense<0xFF800000> : vector<64xf32>
    %214 = vector.multi_reduction <maximumf>, %213, %cst_70 [1] : vector<64x64xf32> to vector<64xf32>
    %215 = vector.shape_cast %214 : vector<64xf32> to vector<64x1xf32>
    %216 = vector.broadcast %215 : vector<64x1xf32> to vector<64x64xf32>
    %217 = arith.subf %213, %216 : vector<64x64xf32>
    %218 = math.exp %217 : vector<64x64xf32>
    %cst_71 = arith.constant dense<0.000000e+00> : vector<64xf32>
    %219 = vector.multi_reduction <add>, %218, %cst_71 [1] : vector<64x64xf32> to vector<64xf32>
    %220 = vector.shape_cast %219 : vector<64xf32> to vector<64x1xf32>
    %221 = tpu.reciprocal %220 {approx = true} : vector<64x1xf32> -> vector<64x1xf32>
    %222 = vector.broadcast %221 : vector<64x1xf32> to vector<64x64xf32>
    %223 = arith.mulf %218, %222 : vector<64x64xf32>
    %224 = arith.truncf %223 : vector<64x64xf32> to vector<64x64xbf16>
    %cst_72 = arith.constant dense<0.000000e+00> : vector<64x32xf32>
    %225 = tpu.matmul %224, %211, %cst_72 {dimension_numbers = #tpu.dot_dimension_numbers<[1], [0], [0], [1], [0, 0, 1, 1], [], []>} : vector<64x64xbf16>, vector<64x32xbf16>, vector<64x32xf32> -> vector<64x32xf32>
    %226 = arith.truncf %225 : vector<64x32xf32> to vector<64x32xbf16>
    %227 = vector.extract_strided_slice %206 {offsets = [0, 0], sizes = [32, 128], strides = [1, 1]} : vector<128x128xbf16> to vector<32x128xbf16>
    %cst_73 = arith.constant dense<0.000000e+00> : vector<64x128xf32>
    %228 = tpu.matmul %226, %227, %cst_73 {dimension_numbers = #tpu.dot_dimension_numbers<[1], [0], [0], [1], [0, 0, 1, 1], [], []>} : vector<64x32xbf16>, vector<32x128xbf16>, vector<64x128xf32> -> vector<64x128xf32>
    %229 = arith.addf %208, %228 : vector<64x128xf32>
    %230 = vector.extract_strided_slice %204 {offsets = [0, 32], sizes = [64, 32], strides = [1, 1]} : vector<64x384xbf16> to vector<64x32xbf16>
    %231 = vector.extract_strided_slice %204 {offsets = [0, 160], sizes = [64, 32], strides = [1, 1]} : vector<64x384xbf16> to vector<64x32xbf16>
    %232 = vector.extract_strided_slice %204 {offsets = [0, 288], sizes = [64, 32], strides = [1, 1]} : vector<64x384xbf16> to vector<64x32xbf16>
    %cst_74 = arith.constant dense<0.000000e+00> : vector<64x64xf32>
    %233 = tpu.matmul %230, %231, %cst_74 {dimension_numbers = #tpu.dot_dimension_numbers<[1], [1], [0], [0], [0, 0, 1, 0], [], []>} : vector<64x32xbf16>, vector<64x32xbf16>, vector<64x64xf32> -> vector<64x64xf32>
    %234 = arith.addf %233, %7 : vector<64x64xf32>
    %cst_75 = arith.constant dense<0xFF800000> : vector<64xf32>
    %235 = vector.multi_reduction <maximumf>, %234, %cst_75 [1] : vector<64x64xf32> to vector<64xf32>
    %236 = vector.shape_cast %235 : vector<64xf32> to vector<64x1xf32>
    %237 = vector.broadcast %236 : vector<64x1xf32> to vector<64x64xf32>
    %238 = arith.subf %234, %237 : vector<64x64xf32>
    %239 = math.exp %238 : vector<64x64xf32>
    %cst_76 = arith.constant dense<0.000000e+00> : vector<64xf32>
    %240 = vector.multi_reduction <add>, %239, %cst_76 [1] : vector<64x64xf32> to vector<64xf32>
    %241 = vector.shape_cast %240 : vector<64xf32> to vector<64x1xf32>
    %242 = tpu.reciprocal %241 {approx = true} : vector<64x1xf32> -> vector<64x1xf32>
    %243 = vector.broadcast %242 : vector<64x1xf32> to vector<64x64xf32>
    %244 = arith.mulf %239, %243 : vector<64x64xf32>
    %245 = arith.truncf %244 : vector<64x64xf32> to vector<64x64xbf16>
    %cst_77 = arith.constant dense<0.000000e+00> : vector<64x32xf32>
    %246 = tpu.matmul %245, %232, %cst_77 {dimension_numbers = #tpu.dot_dimension_numbers<[1], [0], [0], [1], [0, 0, 1, 1], [], []>} : vector<64x64xbf16>, vector<64x32xbf16>, vector<64x32xf32> -> vector<64x32xf32>
    %247 = arith.truncf %246 : vector<64x32xf32> to vector<64x32xbf16>
    %248 = vector.extract_strided_slice %206 {offsets = [32, 0], sizes = [32, 128], strides = [1, 1]} : vector<128x128xbf16> to vector<32x128xbf16>
    %cst_78 = arith.constant dense<0.000000e+00> : vector<64x128xf32>
    %249 = tpu.matmul %247, %248, %cst_78 {dimension_numbers = #tpu.dot_dimension_numbers<[1], [0], [0], [1], [0, 0, 1, 1], [], []>} : vector<64x32xbf16>, vector<32x128xbf16>, vector<64x128xf32> -> vector<64x128xf32>
    %250 = arith.addf %229, %249 : vector<64x128xf32>
    %251 = vector.extract_strided_slice %204 {offsets = [0, 64], sizes = [64, 32], strides = [1, 1]} : vector<64x384xbf16> to vector<64x32xbf16>
    %252 = vector.extract_strided_slice %204 {offsets = [0, 192], sizes = [64, 32], strides = [1, 1]} : vector<64x384xbf16> to vector<64x32xbf16>
    %253 = vector.extract_strided_slice %204 {offsets = [0, 320], sizes = [64, 32], strides = [1, 1]} : vector<64x384xbf16> to vector<64x32xbf16>
    %cst_79 = arith.constant dense<0.000000e+00> : vector<64x64xf32>
    %254 = tpu.matmul %251, %252, %cst_79 {dimension_numbers = #tpu.dot_dimension_numbers<[1], [1], [0], [0], [0, 0, 1, 0], [], []>} : vector<64x32xbf16>, vector<64x32xbf16>, vector<64x64xf32> -> vector<64x64xf32>
    %255 = arith.addf %254, %7 : vector<64x64xf32>
    %cst_80 = arith.constant dense<0xFF800000> : vector<64xf32>
    %256 = vector.multi_reduction <maximumf>, %255, %cst_80 [1] : vector<64x64xf32> to vector<64xf32>
    %257 = vector.shape_cast %256 : vector<64xf32> to vector<64x1xf32>
    %258 = vector.broadcast %257 : vector<64x1xf32> to vector<64x64xf32>
    %259 = arith.subf %255, %258 : vector<64x64xf32>
    %260 = math.exp %259 : vector<64x64xf32>
    %cst_81 = arith.constant dense<0.000000e+00> : vector<64xf32>
    %261 = vector.multi_reduction <add>, %260, %cst_81 [1] : vector<64x64xf32> to vector<64xf32>
    %262 = vector.shape_cast %261 : vector<64xf32> to vector<64x1xf32>
    %263 = tpu.reciprocal %262 {approx = true} : vector<64x1xf32> -> vector<64x1xf32>
    %264 = vector.broadcast %263 : vector<64x1xf32> to vector<64x64xf32>
    %265 = arith.mulf %260, %264 : vector<64x64xf32>
    %266 = arith.truncf %265 : vector<64x64xf32> to vector<64x64xbf16>
    %cst_82 = arith.constant dense<0.000000e+00> : vector<64x32xf32>
    %267 = tpu.matmul %266, %253, %cst_82 {dimension_numbers = #tpu.dot_dimension_numbers<[1], [0], [0], [1], [0, 0, 1, 1], [], []>} : vector<64x64xbf16>, vector<64x32xbf16>, vector<64x32xf32> -> vector<64x32xf32>
    %268 = arith.truncf %267 : vector<64x32xf32> to vector<64x32xbf16>
    %269 = vector.extract_strided_slice %206 {offsets = [64, 0], sizes = [32, 128], strides = [1, 1]} : vector<128x128xbf16> to vector<32x128xbf16>
    %cst_83 = arith.constant dense<0.000000e+00> : vector<64x128xf32>
    %270 = tpu.matmul %268, %269, %cst_83 {dimension_numbers = #tpu.dot_dimension_numbers<[1], [0], [0], [1], [0, 0, 1, 1], [], []>} : vector<64x32xbf16>, vector<32x128xbf16>, vector<64x128xf32> -> vector<64x128xf32>
    %271 = arith.addf %250, %270 : vector<64x128xf32>
    %272 = vector.extract_strided_slice %204 {offsets = [0, 96], sizes = [64, 32], strides = [1, 1]} : vector<64x384xbf16> to vector<64x32xbf16>
    %273 = vector.extract_strided_slice %204 {offsets = [0, 224], sizes = [64, 32], strides = [1, 1]} : vector<64x384xbf16> to vector<64x32xbf16>
    %274 = vector.extract_strided_slice %204 {offsets = [0, 352], sizes = [64, 32], strides = [1, 1]} : vector<64x384xbf16> to vector<64x32xbf16>
    %cst_84 = arith.constant dense<0.000000e+00> : vector<64x64xf32>
    %275 = tpu.matmul %272, %273, %cst_84 {dimension_numbers = #tpu.dot_dimension_numbers<[1], [1], [0], [0], [0, 0, 1, 0], [], []>} : vector<64x32xbf16>, vector<64x32xbf16>, vector<64x64xf32> -> vector<64x64xf32>
    %276 = arith.addf %275, %7 : vector<64x64xf32>
    %cst_85 = arith.constant dense<0xFF800000> : vector<64xf32>
    %277 = vector.multi_reduction <maximumf>, %276, %cst_85 [1] : vector<64x64xf32> to vector<64xf32>
    %278 = vector.shape_cast %277 : vector<64xf32> to vector<64x1xf32>
    %279 = vector.broadcast %278 : vector<64x1xf32> to vector<64x64xf32>
    %280 = arith.subf %276, %279 : vector<64x64xf32>
    %281 = math.exp %280 : vector<64x64xf32>
    %cst_86 = arith.constant dense<0.000000e+00> : vector<64xf32>
    %282 = vector.multi_reduction <add>, %281, %cst_86 [1] : vector<64x64xf32> to vector<64xf32>
    %283 = vector.shape_cast %282 : vector<64xf32> to vector<64x1xf32>
    %284 = tpu.reciprocal %283 {approx = true} : vector<64x1xf32> -> vector<64x1xf32>
    %285 = vector.broadcast %284 : vector<64x1xf32> to vector<64x64xf32>
    %286 = arith.mulf %281, %285 : vector<64x64xf32>
    %287 = arith.truncf %286 : vector<64x64xf32> to vector<64x64xbf16>
    %cst_87 = arith.constant dense<0.000000e+00> : vector<64x32xf32>
    %288 = tpu.matmul %287, %274, %cst_87 {dimension_numbers = #tpu.dot_dimension_numbers<[1], [0], [0], [1], [0, 0, 1, 1], [], []>} : vector<64x64xbf16>, vector<64x32xbf16>, vector<64x32xf32> -> vector<64x32xf32>
    %289 = arith.truncf %288 : vector<64x32xf32> to vector<64x32xbf16>
    %290 = vector.extract_strided_slice %206 {offsets = [96, 0], sizes = [32, 128], strides = [1, 1]} : vector<128x128xbf16> to vector<32x128xbf16>
    %cst_88 = arith.constant dense<0.000000e+00> : vector<64x128xf32>
    %291 = tpu.matmul %289, %290, %cst_88 {dimension_numbers = #tpu.dot_dimension_numbers<[1], [0], [0], [1], [0, 0, 1, 1], [], []>} : vector<64x32xbf16>, vector<32x128xbf16>, vector<64x128xf32> -> vector<64x128xf32>
    %292 = arith.addf %271, %291 : vector<64x128xf32>
    %cst_89 = arith.constant dense<0.000000e+00> : vector<64xf32>
    %293 = vector.multi_reduction <add>, %292, %cst_89 [1] : vector<64x128xf32> to vector<64xf32>
    %294 = vector.shape_cast %293 : vector<64xf32> to vector<64x1xf32>
    %cst_90 = arith.constant 1.280000e+02 : f32
    %295 = vector.broadcast %cst_90 : f32 to vector<64x1xf32>
    %296 = arith.divf %294, %295 : vector<64x1xf32>
    %297 = vector.broadcast %296 : vector<64x1xf32> to vector<64x128xf32>
    %298 = arith.subf %292, %297 : vector<64x128xf32>
    %299 = arith.mulf %298, %298 : vector<64x128xf32>
    %cst_91 = arith.constant dense<0.000000e+00> : vector<64xf32>
    %300 = vector.multi_reduction <add>, %299, %cst_91 [1] : vector<64x128xf32> to vector<64xf32>
    %301 = vector.shape_cast %300 : vector<64xf32> to vector<64x1xf32>
    %cst_92 = arith.constant 1.280000e+02 : f32
    %302 = vector.broadcast %cst_92 : f32 to vector<64x1xf32>
    %303 = arith.divf %301, %302 : vector<64x1xf32>
    %304 = vector.broadcast %296 : vector<64x1xf32> to vector<64x128xf32>
    %305 = arith.subf %292, %304 : vector<64x128xf32>
    %cst_93 = arith.constant 9.99999974E-6 : f32
    %306 = vector.broadcast %cst_93 : f32 to vector<64x1xf32>
    %307 = arith.addf %303, %306 : vector<64x1xf32>
    %308 = math.rsqrt %307 : vector<64x1xf32>
    %309 = vector.broadcast %308 : vector<64x1xf32> to vector<64x128xf32>
    %310 = arith.mulf %305, %309 : vector<64x128xf32>
    %311 = vector.broadcast %174 : vector<1x128xf32> to vector<64x128xf32>
    %312 = arith.mulf %310, %311 : vector<64x128xf32>
    %313 = vector.broadcast %175 : vector<1x128xf32> to vector<64x128xf32>
    %314 = arith.addf %312, %313 : vector<64x128xf32>
    %315 = arith.truncf %314 : vector<64x128xf32> to vector<64x128xbf16>
    %c1_94 = arith.constant 1 : index
    %c0_95 = arith.constant 0 : index
    %c0_96 = arith.constant 0 : index
    %316 = vector.load %arg4[%c1_94, %c0_95, %c0_96] : memref<2x128x512xbf16, #tpu.memory_space<vmem>>, vector<1x128x512xbf16>
    %317 = vector.shape_cast %316 : vector<1x128x512xbf16> to vector<128x512xbf16>
    %cst_97 = arith.constant dense<0.000000e+00> : vector<64x512xf32>
    %318 = tpu.matmul %315, %317, %cst_97 {dimension_numbers = #tpu.dot_dimension_numbers<[1], [0], [0], [1], [0, 0, 1, 1], [], []>} : vector<64x128xbf16>, vector<128x512xbf16>, vector<64x512xf32> -> vector<64x512xf32>
    %c1_98 = arith.constant 1 : index
    %c0_99 = arith.constant 0 : index
    %c0_100 = arith.constant 0 : index
    %319 = vector.load %arg7[%c1_98, %c0_99, %c0_100] : memref<2x1x512xf32, #tpu.memory_space<vmem>>, vector<1x1x512xf32>
    %320 = vector.shape_cast %319 : vector<1x1x512xf32> to vector<1x512xf32>
    %321 = vector.broadcast %320 : vector<1x512xf32> to vector<64x512xf32>
    %322 = arith.addf %318, %321 : vector<64x512xf32>
    %cst_101 = arith.constant 0.000000e+00 : f32
    %323 = vector.broadcast %cst_101 : f32 to vector<64x512xf32>
    %324 = arith.maximumf %322, %323 : vector<64x512xf32>
    %325 = arith.truncf %324 : vector<64x512xf32> to vector<64x512xbf16>
    %c1_102 = arith.constant 1 : index
    %c0_103 = arith.constant 0 : index
    %c0_104 = arith.constant 0 : index
    %326 = vector.load %arg5[%c1_102, %c0_103, %c0_104] : memref<2x512x128xbf16, #tpu.memory_space<vmem>>, vector<1x512x128xbf16>
    %327 = vector.shape_cast %326 : vector<1x512x128xbf16> to vector<512x128xbf16>
    %cst_105 = arith.constant dense<0.000000e+00> : vector<64x128xf32>
    %328 = tpu.matmul %325, %327, %cst_105 {dimension_numbers = #tpu.dot_dimension_numbers<[1], [0], [0], [1], [0, 0, 1, 1], [], []>} : vector<64x512xbf16>, vector<512x128xbf16>, vector<64x128xf32> -> vector<64x128xf32>
    %329 = vector.broadcast %177 : vector<1x128xf32> to vector<64x128xf32>
    %330 = arith.addf %328, %329 : vector<64x128xf32>
    %331 = arith.addf %292, %330 : vector<64x128xf32>
    %c0_106 = arith.constant 0 : index
    %c0_107 = arith.constant 0 : index
    %332 = vector.load %arg8[%c0_106, %c0_107] : memref<8x128xf32, #tpu.memory_space<vmem>>, vector<8x128xf32>
    %333 = vector.extract_strided_slice %332 {offsets = [0, 0], sizes = [1, 128], strides = [1, 1]} : vector<8x128xf32> to vector<1x128xf32>
    %334 = vector.extract_strided_slice %332 {offsets = [1, 0], sizes = [1, 128], strides = [1, 1]} : vector<8x128xf32> to vector<1x128xf32>
    %cst_108 = arith.constant dense<0.000000e+00> : vector<64xf32>
    %335 = vector.multi_reduction <add>, %331, %cst_108 [1] : vector<64x128xf32> to vector<64xf32>
    %336 = vector.shape_cast %335 : vector<64xf32> to vector<64x1xf32>
    %cst_109 = arith.constant 1.280000e+02 : f32
    %337 = vector.broadcast %cst_109 : f32 to vector<64x1xf32>
    %338 = arith.divf %336, %337 : vector<64x1xf32>
    %339 = vector.broadcast %338 : vector<64x1xf32> to vector<64x128xf32>
    %340 = arith.subf %331, %339 : vector<64x128xf32>
    %341 = arith.mulf %340, %340 : vector<64x128xf32>
    %cst_110 = arith.constant dense<0.000000e+00> : vector<64xf32>
    %342 = vector.multi_reduction <add>, %341, %cst_110 [1] : vector<64x128xf32> to vector<64xf32>
    %343 = vector.shape_cast %342 : vector<64xf32> to vector<64x1xf32>
    %cst_111 = arith.constant 1.280000e+02 : f32
    %344 = vector.broadcast %cst_111 : f32 to vector<64x1xf32>
    %345 = arith.divf %343, %344 : vector<64x1xf32>
    %346 = vector.broadcast %338 : vector<64x1xf32> to vector<64x128xf32>
    %347 = arith.subf %331, %346 : vector<64x128xf32>
    %cst_112 = arith.constant 9.99999974E-6 : f32
    %348 = vector.broadcast %cst_112 : f32 to vector<64x1xf32>
    %349 = arith.addf %345, %348 : vector<64x1xf32>
    %350 = math.rsqrt %349 : vector<64x1xf32>
    %351 = vector.broadcast %350 : vector<64x1xf32> to vector<64x128xf32>
    %352 = arith.mulf %347, %351 : vector<64x128xf32>
    %353 = vector.broadcast %333 : vector<1x128xf32> to vector<64x128xf32>
    %354 = arith.mulf %352, %353 : vector<64x128xf32>
    %355 = vector.broadcast %334 : vector<1x128xf32> to vector<64x128xf32>
    %356 = arith.addf %354, %355 : vector<64x128xf32>
    %357 = arith.truncf %356 : vector<64x128xf32> to vector<64x128xbf16>
    %c0_113 = arith.constant 0 : index
    %c0_114 = arith.constant 0 : index
    %358 = vector.load %arg9[%c0_113, %c0_114] : memref<128x128xbf16, #tpu.memory_space<vmem>>, vector<128x128xbf16>
    %cst_115 = arith.constant dense<0.000000e+00> : vector<64x128xf32>
    %359 = tpu.matmul %357, %358, %cst_115 {dimension_numbers = #tpu.dot_dimension_numbers<[1], [0], [0], [1], [0, 0, 1, 1], [], []>} : vector<64x128xbf16>, vector<128x128xbf16>, vector<64x128xf32> -> vector<64x128xf32>
    %c0_116 = arith.constant 0 : index
    %c0_117 = arith.constant 0 : index
    %360 = vector.load %arg10[%c0_116, %c0_117] : memref<1x128xf32, #tpu.memory_space<vmem>>, vector<1x128xf32>
    %361 = vector.broadcast %360 : vector<1x128xf32> to vector<64x128xf32>
    %362 = arith.addf %359, %361 : vector<64x128xf32>
    %c0_118 = arith.constant 0 : index
    %c0_119 = arith.constant 0 : index
    %c0_120 = arith.constant 0 : index
    %363 = vector.load %arg11[%c0_118, %c0_119, %c0_120] : memref<1x64x128xf32, #tpu.memory_space<vmem>>, vector<1x64x128xf32>
    %364 = vector.shape_cast %363 : vector<1x64x128xf32> to vector<64x128xf32>
    %365 = vector.shape_cast %362 : vector<64x128xf32> to vector<1x64x128xf32>
    tpu.vector_store %arg11[%c0_118, %c0_119, %c0_120], %365 {strides = array<i32>} : memref<1x64x128xf32, #tpu.memory_space<vmem>>, vector<1x64x128xf32>,
    return
  }
  func.func @transform_0(%arg0: i32) -> (i32, i32, i32) {
    %c0_i32 = arith.constant 0 : i32
    %c0_i32_0 = arith.constant 0 : i32
    %c0_i32_1 = arith.constant 0 : i32
    return %arg0, %c0_i32, %c0_i32_0 : i32, i32, i32
  }
  func.func @transform_1(%arg0: i32) -> (i32, i32, i32) {
    %c0_i32 = arith.constant 0 : i32
    %c0_i32_0 = arith.constant 0 : i32
    %c0_i32_1 = arith.constant 0 : i32
    %c0_i32_2 = arith.constant 0 : i32
    return %c0_i32, %c0_i32_0, %c0_i32_1 : i32, i32, i32
  }
  func.func @transform_2(%arg0: i32) -> (i32, i32, i32) {
    %c0_i32 = arith.constant 0 : i32
    %c0_i32_0 = arith.constant 0 : i32
    %c0_i32_1 = arith.constant 0 : i32
    %c0_i32_2 = arith.constant 0 : i32
    return %c0_i32, %c0_i32_0, %c0_i32_1 : i32, i32, i32
  }
  func.func @transform_3(%arg0: i32) -> (i32, i32, i32) {
    %c0_i32 = arith.constant 0 : i32
    %c0_i32_0 = arith.constant 0 : i32
    %c0_i32_1 = arith.constant 0 : i32
    %c0_i32_2 = arith.constant 0 : i32
    return %c0_i32, %c0_i32_0, %c0_i32_1 : i32, i32, i32
  }
  func.func @transform_4(%arg0: i32) -> (i32, i32, i32) {
    %c0_i32 = arith.constant 0 : i32
    %c0_i32_0 = arith.constant 0 : i32
    %c0_i32_1 = arith.constant 0 : i32
    %c0_i32_2 = arith.constant 0 : i32
    return %c0_i32, %c0_i32_0, %c0_i32_1 : i32, i32, i32
  }
  func.func @transform_5(%arg0: i32) -> (i32, i32, i32) {
    %c0_i32 = arith.constant 0 : i32
    %c0_i32_0 = arith.constant 0 : i32
    %c0_i32_1 = arith.constant 0 : i32
    %c0_i32_2 = arith.constant 0 : i32
    return %c0_i32, %c0_i32_0, %c0_i32_1 : i32, i32, i32
  }
  func.func @transform_6(%arg0: i32) -> (i32, i32, i32) {
    %c0_i32 = arith.constant 0 : i32
    %c0_i32_0 = arith.constant 0 : i32
    %c0_i32_1 = arith.constant 0 : i32
    %c0_i32_2 = arith.constant 0 : i32
    return %c0_i32, %c0_i32_0, %c0_i32_1 : i32, i32, i32
  }
  func.func @transform_7(%arg0: i32) -> (i32, i32) {
    %c0_i32 = arith.constant 0 : i32
    %c0_i32_0 = arith.constant 0 : i32
    %c0_i32_1 = arith.constant 0 : i32
    return %c0_i32, %c0_i32_0 : i32, i32
  }
  func.func @transform_8(%arg0: i32) -> (i32, i32) {
    %c0_i32 = arith.constant 0 : i32
    %c0_i32_0 = arith.constant 0 : i32
    %c0_i32_1 = arith.constant 0 : i32
    return %c0_i32, %c0_i32_0 : i32, i32
  }
  func.func @transform_9(%arg0: i32) -> (i32, i32) {
    %c0_i32 = arith.constant 0 : i32
    %c0_i32_0 = arith.constant 0 : i32
    %c0_i32_1 = arith.constant 0 : i32
    return %c0_i32, %c0_i32_0 : i32, i32
  }
  func.func @transform_10(%arg0: i32) -> (i32, i32, i32) {
    %c0_i32 = arith.constant 0 : i32
    %c0_i32_0 = arith.constant 0 : i32
    %c0_i32_1 = arith.constant 0 : i32
    return %arg0, %c0_i32, %c0_i32_0 : i32, i32, i32
  }
}

</mosaic_0001>

<bundles_post_ra>
// kernel: _lambda_.1
= control target key start
LH: loop header
LB: loop body
LE: loop exit
PB: predicated region body
PF: predicated region fallthrough
CT: control target
= control target key end

     0   :  { %s10810_s0 = inlined_call_operand.vmem [shape: f32[2,64,128], index: 0, kind: input, shape index: {}]   ;;  %s10811_s1 = inlined_call_operand.vmem [shape: bf16[2,128,384], index: 1, kind: input, shape index: {}]   ;;  %s10812_s2 = inlined_call_operand.hbm [shape: bf16[2,128,128], index: 2, kind: input, shape index: {}]   ;;  %s10813_s3 = inlined_call_operand.vmem [shape: bf16[2,128,512], index: 3, kind: input, shape index: {}]   ;;  %s10814_s4 = inlined_call_operand.vmem [shape: bf16[2,512,128], index: 4, kind: input, shape index: {}]   ;;  %s10815_s5 = inlined_call_operand.vmem [shape: f32[2,8,128], index: 5, kind: input, shape index: {}]   ;;  %s10816_s6 = inlined_call_operand.hbm [shape: f32[2,1,512], index: 6, kind: input, shape index: {}]   ;;  %s10817_s7 = inlined_call_operand.hbm [shape: f32[8,128], index: 7, kind: input, shape index: {}]   ;;  %s10818_s8 = inlined_call_operand.hbm [shape: bf16[128,128], index: 8, kind: input, shape index: {}]   ;;  %s10819_s9 = inlined_call_operand.vmem [shape: f32[1,128], index: 9, kind: input, shape index: {}]   ;;  %s10820_s10 = inlined_call_operand.hbm [shape: f32[2,64,128], index: 10, kind: output, shape index: {}]  }
   0x1   :  { %10825 = sst [smem:[#allocation19_spill]] %s10812_s2 }
   0x2   :  { %10826 = sst [smem:[#allocation20_spill]] %s10816_s6 }
   0x3   :  { %15 = vsyncpa [#allocation3], 0 }
   0x4   :  { %16 = vsyncpa [#allocation6], 0 }
   0x5   :  { %17 = vsyncpa [#allocation9], 0 }
   0x6   :  { %18 = vsyncpa [#allocation4], 0 }
   0x7   :  { %20 = vsyncpa [#allocation4 + $0x1], 0  ;;  %s7934_s13 = smov 0   ;;  %s7936_s14 = smov 0  }
   0x8   :  { %s7938_s15 = smov 0   ;;  %s7940_s16 = smov 0  }
   0x9 LB: > { %10827 = sst [smem:[#allocation15_spill]] %s7860_s15  ;;  %s7955_s17 = sadd.s32 4294967295, %s7864_s16   ;;  %s7864_s16 = sphi %s7940_s16, %s10842_s16   ;;  %s7860_s15 = sphi %s7938_s15, %s10844_s15   ;;  %s7856_s14 = sphi %s7936_s14, %s10846_s14   ;;  %s7852_s13 = sphi %s7934_s13, %s10845_s13  }
   0xa   : > { %s5969_s18 = sadd.s32 4294967294, %s7864_s16   ;;  %s7959_s19 = sadd.s32 1, %s7864_s16  }
   0xb   : > { %10828 = sst [smem:[#allocation16_spill]] %s7959_s19  ;;  %s248_s20 = sadd.s32 1, %s7860_s15 }
   0xc   : > { %s245_s21 = ssub.s32 %s7864_s16, %s7959_s19  ;;  %p258_p0 = scmp.ne.s32.totalorder %s7860_s15, %s7856_s14 }
   0xd   : > { %p246_p1 = scmp.eq.s32.totalorder %s245_s21, 0  ;;  %p259_p2 = scmp.eq.s32.totalorder %s7955_s17, 1 }
   0xe   : > { %p264_p3 = scmp.ne.s32.totalorder %s7856_s14, %s7852_s13  ;;  %p265_p4 = scmp.eq.s32.totalorder %s5969_s18, 1 }
   0xf   : > { %s7970_s22 = scalar_select %p246_p1, %s7860_s15, %s248_s20  }
  0x10   : > { %p7972_p5 = por %p259_p2, %p258_p0  ;;  %p7976_p6 = por %p265_p4, %p264_p3 }
  0x11   : > { %10829 = sst [smem:[#allocation17_spill]] %s7970_s22  ;;  %p5970_p7 = scmp.ge.s32.totalorder %s7864_s16, 1 }
  0x12   : > { %s10831_s24 = scalar_select %p7976_p6, 1, 0 }
  0x13   : > { %p272_p8 = scmp.lt.s32.totalorder %s7864_s16, 3  ;;  %p7265_p9 = scmp.eq.s32.totalorder %s7955_s17, 0 }
  0x14   : > { %10832 = sst [smem:[#allocation18_spill]] %s10831_s24  ;;  %s7866_s18 = smov [#allocation5]  }
  0x15   : > { %p7983_p10 = pnand %p5970_p7, %p272_p8  ;;  %s10834_s6 = sld [smem:[#allocation20_spill]] }
  0x16   : > { %s10835_s2 = sld [smem:[#allocation19_spill]]  ;;  %s311_s20 = sshll.u32 %s7866_s18, 4  ;;  %s312_s20 = int_to_ptr.vmem [resolvable:$true] %s311_s20 }
  0x17   : > { %p7248_p11 = pneg %p7983_p10  ;;  %s7867_s21 = smov 64  }
  0x18   : > { %s7868_s26 = smov 4   ;;  %s7869_s27 = smov [#allocation2]  }
  0x19   : > { %p7997_p12 = pnand %p7265_p9, %p7248_p11  ;;  %s288_s29 = sshll.u32 %s7869_s27, 4  ;;  %s289_s29 = int_to_ptr.vmem [resolvable:$true] %s288_s29 }
  0x1a   : > { %s335_s15 = sshll.u32 %s10818_s8, 4  ;;  %s7870_s19 = smov [#allocation7]   ;;  %s336_s15 = int_to_ptr.hbm [resolvable:$true] %s335_s15 }
  0x1b   : > { %s309_s28 = sshll.u32 %s10834_s6, 4  ;;  %s324_s6 = sshll.u32 %s10817_s7, 4  ;;  %s310_s28 = int_to_ptr.hbm [resolvable:$true] %s309_s28  ;;  %s325_s6 = int_to_ptr.hbm [resolvable:$true] %s324_s6 }
  0x1c   : > { %s286_s11 = sshll.u32 %s10835_s2, 4  ;;  %s326_s24 = sshll.u32 %s7870_s19, 4  ;;  %s287_s11 = int_to_ptr.hbm [resolvable:$true] %s286_s11  ;;  %s327_s24 = int_to_ptr.vmem [resolvable:$true] %s326_s24 }
  0x1d   : > { %7254 = dma.hbm_to_vmem [thread:$0]  (!%p7997_p12), %s310_s28, 128, %s312_s20, [#allocation6], %s7867_s21, %s7867_s21, %s7868_s26  }
  0x1e   : > { %7251 = dma.hbm_to_vmem [thread:$0]  (!%p7997_p12), %s287_s11, 2048, %s289_s29, [#allocation3], %s7867_s21, %s7867_s21, %s7868_s26  }
  0x1f   : > { %7257 = dma.hbm_to_vmem [thread:$0]  (!%p7997_p12), %s325_s6, 128, %s327_s24, [#allocation6]  }
  0x20   : > { %s7871_s28 = smov [#allocation8]   ;;  %364 = sbr.rel (%p7983_p10) target bundleno = 5774 (0x168e), region = 60 }
  0x21   : > { %s337_s20 = sshll.u32 %s7871_s28, 4  ;;  %s338_s20 = int_to_ptr.vmem [resolvable:$true] %s337_s20 }
  0x22   : > { %7260 = dma.hbm_to_vmem [thread:$0]  (!%p7997_p12), %s336_s15, 1024, %s338_s20, [#allocation9], %s7867_s21, %s7867_s21, %s7868_s26  }
  0x25   : > { %7835 = dma.done.wait (%p7265_p9), [#allocation3], 2048  }
  0x26   : > { %7837 = vsyncadd (%p7265_p9), [#allocation3], 4294965248 }
  0x27   : > { %7839 = dma.done.wait (%p7265_p9), [#allocation6], 256  }
  0x28   : > { %7841 = vsyncadd (%p7265_p9), [#allocation6], 4294967040 }
  0x29   : > { %7843 = dma.done.wait (%p7265_p9), [#allocation9], 1024  }
  0x2a   : > { %7845 = vsyncadd (%p7265_p9), [#allocation9], 4294966272  ;;  %p418_p13 = scmp.lt.s32.totalorder %s7955_s17, 1  ;;  %v7872_v7 = vmov 128.0   ;;  %v6070_v43 = vld [vmem:[%s10811_s1 + $0xa8] sm:$0xf] }
  0x2b   : > { %7320 = vrcp.f32 %v7872_v7  ;;  %v7037_v44 = vld [vmem:[%s10811_s1 + $0xb0] sm:$0xf0]  ;;  %v6078_v45 = vld [vmem:[%s10811_s1 + $0xb0] sm:$0xf]  ;;  %v7038_v47 = vld [vmem:[%s10811_s1 + $0xb8] sm:$0xf0] }
  0x2c   : > { %s419_s2 = scalar_select %p418_p13, %s7955_s17, 1  ;;  %v6071_v46 = vor.u32 %v7037_v44, %v6070_v43  ;;  %v6079_v48 = vor.u32 %v7038_v47, %v6078_v45  ;;  %v6058_v49 = vld [vmem:[%s10811_s1 + $0x90] sm:$0xf]  ;;  %v7034_v50 = vld [vmem:[%s10811_s1 + $0x98] sm:$0xf0] }
  0x2d   : > { %v6066_v51 = vld [vmem:[%s10811_s1 + $0x98] sm:$0xf]  ;;  %v6059_v52 = vor.u32 %v7034_v50, %v6058_v49  ;;  %v7035_v53 = vld [vmem:[%s10811_s1 + $0xa0] sm:$0xf0]  ;;  %v7036_v57 = vld [vmem:[%s10811_s1 + $0xac] sm:$0xf] }
  0x2e   : > { %s7014_s6 = sshll.u32 %s419_s2, 6  ;;  %809 = vmatpush.bf16.msra.mxu0 %v6071_v46  ;;  %867 = vmatpush.bf16.msra.mxu2 %v6079_v48  ;;  %v6067_v54 = vor.u32 %v7035_v53, %v6066_v51  ;;  %v6046_v55 = vld [vmem:[%s10811_s1 + $0x78] sm:$0xf]  ;;  %v7031_v56 = vld [vmem:[%s10811_s1 + $0x80] sm:$0xf0]  ;;  %s7873_s11 = smov 96  }
  0x2f   : > { %s8034_s22 = scalar_lea.vmem %s10810_s0, %s7014_s6  ;;  %v6047_v58 = vor.u32 %v7031_v56, %v6046_v55  ;;  %v6072_v59 = vld [vmem:[%s10811_s1 + $0xb4] sm:$0xf0]  ;;  %v6054_v60 = vld [vmem:[%s10811_s1 + $0x80] sm:$0xf]  ;;  %v7032_v61 = vld [vmem:[%s10811_s1 + $0x88] sm:$0xf0] }
  0x30   : > { %v428_v0 = vld [vmem:[%s8034_s22 + $0x20] sm:$0xff]  ;;  %v426_v1 = vld [vmem:[%s8034_s22 + $0x10] sm:$0xff]  ;;  %v429_v3 = vld [vmem:[%s8034_s22 + $0x28] sm:$0xff]  ;;  %v8126_v62 = vor.u32 %v7036_v57, %v6072_v59  ;;  %v6055_v63 = vor.u32 %v7032_v61, %v6054_v60  ;;  %s7875_s12 = smov 64   ;;  %s7876_s21 = smov 32  }
  0x31   : > { %v424_v2 = vld [vmem:[%s8034_s22] sm:$0xff]  ;;  %468 = vadd.xlane.f32.xlu2 %v428_v0  ;;  %464 = vadd.xlane.f32.xlu1 %v426_v1  ;;  %v427_v4 = vld [vmem:[%s8034_s22 + $0x18] sm:$0xff]  ;;  %v425_v5 = vld [vmem:[%s8034_s22 + $0x8] sm:$0xff]  ;;  %v7321_v8 = vpop.eup %7320  ;;  %s415_s28 = sand.u32 1, %s7856_s14   ;;  %s7215_s19 = sshll.u32 %s7955_s17, 6 }
  0x32   : > { %460 = vadd.xlane.f32.xlu0 %v424_v2  ;;  %v430_v6 = vld [vmem:[%s8034_s22 + $0x30] sm:$0xff]  ;;  %v477_v9 = vmul.f32 128.0, %v7321_v8  ;;  %vm481_vm0 = vweird.f32 %v7321_v8  ;;  %v8061_v30 = vld [vmem:[%s8034_s22 + $0x38] sm:$0xff]  ;;  %810 = vmatpush.bf16.msra.mxu0 %v6059_v52  ;;  %v5986_v47 = vld [vmem:[%s10811_s1] sm:$0xf]  ;;  %s5981_s20 = sshll.u32 %s415_s28, 6 }
  0x33   : > { %868 = vmatpush.bf16.msra.mxu2 %v6067_v54  ;;  %7216 = vmatpush.bf16.msra.mxu1 %v8126_v62  ;;  %v7016_v48 = vld [vmem:[%s10811_s1 + $0x8] sm:$0xf0]  ;;  %v7021_v49 = vld [vmem:[%s10811_s1 + $0x34] sm:$0xf]  ;;  %v6012_v52 = vld [vmem:[%s10811_s1 + $0x3c] sm:$0xf0] }
  0x34   : > { %v478_v10 = vsub.f32 1.0, %v477_v9  ;;  %v6022_v9 = vld [vmem:[%s10811_s1 + $0x48] sm:$0xf]  ;;  %v5987_v51 = vor.u32 %v7016_v48, %v5986_v47  ;;  %v8229_v54 = vor.u32 %v7021_v49, %v6012_v52  ;;  %v7017_v55 = vld [vmem:[%s10811_s1 + $0x10] sm:$0xf0]  ;;  %s417_s15 = scalar_lea.vmem [#allocation10], %s5981_s20 }
  0x35   : > { %v5994_v53 = vld [vmem:[%s10811_s1 + $0x8] sm:$0xf]  ;;  %v7018_v57 = vld [vmem:[%s10811_s1 + $0x1c] sm:$0xf]  ;;  %s5851_s26 = scalar_lea.sflag [#allocation4], %s415_s28  ;;  %s7810_s30 = scalar_lea.hbm %s10820_s10, 128 }
  0x36   : > { %v479_v11 = vmul.f32 %v7321_v8, %v478_v10  ;;  %811 = vmatpush.bf16.msra.mxu0 %v6047_v58  ;;  %v7025_v10 = vld [vmem:[%s10811_s1 + $0x50] sm:$0xf0]  ;;  %v5995_v56 = vor.u32 %v7017_v55, %v5994_v53  ;;  %v6000_v58 = vld [vmem:[%s10811_s1 + $0x24] sm:$0xf0] }
  0x37   : > { %869 = vmatpush.bf16.msra.mxu2 %v6055_v63  ;;  %v8242_v60 = vor.u32 %v7018_v57, %v6000_v58 }
  0x38   : > { %v480_v12 = vadd.f32 %v7321_v8, %v479_v11  ;;  %v7030_v11 = vld [vmem:[%s10811_s1 + $0x7c] sm:$0xf] }
  0x39   : > { %470 = vadd.xlane.f32.xlu2 %v429_v3  ;;  %466 = vadd.xlane.f32.xlu1 %v427_v4 }
  0x3a   : > { %462 = vadd.xlane.f32.xlu0 %v425_v5  ;;  %v8043_v13 = vsel %vm481_vm0, %v7321_v8, %v480_v12  ;;  %v6023_v12 = vor.u32 %v7025_v10, %v6022_v9 }
  0x41   : > { %472 = vadd.xlane.f32.xlu2 %v430_v6 }
  0xa4   : > { %v469_v14 = vpop.xlane.xlu2 %468  ;;  %v465_v15 = vpop.xlane.xlu1 %464 }
  0xa5   : > { %v461_v16 = vpop.xlane.xlu0 %460  ;;  %v487_v26 = vmul.f32 %v8043_v13, %v469_v14  ;;  %v485_v27 = vmul.f32 %v8043_v13, %v465_v15  ;;  %v6048_v14 = vld [vmem:[%s10811_s1 + $0x84] sm:$0xf0]  ;;  %v6030_v15 = vld [vmem:[%s10811_s1 + $0x50] sm:$0xf] }
  0xa6   : > { %v483_v17 = vmul.f32 %v8043_v13, %v461_v16  ;;  %v7026_v16 = vld [vmem:[%s10811_s1 + $0x58] sm:$0xf0] }
  0xa7   : > { %v8066_v33 = vsub.f32 %v428_v0, %v487_v26  ;;  %v8068_v34 = vsub.f32 %v426_v1, %v485_v27  ;;  %v6034_v0 = vld [vmem:[%s10811_s1 + $0x60] sm:$0xf]  ;;  %v7028_v1 = vld [vmem:[%s10811_s1 + $0x68] sm:$0xf0]  ;;  %v6018_v26 = vld [vmem:[%s10811_s1 + $0x38] sm:$0xf] }
  0xa8   : > { %v8046_v18 = vsub.f32 %v424_v2, %v483_v17  ;;  %v7033_v2 = vld [vmem:[%s10811_s1 + $0x94] sm:$0xf]  ;;  %v8168_v17 = vor.u32 %v7030_v11, %v6048_v14  ;;  %v7023_v27 = vld [vmem:[%s10811_s1 + $0x40] sm:$0xf0] }
  0xa9   : > { %v503_v38 = vmul.f32 %v8066_v33, %v8066_v33  ;;  %v501_v39 = vmul.f32 %v8068_v34, %v8068_v34 }
  0xaa   : > { %v499_v19 = vmul.f32 %v8046_v18, %v8046_v18 }
  0xac   : > { %507 = vadd.xlane.f32.xlu0 %v499_v19  ;;  %v471_v20 = vpop.xlane.xlu2 %470  ;;  %v467_v21 = vpop.xlane.xlu1 %466  ;;  %v6031_v19 = vor.u32 %v7026_v16, %v6030_v15 }
  0xad   : > { %v486_v22 = vmul.f32 %v8043_v13, %v467_v21  ;;  %v463_v23 = vpop.xlane.xlu0 %462  ;;  %v488_v37 = vmul.f32 %v8043_v13, %v471_v20  ;;  %v6010_v20 = vld [vmem:[%s10811_s1 + $0x30] sm:$0xf]  ;;  %v7022_v21 = vld [vmem:[%s10811_s1 + $0x38] sm:$0xf0] }
  0xae   : > { %v484_v24 = vmul.f32 %v8043_v13, %v463_v23  ;;  %v6011_v23 = vor.u32 %v7022_v21, %v6010_v20 }
  0xaf   : > { %v8052_v25 = vsub.f32 %v427_v4, %v486_v22  ;;  %v8080_v41 = vsub.f32 %v429_v3, %v488_v37  ;;  %v6035_v3 = vor.u32 %v7028_v1, %v6034_v0  ;;  %v6060_v4 = vld [vmem:[%s10811_s1 + $0x9c] sm:$0xf0]  ;;  %v7027_v22 = vld [vmem:[%s10811_s1 + $0x64] sm:$0xf]  ;;  %v7024_v37 = vld [vmem:[%s10811_s1 + $0x4c] sm:$0xf] }
  0xb0   : > { %v8056_v28 = vsub.f32 %v425_v5, %v484_v24  ;;  %v6042_v5 = vld [vmem:[%s10811_s1 + $0x68] sm:$0xf]  ;;  %v8147_v7 = vor.u32 %v7033_v2, %v6060_v4  ;;  %v6036_v24 = vld [vmem:[%s10811_s1 + $0x6c] sm:$0xf0]  ;;  %v7015_v4 = vld [vmem:[%s10811_s1 + $0x4] sm:$0xf] }
  0xb1   : > { %v502_v29 = vmul.f32 %v8052_v25, %v8052_v25  ;;  %v504_v42 = vmul.f32 %v8080_v41, %v8080_v41  ;;  %812 = vmatpush.bf16.msra.mxu0 %v6035_v3 }
  0xb2   : > { %v500_v31 = vmul.f32 %v8056_v28, %v8056_v28  ;;  %7217 = vmatpush.bf16.msra.mxu1 %v8147_v7 }
  0xb3   : > { %513 = vadd.xlane.f32.xlu2 %v502_v29  ;;  %v8189_v29 = vor.u32 %v7027_v22, %v6036_v24 }
  0xb4   : > { %474 = vadd.xlane.f32.xlu0 %v8061_v30  ;;  %509 = vadd.xlane.f32.xlu1 %v500_v31  ;;  %v473_v32 = vpop.xlane.xlu2 %472  ;;  %v6019_v31 = vor.u32 %v7023_v27, %v6018_v26 }
  0xb5   : > { %v489_v35 = vmul.f32 %v8043_v13, %v473_v32  ;;  %813 = vmatpush.bf16.msra.mxu0 %v6023_v12  ;;  %v5998_v32 = vld [vmem:[%s10811_s1 + $0x18] sm:$0xf] }
  0xb6   : > { %7218 = vmatpush.bf16.msra.mxu1 %v8168_v17 }
  0xb7   : > { %v8071_v36 = vsub.f32 %v430_v6, %v489_v35  ;;  %v7029_v6 = vld [vmem:[%s10811_s1 + $0x70] sm:$0xf0]  ;;  %v7019_v35 = vld [vmem:[%s10811_s1 + $0x20] sm:$0xf0] }
  0xb8   : > { %v6043_v8 = vor.u32 %v7029_v6, %v6042_v5 }
  0xb9   : > { %v505_v40 = vmul.f32 %v8071_v36, %v8071_v36  ;;  %814 = vmatpush.bf16.msra.mxu0 %v6011_v23 }
  0xba   : > { %870 = vmatpush.bf16.msra.mxu2 %v6043_v8  ;;  %7219 = vmatpush.bf16.msra.mxu1 %v8189_v29 }
  0xbb   : > { %519 = vadd.xlane.f32.xlu2 %v505_v40  ;;  %v6006_v40 = vld [vmem:[%s10811_s1 + $0x20] sm:$0xf] }
  0xbc   : > { %515 = vadd.xlane.f32.xlu0 %v503_v38  ;;  %511 = vadd.xlane.f32.xlu1 %v501_v39  ;;  %v5999_v38 = vor.u32 %v7019_v35, %v5998_v32  ;;  %v6024_v39 = vld [vmem:[%s10811_s1 + $0x54] sm:$0xf0] }
  0xbd   : > { %v8210_v44 = vor.u32 %v7024_v37, %v6024_v39  ;;  %v459_v39 = vld [vmem:[%s10815_s5] sm:$0xff] }
  0xbe   : > { %871 = vmatpush.bf16.msra.mxu2 %v6031_v19  ;;  %815 = vmatpush.bf16.msra.mxu0 %v5999_v38  ;;  %v8283_v47 = vperm.slane %v459_v39, 0  ;;  %v8293_v57 = vperm.slane %v459_v39, 1 }
  0xbf   : > { %7220 = vmatpush.bf16.msra.mxu1 %v8210_v44 }
  0xc2   : > { %872 = vmatpush.bf16.msra.mxu2 %v6019_v31  ;;  %816 = vmatpush.bf16.msra.mxu0 %v5987_v51 }
  0xc3   : > { %7221 = vmatpush.bf16.msra.mxu1 %v8229_v54 }
  0xc4   : > { %517 = vadd.xlane.f32.xlu1 %v504_v42  ;;  %v7020_v42 = vld [vmem:[%s10811_s1 + $0x28] sm:$0xf0] }
  0xc5   : > { %v6007_v45 = vor.u32 %v7020_v42, %v6006_v40 }
  0xc6   : > { %838 = vmatpush.bf16.msrb.mxu0 %v8126_v62  ;;  %v5988_v62 = vld [vmem:[%s10811_s1 + $0xc] sm:$0xf0] }
  0xc7   : > { %873 = vmatpush.bf16.msra.mxu2 %v6007_v45  ;;  %7222 = vmatpush.bf16.msra.mxu1 %v8242_v60  ;;  %v8258_v9 = vor.u32 %v7015_v4, %v5988_v62 }
  0xca   : > { %839 = vmatpush.bf16.msrb.mxu0 %v8147_v7 }
  0xcb   : > { %874 = vmatpush.bf16.msra.mxu2 %v5995_v56  ;;  %7223 = vmatpush.bf16.msra.mxu1 %v8258_v9 }
  0xce   : > { %840 = vmatpush.bf16.msrb.mxu0 %v8168_v17 }
  0xd2   : > { %841 = vmatpush.bf16.msrb.mxu0 %v8189_v29 }
  0xd6   : > { %842 = vmatpush.bf16.msrb.mxu0 %v8210_v44 }
  0xda   : > { %843 = vmatpush.bf16.msrb.mxu0 %v8229_v54 }
  0xde   : > { %844 = vmatpush.bf16.msrb.mxu0 %v8242_v60 }
  0xe2   : > { %845 = vmatpush.bf16.msrb.mxu0 %v8258_v9 }
 0x11f   : > { %v508_v43 = vpop.xlane.xlu0 %507 }
 0x120   : > { %v523_v46 = vmul.f32 %v508_v43, %v8043_v13 }
 0x122   : > { %v531_v50 = vadd.f32 1e-05, %v523_v46 }
 0x124   : > { %7322 = vrsqrt.f32 %v531_v50  ;;  %vm545_vm2 = vweird.f32 %v531_v50 }
 0x126   : > { %v514_v59 = vpop.xlane.xlu2 %513 }
 0x127   : > { %v526_v61 = vmul.f32 %v514_v59, %v8043_v13  ;;  %v510_v63 = vpop.xlane.xlu1 %509  ;;  %v475_v0 = vpop.xlane.xlu0 %474 }
 0x128   : > { %v524_v1 = vmul.f32 %v510_v63, %v8043_v13  ;;  %v490_v2 = vmul.f32 %v8043_v13, %v475_v0 }
 0x129   : > { %v534_v3 = vadd.f32 1e-05, %v526_v61 }
 0x12a   : > { %v7323_v5 = vpop.eup %7322  ;;  %v532_v6 = vadd.f32 1e-05, %v524_v1  ;;  %v8256_v8 = vsub.f32 %v8061_v30, %v490_v2 }
 0x12b   : > { %v540_v10 = vmul.f32 %v7323_v5, %v531_v50  ;;  %7324 = vrsqrt.f32 %v534_v3  ;;  %vm546_vm1 = vweird.f32 %v7323_v5  ;;  %vm575_vm6 = vweird.f32 %v534_v3 }
 0x12c   : > { %7326 = vrsqrt.f32 %v532_v6  ;;  %v506_v11 = vmul.f32 %v8256_v8, %v8256_v8  ;;  %vm8271_vm3 = vmor %vm545_vm2, %vm546_vm1  ;;  %vm555_vm4 = vweird.f32 %v532_v6 }
 0x12d   : > { %v541_v12 = vmul.f32 %v7323_v5, %v540_v10 }
 0x12e   : > { %521 = vadd.xlane.f32.xlu0 %v506_v11  ;;  %v520_v32 = vpop.xlane.xlu2 %519 }
 0x12f   : > { %v542_v7 = vmul.f32 0.5, %v541_v12  ;;  %v512_v14 = vpop.xlane.xlu1 %511  ;;  %v516_v15 = vpop.xlane.xlu0 %515 }
 0x130   : > { %v525_v30 = vmul.f32 %v512_v14, %v8043_v13  ;;  %v527_v16 = vmul.f32 %v516_v15, %v8043_v13 }
 0x131   : > { %v7325_v19 = vpop.eup %7324  ;;  %v543_v20 = vsub.f32 1.5, %v542_v7 }
 0x132   : > { %v7327_v21 = vpop.eup %7326  ;;  %v570_v22 = vmul.f32 %v7325_v19, %v534_v3  ;;  %v533_v23 = vadd.f32 1e-05, %v525_v30  ;;  %v8267_v24 = vadd.f32 1e-05, %v527_v16  ;;  %vm576_vm7 = vweird.f32 %v7325_v19 }
 0x133   : > { %v544_v26 = vmul.f32 %v7323_v5, %v543_v20  ;;  %v550_v17 = vmul.f32 %v7327_v21, %v532_v6  ;;  %vm556_vm5 = vweird.f32 %v7327_v21  ;;  %vm8285_vm9 = vmor %vm575_vm6, %vm576_vm7 }
 0x134   : > { %v571_v27 = vmul.f32 %v7325_v19, %v570_v22  ;;  %7328 = vrsqrt.f32 %v533_v23  ;;  %vm557_vm8 = vmor %vm555_vm4, %vm556_vm5  ;;  %vm565_vm10 = vweird.f32 %v533_v23  ;;  %vm585_vm15 = vweird.f32 %v8267_v24 }
 0x135   : > { %v551_v31 = vmul.f32 %v7327_v21, %v550_v17  ;;  %7330 = vrsqrt.f32 %v8267_v24  ;;  %v548_v35 = vsel %vm8271_vm3, %v7323_v5, %v544_v26 }
 0x136   : > { %v572_v29 = vmul.f32 0.5, %v571_v27  ;;  %v619_v46 = vmul.f32 %v548_v35, %v8046_v18 }
 0x137   : > { %v552_v37 = vmul.f32 0.5, %v551_v31  ;;  %v518_v38 = vpop.xlane.xlu1 %517 }
 0x138   : > { %v573_v40 = vsub.f32 1.5, %v572_v29  ;;  %v528_v42 = vmul.f32 %v518_v38, %v8043_v13  ;;  %v628_v54 = vmul.f32 %v8283_v47, %v619_v46  ;;  %v529_v29 = vmul.f32 %v520_v32, %v8043_v13 }
 0x139   : > { %v553_v43 = vsub.f32 1.5, %v552_v37 }
 0x13a   : > { %v7329_v44 = vpop.eup %7328  ;;  %v536_v45 = vadd.f32 1e-05, %v528_v42  ;;  %v574_v49 = vmul.f32 %v7325_v19, %v573_v40  ;;  %v637_v4 = vadd.f32 %v8293_v57, %v628_v54 }
 0x13b   : > { %v7331_v48 = vpop.eup %7330  ;;  %v554_v50 = vmul.f32 %v7327_v21, %v553_v43  ;;  %v560_v51 = vmul.f32 %v7329_v44, %v533_v23  ;;  %vm566_vm11 = vweird.f32 %v7329_v44 }
 0x13c   : > { %v580_v53 = vmul.f32 %v7331_v48, %v8267_v24  ;;  %7332 = vrsqrt.f32 %v536_v45  ;;  %v578_v58 = vsel %vm8285_vm9, %v7325_v19, %v574_v49  ;;  %vm567_vm12 = vmor %vm565_vm10, %vm566_vm11  ;;  %vm595_vm13 = vweird.f32 %v536_v45 }
 0x13d   : > { %v558_v55 = vsel %vm557_vm8, %v7327_v21, %v554_v50  ;;  %v561_v56 = vmul.f32 %v7329_v44, %v560_v51  ;;  %vm586_vm0 = vweird.f32 %v7331_v48  ;;  %vm969_vm9 = vcmask 261120  }
 0x13e   : > { %v620_v18 = vmul.f32 %v558_v55, %v8056_v28  ;;  %v581_v61 = vmul.f32 %v7331_v48, %v580_v53  ;;  %v622_v28 = vmul.f32 %v578_v58, %v8052_v25  ;;  %vm587_vm2 = vmor %vm585_vm15, %vm586_vm0  ;;  %vm1023_vm11 = vcmask 523264  }
 0x13f   : > { %v562_v59 = vmul.f32 0.5, %v561_v56 }
 0x140   : > { %v629_v63 = vmul.f32 %v8283_v47, %v620_v18  ;;  %v582_v3 = vmul.f32 0.5, %v581_v61  ;;  %v631_v12 = vmul.f32 %v8283_v47, %v622_v28 }
 0x141   : > { %v563_v0 = vsub.f32 1.5, %v562_v59 }
 0x142   : > { %v638_v60 = vadd.f32 %v8293_v57, %v629_v63  ;;  %v7333_v1 = vpop.eup %7332  ;;  %v583_v9 = vsub.f32 1.5, %v582_v3 }
 0x143   : > { %v564_v2 = vmul.f32 %v7329_v44, %v563_v0  ;;  %v590_v62 = vmul.f32 %v7333_v1, %v536_v45  ;;  %vm596_vm14 = vweird.f32 %v7333_v1 }
 0x144   : > { %v8302_v6 = vpack.c.bf16 %v638_v60, %v637_v4  ;;  %v584_v30 = vmul.f32 %v7331_v48, %v583_v9  ;;  %vm597_vm1 = vmor %vm595_vm13, %vm596_vm14 }
 0x145   : > { %v568_v5 = vsel %vm567_vm12, %v7329_v44, %v564_v2  ;;  %v591_v10 = vmul.f32 %v7333_v1, %v590_v62 }
 0x146   : > { %v621_v11 = vmul.f32 %v568_v5, %v8068_v34  ;;  %817 = vmatmul.bf16.vlgmr.msra.gmra.mxu0 %v8302_v6  ;;  %875 = vmatmul.bf16.vlgmr.msra.gmra.mxu2 %v8302_v6  ;;  %v640_v34 = vadd.f32 %v8293_v57, %v631_v12  ;;  %v588_v21 = vsel %vm587_vm2, %v7331_v48, %v584_v30 }
 0x147   : > { %v592_v25 = vmul.f32 0.5, %v591_v10  ;;  %v623_v23 = vmul.f32 %v588_v21, %v8066_v33 }
 0x148   : > { %v630_v7 = vmul.f32 %v8283_v47, %v621_v11 }
 0x149   : > { %v593_v14 = vsub.f32 1.5, %v592_v25  ;;  %v632_v26 = vmul.f32 %v8283_v47, %v623_v23 }
 0x14a   : > { %v639_v15 = vadd.f32 %v8293_v57, %v630_v7 }
 0x14b   : > { %v594_v16 = vmul.f32 %v7333_v1, %v593_v14  ;;  %v641_v27 = vadd.f32 %v8293_v57, %v632_v26 }
 0x14c   : > { %v646_v19 = vpack.c.bf16 %v640_v34, %v639_v15 }
 0x14d   : > { %v598_v20 = vsel %vm597_vm1, %v7333_v1, %v594_v16 }
 0x14e   : > { %851 = vmatmul.bf16.vlgmr.msra.gmra.mxu1 %v646_v19  ;;  %v624_v22 = vmul.f32 %v598_v20, %v8080_v41  ;;  %v537_v41 = vadd.f32 1e-05, %v529_v29 }
 0x150   : > { %v633_v24 = vmul.f32 %v8283_v47, %v624_v22  ;;  %7334 = vrsqrt.f32 %v537_v41  ;;  %vm605_vm3 = vweird.f32 %v537_v41 }
 0x152   : > { %v642_v17 = vadd.f32 %v8293_v57, %v633_v24 }
 0x154   : > { %v647_v31 = vpack.c.bf16 %v642_v17, %v641_v27 }
 0x156   : > { %822 = vmatmul.bf16.gmra.mxu0 %v646_v19  ;;  %880 = vmatmul.bf16.gmra.mxu2 %v646_v19  ;;  %v7335_v33 = vpop.eup %7334 }
 0x157   : > { %v600_v35 = vmul.f32 %v7335_v33, %v537_v41  ;;  %vm606_vm4 = vweird.f32 %v7335_v33 }
 0x158   : > { %vm607_vm5 = vmor %vm605_vm3, %vm606_vm4 }
 0x159   : > { %v601_v37 = vmul.f32 %v7335_v33, %v600_v35 }
 0x15b   : > { %v602_v42 = vmul.f32 0.5, %v601_v37 }
 0x15d   : > { %v603_v43 = vsub.f32 1.5, %v602_v42 }
 0x15e   : > { %856 = vmatmul.bf16.gmra.mxu1 %v647_v31 }
 0x15f   : > { %v604_v45 = vmul.f32 %v7335_v33, %v603_v43 }
 0x161   : > { %v608_v49 = vsel %vm607_vm5, %v7335_v33, %v604_v45 }
 0x162   : > { %v625_v52 = vmul.f32 %v608_v49, %v8071_v36 }
 0x164   : > { %v634_v18 = vmul.f32 %v8283_v47, %v625_v52 }
 0x166   : > { %827 = vmatmul.bf16.gmra.mxu0 %v647_v31  ;;  %885 = vmatmul.bf16.gmra.mxu2 %v647_v31  ;;  %v643_v58 = vadd.f32 %v8293_v57, %v634_v18 }
 0x1a1   : > { %v522_v38 = vpop.xlane.xlu0 %521 }
 0x1a2   : > { %v530_v39 = vmul.f32 %v522_v38, %v8043_v13 }
 0x1a4   : > { %v538_v40 = vadd.f32 1e-05, %v530_v39 }
 0x1a6   : > { %7336 = vrsqrt.f32 %v538_v40  ;;  %vm615_vm7 = vweird.f32 %v538_v40 }
 0x1ac   : > { %v7337_v44 = vpop.eup %7336 }
 0x1ad   : > { %v610_v46 = vmul.f32 %v7337_v44, %v538_v40  ;;  %vm616_vm6 = vweird.f32 %v7337_v44 }
 0x1ae   : > { %vm617_vm8 = vmor %vm615_vm7, %vm616_vm6 }
 0x1af   : > { %v611_v48 = vmul.f32 %v7337_v44, %v610_v46 }
 0x1b1   : > { %v612_v50 = vmul.f32 0.5, %v611_v48 }
 0x1b3   : > { %v613_v51 = vsub.f32 1.5, %v612_v50 }
 0x1b5   : > { %v614_v53 = vmul.f32 %v7337_v44, %v613_v51 }
 0x1b7   : > { %v618_v55 = vsel %vm617_vm8, %v7337_v44, %v614_v53 }
 0x1b8   : > { %v626_v56 = vmul.f32 %v618_v55, %v8256_v8 }
 0x1ba   : > { %v635_v54 = vmul.f32 %v8283_v47, %v626_v56 }
 0x1bc   : > { %v644_v59 = vadd.f32 %v8293_v57, %v635_v54 }
 0x1be   : > { %v648_v61 = vpack.c.bf16 %v644_v59, %v643_v58 }
 0x1c0   : > { %832 = vmatmul.bf16.gmra.mxu0 %v648_v61  ;;  %861 = vmatmul.bf16.gmra.mxu1 %v648_v61 }
 0x1c1   : > { %890 = vmatmul.bf16.gmra.mxu2 %v648_v61 }
 0x1c3   : > { %v8326_v63 = vpop.f32.mrf.mxu0 }
 0x1c9   : > { %v876_v19 = vpop.f32.mrf.mxu2 }
 0x1cb   : > { %v8328_v36 = vpop.f32.mrf.mxu0  ;;  %v852_v0 = vpop.f32.mrf.mxu1 }
 0x1d0   : > { %846 = vmatmul.bf16.vlgmr.msrb.gmra.mxu0 %v8302_v6 }
 0x1d1   : > { %v878_v20 = vpop.f32.mrf.mxu2 }
 0x1d2   : > { %v899_v18 = vpack.c.bf16 %v878_v20, %v878_v20 }
 0x1d3   : > { %v823_v8 = vpop.f32.mrf.mxu0  ;;  %v854_v60 = vpop.f32.mrf.mxu1 }
 0x1d4   : > { %v900_v28 = vpack.c.bf16 %v852_v0, %v823_v8  ;;  %v897_v0 = vpack.c.bf16 %v876_v19, %v876_v19 }
 0x1d6   : > { %v959_v2 = vunpack.c.h.b16 %v900_v28  ;;  %v947_v10 = vunpack.c.l.b16 %v900_v28 }
 0x1d9   : > { %v881_v21 = vpop.f32.mrf.mxu2 }
 0x1da   : > { %v901_v52 = vpack.c.bf16 %v881_v21, %v881_v21 }
 0x1db   : > { %v825_v1 = vpop.f32.mrf.mxu0  ;;  %v857_v57 = vpop.f32.mrf.mxu1 }
 0x1dc   : > { %v902_v47 = vpack.c.bf16 %v854_v60, %v825_v1  ;;  %v1126_v8 = vunpack.c.l.b16 %v901_v52 }
 0x1de   : > { %v960_v3 = vunpack.c.h.b16 %v902_v47  ;;  %v948_v5 = vunpack.c.l.b16 %v902_v47 }
 0x1e0   : > { %v8331_v4 = vpack.c.b16 %v960_v3, %v959_v2  ;;  %v8335_v11 = vpack.c.b16 %v948_v5, %v947_v10 }
 0x1e1   : > { %v883_v22 = vpop.f32.mrf.mxu2 }
 0x1e2   : > { %1256 = vrot.lane.b32.xlu0 %v8331_v4, %s7873_s11  ;;  %v903_v49 = vpack.c.bf16 %v883_v22, %v883_v22 }
 0x1e3   : > { %v828_v62 = vpop.f32.mrf.mxu0  ;;  %v859_v12 = vpop.f32.mrf.mxu1 }
 0x1e4   : > { %v904_v6 = vpack.c.bf16 %v857_v57, %v828_v62  ;;  %v1127_v54 = vunpack.c.l.b16 %v903_v49  ;;  %v1124_v62 = vunpack.c.l.b16 %v897_v0 }
 0x1e6   : > { %v949_v7 = vunpack.c.l.b16 %v904_v6  ;;  %v961_v14 = vunpack.c.h.b16 %v904_v6  ;;  %v8361_v2 = vpack.c.b16 %v1127_v54, %v1126_v8 }
 0x1e9   : > { %v886_v23 = vpop.f32.mrf.mxu2 }
 0x1ea   : > { %1248 = vrot.lane.b32.xlu0 %v8335_v11, %s7873_s11  ;;  %v905_v45 = vpack.c.bf16 %v886_v23, %v886_v23 }
 0x1eb   : > { %v830_v9 = vpop.f32.mrf.mxu0 }
 0x1ec   : > { %v906_v25 = vpack.c.bf16 %v859_v12, %v830_v9  ;;  %v1128_v53 = vunpack.c.l.b16 %v905_v45 }
 0x1ee   : > { %v950_v15 = vunpack.c.l.b16 %v906_v25  ;;  %v962_v34 = vunpack.c.h.b16 %v906_v25 }
 0x1f0   : > { %v8339_v30 = vpack.c.b16 %v950_v15, %v949_v7  ;;  %v8341_v16 = vpack.c.b16 %v962_v34, %v961_v14 }
 0x1f1   : > { %v888_v24 = vpop.f32.mrf.mxu2 }
 0x1f2   : > { %1258 = vrot.lane.b32.xlu2 %v8341_v16, %s7873_s11  ;;  %v907_v42 = vpack.c.bf16 %v888_v24, %v888_v24  ;;  %v989_v56 = vsel %vm969_vm9, %v8341_v16, 0  ;;  %v432_v24 = vlaneseq }
 0x1f4   : > { %v1129_v50 = vunpack.c.l.b16 %v907_v42 }
 0x1f6   : > { %v8357_v58 = vpack.c.b16 %v1129_v50, %v1128_v53 }
 0x23d   : > { %v833_v26 = vpop.f32.mrf.mxu0  ;;  %v862_v17 = vpop.f32.mrf.mxu1 }
 0x23e   : > { %v908_v27 = vpack.c.bf16 %v862_v17, %v833_v26  ;;  %v433_v26 = vshrl.u32 %v432_v24, 7  ;;  %v442_v17 = vand.u32 127, %v432_v24 }
 0x240   : > { %v963_v33 = vunpack.c.h.b16 %v908_v27  ;;  %v951_v6 = vunpack.c.l.b16 %v908_v27  ;;  %vm443_vm10 = vcmp.le.s32.totalorder %v442_v17, %v433_v26  ;;  %v7874_v27 = vmov -inf  }
 0x241   : > { %v436_v45 = vadd.s32 24, %v433_v26  ;;  %v437_v52 = vadd.s32 32, %v433_v26  ;;  %v438_v54 = vadd.s32 40, %v433_v26 }
 0x243   : > { %vm446_vm14 = vcmp.le.s32.totalorder %v442_v17, %v436_v45  ;;  %vm447_vm15 = vcmp.le.s32.totalorder %v442_v17, %v437_v52  ;;  %vm448_vm0 = vcmp.le.s32.totalorder %v442_v17, %v438_v54 }
 0x244   : > { %v891_v31 = vpop.f32.mrf.mxu2  ;;  %v8410_v50 = vsel %vm446_vm14, 0.0, %v7874_v27  ;;  %v8424_v8 = vsel %vm448_vm0, 0.0, %v7874_v27 }
 0x245   : > { %v835_v32 = vpop.f32.mrf.mxu0  ;;  %v864_v29 = vpop.f32.mrf.mxu1  ;;  %v909_v38 = vpack.c.bf16 %v891_v31, %v891_v31  ;;  %v8397_v31 = vsel %vm443_vm10, 0.0, %v7874_v27 }
 0x246   : > { %v910_v41 = vpack.c.bf16 %v864_v29, %v835_v32  ;;  %v434_v29 = vadd.s32 8, %v433_v26 }
 0x247   : > { %v1130_v46 = vunpack.c.l.b16 %v909_v38 }
 0x248   : > { %v964_v35 = vunpack.c.h.b16 %v910_v41  ;;  %v952_v10 = vunpack.c.l.b16 %v910_v41  ;;  %vm444_vm12 = vcmp.le.s32.totalorder %v442_v17, %v434_v29 }
 0x249   : > { %v8402_v38 = vsel %vm444_vm12, 0.0, %v7874_v27 }
 0x24a   : > { %v8345_v37 = vpack.c.b16 %v964_v35, %v963_v33  ;;  %v8377_v12 = vpack.c.b16 %v952_v10, %v951_v6 }
 0x24c   : > { %v893_v39 = vpop.f32.mrf.mxu2  ;;  %1260 = vrot.lane.b32.xlu1 %v8345_v37, %s7873_s11  ;;  %v992_v40 = vsel %vm969_vm9, %v8345_v37, 0  ;;  %v1259_v14 = vpop.permute.xlu2 %1258 }
 0x24d   : > { %v911_v43 = vpack.c.bf16 %v893_v39, %v893_v39  ;;  %v847_v44 = vpop.f32.mrf.mxu0  ;;  %998 = vmatpush.bf16.xpose.msra.mxu3 %v992_v40  ;;  %v1281_v15 = vsel %vm969_vm9, %v1259_v14, 0  ;;  %v435_v39 = vadd.s32 16, %v433_v26 }
 0x24e   : > { %v896_v55 = vpack.c.bf16 %v847_v44, %v8326_v63  ;;  %v1125_v63 = vunpack.c.l.b16 %v899_v18  ;;  %v8417_v18 = vsel %vm447_vm15, 0.0, %v7874_v27 }
 0x24f   : > { %v1131_v48 = vunpack.c.l.b16 %v911_v43  ;;  %vm445_vm13 = vcmp.le.s32.totalorder %v442_v17, %v435_v39 }
 0x250   : > { %v945_v60 = vunpack.c.l.b16 %v896_v55  ;;  %v957_v28 = vunpack.c.h.b16 %v896_v55  ;;  %v8374_v5 = vpack.c.b16 %v1125_v63, %v1124_v62  ;;  %v8406_v44 = vsel %vm445_vm13, 0.0, %v7874_v27 }
 0x251   : > { %v8351_v51 = vpack.c.b16 %v1131_v48, %v1130_v46  ;;  %v440_v62 = vadd.s32 56, %v433_v26 }
 0x253   : > { %1156 = vmatpush.bf16.msra.mxu0 %v8351_v51  ;;  %vm450_vm2 = vcmp.le.s32.totalorder %v442_v17, %v440_v62 }
 0x254   : > { %v1257_v34 = vpop.permute.xlu0 %1256 }
 0x255   : > { %v849_v59 = vpop.f32.mrf.mxu0  ;;  %999 = vmatpush.bf16.xpose.msra.mxu3 %v989_v56  ;;  %v1278_v19 = vsel %vm969_vm9, %v1257_v34, 0 }
 0x256   : > { %v898_v61 = vpack.c.bf16 %v849_v59, %v8328_v36  ;;  %v986_v36 = vsel %vm969_vm9, %v8331_v4, 0 }
 0x257   : > { %1157 = vmatpush.bf16.msra.mxu0 %v8357_v58 }
 0x258   : > { %v946_v1 = vunpack.c.l.b16 %v898_v61  ;;  %v958_v47 = vunpack.c.h.b16 %v898_v61 }
 0x25a   : > { %v8363_v3 = vpack.c.b16 %v946_v1, %v945_v60  ;;  %v8365_v57 = vpack.c.b16 %v958_v47, %v957_v28  ;;  %v439_v60 = vadd.s32 48, %v433_v26 }
 0x25b   : > { %1158 = vmatpush.bf16.msra.mxu0 %v8361_v2 }
 0x25c   : > { %1254 = vrot.lane.b32.xlu2 %v8365_v57, %s7873_s11  ;;  %1246 = vrot.lane.b32.xlu1 %v8363_v3, %s7873_s11  ;;  %v983_v9 = vsel %vm969_vm9, %v8365_v57, 0  ;;  %v1249_v32 = vpop.permute.xlu0 %1248  ;;  %vm449_vm1 = vcmp.le.s32.totalorder %v442_v17, %v439_v60 }
 0x25d   : > { %1000 = vmatpush.bf16.xpose.msra.mxu3 %v986_v36  ;;  %v8431_v63 = vsel %vm449_vm1, 0.0, %v7874_v27 }
 0x25f   : > { %1159 = vmatpush.bf16.msra.mxu0 %v8374_v5 }
 0x264   : > { %1252 = vrot.lane.b32.xlu1 %v8377_v12, %s7873_s11 }
 0x265   : > { %1001 = vmatpush.bf16.xpose.msra.mxu3 %v983_v9  ;;  %v8438_v9 = vsel %vm450_vm2, 0.0, %v7874_v27 }
 0x26c   : > { %6080 = vmatmul.msk.bf16.vlgmr.msra.gmra.mxu3 %vm969_vm9, %v8363_v3 }
 0x27c   : > { %6081 = vmatmul.msk.bf16.gmra.mxu3 %vm969_vm9, %v8335_v11 }
 0x28c   : > { %6082 = vmatmul.msk.bf16.gmra.mxu3 %vm969_vm9, %v8339_v30 }
 0x29c   : > { %6083 = vmatmul.msk.bf16.gmra.mxu3 %vm969_vm9, %v8377_v12 }
 0x2b6   : > { %v1255_v20 = vpop.permute.xlu2 %1254 }
 0x2b7   : > { %v1275_v22 = vsel %vm969_vm9, %v1255_v20, 0 }
 0x2be   : > { %v1261_v25 = vpop.permute.xlu1 %1260 }
 0x2bf   : > { %v1284_v7 = vsel %vm969_vm9, %v1261_v25, 0 }
 0x2c0   : > { %1290 = vmatpush.bf16.xpose.msrb.mxu2 %v1284_v7  ;;  %7224 = vmatpush.bf16.xpose.msrb.mxu3 %v1284_v7 }
 0x2c8   : > { %1291 = vmatpush.bf16.xpose.msrb.mxu2 %v1281_v15  ;;  %7225 = vmatpush.bf16.xpose.msrb.mxu3 %v1281_v15 }
 0x2ce   : > { %v1247_v21 = vpop.permute.xlu1 %1246 }
 0x2d0   : > { %1292 = vmatpush.bf16.xpose.msrb.mxu2 %v1278_v19  ;;  %7226 = vmatpush.bf16.xpose.msrb.mxu3 %v1278_v19 }
 0x2d6   : > { %v1253_v23 = vpop.permute.xlu1 %1252 }
 0x2d8   : > { %1293 = vmatpush.bf16.xpose.msrb.mxu2 %v1275_v22  ;;  %7227 = vmatpush.bf16.xpose.msrb.mxu3 %v1275_v22 }
 0x2df   : > { %6100 = vmatmul.msk.bf16.vlgmr.msrb.gmra.mxu2 %vm969_vm9, %v1247_v21  ;;  %6103 = vmatmul.msk.bf16.vlgmr.msrb.gmra.mxu3 %vm969_vm9, %v1253_v23 }
 0x2ef   : > { %v1003_v41 = vpop.f32.mrf.mxu3  ;;  %6101 = vmatmul.msk.bf16.gmra.mxu2 %vm969_vm9, %v1249_v32 }
 0x2f0   : > { %v1004_v33 = vadd.f32 %v1003_v41, %v8397_v31 }
 0x2f2   : > { %v1024_v35 = vsel %vm1023_vm11, %v1004_v33, -inf }
 0x2f3   : > { %1025 = vmax.xlane.f32.xlu2 %v1024_v35 }
 0x2f7   : > { %v1005_v40 = vpop.f32.mrf.mxu3 }
 0x2f8   : > { %v1006_v42 = vadd.f32 %v1005_v40, %v8402_v38 }
 0x2fa   : > { %v1027_v43 = vsel %vm1023_vm11, %v1006_v42, -inf }
 0x2fb   : > { %1028 = vmax.xlane.f32.xlu1 %v1027_v43 }
 0x2ff   : > { %v1008_v46 = vpop.f32.mrf.mxu3 }
 0x300   : > { %v1009_v48 = vadd.f32 %v1008_v46, %v8406_v44 }
 0x302   : > { %v1030_v49 = vsel %vm1023_vm11, %v1009_v48, -inf }
 0x303   : > { %1031 = vmax.xlane.f32.xlu0 %v1030_v49 }
 0x307   : > { %v1010_v53 = vpop.f32.mrf.mxu3 }
 0x308   : > { %v8413_v55 = vadd.f32 %v1010_v53, %v8410_v50 }
 0x30a   : > { %v1033_v56 = vsel %vm1023_vm11, %v8413_v55, -inf }
 0x30b   : > { %1034 = vmax.xlane.f32.xlu2 %v1033_v56 }
 0x30f   : > { %v1013_v59 = vpop.f32.mrf.mxu3 }
 0x310   : > { %v8420_v61 = vadd.f32 %v1013_v59, %v8417_v18 }
 0x312   : > { %v1036_v0 = vsel %vm1023_vm11, %v8420_v61, -inf }
 0x313   : > { %1037 = vmax.xlane.f32.xlu1 %v1036_v0 }
 0x317   : > { %v1015_v28 = vpop.f32.mrf.mxu3 }
 0x318   : > { %v8427_v1 = vadd.f32 %v1015_v28, %v8424_v8 }
 0x31a   : > { %v1039_v47 = vsel %vm1023_vm11, %v8427_v1, -inf }
 0x31b   : > { %1040 = vmax.xlane.f32.xlu0 %v1039_v47 }
 0x31f   : > { %v1018_v36 = vpop.f32.mrf.mxu3 }
 0x320   : > { %v8434_v10 = vadd.f32 %v1018_v36, %v8431_v63 }
 0x322   : > { %v1042_v6 = vsel %vm1023_vm11, %v8434_v10, -inf }
 0x323   : > { %1043 = vmax.xlane.f32.xlu0 %v1042_v6 }
 0x327   : > { %v1020_v25 = vpop.f32.mrf.mxu3 }
 0x328   : > { %v8441_v7 = vadd.f32 %v1020_v25, %v8438_v9 }
 0x32a   : > { %v1045_v14 = vsel %vm1023_vm11, %v8441_v7, -inf }
 0x32b   : > { %1046 = vmax.xlane.f32.xlu2 %v1045_v14 }
 0x362   : > { %v1295_v15 = vpop.f32.mrf.mxu2 }
 0x363   : > { %v8446_v34 = vadd.f32 %v1295_v15, %v8397_v31 }
 0x365   : > { %v1315_v19 = vsel %vm1023_vm11, %v8446_v34, -inf }
 0x366   : > { %v1026_v20 = vpop.xlane.xlu2 %1025  ;;  %1316 = vmax.xlane.f32.xlu2 %v1315_v19 }
 0x367   : > { %v1048_v21 = vsub.f32 %v1004_v33, %v1026_v20 }
 0x369   : > { %v1056_v22 = vmul.f32 1.442695, %v1048_v21 }
 0x36a   : > { %v1297_v23 = vpop.f32.mrf.mxu2 }
 0x36b   : > { %7338 = vpow2.f32 %v1056_v22  ;;  %v8451_v24 = vadd.f32 %v1297_v23, %v8402_v38 }
 0x36d   : > { %v1318_v26 = vsel %vm1023_vm11, %v8451_v24, -inf }
 0x36e   : > { %v1029_v17 = vpop.xlane.xlu1 %1028  ;;  %1319 = vmax.xlane.f32.xlu1 %v1318_v26 }
 0x36f   : > { %v1049_v27 = vsub.f32 %v1006_v42, %v1029_v17 }
 0x371   : > { %v8455_v32 = vpop.eup %7338  ;;  %v1058_v29 = vmul.f32 1.442695, %v1049_v27 }
 0x372   : > { %v1300_v41 = vpop.f32.mrf.mxu2  ;;  %v1072_v35 = vsel %vm1023_vm11, %v8455_v32, 0.0 }
 0x373   : > { %v8460_v33 = vadd.f32 %v1300_v41, %v8406_v44  ;;  %1073 = vadd.xlane.f32.xlu2 %v1072_v35  ;;  %7340 = vpow2.f32 %v1058_v29 }
 0x375   : > { %v1321_v39 = vsel %vm1023_vm11, %v8460_v33, -inf }
 0x376   : > { %1322 = vmax.xlane.f32.xlu1 %v1321_v39  ;;  %v1032_v40 = vpop.xlane.xlu0 %1031 }
 0x377   : > { %v1050_v43 = vsub.f32 %v1009_v48, %v1032_v40 }
 0x379   : > { %v1060_v45 = vmul.f32 1.442695, %v1050_v43  ;;  %v8464_v42 = vpop.eup %7340 }
 0x37a   : > { %v1302_v46 = vpop.f32.mrf.mxu2  ;;  %v1075_v53 = vsel %vm1023_vm11, %v8464_v42, 0.0 }
 0x37b   : > { %v8467_v49 = vadd.f32 %v1302_v46, %v8410_v50  ;;  %7342 = vpow2.f32 %v1060_v45 }
 0x37d   : > { %v1324_v52 = vsel %vm1023_vm11, %v8467_v49, -inf }
 0x37e   : > { %v1035_v56 = vpop.xlane.xlu2 %1034  ;;  %1325 = vmax.xlane.f32.xlu0 %v1324_v52  ;;  %1076 = vadd.xlane.f32.xlu1 %v1075_v53 }
 0x37f   : > { %v1051_v54 = vsub.f32 %v8413_v55, %v1035_v56 }
 0x381   : > { %v1062_v48 = vmul.f32 1.442695, %v1051_v54  ;;  %v8474_v59 = vpop.eup %7342 }
 0x382   : > { %v1078_v0 = vsel %vm1023_vm11, %v8474_v59, 0.0 }
 0x383   : > { %7344 = vpow2.f32 %v1062_v48 }
 0x386   : > { %v1038_v60 = vpop.xlane.xlu1 %1037  ;;  %1079 = vadd.xlane.f32.xlu0 %v1078_v0 }
 0x387   : > { %v1052_v28 = vsub.f32 %v8420_v61, %v1038_v60 }
 0x389   : > { %v8479_v47 = vpop.eup %7344  ;;  %v1064_v62 = vmul.f32 1.442695, %v1052_v28 }
 0x38a   : > { %v1081_v36 = vsel %vm1023_vm11, %v8479_v47, 0.0 }
 0x38b   : > { %7346 = vpow2.f32 %v1064_v62  ;;  %1082 = vadd.xlane.f32.xlu2 %v1081_v36 }
 0x38e   : > { %v1041_v55 = vpop.xlane.xlu0 %1040 }
 0x38f   : > { %v1053_v6 = vsub.f32 %v8427_v1, %v1041_v55 }
 0x391   : > { %v8484_v25 = vpop.eup %7346  ;;  %v1066_v14 = vmul.f32 1.442695, %v1053_v6 }
 0x392   : > { %v1084_v15 = vsel %vm1023_vm11, %v8484_v25, 0.0 }
 0x393   : > { %7348 = vpow2.f32 %v1066_v14  ;;  %1085 = vadd.xlane.f32.xlu2 %v1084_v15 }
 0x396   : > { %v1044_v1 = vpop.xlane.xlu0 %1043 }
 0x397   : > { %1411 = vrot.lane.b32.xlu1 %v8357_v58, %s7873_s11  ;;  %v1054_v20 = vsub.f32 %v8434_v10, %v1044_v1 }
 0x399   : > { %v8490_v61 = vpop.eup %7348  ;;  %v1068_v21 = vmul.f32 1.442695, %v1054_v20 }
 0x39a   : > { %1413 = vrot.lane.b32.xlu0 %v8351_v51, %s7873_s11  ;;  %v1087_v19 = vsel %vm1023_vm11, %v8490_v61, 0.0 }
 0x39b   : > { %1088 = vadd.xlane.f32.xlu2 %v1087_v19  ;;  %7350 = vpow2.f32 %v1068_v21 }
 0x39e   : > { %v8503_v26 = vpop.xlane.xlu2 %1046 }
 0x39f   : > { %1407 = vrot.lane.b32.xlu1 %v8374_v5, %s7873_s11 }
 0x3a1   : > { %v8499_v22 = vpop.eup %7350 }
 0x3a2   : > { %v1090_v23 = vsel %vm1023_vm11, %v8499_v22, 0.0 }
 0x3c9   : > { %1091 = vadd.xlane.f32.xlu1 %v1090_v23 }
 0x3d9   : > { %v1317_v17 = vpop.xlane.xlu2 %1316 }
 0x3da   : > { %v1339_v27 = vsub.f32 %v8446_v34, %v1317_v17 }
 0x3dc   : > { %v1347_v29 = vmul.f32 1.442695, %v1339_v27 }
 0x3de   : > { %7352 = vpow2.f32 %v1347_v29 }
 0x3e1   : > { %v1320_v41 = vpop.xlane.xlu1 %1319 }
 0x3e2   : > { %v1340_v35 = vsub.f32 %v8451_v24, %v1320_v41  ;;  %1539 = vrot.lane.b32.xlu1 %v8345_v37, %s7875_s12 }
 0x3e4   : > { %v8509_v10 = vpop.eup %7352  ;;  %v1349_v39 = vmul.f32 1.442695, %v1340_v35 }
 0x3e5   : > { %v1363_v40 = vsel %vm1023_vm11, %v8509_v10, 0.0 }
 0x3e6   : > { %7354 = vpow2.f32 %v1349_v39  ;;  %1364 = vadd.xlane.f32.xlu2 %v1363_v40  ;;  %v1074_v46 = vpop.xlane.xlu2 %1073 }
 0x3e9   : > { %v1323_v43 = vpop.xlane.xlu1 %1322 }
 0x3ea   : > { %v1341_v34 = vsub.f32 %v8460_v33, %v1323_v43  ;;  %1535 = vrot.lane.b32.xlu1 %v8331_v4, %s7875_s12 }
 0x3ec   : > { %v8516_v45 = vpop.eup %7354  ;;  %v1351_v24 = vmul.f32 1.442695, %v1341_v34 }
 0x3ed   : > { %v1366_v52 = vsel %vm1023_vm11, %v8516_v45, 0.0 }
 0x3ee   : > { %7356 = vpow2.f32 %v1351_v24  ;;  %1367 = vadd.xlane.f32.xlu0 %v1366_v52 }
 0x3ef   : > { %7358 = vrcp.f32 %v1074_v46  ;;  %v7042_v46 = vld [vmem:[#allocation2 + $0x18] sm:$0xff] }
 0x3f0   : > { %1494 = vmatpush.bf16.msrb.mxu0 %v7042_v46 }
 0x3f1   : > { %v1077_v53 = vpop.xlane.xlu1 %1076  ;;  %v1326_v56 = vpop.xlane.xlu0 %1325 }
 0x3f2   : > { %7360 = vrcp.f32 %v1077_v53  ;;  %v1342_v54 = vsub.f32 %v8467_v49, %v1326_v56  ;;  %1533 = vrot.lane.b32.xlu1 %v8365_v57, %s7875_s12 }
 0x3f4   : > { %v8523_v33 = vpop.eup %7356  ;;  %v1353_v48 = vmul.f32 1.442695, %v1342_v54 }
 0x3f5   : > { %v1369_v0 = vsel %vm1023_vm11, %v8523_v33, 0.0  ;;  %v7359_v60 = vpop.eup %7358 }
 0x3f6   : > { %7362 = vpow2.f32 %v1353_v48  ;;  %1370 = vadd.xlane.f32.xlu0 %v1369_v0  ;;  %v1104_v62 = vmul.f32 %v7359_v60, %v8455_v32  ;;  %v7041_v0 = vld [vmem:[#allocation2 + $0x10] sm:$0xff] }
 0x3f7   : > { %1495 = vmatpush.bf16.msrb.mxu0 %v7041_v0 }
 0x3f8   : > { %v7361_v28 = vpop.eup %7360 }
 0x3f9   : > { %v1105_v36 = vmul.f32 %v7361_v28, %v8464_v42  ;;  %v1080_v6 = vpop.xlane.xlu0 %1079 }
 0x3fa   : > { %1812 = vrot.lane.b32.xlu1 %v8365_v57, %s7876_s21 }
 0x3fb   : > { %v1112_v49 = vpack.c.bf16 %v1105_v36, %v1104_v62 }
 0x3fc   : > { %v8531_v55 = vpop.eup %7362 }
 0x3fd   : > { %6084 = vmatmul.msk.bf16.vlgmr.msra.gmra.mxu0 %vm1023_vm11, %v1112_v49  ;;  %v1372_v14 = vsel %vm1023_vm11, %v8531_v55, 0.0 }
 0x3fe   : > { %v1083_v15 = vpop.xlane.xlu2 %1082  ;;  %1409 = vrot.lane.b32.xlu2 %v8361_v2, %s7873_s11  ;;  %1373 = vadd.xlane.f32.xlu0 %v1372_v14 }
 0x3ff   : > { %7364 = vrcp.f32 %v1083_v15 }
 0x400   : > { %7366 = vrcp.f32 %v1080_v6 }
 0x402   : > { %1806 = vrot.lane.b32.xlu1 %v8335_v11, %s7876_s21 }
 0x405   : > { %v7365_v57 = vpop.eup %7364 }
 0x406   : > { %v7367_v32 = vpop.eup %7366  ;;  %v1086_v42 = vpop.xlane.xlu2 %1085  ;;  %v1107_v19 = vmul.f32 %v7365_v57, %v8479_v47 }
 0x407   : > { %v1106_v1 = vmul.f32 %v7367_v32, %v8474_v59  ;;  %v1055_v59 = vsub.f32 %v8441_v7, %v8503_v26 }
 0x409   : > { %v1113_v20 = vpack.c.bf16 %v1107_v19, %v1106_v1  ;;  %v1412_v17 = vpop.permute.xlu1 %1411  ;;  %v1070_v41 = vmul.f32 1.442695, %v1055_v59 }
 0x40a   : > { %1531 = vrot.lane.b32.xlu1 %v8377_v12, %s7875_s12 }
 0x40c   : > { %v1414_v21 = vpop.permute.xlu0 %1413 }
 0x40d   : > { %6085 = vmatmul.msk.bf16.gmra.mxu0 %vm1023_vm11, %v1113_v20  ;;  %1435 = vmatpush.bf16.msra.mxu3 %v1414_v21 }
 0x40e   : > { %v1089_v23 = vpop.xlane.xlu2 %1088 }
 0x40f   : > { %7368 = vrcp.f32 %v1089_v23 }
 0x410   : > { %7370 = vrcp.f32 %v1086_v42 }
 0x411   : > { %1436 = vmatpush.bf16.msra.mxu3 %v1412_v17  ;;  %7372 = vpow2.f32 %v1070_v41 }
 0x412   : > { %1250 = vrot.lane.b32.xlu0 %v8339_v30, %s7873_s11 }
 0x415   : > { %v7369_v27 = vpop.eup %7368 }
 0x416   : > { %v7371_v47 = vpop.eup %7370  ;;  %v1109_v29 = vmul.f32 %v7369_v27, %v8490_v61  ;;  %v1408_v61 = vpop.permute.xlu1 %1407 }
 0x417   : > { %v1108_v35 = vmul.f32 %v7371_v47, %v8484_v25  ;;  %v8556_v40 = vpop.eup %7372  ;;  %v7040_v25 = vld [vmem:[#allocation2 + $0x8] sm:$0xff] }
 0x418   : > { %v1093_v7 = vsel %vm1023_vm11, %v8556_v40, 0.0  ;;  %1215 = vmatpush.bf16.msrb.mxu1 %v7040_v25 }
 0x419   : > { %v1114_v39 = vpack.c.bf16 %v1109_v29, %v1108_v35 }
 0x41a   : > { %1818 = vrot.lane.b32.xlu0 %v8345_v37, %s7876_s21  ;;  %v7039_v37 = vld [vmem:[#allocation2] sm:$0xff] }
 0x41c   : > { %1216 = vmatpush.bf16.msrb.mxu1 %v7039_v37 }
 0x41d   : > { %6086 = vmatmul.msk.bf16.gmra.mxu0 %vm1023_vm11, %v1114_v39 }
 0x422   : > { %1816 = vrot.lane.b32.xlu0 %v8341_v16, %s7876_s21 }
 0x427   : > { %1094 = vadd.xlane.f32.xlu2 %v1093_v7 }
 0x42a   : > { %1814 = vrot.lane.b32.xlu0 %v8331_v4, %s7876_s21 }
 0x432   : > { %1804 = vrot.lane.b32.xlu0 %v8363_v3, %s7876_s21 }
 0x43a   : > { %1529 = vrot.lane.b32.xlu0 %v8339_v30, %s7875_s12 }
 0x43c   : > { %v1092_v4 = vpop.xlane.xlu1 %1091 }
 0x43f   : > { %1537 = vrot.lane.b32.xlu2 %v8341_v16, %s7875_s12 }
 0x442   : > { %1810 = vrot.lane.b32.xlu0 %v8377_v12, %s7876_s21  ;;  %v1310_v12 = vpop.f32.mrf.mxu3 }
 0x443   : > { %v8578_v52 = vadd.f32 %v1310_v12, %v8431_v63 }
 0x445   : > { %v1333_v48 = vsel %vm1023_vm11, %v8578_v52, -inf }
 0x447   : > { %1525 = vrot.lane.b32.xlu2 %v8363_v3, %s7875_s12 }
 0x44f   : > { %1527 = vrot.lane.b32.xlu2 %v8335_v11, %s7875_s12 }
 0x454   : > { %v1540_v26 = vpop.permute.xlu1 %1539 }
 0x455   : > { %v1563_v43 = vsel %vm969_vm9, %v1540_v26, 0 }
 0x456   : > { %1569 = vmatpush.bf16.xpose.msra.mxu1 %v1563_v43 }
 0x457   : > { %1808 = vrot.lane.b32.xlu2 %v8339_v30, %s7876_s21 }
 0x459   : > { %v1365_v34 = vpop.xlane.xlu2 %1364 }
 0x45a   : > { %7374 = vrcp.f32 %v1365_v34 }
 0x45c   : > { %v1536_v19 = vpop.permute.xlu1 %1535 }
 0x45d   : > { %v1557_v43 = vsel %vm969_vm9, %v1536_v19, 0 }
 0x460   : > { %v7375_v3 = vpop.eup %7374 }
 0x461   : > { %v1410_v16 = vpop.permute.xlu2 %1409  ;;  %v1368_v24 = vpop.xlane.xlu0 %1367  ;;  %v1395_v53 = vmul.f32 %v7375_v3, %v8509_v10 }
 0x462   : > { %7376 = vrcp.f32 %v1368_v24  ;;  %1437 = vmatpush.bf16.msra.mxu3 %v1410_v16 }
 0x464   : > { %v1534_v21 = vpop.permute.xlu1 %1533 }
 0x466   : > { %1438 = vmatpush.bf16.msra.mxu3 %v1408_v61 }
 0x468   : > { %v7377_v11 = vpop.eup %7376 }
 0x469   : > { %v1396_v30 = vmul.f32 %v7377_v11, %v8516_v45  ;;  %v1371_v56 = vpop.xlane.xlu0 %1370 }
 0x46a   : > { %7228 = vmatpush.bf16.msrb.mxu3 %v7042_v46  ;;  %7378 = vrcp.f32 %v1371_v56 }
 0x46b   : > { %v1403_v54 = vpack.c.bf16 %v1396_v30, %v1395_v53 }
 0x46c   : > { %1334 = vmax.xlane.f32.xlu0 %v1333_v48  ;;  %v1813_v25 = vpop.permute.xlu1 %1812 }
 0x46d   : > { %6104 = vmatmul.msk.bf16.vlgmr.msra.gmra.mxu3 %vm1023_vm11, %v1403_v54  ;;  %v1833_v26 = vsel %vm969_vm9, %v1813_v25, 0 }
 0x46e   : > { %7229 = vmatpush.bf16.msrb.mxu3 %v7041_v0 }
 0x470   : > { %v7379_v28 = vpop.eup %7378 }
 0x471   : > { %v1374_v60 = vpop.xlane.xlu0 %1373  ;;  %v1397_v10 = vmul.f32 %v7379_v28, %v8523_v33 }
 0x472   : > { %7380 = vrcp.f32 %v1374_v60 }
 0x473   : > { %7382 = vrcp.f32 %v1092_v4 }
 0x478   : > { %v7381_v62 = vpop.eup %7380 }
 0x479   : > { %v1398_v45 = vmul.f32 %v7381_v62, %v8531_v55  ;;  %v7383_v47 = vpop.eup %7382 }
 0x47a   : > { %v1161_v36 = vpop.f32.mrf.mxu0  ;;  %v1110_v39 = vmul.f32 %v7383_v47, %v8499_v22  ;;  %v1554_v22 = vsel %vm969_vm9, %v1534_v21, 0  ;;  %v7659_v21 = vld [vmem:[%s8034_s22] sm:$0xff] }
 0x47b   : > { %v1404_v49 = vpack.c.bf16 %v1398_v45, %v1397_v10 }
 0x47d   : > { %6105 = vmatmul.msk.bf16.gmra.mxu3 %vm1023_vm11, %v1404_v49 }
 0x482   : > { %v1163_v6 = vpop.f32.mrf.mxu0 }
 0x483   : > { %v1181_v14 = vpack.c.bf16 %v1163_v6, %v1161_v36 }
 0x484   : > { %v1251_v15 = vpop.permute.xlu0 %1250 }
 0x485   : > { %6096 = vmatmul.msk.bf16.vlgmr.msrb.gmra.mxu1 %vm969_vm9, %v1181_v14  ;;  %6102 = vmatmul.msk.bf16.gmra.mxu2 %vm969_vm9, %v1251_v15 }
 0x48a   : > { %v1166_v57 = vpop.f32.mrf.mxu0 }
 0x48c   : > { %v1819_v32 = vpop.permute.xlu0 %1818 }
 0x48d   : > { %v1842_v42 = vsel %vm969_vm9, %v1819_v32, 0 }
 0x48e   : > { %1848 = vmatpush.bf16.xpose.msra.mxu0 %v1842_v42 }
 0x492   : > { %v1168_v33 = vpop.f32.mrf.mxu0 }
 0x493   : > { %v1182_v1 = vpack.c.bf16 %v1168_v33, %v1166_v57  ;;  %v1807_v57 = vpop.permute.xlu1 %1806 }
 0x494   : > { %v1817_v55 = vpop.permute.xlu0 %1816 }
 0x495   : > { %6097 = vmatmul.msk.bf16.gmra.mxu1 %vm969_vm9, %v1182_v1  ;;  %v1839_v20 = vsel %vm969_vm9, %v1817_v55, 0 }
 0x496   : > { %1849 = vmatpush.bf16.xpose.msra.mxu0 %v1839_v20 }
 0x49a   : > { %v1095_v23 = vpop.xlane.xlu2 %1094  ;;  %v1171_v17 = vpop.f32.mrf.mxu0 }
 0x49b   : > { %7384 = vrcp.f32 %v1095_v23  ;;  %v1532_v1 = vpop.permute.xlu1 %1531 }
 0x49c   : > { %v1815_v27 = vpop.permute.xlu0 %1814 }
 0x49d   : > { %v1836_v59 = vsel %vm969_vm9, %v1815_v27, 0 }
 0x49e   : > { %1850 = vmatpush.bf16.xpose.msra.mxu0 %v1836_v59 }
 0x4a1   : > { %v7385_v29 = vpop.eup %7384 }
 0x4a2   : > { %v1538_v41 = vpop.permute.xlu2 %1537  ;;  %v1173_v35 = vpop.f32.mrf.mxu0  ;;  %v1111_v7 = vmul.f32 %v7385_v29, %v8556_v40 }
 0x4a3   : > { %v1183_v37 = vpack.c.bf16 %v1173_v35, %v1171_v17  ;;  %v1560_v61 = vsel %vm969_vm9, %v1538_v41, 0  ;;  %v1312_v40 = vpop.f32.mrf.mxu3 }
 0x4a4   : > { %1570 = vmatpush.bf16.xpose.msra.mxu1 %v1560_v61  ;;  %v1115_v4 = vpack.c.bf16 %v1111_v7, %v1110_v39  ;;  %v1805_v34 = vpop.permute.xlu0 %1804  ;;  %v1313_v62 = vadd.f32 %v1312_v40, %v8438_v9  ;;  %v7660_v7 = vld [vmem:[%s8034_s22 + $0x10] sm:$0xff] }
 0x4a5   : > { %6098 = vmatmul.msk.bf16.gmra.mxu1 %vm969_vm9, %v1183_v37 }
 0x4a6   : > { %6087 = vmatmul.msk.bf16.gmra.mxu0 %vm1023_vm11, %v1115_v4  ;;  %v1336_v49 = vsel %vm1023_vm11, %v1313_v62, -inf }
 0x4a7   : > { %1851 = vmatpush.bf16.xpose.msra.mxu0 %v1833_v26 }
 0x4aa   : > { %v1526_v15 = vpop.permute.xlu2 %1525 }
 0x4ac   : > { %1571 = vmatpush.bf16.xpose.msra.mxu1 %v1557_v43  ;;  %v1530_v24 = vpop.permute.xlu0 %1529 }
 0x4b2   : > { %v1528_v19 = vpop.permute.xlu2 %1527 }
 0x4b4   : > { %1572 = vmatpush.bf16.xpose.msra.mxu1 %v1554_v22  ;;  %v1811_v3 = vpop.permute.xlu0 %1810 }
 0x4ba   : > { %v1809_v33 = vpop.permute.xlu2 %1808 }
 0x4df   : > { %v1335_v53 = vpop.xlane.xlu0 %1334 }
 0x4e0   : > { %v1345_v0 = vsub.f32 %v8578_v52, %v1335_v53 }
 0x4e2   : > { %v1359_v28 = vmul.f32 1.442695, %v1345_v0 }
 0x4e4   : > { %7386 = vpow2.f32 %v1359_v28 }
 0x4ea   : > { %v8611_v6 = vpop.eup %7386 }
 0x4eb   : > { %v1381_v52 = vsel %vm1023_vm11, %v8611_v6, 0.0 }
 0x4f0   : > { %v1440_v16 = vpop.f32.mrf.mxu3 }
 0x4f8   : > { %v1442_v12 = vpop.f32.mrf.mxu3 }
 0x4f9   : > { %v1460_v46 = vpack.c.bf16 %v1442_v12, %v1440_v16 }
 0x4fb   : > { %6116 = vmatmul.msk.bf16.vlgmr.msrb.gmra.mxu0 %vm969_vm9, %v1460_v46 }
 0x500   : > { %v1445_v11 = vpop.f32.mrf.mxu3 }
 0x502   : > { %v1218_v20 = vpop.f32.mrf.mxu1 }
 0x508   : > { %v1305_v30 = vpop.f32.mrf.mxu2  ;;  %v1447_v56 = vpop.f32.mrf.mxu3 }
 0x509   : > { %v1306_v54 = vadd.f32 %v1305_v30, %v8417_v18  ;;  %v1461_v48 = vpack.c.bf16 %v1447_v56, %v1445_v11 }
 0x50a   : > { %v8641_v47 = vpop.f32.mrf.mxu1 }
 0x50b   : > { %6117 = vmatmul.msk.bf16.gmra.mxu0 %vm969_vm9, %v1461_v48  ;;  %v1327_v60 = vsel %vm1023_vm11, %v1306_v54, -inf }
 0x50c   : > { %1328 = vmax.xlane.f32.xlu2 %v1327_v60 }
 0x510   : > { %v1307_v10 = vpop.f32.mrf.mxu2 }
 0x511   : > { %v1308_v45 = vadd.f32 %v1307_v10, %v8424_v8 }
 0x512   : > { %v1223_v37 = vpop.f32.mrf.mxu1 }
 0x513   : > { %v1330_v36 = vsel %vm1023_vm11, %v1308_v45, -inf }
 0x514   : > { %1331 = vmax.xlane.f32.xlu1 %v1330_v36  ;;  %1337 = vmax.xlane.f32.xlu2 %v1336_v49 }
 0x51a   : > { %v8653_v46 = vpop.f32.mrf.mxu1 }
 0x51b   : > { %6140 = vmatmul.msk.bf16.vlgmr.msra.gmra.mxu0 %vm969_vm9, %v1805_v34 }
 0x51c   : > { %1382 = vadd.xlane.f32.xlu1 %v1381_v52 }
 0x522   : > { %v8663_v48 = vpop.f32.mrf.mxu1 }
 0x523   : > { %v1176_v14 = vpop.f32.mrf.mxu0 }
 0x52b   : > { %v1178_v32 = vpop.f32.mrf.mxu0  ;;  %6141 = vmatmul.msk.bf16.gmra.mxu0 %vm969_vm9, %v1807_v57 }
 0x52c   : > { %v1184_v42 = vpack.c.bf16 %v1178_v32, %v1176_v14  ;;  %1971 = vrot.lane.b32.xlu2 %v8351_v51, %s7876_s21 }
 0x52e   : > { %6099 = vmatmul.msk.bf16.gmra.mxu1 %vm969_vm9, %v1184_v42 }
 0x534   : > { %1686 = vrot.lane.b32.xlu2 %v8374_v5, %s7875_s12 }
 0x535   : > { %1692 = vrot.lane.b32.xlu1 %v8351_v51, %s7875_s12  ;;  %v7658_v51 = vld [vmem:[%s10815_s5] sm:$0xff] }
 0x536   : > { %v8635_v55 = vperm.slane %v7658_v51, 4 }
 0x538   : > { %v929_v23 = vadd.f32 %v7659_v21, %v8635_v55  ;;  %v931_v25 = vadd.f32 %v7660_v7, %v8635_v55 }
 0x53a   : > { %v1238_v17 = vadd.f32 %v1218_v20, %v929_v23  ;;  %v1240_v61 = vadd.f32 %v1223_v37, %v931_v25 }
 0x53b   : > { %6142 = vmatmul.msk.bf16.gmra.mxu0 %vm969_vm9, %v1809_v33 }
 0x53c   : > { %1969 = vrot.lane.b32.xlu2 %v8357_v58, %s7876_s21 }
 0x53e   : > { %6120 = vmatmul.msk.bf16.vlgmr.msra.gmra.mxu1 %vm969_vm9, %v1526_v15 }
 0x54b   : > { %6143 = vmatmul.msk.bf16.gmra.mxu0 %vm969_vm9, %v1811_v3 }
 0x54e   : > { %6121 = vmatmul.msk.bf16.gmra.mxu1 %vm969_vm9, %v1528_v19 }
 0x55e   : > { %6122 = vmatmul.msk.bf16.gmra.mxu1 %vm969_vm9, %v1530_v24 }
 0x56e   : > { %6123 = vmatmul.msk.bf16.gmra.mxu1 %vm969_vm9, %v1532_v1 }
 0x578   : > { %v1497_v27 = vpop.f32.mrf.mxu0 }
 0x579   : > { %v8639_v59 = vadd.f32 %v1497_v27, %v1238_v17 }
 0x57f   : > { %v1329_v29 = vpop.xlane.xlu2 %1328 }
 0x580   : > { %v1343_v41 = vsub.f32 %v1306_v54, %v1329_v29  ;;  %v8643_v35 = vpop.f32.mrf.mxu0 }
 0x582   : > { %v1355_v39 = vmul.f32 1.442695, %v1343_v41 }
 0x584   : > { %7388 = vpow2.f32 %v1355_v39 }
 0x587   : > { %v1338_v4 = vpop.xlane.xlu2 %1337  ;;  %v1332_v26 = vpop.xlane.xlu1 %1331 }
 0x588   : > { %v1346_v43 = vsub.f32 %v1313_v62, %v1338_v4  ;;  %v1502_v22 = vpop.f32.mrf.mxu0  ;;  %v1344_v24 = vsub.f32 %v1308_v45, %v1332_v26  ;;  %v8669_v62 = vpop.f32.mrf.mxu1 }
 0x589   : > { %v8647_v40 = vadd.f32 %v1502_v22, %v1240_v61 }
 0x58a   : > { %v8649_v34 = vpop.eup %7388  ;;  %v1361_v16 = vmul.f32 1.442695, %v1346_v43  ;;  %v1357_v3 = vmul.f32 1.442695, %v1344_v24 }
 0x58b   : > { %v1375_v12 = vsel %vm1023_vm11, %v8649_v34, 0.0 }
 0x58c   : > { %1376 = vadd.xlane.f32.xlu1 %v1375_v12  ;;  %7390 = vpow2.f32 %v1361_v16 }
 0x58d   : > { %7392 = vpow2.f32 %v1357_v3 }
 0x58f   : > { %v1972_v11 = vpop.permute.xlu2 %1971  ;;  %v8667_v60 = vpop.xlane.xlu1 %1382 }
 0x590   : > { %1993 = vmatpush.bf16.msrb.mxu1 %v1972_v11  ;;  %v8685_v19 = vpop.f32.mrf.mxu0 }
 0x592   : > { %v8655_v53 = vpop.eup %7390 }
 0x593   : > { %v1384_v30 = vsel %vm1023_vm11, %v8655_v53, 0.0  ;;  %v8661_v54 = vpop.eup %7392 }
 0x594   : > { %1385 = vadd.xlane.f32.xlu0 %v1384_v30  ;;  %v1378_v0 = vsel %vm1023_vm11, %v8661_v54, 0.0 }
 0x597   : > { %v8659_v56 = vpop.permute.xlu2 %1686 }
 0x598   : > { %v1853_v20 = vpop.f32.mrf.mxu0 }
 0x599   : > { %v8707_v61 = vadd.f32 %v1853_v20, %v8397_v31 }
 0x59b   : > { %v1873_v26 = vsel %vm1023_vm11, %v8707_v61, -inf }
 0x59c   : > { %1379 = vadd.xlane.f32.xlu0 %v1378_v0 }
 0x59f   : > { %v1970_v28 = vpop.permute.xlu2 %1969 }
 0x5a0   : > { %1994 = vmatpush.bf16.msrb.mxu1 %v1970_v28  ;;  %v1855_v23 = vpop.f32.mrf.mxu0 }
 0x5a1   : > { %v8710_v4 = vadd.f32 %v1855_v23, %v8402_v38 }
 0x5a3   : > { %v1876_v16 = vsel %vm1023_vm11, %v8710_v4, -inf }
 0x5a7   : > { %v1693_v10 = vpop.permute.xlu1 %1692 }
 0x5a8   : > { %1714 = vmatpush.bf16.msra.mxu2 %v1693_v10  ;;  %v1858_v39 = vpop.f32.mrf.mxu0 }
 0x5a9   : > { %v8720_v24 = vadd.f32 %v1858_v39, %v8406_v44 }
 0x5ab   : > { %v8671_v45 = vpop.f32.mrf.mxu1  ;;  %v1879_v11 = vsel %vm1023_vm11, %v8720_v24, -inf }
 0x5b0   : > { %v1860_v37 = vpop.f32.mrf.mxu0 }
 0x5b1   : > { %v8725_v3 = vadd.f32 %v1860_v37, %v8410_v50 }
 0x5b3   : > { %v8673_v36 = vpop.f32.mrf.mxu1  ;;  %v1882_v28 = vsel %vm1023_vm11, %v8725_v3, -inf }
 0x5b8   : > { %v1863_v43 = vpop.f32.mrf.mxu0 }
 0x5b9   : > { %v8735_v10 = vadd.f32 %v1863_v43, %v8417_v18 }
 0x5bb   : > { %v1574_v49 = vpop.f32.mrf.mxu1 }
 0x5bc   : > { %v8676_v52 = vadd.f32 %v1574_v49, %v8397_v31 }
 0x5be   : > { %v1594_v14 = vsel %vm1023_vm11, %v8676_v52, -inf }
 0x5bf   : > { %1595 = vmax.xlane.f32.xlu1 %v1594_v14 }
 0x5c0   : > { %v1865_v49 = vpop.f32.mrf.mxu0 }
 0x5c3   : > { %v1576_v15 = vpop.f32.mrf.mxu1 }
 0x5c4   : > { %v8681_v57 = vadd.f32 %v1576_v15, %v8402_v38 }
 0x5c6   : > { %v1597_v32 = vsel %vm1023_vm11, %v8681_v57, -inf }
 0x5c7   : > { %1598 = vmax.xlane.f32.xlu0 %v1597_v32  ;;  %v8740_v32 = vadd.f32 %v1865_v49, %v8424_v8 }
 0x5c9   : > { %v1888_v20 = vsel %vm1023_vm11, %v8740_v32, -inf }
 0x5cb   : > { %v1579_v42 = vpop.f32.mrf.mxu1 }
 0x5cc   : > { %v8715_v22 = vadd.f32 %v1579_v42, %v8406_v44  ;;  %v1885_v42 = vsel %vm1023_vm11, %v8735_v10, -inf }
 0x5ce   : > { %v1600_v12 = vsel %vm1023_vm11, %v8715_v22, -inf }
 0x5d3   : > { %v1581_v33 = vpop.f32.mrf.mxu1 }
 0x5d4   : > { %v8688_v1 = vadd.f32 %v1581_v33, %v8410_v50 }
 0x5d6   : > { %v1603_v51 = vsel %vm1023_vm11, %v8688_v1, -inf }
 0x5d7   : > { %1604 = vmax.xlane.f32.xlu2 %v1603_v51 }
 0x5d8   : > { %1688 = vrot.lane.b32.xlu1 %v8361_v2, %s7875_s12 }
 0x5db   : > { %1690 = vrot.lane.b32.xlu0 %v8357_v58, %s7875_s12  ;;  %v1584_v21 = vpop.f32.mrf.mxu1 }
 0x5dc   : > { %v8730_v30 = vadd.f32 %v1584_v21, %v8417_v18 }
 0x5de   : > { %v1606_v15 = vsel %vm1023_vm11, %v8730_v30, -inf }
 0x5e3   : > { %v1586_v17 = vpop.f32.mrf.mxu1 }
 0x5e4   : > { %v8697_v27 = vadd.f32 %v1586_v17, %v8424_v8 }
 0x5e6   : > { %v1609_v29 = vsel %vm1023_vm11, %v8697_v27, -inf }
 0x5e7   : > { %1610 = vmax.xlane.f32.xlu2 %v1609_v29 }
 0x5eb   : > { %v1589_v41 = vpop.f32.mrf.mxu1 }
 0x5ec   : > { %v8745_v33 = vadd.f32 %v1589_v41, %v8431_v63 }
 0x5ee   : > { %v1612_v21 = vsel %vm1023_vm11, %v8745_v33, -inf }
 0x5f3   : > { %v1591_v7 = vpop.f32.mrf.mxu1 }
 0x5f4   : > { %v8702_v25 = vadd.f32 %v1591_v7, %v8438_v9 }
 0x5f6   : > { %v1615_v58 = vsel %vm1023_vm11, %v8702_v25, -inf }
 0x5f7   : > { %1616 = vmax.xlane.f32.xlu2 %v1615_v58 }
 0x5ff   : > { %1874 = vmax.xlane.f32.xlu2 %v1873_v26  ;;  %v1377_v14 = vpop.xlane.xlu1 %1376 }
 0x600   : > { %7394 = vrcp.f32 %v1377_v14 }
 0x602   : > { %1877 = vmax.xlane.f32.xlu1 %v1876_v16 }
 0x605   : > { %1601 = vmax.xlane.f32.xlu0 %v1600_v12 }
 0x606   : > { %v7395_v23 = vpop.eup %7394 }
 0x607   : > { %1880 = vmax.xlane.f32.xlu2 %v1879_v11  ;;  %v1386_v0 = vpop.xlane.xlu0 %1385  ;;  %v1399_v29 = vmul.f32 %v7395_v23, %v8649_v34 }
 0x60a   : > { %1883 = vmax.xlane.f32.xlu1 %v1882_v28 }
 0x60d   : > { %1607 = vmax.xlane.f32.xlu0 %v1606_v15 }
 0x60f   : > { %1886 = vmax.xlane.f32.xlu2 %v1885_v42  ;;  %v1380_v51 = vpop.xlane.xlu0 %1379 }
 0x610   : > { %7396 = vrcp.f32 %v1380_v51 }
 0x611   : > { %7398 = vrcp.f32 %v1386_v0 }
 0x612   : > { %1889 = vmax.xlane.f32.xlu1 %v1888_v20  ;;  %7400 = vrcp.f32 %v8667_v60 }
 0x615   : > { %1613 = vmax.xlane.f32.xlu0 %v1612_v21 }
 0x616   : > { %v7397_v17 = vpop.eup %7396 }
 0x617   : > { %v1400_v39 = vmul.f32 %v7397_v17, %v8661_v54  ;;  %v7399_v41 = vpop.eup %7398 }
 0x618   : > { %v7401_v37 = vpop.eup %7400  ;;  %v1402_v58 = vmul.f32 %v7399_v41, %v8655_v53  ;;  %v1868_v53 = vpop.f32.mrf.mxu0 }
 0x619   : > { %v1405_v7 = vpack.c.bf16 %v1400_v39, %v1399_v29  ;;  %v1401_v26 = vmul.f32 %v7401_v37, %v8611_v6 }
 0x61b   : > { %6106 = vmatmul.msk.bf16.gmra.mxu3 %vm1023_vm11, %v1405_v7  ;;  %v1406_v43 = vpack.c.bf16 %v1402_v58, %v1401_v26 }
 0x620   : > { %v1870_v15 = vpop.f32.mrf.mxu0 }
 0x621   : > { %v8774_v51 = vadd.f32 %v1870_v15, %v8438_v9 }
 0x623   : > { %v1894_v20 = vsel %vm1023_vm11, %v8774_v51, -inf }
 0x62b   : > { %6107 = vmatmul.msk.bf16.gmra.mxu3 %vm1023_vm11, %v1406_v43 }
 0x632   : > { %v1596_v16 = vpop.xlane.xlu1 %1595 }
 0x633   : > { %v1618_v34 = vsub.f32 %v8676_v52, %v1596_v16  ;;  %v8769_v52 = vadd.f32 %v1868_v53, %v8431_v63 }
 0x635   : > { %v1626_v12 = vmul.f32 1.442695, %v1618_v34 }
 0x637   : > { %7402 = vpow2.f32 %v1626_v12 }
 0x63a   : > { %v1599_v54 = vpop.xlane.xlu0 %1598 }
 0x63b   : > { %v1619_v11 = vsub.f32 %v8681_v57, %v1599_v54  ;;  %v1891_v57 = vsel %vm1023_vm11, %v8769_v52, -inf }
 0x63d   : > { %v8760_v0 = vpop.eup %7402  ;;  %v1628_v60 = vmul.f32 1.442695, %v1619_v11 }
 0x63e   : > { %v1642_v28 = vsel %vm1023_vm11, %v8760_v0, 0.0 }
 0x63f   : > { %7404 = vpow2.f32 %v1628_v60  ;;  %1643 = vadd.xlane.f32.xlu0 %v1642_v28 }
 0x645   : > { %v8764_v6 = vpop.eup %7404 }
 0x646   : > { %v1645_v49 = vsel %vm1023_vm11, %v8764_v6, 0.0 }
 0x647   : > { %1646 = vadd.xlane.f32.xlu2 %v1645_v49 }
 0x64a   : > { %v1689_v42 = vpop.permute.xlu1 %1688  ;;  %v1605_v21 = vpop.xlane.xlu2 %1604 }
 0x64d   : > { %v1691_v14 = vpop.permute.xlu0 %1690 }
 0x64e   : > { %1715 = vmatpush.bf16.msra.mxu2 %v1691_v14 }
 0x64f   : > { %1892 = vmax.xlane.f32.xlu2 %v1891_v57 }
 0x652   : > { %1716 = vmatpush.bf16.msra.mxu2 %v1689_v42 }
 0x656   : > { %1717 = vmatpush.bf16.msra.mxu2 %v8659_v56 }
 0x657   : > { %1895 = vmax.xlane.f32.xlu2 %v1894_v20 }
 0x65a   : > { %v8779_v23 = vpop.xlane.xlu2 %1610 }
 0x66a   : > { %v8781_v17 = vpop.xlane.xlu2 %1616 }
 0x66f   : > { %1967 = vrot.lane.b32.xlu2 %v8361_v2, %s7876_s21 }
 0x672   : > { %v1875_v7 = vpop.xlane.xlu2 %1874 }
 0x673   : > { %v1897_v58 = vsub.f32 %v8707_v61, %v1875_v7  ;;  %v1621_v61 = vsub.f32 %v8688_v1, %v1605_v21 }
 0x675   : > { %v1878_v29 = vpop.xlane.xlu1 %1877  ;;  %v1905_v43 = vmul.f32 1.442695, %v1897_v58  ;;  %v1632_v28 = vmul.f32 1.442695, %v1621_v61 }
 0x676   : > { %v1898_v39 = vsub.f32 %v8710_v4, %v1878_v29 }
 0x678   : > { %v1907_v41 = vmul.f32 1.442695, %v1898_v39  ;;  %v1602_v37 = vpop.xlane.xlu0 %1601 }
 0x679   : > { %v1620_v56 = vsub.f32 %v8715_v22, %v1602_v37 }
 0x67a   : > { %7406 = vpow2.f32 %v1907_v41  ;;  %v1881_v11 = vpop.xlane.xlu2 %1880 }
 0x67b   : > { %v1630_v26 = vmul.f32 1.442695, %v1620_v56  ;;  %v1899_v53 = vsub.f32 %v8720_v24, %v1881_v11 }
 0x67d   : > { %7408 = vpow2.f32 %v1630_v26  ;;  %v1909_v57 = vmul.f32 1.442695, %v1899_v53  ;;  %v1884_v15 = vpop.xlane.xlu1 %1883 }
 0x67e   : > { %7410 = vpow2.f32 %v1905_v43  ;;  %v1900_v20 = vsub.f32 %v8725_v3, %v1884_v15 }
 0x680   : > { %v8788_v16 = vpop.eup %7406  ;;  %v1608_v34 = vpop.xlane.xlu0 %1607  ;;  %v1911_v29 = vmul.f32 1.442695, %v1900_v20 }
 0x681   : > { %v1924_v2 = vsel %vm1023_vm11, %v8788_v16, 0.0  ;;  %v1622_v4 = vsub.f32 %v8730_v30, %v1608_v34 }
 0x682   : > { %1925 = vadd.xlane.f32.xlu1 %v1924_v2 }
 0x683   : > { %v8792_v12 = vpop.eup %7408  ;;  %v1634_v54 = vmul.f32 1.442695, %v1622_v4 }
 0x684   : > { %v1648_v22 = vsel %vm1023_vm11, %v8792_v12, 0.0  ;;  %v8798_v60 = vpop.eup %7410 }
 0x685   : > { %1649 = vadd.xlane.f32.xlu0 %v1648_v22  ;;  %7412 = vpow2.f32 %v1634_v54  ;;  %v1921_v14 = vsel %vm1023_vm11, %v8798_v60, 0.0  ;;  %v1890_v43 = vpop.xlane.xlu1 %1889  ;;  %v1625_v54 = vsub.f32 %v8702_v25, %v8781_v17 }
 0x686   : > { %7414 = vpow2.f32 %v1632_v28 }
 0x687   : > { %7416 = vpow2.f32 %v1909_v57 }
 0x688   : > { %v1614_v49 = vpop.xlane.xlu0 %1613 }
 0x689   : > { %v1624_v30 = vsub.f32 %v8745_v33, %v1614_v49  ;;  %v1887_v33 = vpop.xlane.xlu2 %1886  ;;  %v1623_v49 = vsub.f32 %v8697_v27, %v8779_v23 }
 0x68a   : > { %v1901_v41 = vsub.f32 %v8735_v10, %v1887_v33  ;;  %v1902_v10 = vsub.f32 %v8740_v32, %v1890_v43  ;;  %v1640_v32 = vmul.f32 1.442695, %v1625_v54 }
 0x68b   : > { %v8804_v42 = vpop.eup %7412  ;;  %v1638_v1 = vmul.f32 1.442695, %v1624_v30  ;;  %v1636_v30 = vmul.f32 1.442695, %v1623_v49 }
 0x68c   : > { %v8807_v21 = vpop.eup %7414  ;;  %v1654_v24 = vsel %vm1023_vm11, %v8804_v42, 0.0  ;;  %v1913_v56 = vmul.f32 1.442695, %v1901_v41  ;;  %v1915_v2 = vmul.f32 1.442695, %v1902_v10 }
 0x68d   : > { %1922 = vadd.xlane.f32.xlu0 %v1921_v14  ;;  %7418 = vpow2.f32 %v1638_v1  ;;  %v1651_v39 = vsel %vm1023_vm11, %v8807_v21, 0.0  ;;  %v8813_v7 = vpop.eup %7416 }
 0x68e   : > { %7420 = vpow2.f32 %v1911_v29  ;;  %v1927_v37 = vsel %vm1023_vm11, %v8813_v7, 0.0 }
 0x68f   : > { %7422 = vpow2.f32 %v1913_v56 }
 0x690   : > { %7424 = vpow2.f32 %v1915_v2 }
 0x691   : > { %7426 = vpow2.f32 %v1640_v32 }
 0x693   : > { %v8818_v3 = vpop.eup %7418 }
 0x694   : > { %v1660_v26 = vsel %vm1023_vm11, %v8818_v3, 0.0  ;;  %v8824_v34 = vpop.eup %7420 }
 0x695   : > { %1655 = vadd.xlane.f32.xlu0 %v1654_v24  ;;  %v8829_v61 = vpop.eup %7422 }
 0x696   : > { %v1933_v11 = vsel %vm1023_vm11, %v8829_v61, 0.0  ;;  %v8836_v53 = vpop.eup %7424 }
 0x697   : > { %v1936_v14 = vsel %vm1023_vm11, %v8836_v53, 0.0  ;;  %v8842_v15 = vpop.eup %7426 }
 0x698   : > { %1652 = vadd.xlane.f32.xlu2 %v1651_v39  ;;  %v1663_v27 = vsel %vm1023_vm11, %v8842_v15, 0.0 }
 0x69b   : > { %1965 = vrot.lane.b32.xlu1 %v8374_v5, %s7876_s21  ;;  %v1930_v5 = vsel %vm1023_vm11, %v8824_v34, 0.0 }
 0x69d   : > { %1928 = vadd.xlane.f32.xlu0 %v1927_v37 }
 0x69e   : > { %v1450_v58 = vpop.f32.mrf.mxu3 }
 0x6a0   : > { %1661 = vadd.xlane.f32.xlu2 %v1660_v26 }
 0x6a5   : > { %1931 = vadd.xlane.f32.xlu0 %v1930_v5 }
 0x6a6   : > { %v1452_v4 = vpop.f32.mrf.mxu3 }
 0x6a7   : > { %v1462_v22 = vpack.c.bf16 %v1452_v4, %v1450_v58 }
 0x6a9   : > { %6118 = vmatmul.msk.bf16.vlgmr.msrb.gmra.mxu3 %vm969_vm9, %v1462_v22 }
 0x6ad   : > { %1934 = vadd.xlane.f32.xlu0 %v1933_v11 }
 0x6ae   : > { %v1455_v28 = vpop.f32.mrf.mxu3 }
 0x6b2   : > { %v1644_v57 = vpop.xlane.xlu0 %1643 }
 0x6b3   : > { %7428 = vrcp.f32 %v1644_v57 }
 0x6b4   : > { %7430 = vpow2.f32 %v1636_v30 }
 0x6b5   : > { %1937 = vadd.xlane.f32.xlu0 %v1936_v14 }
 0x6b6   : > { %v1457_v25 = vpop.f32.mrf.mxu3 }
 0x6b7   : > { %v1463_v17 = vpack.c.bf16 %v1457_v25, %v1455_v28 }
 0x6b9   : > { %6119 = vmatmul.msk.bf16.gmra.mxu3 %vm969_vm9, %v1463_v17  ;;  %v7429_v23 = vpop.eup %7428 }
 0x6ba   : > { %v1647_v1 = vpop.xlane.xlu2 %1646  ;;  %v8847_v20 = vpop.eup %7430  ;;  %v1674_v29 = vmul.f32 %v7429_v23, %v8760_v0 }
 0x6bb   : > { %7432 = vrcp.f32 %v1647_v1  ;;  %v1657_v56 = vsel %vm1023_vm11, %v8847_v20, 0.0 }
 0x6bd   : > { %1664 = vadd.xlane.f32.xlu0 %v1663_v27 }
 0x6c1   : > { %v7433_v24 = vpop.eup %7432 }
 0x6c2   : > { %v1675_v39 = vmul.f32 %v7433_v24, %v8764_v6  ;;  %v1893_v33 = vpop.xlane.xlu2 %1892 }
 0x6c3   : > { %v1903_v41 = vsub.f32 %v8769_v52, %v1893_v33 }
 0x6c4   : > { %v1682_v37 = vpack.c.bf16 %v1675_v39, %v1674_v29 }
 0x6c5   : > { %v1917_v58 = vmul.f32 1.442695, %v1903_v41  ;;  %1658 = vadd.xlane.f32.xlu1 %v1657_v56 }
 0x6c6   : > { %6124 = vmatmul.msk.bf16.vlgmr.msra.gmra.mxu2 %vm1023_vm11, %v1682_v37 }
 0x6c7   : > { %7434 = vpow2.f32 %v1917_v58 }
 0x6ca   : > { %v1896_v26 = vpop.xlane.xlu2 %1895 }
 0x6cb   : > { %v1904_v43 = vsub.f32 %v8774_v51, %v1896_v26  ;;  %v7044_v26 = vld [vmem:[#allocation2 + $0x28] sm:$0xff] }
 0x6cc   : > { %1773 = vmatpush.bf16.msra.mxu3 %v7044_v26 }
 0x6cd   : > { %v8856_v10 = vpop.eup %7434  ;;  %v1919_v0 = vmul.f32 1.442695, %v1904_v43 }
 0x6ce   : > { %v1939_v6 = vsel %vm1023_vm11, %v8856_v10, 0.0 }
 0x6cf   : > { %7436 = vpow2.f32 %v1919_v0  ;;  %1940 = vadd.xlane.f32.xlu2 %v1939_v6 }
 0x6d2   : > { %v1968_v52 = vpop.permute.xlu2 %1967 }
 0x6d3   : > { %1995 = vmatpush.bf16.msrb.mxu1 %v1968_v52 }
 0x6d5   : > { %v8860_v5 = vpop.eup %7436 }
 0x6d6   : > { %v1942_v2 = vsel %vm1023_vm11, %v8860_v5, 0.0 }
 0x6d7   : > { %1943 = vadd.xlane.f32.xlu0 %v1942_v2  ;;  %v7043_v2 = vld [vmem:[#allocation2 + $0x20] sm:$0xff] }
 0x6d8   : > { %1774 = vmatpush.bf16.msra.mxu3 %v7043_v2 }
 0x6f5   : > { %v1926_v54 = vpop.xlane.xlu1 %1925 }
 0x6f8   : > { %v1650_v4 = vpop.xlane.xlu0 %1649 }
 0x700   : > { %v1923_v22 = vpop.xlane.xlu0 %1922 }
 0x701   : > { %7438 = vrcp.f32 %v1923_v22 }
 0x702   : > { %7440 = vrcp.f32 %v1926_v54  ;;  %v7662_v54 = vld [vmem:[%s8034_s22 + $0x30] sm:$0xff] }
 0x703   : > { %7442 = vrcp.f32 %v1650_v4 }
 0x707   : > { %v7439_v51 = vpop.eup %7438 }
 0x708   : > { %v1656_v11 = vpop.xlane.xlu0 %1655  ;;  %v7441_v32 = vpop.eup %7440  ;;  %v1953_v28 = vmul.f32 %v7439_v51, %v8798_v60  ;;  %v935_v51 = vadd.f32 %v7662_v54, %v8635_v55 }
 0x709   : > { %v1954_v14 = vmul.f32 %v7441_v32, %v8788_v16  ;;  %v7443_v25 = vpop.eup %7442 }
 0x70a   : > { %v1676_v27 = vmul.f32 %v7443_v25, %v8792_v12  ;;  %v7661_v12 = vld [vmem:[%s8034_s22 + $0x20] sm:$0xff] }
 0x70b   : > { %v1653_v49 = vpop.xlane.xlu2 %1652  ;;  %v1961_v57 = vpack.c.bf16 %v1954_v14, %v1953_v28  ;;  %v1244_v28 = vadd.f32 %v8671_v45, %v935_v51 }
 0x70c   : > { %7444 = vrcp.f32 %v1653_v49 }
 0x70d   : > { %v1966_v30 = vpop.permute.xlu1 %1965 }
 0x70e   : > { %1996 = vmatpush.bf16.msrb.mxu1 %v1966_v30 }
 0x710   : > { %v1929_v17 = vpop.xlane.xlu0 %1928 }
 0x711   : > { %6144 = vmatmul.msk.bf16.vlgmr.msrb.gmra.mxu1 %vm1023_vm11, %v1961_v57  ;;  %7446 = vrcp.f32 %v1929_v17 }
 0x712   : > { %v7445_v1 = vpop.eup %7444 }
 0x713   : > { %v1677_v23 = vmul.f32 %v7445_v1, %v8807_v21  ;;  %v933_v21 = vadd.f32 %v7661_v12, %v8635_v55 }
 0x715   : > { %v1683_v24 = vpack.c.bf16 %v1677_v23, %v1676_v27  ;;  %v1242_v58 = vadd.f32 %v8663_v48, %v933_v21  ;;  %v7046_v48 = vld [vmem:[#allocation2 + $0x38] sm:$0xff]  ;;  %v7045_v21 = vld [vmem:[#allocation2 + $0x30] sm:$0xff] }
 0x716   : > { %2052 = vmatpush.bf16.msrb.mxu2 %v7046_v48 }
 0x717   : > { %6125 = vmatmul.msk.bf16.gmra.mxu2 %vm1023_vm11, %v1683_v24  ;;  %v7447_v16 = vpop.eup %7446 }
 0x718   : > { %v1932_v60 = vpop.xlane.xlu0 %1931  ;;  %v1955_v39 = vmul.f32 %v7447_v16, %v8813_v7 }
 0x719   : > { %7448 = vrcp.f32 %v1932_v60 }
 0x71a   : > { %2053 = vmatpush.bf16.msrb.mxu2 %v7045_v21 }
 0x71f   : > { %v7449_v29 = vpop.eup %7448 }
 0x720   : > { %v1956_v33 = vmul.f32 %v7449_v29, %v8824_v34  ;;  %v1935_v41 = vpop.xlane.xlu0 %1934 }
 0x721   : > { %7450 = vrcp.f32 %v1935_v41 }
 0x722   : > { %v1962_v37 = vpack.c.bf16 %v1956_v33, %v1955_v39 }
 0x724   : > { %6145 = vmatmul.msk.bf16.gmra.mxu1 %vm1023_vm11, %v1962_v37 }
 0x727   : > { %v7451_v43 = vpop.eup %7450 }
 0x728   : > { %v1938_v56 = vpop.xlane.xlu0 %1937  ;;  %v1957_v34 = vmul.f32 %v7451_v43, %v8829_v61 }
 0x729   : > { %7452 = vrcp.f32 %v1938_v56 }
 0x72a   : > { %7454 = vrcp.f32 %v1656_v11 }
 0x72c   : > { %v1507_v0 = vpop.f32.mrf.mxu3 }
 0x72d   : > { %v8876_v6 = vadd.f32 %v1507_v0, %v1242_v58 }
 0x72f   : > { %v7453_v7 = vpop.eup %7452 }
 0x730   : > { %v1958_v52 = vmul.f32 %v7453_v7, %v8836_v53  ;;  %v7455_v61 = vpop.eup %7454  ;;  %v1662_v53 = vpop.xlane.xlu2 %1661 }
 0x731   : > { %v1678_v57 = vmul.f32 %v7455_v61, %v8804_v42  ;;  %v1665_v17 = vpop.xlane.xlu0 %1664 }
 0x732   : > { %v1963_v4 = vpack.c.bf16 %v1958_v52, %v1957_v34 }
 0x734   : > { %6146 = vmatmul.msk.bf16.gmra.mxu1 %vm1023_vm11, %v1963_v4  ;;  %v8881_v22 = vpop.f32.mrf.mxu3 }
 0x738   : > { %v1659_v32 = vpop.xlane.xlu1 %1658 }
 0x739   : > { %7456 = vrcp.f32 %v1659_v32 }
 0x73a   : > { %7458 = vrcp.f32 %v1665_v17 }
 0x73b   : > { %7460 = vrcp.f32 %v1662_v53 }
 0x73c   : > { %v1512_v49 = vpop.f32.mrf.mxu3 }
 0x73d   : > { %v8886_v14 = vadd.f32 %v1512_v49, %v1244_v28 }
 0x73f   : > { %v7457_v30 = vpop.eup %7456 }
 0x740   : > { %v1679_v25 = vmul.f32 %v7457_v30, %v8847_v20  ;;  %v7459_v23 = vpop.eup %7458 }
 0x741   : > { %v7461_v24 = vpop.eup %7460  ;;  %v1681_v60 = vmul.f32 %v7459_v23, %v8842_v15 }
 0x742   : > { %v1684_v11 = vpack.c.bf16 %v1679_v25, %v1678_v57  ;;  %v1941_v1 = vpop.xlane.xlu2 %1940  ;;  %v1680_v42 = vmul.f32 %v7461_v24, %v8818_v3  ;;  %v7663_v57 = vld [vmem:[%s8034_s22 + $0x8] sm:$0xff] }
 0x743   : > { %7462 = vrcp.f32 %v1941_v1  ;;  %v930_v25 = vadd.f32 %v7663_v57, %v8635_v55 }
 0x744   : > { %6126 = vmatmul.msk.bf16.gmra.mxu2 %vm1023_vm11, %v1684_v11  ;;  %v1685_v37 = vpack.c.bf16 %v1681_v60, %v1680_v42  ;;  %v1514_v53 = vpop.f32.mrf.mxu3 }
 0x749   : > { %v1719_v27 = vpop.f32.mrf.mxu2  ;;  %v7463_v16 = vpop.eup %7462 }
 0x74a   : > { %v1944_v45 = vpop.xlane.xlu0 %1943  ;;  %v1959_v39 = vmul.f32 %v7463_v16, %v8856_v10 }
 0x74b   : > { %7464 = vrcp.f32 %v1944_v45 }
 0x751   : > { %v7465_v29 = vpop.eup %7464  ;;  %v1721_v20 = vpop.f32.mrf.mxu2 }
 0x752   : > { %v1960_v33 = vmul.f32 %v7465_v29, %v8860_v5  ;;  %v1739_v41 = vpack.c.bf16 %v1721_v20, %v1719_v27  ;;  %v1239_v27 = vadd.f32 %v8641_v47, %v930_v25  ;;  %v7664_v29 = vld [vmem:[%s8034_s22 + $0x18] sm:$0xff] }
 0x754   : > { %6127 = vmatmul.msk.bf16.gmra.mxu2 %vm1023_vm11, %v1685_v37  ;;  %6136 = vmatmul.msk.bf16.vlgmr.msra.gmra.mxu3 %vm969_vm9, %v1739_v41  ;;  %v1964_v12 = vpack.c.bf16 %v1960_v33, %v1959_v39  ;;  %v1518_v23 = vadd.f32 %v8643_v35, %v1239_v27 }
 0x756   : > { %6147 = vmatmul.msk.bf16.gmra.mxu1 %vm1023_vm11, %v1964_v12 }
 0x78e   : > { %v1998_v15 = vpop.f32.mrf.mxu1 }
 0x796   : > { %v2000_v56 = vpop.f32.mrf.mxu1 }
 0x797   : > { %v2018_v3 = vpack.c.bf16 %v2000_v56, %v1998_v15 }
 0x799   : > { %6156 = vmatmul.msk.bf16.vlgmr.msrb.gmra.mxu2 %vm969_vm9, %v2018_v3  ;;  %v7665_v3 = vld [vmem:[%s8034_s22 + $0x28] sm:$0xff] }
 0x79a   : > { %v1724_v58 = vpop.f32.mrf.mxu2 }
 0x7a1   : > { %v2003_v10 = vpop.f32.mrf.mxu1 }
 0x7a2   : > { %v1726_v26 = vpop.f32.mrf.mxu2 }
 0x7a3   : > { %v1740_v5 = vpack.c.bf16 %v1726_v26, %v1724_v58 }
 0x7a5   : > { %6137 = vmatmul.msk.bf16.gmra.mxu3 %vm969_vm9, %v1740_v5 }
 0x7a9   : > { %v2005_v43 = vpop.f32.mrf.mxu1 }
 0x7aa   : > { %v2019_v0 = vpack.c.bf16 %v2005_v43, %v2003_v10 }
 0x7ac   : > { %6157 = vmatmul.msk.bf16.gmra.mxu2 %vm969_vm9, %v2019_v0 }
 0x7b1   : > { %v2008_v7 = vpop.f32.mrf.mxu1 }
 0x7b9   : > { %v2010_v34 = vpop.f32.mrf.mxu1 }
 0x7ba   : > { %v2020_v52 = vpack.c.bf16 %v2010_v34, %v2008_v7 }
 0x7bc   : > { %6158 = vmatmul.msk.bf16.gmra.mxu2 %vm969_vm9, %v2020_v52 }
 0x7c7   : > { %v1729_v2 = vpop.f32.mrf.mxu2 }
 0x7cf   : > { %v1731_v4 = vpop.f32.mrf.mxu2 }
 0x7d0   : > { %v1741_v48 = vpack.c.bf16 %v1731_v4, %v1729_v2  ;;  %v7666_v2 = vld [vmem:[%s8034_s22 + $0x38] sm:$0xff] }
 0x7d1   : > { %v936_v4 = vadd.f32 %v7666_v2, %v8635_v55  ;;  %v7073_v2 = vld [vmem:[%s10813_s3 + $0xcc] sm:$0xf0] }
 0x7d2   : > { %6138 = vmatmul.msk.bf16.gmra.mxu3 %vm969_vm9, %v1741_v48 }
 0x7d3   : > { %v2013_v54 = vpop.f32.mrf.mxu1 }
 0x7d7   : > { %v1734_v51 = vpop.f32.mrf.mxu2  ;;  %v1776_v30 = vpop.f32.mrf.mxu3 }
 0x7d8   : > { %v1796_v17 = vadd.f32 %v1776_v30, %v8639_v59  ;;  %v932_v59 = vadd.f32 %v7664_v29, %v8635_v55 }
 0x7da   : > { %v1241_v33 = vadd.f32 %v8653_v46, %v932_v59 }
 0x7db   : > { %v2015_v32 = vpop.f32.mrf.mxu1 }
 0x7dc   : > { %v2021_v28 = vpack.c.bf16 %v2015_v32, %v2013_v54  ;;  %v1520_v41 = vadd.f32 %v8685_v19, %v1241_v33  ;;  %v1245_v54 = vadd.f32 %v8673_v36, %v936_v4  ;;  %v7071_v4 = vld [vmem:[%s10813_s3 + $0xc4] sm:$0xf] }
 0x7de   : > { %6159 = vmatmul.msk.bf16.gmra.mxu2 %vm969_vm9, %v2021_v28  ;;  %v1524_v32 = vadd.f32 %v1514_v53, %v1245_v54  ;;  %v6260_v54 = vld [vmem:[%s10813_s3 + $0xd0] sm:$0xf0] }
 0x7df   : > { %v1736_v61 = vpop.f32.mrf.mxu2  ;;  %v1778_v45 = vpop.f32.mrf.mxu3 }
 0x7e0   : > { %v1742_v49 = vpack.c.bf16 %v1736_v61, %v1734_v51  ;;  %v1797_v24 = vadd.f32 %v1778_v45, %v1518_v23 }
 0x7e2   : > { %6139 = vmatmul.msk.bf16.gmra.mxu3 %vm969_vm9, %v1742_v49 }
 0x81c   : > { %v2055_v11 = vpop.f32.mrf.mxu2 }
 0x81d   : > { %v8908_v1 = vadd.f32 %v2055_v11, %v1796_v17 }
 0x81f   : > { %2083 = vadd.xlane.f32.xlu2 %v8908_v1 }
 0x824   : > { %v2057_v60 = vpop.f32.mrf.mxu2 }
 0x825   : > { %v8913_v16 = vadd.f32 %v2057_v60, %v1797_v24 }
 0x827   : > { %2085 = vadd.xlane.f32.xlu0 %v8913_v16 }
 0x828   : > { %v1781_v42 = vpop.f32.mrf.mxu3 }
 0x829   : > { %v1798_v20 = vadd.f32 %v1781_v42, %v8647_v40  ;;  %v934_v40 = vadd.f32 %v7665_v3, %v8635_v55  ;;  %v7077_v3 = vld [vmem:[%s10813_s3 + $0xec] sm:$0xf0] }
 0x82b   : > { %v1243_v10 = vadd.f32 %v8669_v62, %v934_v40  ;;  %v7075_v40 = vld [vmem:[%s10813_s3 + $0xe4] sm:$0xf] }
 0x82d   : > { %v1522_v19 = vadd.f32 %v8881_v22, %v1243_v10  ;;  %v6276_v10 = vld [vmem:[%s10813_s3 + $0xf0] sm:$0xf0] }
 0x82f   : > { %v2060_v39 = vpop.f32.mrf.mxu2 }
 0x830   : > { %v8919_v47 = vadd.f32 %v2060_v39, %v1798_v20  ;;  %v1783_v35 = vpop.f32.mrf.mxu3 }
 0x831   : > { %v1799_v37 = vadd.f32 %v1783_v35, %v1520_v41 }
 0x832   : > { %2087 = vadd.xlane.f32.xlu2 %v8919_v47 }
 0x837   : > { %v2062_v12 = vpop.f32.mrf.mxu2 }
 0x838   : > { %v8924_v21 = vadd.f32 %v2062_v12, %v1799_v37 }
 0x83a   : > { %2089 = vadd.xlane.f32.xlu1 %v8924_v21 }
 0x83f   : > { %v2065_v15 = vpop.f32.mrf.mxu2 }
 0x847   : > { %v2067_v43 = vpop.f32.mrf.mxu2 }
 0x855   : > { %v1786_v56 = vpop.f32.mrf.mxu3 }
 0x856   : > { %v1800_v58 = vadd.f32 %v1786_v56, %v8876_v6  ;;  %v6274_v56 = vld [vmem:[%s10813_s3 + $0xe0] sm:$0xf] }
 0x858   : > { %v8930_v46 = vadd.f32 %v2065_v15, %v1800_v58  ;;  %v6275_v58 = vor.u32 %v7077_v3, %v6274_v56  ;;  %v6228_v56 = vld [vmem:[%s10813_s3 + $0x90] sm:$0xf0]  ;;  %v6234_v3 = vld [vmem:[%s10813_s3 + $0x88] sm:$0xf] }
 0x85a   : > { %2091 = vadd.xlane.f32.xlu0 %v8930_v46  ;;  %2467 = vmatpush.bf16.msrb.mxu3 %v6275_v58 }
 0x85d   : > { %v1788_v26 = vpop.f32.mrf.mxu3 }
 0x85e   : > { %v1801_v5 = vadd.f32 %v1788_v26, %v1522_v19  ;;  %v6282_v19 = vld [vmem:[%s10813_s3 + $0xe8] sm:$0xf]  ;;  %v7078_v26 = vld [vmem:[%s10813_s3 + $0xf4] sm:$0xf0] }
 0x860   : > { %v8935_v0 = vadd.f32 %v2067_v43, %v1801_v5  ;;  %v6279_v5 = vor.u32 %v7075_v40, %v6276_v10  ;;  %v6283_v43 = vor.u32 %v7078_v26, %v6282_v19  ;;  %v7066_v40 = vld [vmem:[%s10813_s3 + $0x94] sm:$0xf0]  ;;  %v7064_v19 = vld [vmem:[%s10813_s3 + $0x8c] sm:$0xf]  ;;  %v6236_v26 = vld [vmem:[%s10813_s3 + $0x98] sm:$0xf0] }
 0x861   : > { %v2070_v6 = vpop.f32.mrf.mxu2  ;;  %v6235_v10 = vor.u32 %v7066_v40, %v6234_v3  ;;  %v7052_v40 = vld [vmem:[%s10813_s3 + $0x2c] sm:$0xf] }
 0x862   : > { %2093 = vadd.xlane.f32.xlu2 %v8935_v0  ;;  %2496 = vmatpush.bf16.msrb.mxu0 %v6279_v5  ;;  %v6239_v5 = vor.u32 %v7064_v19, %v6236_v26  ;;  %v6162_v26 = vld [vmem:[%s10813_s3] sm:$0xf] }
 0x863   : > { %2525 = vmatpush.bf16.msra.mxu1 %v6283_v43  ;;  %v6210_v43 = vld [vmem:[%s10813_s3 + $0x60] sm:$0xf] }
 0x865   : > { %v1791_v7 = vpop.f32.mrf.mxu3 }
 0x866   : > { %v1802_v34 = vadd.f32 %v1791_v7, %v8886_v14  ;;  %v7076_v7 = vld [vmem:[%s10813_s3 + $0xec] sm:$0xf] }
 0x868   : > { %v8939_v52 = vadd.f32 %v2070_v6, %v1802_v34  ;;  %v6284_v34 = vld [vmem:[%s10813_s3 + $0xf8] sm:$0xf0] }
 0x869   : > { %v2072_v55 = vpop.f32.mrf.mxu2  ;;  %v6287_v6 = vor.u32 %v7076_v7, %v6284_v34  ;;  %v7061_v7 = vld [vmem:[%s10813_s3 + $0x6c] sm:$0xf0]  ;;  %v7059_v34 = vld [vmem:[%s10813_s3 + $0x64] sm:$0xf] }
 0x86a   : > { %2095 = vadd.xlane.f32.xlu2 %v8939_v52 }
 0x86b   : > { %2554 = vmatpush.bf16.msra.mxu2 %v6287_v6  ;;  %v6211_v6 = vor.u32 %v7061_v7, %v6210_v43  ;;  %v7047_v43 = vld [vmem:[%s10813_s3 + $0x4] sm:$0xf] }
 0x86d   : > { %v1793_v14 = vpop.f32.mrf.mxu3 }
 0x86e   : > { %v1803_v61 = vadd.f32 %v1793_v14, %v1524_v32  ;;  %v7074_v14 = vld [vmem:[%s10813_s3 + $0xd4] sm:$0xf0]  ;;  %v6263_v32 = vor.u32 %v7071_v4, %v6260_v54 }
 0x86f   : > { %v7062_v4 = vld [vmem:[%s10813_s3 + $0x74] sm:$0xf0] }
 0x870   : > { %v8955_v57 = vadd.f32 %v2072_v55, %v1803_v61  ;;  %v7072_v61 = vld [vmem:[%s10813_s3 + $0xcc] sm:$0xf]  ;;  %2497 = vmatpush.bf16.msrb.mxu0 %v6263_v32 }
 0x892   : > { %v2084_v62 = vpop.xlane.xlu2 %2083 }
 0x893   : > { %v2099_v22 = vmul.f32 %v2084_v62, %v8043_v13  ;;  %v6258_v62 = vld [vmem:[%s10813_s3 + $0xc0] sm:$0xf] }
 0x895   : > { %v8946_v48 = vsub.f32 %v8908_v1, %v2099_v22  ;;  %v6259_v22 = vor.u32 %v7073_v2, %v6258_v62  ;;  %v6212_v62 = vld [vmem:[%s10813_s3 + $0x70] sm:$0xf0]  ;;  %v6218_v2 = vld [vmem:[%s10813_s3 + $0x68] sm:$0xf] }
 0x896   : > { %v6219_v54 = vor.u32 %v7062_v4, %v6218_v2  ;;  %v7050_v4 = vld [vmem:[%s10813_s3 + $0x14] sm:$0xf0] }
 0x897   : > { %v2115_v51 = vmul.f32 %v8946_v48, %v8946_v48  ;;  %2468 = vmatpush.bf16.msrb.mxu3 %v6259_v22  ;;  %v6215_v22 = vor.u32 %v7059_v34, %v6212_v62  ;;  %v6170_v62 = vld [vmem:[%s10813_s3 + $0x8] sm:$0xf] }
 0x899   : > { %2123 = vadd.xlane.f32.xlu1 %v2115_v51  ;;  %v6266_v51 = vld [vmem:[%s10813_s3 + $0xc8] sm:$0xf] }
 0x89a   : > { %v2086_v28 = vpop.xlane.xlu0 %2085 }
 0x89b   : > { %v2100_v49 = vmul.f32 %v2086_v28, %v8043_v13  ;;  %v6267_v28 = vor.u32 %v7074_v14, %v6266_v51  ;;  %v7060_v51 = vld [vmem:[%s10813_s3 + $0x6c] sm:$0xf]  ;;  %v6220_v14 = vld [vmem:[%s10813_s3 + $0x78] sm:$0xf0] }
 0x89c   : > { %v6223_v32 = vor.u32 %v7060_v51, %v6220_v14  ;;  %v6171_v51 = vor.u32 %v7050_v4, %v6170_v62 }
 0x89d   : > { %v8953_v30 = vsub.f32 %v8913_v16, %v2100_v49  ;;  %v6268_v49 = vld [vmem:[%s10813_s3 + $0xd8] sm:$0xf0]  ;;  %2526 = vmatpush.bf16.msra.mxu1 %v6267_v28  ;;  %v6194_v28 = vld [vmem:[%s10813_s3 + $0x40] sm:$0xf] }
 0x89e   : > { %v6271_v55 = vor.u32 %v7072_v61, %v6268_v49  ;;  %v7057_v61 = vld [vmem:[%s10813_s3 + $0x4c] sm:$0xf0]  ;;  %v7055_v49 = vld [vmem:[%s10813_s3 + $0x44] sm:$0xf] }
 0x89f   : > { %v2116_v25 = vmul.f32 %v8953_v30, %v8953_v30 }
 0x8a0   : > { %2555 = vmatpush.bf16.msra.mxu2 %v6271_v55  ;;  %v6195_v55 = vor.u32 %v7057_v61, %v6194_v28 }
 0x8a1   : > { %2125 = vadd.xlane.f32.xlu0 %v2116_v25  ;;  %2097 = vadd.xlane.f32.xlu1 %v8955_v57  ;;  %v6242_v25 = vld [vmem:[%s10813_s3 + $0xa0] sm:$0xf] }
 0x8a5   : > { %v2088_v36 = vpop.xlane.xlu2 %2087 }
 0x8a6   : > { %v2101_v53 = vmul.f32 %v2088_v36, %v8043_v13  ;;  %v7069_v36 = vld [vmem:[%s10813_s3 + $0xac] sm:$0xf0] }
 0x8a8   : > { %v8962_v17 = vsub.f32 %v8919_v47, %v2101_v53  ;;  %v7067_v53 = vld [vmem:[%s10813_s3 + $0xa4] sm:$0xf] }
 0x8aa   : > { %v2117_v11 = vmul.f32 %v8962_v17, %v8962_v17 }
 0x8ac   : > { %2127 = vadd.xlane.f32.xlu0 %v2117_v11  ;;  %v6243_v11 = vor.u32 %v7069_v36, %v6242_v25  ;;  %v6196_v25 = vld [vmem:[%s10813_s3 + $0x50] sm:$0xf0]  ;;  %v6202_v36 = vld [vmem:[%s10813_s3 + $0x48] sm:$0xf] }
 0x8ad   : > { %v2090_v27 = vpop.xlane.xlu1 %2089 }
 0x8ae   : > { %v2102_v45 = vmul.f32 %v2090_v27, %v8043_v13  ;;  %v6244_v27 = vld [vmem:[%s10813_s3 + $0xb0] sm:$0xf0]  ;;  %2469 = vmatpush.bf16.msrb.mxu3 %v6243_v11  ;;  %v6199_v11 = vor.u32 %v7055_v49, %v6196_v25 }
 0x8b0   : > { %v8968_v23 = vsub.f32 %v8924_v21, %v2102_v45  ;;  %v6250_v45 = vld [vmem:[%s10813_s3 + $0xa8] sm:$0xf] }
 0x8b2   : > { %v2118_v24 = vmul.f32 %v8968_v23, %v8968_v23 }
 0x8b4   : > { %2129 = vadd.xlane.f32.xlu2 %v2118_v24  ;;  %v7070_v24 = vld [vmem:[%s10813_s3 + $0xb4] sm:$0xf0] }
 0x8cd   : > { %v2092_v60 = vpop.xlane.xlu0 %2091 }
 0x8ce   : > { %v2103_v42 = vmul.f32 %v2092_v60, %v8043_v13  ;;  %v6247_v60 = vor.u32 %v7067_v53, %v6244_v27  ;;  %v7058_v53 = vld [vmem:[%s10813_s3 + $0x54] sm:$0xf0] }
 0x8cf   : > { %v6203_v27 = vor.u32 %v7058_v53, %v6202_v36 }
 0x8d0   : > { %v8974_v29 = vsub.f32 %v8930_v46, %v2103_v42  ;;  %v6251_v42 = vor.u32 %v7070_v24, %v6250_v45  ;;  %2498 = vmatpush.bf16.msrb.mxu0 %v6247_v60  ;;  %v7056_v45 = vld [vmem:[%s10813_s3 + $0x4c] sm:$0xf]  ;;  %v6204_v24 = vld [vmem:[%s10813_s3 + $0x58] sm:$0xf0] }
 0x8d1   : > { %v6207_v60 = vor.u32 %v7056_v45, %v6204_v24 }
 0x8d2   : > { %v2119_v59 = vmul.f32 %v8974_v29, %v8974_v29  ;;  %2527 = vmatpush.bf16.msra.mxu1 %v6251_v42  ;;  %v6178_v42 = vld [vmem:[%s10813_s3 + $0x20] sm:$0xf] }
 0x8d4   : > { %2131 = vadd.xlane.f32.xlu1 %v2119_v59  ;;  %v7068_v59 = vld [vmem:[%s10813_s3 + $0xac] sm:$0xf] }
 0x8d5   : > { %v2094_v20 = vpop.xlane.xlu2 %2093 }
 0x8d6   : > { %v2104_v39 = vmul.f32 %v2094_v20, %v8043_v13  ;;  %v6252_v20 = vld [vmem:[%s10813_s3 + $0xb8] sm:$0xf0]  ;;  %2528 = vmatpush.bf16.msra.mxu1 %v6235_v10 }
 0x8d8   : > { %v8980_v33 = vsub.f32 %v8935_v0, %v2104_v39  ;;  %v6255_v39 = vor.u32 %v7068_v59, %v6252_v20  ;;  %v7053_v59 = vld [vmem:[%s10813_s3 + $0x2c] sm:$0xf0]  ;;  %v7051_v20 = vld [vmem:[%s10813_s3 + $0x24] sm:$0xf] }
 0x8da   : > { %v2120_v35 = vmul.f32 %v8980_v33, %v8980_v33  ;;  %2556 = vmatpush.bf16.msra.mxu2 %v6255_v39  ;;  %2529 = vmatpush.bf16.msra.mxu1 %v6219_v54  ;;  %v6179_v39 = vor.u32 %v7053_v59, %v6178_v42  ;;  %v6172_v54 = vld [vmem:[%s10813_s3 + $0x18] sm:$0xf0] }
 0x8dc   : > { %2133 = vadd.xlane.f32.xlu0 %v2120_v35  ;;  %v6226_v35 = vld [vmem:[%s10813_s3 + $0x80] sm:$0xf] }
 0x8dd   : > { %v2096_v41 = vpop.xlane.xlu2 %2095 }
 0x8de   : > { %v2105_v37 = vmul.f32 %v2096_v41, %v8043_v13  ;;  %v7065_v41 = vld [vmem:[%s10813_s3 + $0x8c] sm:$0xf0]  ;;  %2557 = vmatpush.bf16.msra.mxu2 %v6239_v5  ;;  %2530 = vmatpush.bf16.msra.mxu1 %v6203_v27 }
 0x8df   : > { %v7049_v5 = vld [vmem:[%s10813_s3 + $0xc] sm:$0xf0] }
 0x8e0   : > { %v8986_v12 = vsub.f32 %v8939_v52, %v2105_v37  ;;  %v7063_v37 = vld [vmem:[%s10813_s3 + $0x84] sm:$0xf]  ;;  %v6163_v34 = vor.u32 %v7049_v5, %v6162_v26 }
 0x8e1   : > { %v6231_v58 = vor.u32 %v7063_v37, %v6228_v56  ;;  %v7054_v37 = vld [vmem:[%s10813_s3 + $0x34] sm:$0xf0] }
 0x8e2   : > { %v2121_v15 = vmul.f32 %v8986_v12, %v8986_v12  ;;  %2558 = vmatpush.bf16.msra.mxu2 %v6223_v32 }
 0x8e3   : > { %2499 = vmatpush.bf16.msrb.mxu0 %v6231_v58  ;;  %v6188_v58 = vld [vmem:[%s10813_s3 + $0x38] sm:$0xf0] }
 0x8e4   : > { %2135 = vadd.xlane.f32.xlu2 %v2121_v15  ;;  %v6227_v15 = vor.u32 %v7065_v41, %v6226_v35  ;;  %v6180_v35 = vld [vmem:[%s10813_s3 + $0x30] sm:$0xf0]  ;;  %v6186_v41 = vld [vmem:[%s10813_s3 + $0x28] sm:$0xf]  ;;  %v6191_v19 = vor.u32 %v7052_v40, %v6188_v58 }
 0x8e5   : > { %v6183_v56 = vor.u32 %v7051_v20, %v6180_v35  ;;  %v6187_v3 = vor.u32 %v7054_v37, %v6186_v41 }
 0x8e6   : > { %2470 = vmatpush.bf16.msrb.mxu3 %v6227_v15  ;;  %2559 = vmatpush.bf16.msra.mxu2 %v6207_v60 }
 0x8e7   : > { %2500 = vmatpush.bf16.msrb.mxu0 %v6215_v22  ;;  %2531 = vmatpush.bf16.msra.mxu1 %v6187_v3  ;;  %v7048_v22 = vld [vmem:[%s10813_s3 + $0xc] sm:$0xf]  ;;  %v9194_v3 = vld [vmem:[%s10815_s5] sm:$0xff] }
 0x8e8   : > { %v6175_v14 = vor.u32 %v7048_v22, %v6172_v54  ;;  %v9197_v40 = vperm.slane %v9194_v3, 2 }
 0x8ea   : > { %2471 = vmatpush.bf16.msrb.mxu3 %v6211_v6  ;;  %2560 = vmatpush.bf16.msra.mxu2 %v6191_v19  ;;  %v6164_v6 = vld [vmem:[%s10813_s3 + $0x10] sm:$0xf0] }
 0x8eb   : > { %2501 = vmatpush.bf16.msrb.mxu0 %v6199_v11  ;;  %v6167_v2 = vor.u32 %v7047_v43, %v6164_v6  ;;  %2532 = vmatpush.bf16.msra.mxu1 %v6171_v51 }
 0x8ee   : > { %2472 = vmatpush.bf16.msrb.mxu3 %v6195_v55  ;;  %2561 = vmatpush.bf16.msra.mxu2 %v6175_v14 }
 0x8ef   : > { %2502 = vmatpush.bf16.msrb.mxu0 %v6183_v56 }
 0x8f2   : > { %2473 = vmatpush.bf16.msrb.mxu3 %v6179_v39 }
 0x8f3   : > { %2503 = vmatpush.bf16.msrb.mxu0 %v6167_v2  ;;  %v9204_v2 = vperm.slane %v9194_v3, 3 }
 0x8f6   : > { %2474 = vmatpush.bf16.msrb.mxu3 %v6163_v34 }
 0x90c   : > { %v2124_v15 = vpop.xlane.xlu1 %2123 }
 0x90d   : > { %v2139_v10 = vmul.f32 %v2124_v15, %v8043_v13 }
 0x90f   : > { %v2147_v7 = vadd.f32 1e-05, %v2139_v10 }
 0x911   : > { %7466 = vrsqrt.f32 %v2147_v7  ;;  %vm2161_vm4 = vweird.f32 %v2147_v7 }
 0x914   : > { %v2126_v32 = vpop.xlane.xlu0 %2125  ;;  %v2098_v28 = vpop.xlane.xlu1 %2097 }
 0x915   : > { %v2140_v61 = vmul.f32 %v2126_v32, %v8043_v13  ;;  %v2106_v49 = vmul.f32 %v2098_v28, %v8043_v13 }
 0x917   : > { %v7467_v55 = vpop.eup %7466  ;;  %v2148_v25 = vadd.f32 1e-05, %v2140_v61  ;;  %v9186_v36 = vsub.f32 %v8955_v57, %v2106_v49 }
 0x918   : > { %v2156_v53 = vmul.f32 %v7467_v55, %v2147_v7  ;;  %vm2162_vm3 = vweird.f32 %v7467_v55 }
 0x919   : > { %7468 = vrsqrt.f32 %v2148_v25  ;;  %v2122_v11 = vmul.f32 %v9186_v36, %v9186_v36  ;;  %vm2163_vm5 = vmor %vm2161_vm4, %vm2162_vm3  ;;  %vm2171_vm7 = vweird.f32 %v2148_v25 }
 0x91a   : > { %v2157_v27 = vmul.f32 %v7467_v55, %v2156_v53 }
 0x91b   : > { %2137 = vadd.xlane.f32.xlu1 %v2122_v11 }
 0x91c   : > { %v2158_v45 = vmul.f32 0.5, %v2157_v27 }
 0x91e   : > { %v2159_v24 = vsub.f32 1.5, %v2158_v45 }
 0x91f   : > { %v7469_v60 = vpop.eup %7468  ;;  %v2128_v42 = vpop.xlane.xlu0 %2127 }
 0x920   : > { %v2160_v59 = vmul.f32 %v7467_v55, %v2159_v24  ;;  %v2166_v20 = vmul.f32 %v7469_v60, %v2148_v25  ;;  %v2141_v39 = vmul.f32 %v2128_v42, %v8043_v13  ;;  %vm2172_vm6 = vweird.f32 %v7469_v60 }
 0x921   : > { %vm2173_vm8 = vmor %vm2171_vm7, %vm2172_vm6 }
 0x922   : > { %v2167_v35 = vmul.f32 %v7469_v60, %v2166_v20  ;;  %v2149_v41 = vadd.f32 1e-05, %v2141_v39  ;;  %v2164_v37 = vsel %vm2163_vm5, %v7467_v55, %v2160_v59 }
 0x923   : > { %v2235_v58 = vmul.f32 %v2164_v37, %v8946_v48 }
 0x924   : > { %v2168_v15 = vmul.f32 0.5, %v2167_v35  ;;  %7470 = vrsqrt.f32 %v2149_v41  ;;  %vm2181_vm12 = vweird.f32 %v2149_v41 }
 0x925   : > { %v2244_v34 = vmul.f32 %v9197_v40, %v2235_v58 }
 0x926   : > { %v2169_v56 = vsub.f32 1.5, %v2168_v15 }
 0x927   : > { %v2130_v10 = vpop.xlane.xlu2 %2129  ;;  %v2253_v54 = vadd.f32 %v9204_v2, %v2244_v34 }
 0x928   : > { %v2170_v19 = vmul.f32 %v7469_v60, %v2169_v56  ;;  %v2142_v26 = vmul.f32 %v2130_v10, %v8043_v13 }
 0x92a   : > { %v7471_v5 = vpop.eup %7470  ;;  %v2174_v43 = vsel %vm2173_vm8, %v7469_v60, %v2170_v19  ;;  %v2150_v7 = vadd.f32 1e-05, %v2142_v26 }
 0x92b   : > { %v2236_v6 = vmul.f32 %v2174_v43, %v8953_v30  ;;  %v2176_v62 = vmul.f32 %v7471_v5, %v2149_v41  ;;  %vm2182_vm10 = vweird.f32 %v7471_v5 }
 0x92c   : > { %7472 = vrsqrt.f32 %v2150_v7  ;;  %vm2183_vm13 = vmor %vm2181_vm12, %vm2182_vm10  ;;  %vm2191_vm15 = vweird.f32 %v2150_v7 }
 0x92d   : > { %v2245_v48 = vmul.f32 %v9197_v40, %v2236_v6  ;;  %v2177_v4 = vmul.f32 %v7471_v5, %v2176_v62 }
 0x92f   : > { %v2178_v22 = vmul.f32 0.5, %v2177_v4  ;;  %v2254_v51 = vadd.f32 %v9204_v2, %v2245_v48 }
 0x931   : > { %v2179_v14 = vsub.f32 1.5, %v2178_v22  ;;  %v2261_v32 = vpack.c.bf16 %v2254_v51, %v2253_v54 }
 0x932   : > { %v7473_v28 = vpop.eup %7472 }
 0x933   : > { %v2180_v61 = vmul.f32 %v7471_v5, %v2179_v14  ;;  %v2186_v49 = vmul.f32 %v7473_v28, %v2150_v7  ;;  %2475 = vmatmul.bf16.vlgmr.msrb.gmra.mxu3 %v2261_v32  ;;  %2504 = vmatmul.bf16.vlgmr.msrb.gmra.mxu0 %v2261_v32  ;;  %vm2192_vm14 = vweird.f32 %v7473_v28 }
 0x934   : > { %2533 = vmatmul.bf16.vlgmr.msra.gmra.mxu1 %v2261_v32  ;;  %2562 = vmatmul.bf16.vlgmr.msra.gmra.mxu2 %v2261_v32  ;;  %vm2193_vm0 = vmor %vm2191_vm15, %vm2192_vm14 }
 0x935   : > { %v2187_v30 = vmul.f32 %v7473_v28, %v2186_v49  ;;  %v2184_v55 = vsel %vm2183_vm13, %v7471_v5, %v2180_v61 }
 0x936   : > { %v2237_v11 = vmul.f32 %v2184_v55, %v8962_v17 }
 0x937   : > { %v2188_v25 = vmul.f32 0.5, %v2187_v30 }
 0x938   : > { %v2246_v60 = vmul.f32 %v9197_v40, %v2237_v11  ;;  %v7101_v11 = vld [vmem:[%s10814_s4 + $0xb0] sm:$0xff] }
 0x939   : > { %v2189_v53 = vsub.f32 1.5, %v2188_v25  ;;  %v7102_v25 = vld [vmem:[%s10814_s4 + $0xb8] sm:$0xff] }
 0x93a   : > { %v2255_v59 = vadd.f32 %v9204_v2, %v2246_v60  ;;  %2946 = vmatpush.bf16.msrb.mxu1 %v7102_v25  ;;  %v7100_v60 = vld [vmem:[%s10814_s4 + $0xa8] sm:$0xff] }
 0x93b   : > { %v2190_v27 = vmul.f32 %v7473_v28, %v2189_v53  ;;  %v7093_v53 = vld [vmem:[%s10814_s4 + $0x70] sm:$0xff] }
 0x93d   : > { %v2194_v45 = vsel %vm2193_vm0, %v7473_v28, %v2190_v27  ;;  %v7086_v27 = vld [vmem:[%s10814_s4 + $0x38] sm:$0xff] }
 0x93e   : > { %v2238_v24 = vmul.f32 %v2194_v45, %v8968_v23  ;;  %2947 = vmatpush.bf16.msrb.mxu1 %v7101_v11  ;;  %v7110_v45 = vld [vmem:[%s10814_s4 + $0xf8] sm:$0xff]  ;;  %2888 = vmatpush.bf16.msra.mxu3 %v7086_v27  ;;  %v7079_v27 = vld [vmem:[%s10814_s4] sm:$0xff] }
 0x93f   : > { %2975 = vmatpush.bf16.msrb.mxu2 %v7110_v45  ;;  %v7103_v45 = vld [vmem:[%s10814_s4 + $0xc0] sm:$0xff] }
 0x940   : > { %v2247_v42 = vmul.f32 %v9197_v40, %v2238_v24  ;;  %v7092_v24 = vld [vmem:[%s10814_s4 + $0x68] sm:$0xff] }
 0x942   : > { %v2256_v20 = vadd.f32 %v9204_v2, %v2247_v42  ;;  %2948 = vmatpush.bf16.msrb.mxu1 %v7100_v60 }
 0x944   : > { %v2262_v39 = vpack.c.bf16 %v2256_v20, %v2255_v59  ;;  %v7085_v59 = vld [vmem:[%s10814_s4 + $0x30] sm:$0xff] }
 0x945   : > { %v7109_v20 = vld [vmem:[%s10814_s4 + $0xf0] sm:$0xff]  ;;  %2889 = vmatpush.bf16.msra.mxu3 %v7085_v59 }
 0x946   : > { %2480 = vmatmul.bf16.gmra.mxu3 %v2262_v39  ;;  %2509 = vmatmul.bf16.gmra.mxu0 %v2262_v39 }
 0x947   : > { %2538 = vmatmul.bf16.gmra.mxu1 %v2262_v39  ;;  %2567 = vmatmul.bf16.gmra.mxu2 %v2262_v39  ;;  %v2132_v17 = vpop.xlane.xlu1 %2131  ;;  %v7091_v39 = vld [vmem:[%s10814_s4 + $0x60] sm:$0xff] }
 0x948   : > { %v2143_v35 = vmul.f32 %v2132_v17, %v8043_v13  ;;  %v7099_v17 = vld [vmem:[%s10814_s4 + $0xa0] sm:$0xff]  ;;  %2976 = vmatpush.bf16.msrb.mxu2 %v7109_v20 }
 0x949   : > { %2949 = vmatpush.bf16.msrb.mxu1 %v7099_v17 }
 0x94a   : > { %v2151_v41 = vadd.f32 1e-05, %v2143_v35 }
 0x94c   : > { %7474 = vrsqrt.f32 %v2151_v41  ;;  %vm2201_vm2 = vweird.f32 %v2151_v41 }
 0x94f   : > { %v2134_v37 = vpop.xlane.xlu0 %2133 }
 0x950   : > { %v2144_v23 = vmul.f32 %v2134_v37, %v8043_v13  ;;  %v7108_v37 = vld [vmem:[%s10814_s4 + $0xe8] sm:$0xff] }
 0x951   : > { %2977 = vmatpush.bf16.msrb.mxu2 %v7108_v37 }
 0x952   : > { %v7475_v15 = vpop.eup %7474  ;;  %v2152_v56 = vadd.f32 1e-05, %v2144_v23 }
 0x953   : > { %v2196_v58 = vmul.f32 %v7475_v15, %v2151_v41  ;;  %vm2202_vm1 = vweird.f32 %v7475_v15  ;;  %v7084_v41 = vld [vmem:[%s10814_s4 + $0x28] sm:$0xff] }
 0x954   : > { %7476 = vrsqrt.f32 %v2152_v56  ;;  %vm2203_vm3 = vmor %vm2201_vm2, %vm2202_vm1  ;;  %vm2211_vm5 = vweird.f32 %v2152_v56  ;;  %2890 = vmatpush.bf16.msra.mxu3 %v7084_v41 }
 0x955   : > { %v2197_v10 = vmul.f32 %v7475_v15, %v2196_v58  ;;  %v7090_v58 = vld [vmem:[%s10814_s4 + $0x58] sm:$0xff] }
 0x957   : > { %v2198_v19 = vmul.f32 0.5, %v2197_v10  ;;  %v7098_v10 = vld [vmem:[%s10814_s4 + $0x98] sm:$0xff] }
 0x958   : > { %2950 = vmatpush.bf16.msrb.mxu1 %v7098_v10 }
 0x959   : > { %v2199_v26 = vsub.f32 1.5, %v2198_v19 }
 0x95a   : > { %v7477_v5 = vpop.eup %7476 }
 0x95b   : > { %v2200_v43 = vmul.f32 %v7475_v15, %v2199_v26  ;;  %v2206_v7 = vmul.f32 %v7477_v5, %v2152_v56  ;;  %vm2212_vm4 = vweird.f32 %v7477_v5  ;;  %v7083_v26 = vld [vmem:[%s10814_s4 + $0x20] sm:$0xff] }
 0x95c   : > { %vm2213_vm6 = vmor %vm2211_vm5, %vm2212_vm4  ;;  %2891 = vmatpush.bf16.msra.mxu3 %v7083_v26 }
 0x95d   : > { %v2207_v34 = vmul.f32 %v7477_v5, %v2206_v7  ;;  %v2204_v6 = vsel %vm2203_vm3, %v7475_v15, %v2200_v43  ;;  %v7089_v7 = vld [vmem:[%s10814_s4 + $0x50] sm:$0xff] }
 0x95e   : > { %v2239_v4 = vmul.f32 %v2204_v6, %v8974_v29  ;;  %v2136_v29 = vpop.xlane.xlu2 %2135  ;;  %v7082_v6 = vld [vmem:[%s10814_s4 + $0x18] sm:$0xff] }
 0x95f   : > { %v2208_v62 = vmul.f32 0.5, %v2207_v34  ;;  %v2145_v30 = vmul.f32 %v2136_v29, %v8043_v13  ;;  %v7097_v34 = vld [vmem:[%s10814_s4 + $0x90] sm:$0xff] }
 0x960   : > { %v2248_v14 = vmul.f32 %v9197_v40, %v2239_v4  ;;  %2951 = vmatpush.bf16.msrb.mxu1 %v7097_v34  ;;  %2892 = vmatpush.bf16.msra.mxu3 %v7082_v6  ;;  %v7088_v4 = vld [vmem:[%s10814_s4 + $0x48] sm:$0xff] }
 0x961   : > { %v2209_v48 = vsub.f32 1.5, %v2208_v62  ;;  %v9224_v55 = vadd.f32 1e-05, %v2145_v30  ;;  %v7106_v62 = vld [vmem:[%s10814_s4 + $0xd8] sm:$0xff]  ;;  %v7080_v30 = vld [vmem:[%s10814_s4 + $0x8] sm:$0xff] }
 0x962   : > { %v2257_v28 = vadd.f32 %v9204_v2, %v2248_v14  ;;  %v7105_v14 = vld [vmem:[%s10814_s4 + $0xd0] sm:$0xff] }
 0x963   : > { %v2210_v22 = vmul.f32 %v7477_v5, %v2209_v48  ;;  %7478 = vrsqrt.f32 %v9224_v55  ;;  %vm2221_vm8 = vweird.f32 %v9224_v55 }
 0x965   : > { %v2214_v54 = vsel %vm2213_vm6, %v7477_v5, %v2210_v22  ;;  %v7107_v5 = vld [vmem:[%s10814_s4 + $0xe0] sm:$0xff]  ;;  %v7096_v22 = vld [vmem:[%s10814_s4 + $0x88] sm:$0xff] }
 0x966   : > { %v2240_v51 = vmul.f32 %v2214_v54, %v8980_v33  ;;  %v7094_v33 = vld [vmem:[%s10814_s4 + $0x78] sm:$0xff]  ;;  %2978 = vmatpush.bf16.msrb.mxu2 %v7107_v5  ;;  %2952 = vmatpush.bf16.msrb.mxu1 %v7096_v22 }
 0x967   : > { %2917 = vmatpush.bf16.msra.mxu0 %v7094_v33  ;;  %v7104_v33 = vld [vmem:[%s10814_s4 + $0xc8] sm:$0xff] }
 0x968   : > { %v2249_v32 = vmul.f32 %v9197_v40, %v2240_v51  ;;  %v7081_v51 = vld [vmem:[%s10814_s4 + $0x10] sm:$0xff] }
 0x969   : > { %v9251_v42 = vpop.eup %7478  ;;  %2893 = vmatpush.bf16.msra.mxu3 %v7081_v51 }
 0x96a   : > { %v2258_v61 = vadd.f32 %v9204_v2, %v2249_v32  ;;  %v2216_v35 = vmul.f32 %v9251_v42, %v9224_v55  ;;  %2979 = vmatpush.bf16.msrb.mxu2 %v7106_v62  ;;  %vm2222_vm7 = vweird.f32 %v9251_v42 }
 0x96b   : > { %2918 = vmatpush.bf16.msra.mxu0 %v7093_v53  ;;  %vm2223_vm10 = vmor %vm2221_vm8, %vm2222_vm7 }
 0x96c   : > { %v2263_v49 = vpack.c.bf16 %v2258_v61, %v2257_v28  ;;  %v2217_v23 = vmul.f32 %v9251_v42, %v2216_v35  ;;  %v7087_v61 = vld [vmem:[%s10814_s4 + $0x40] sm:$0xff] }
 0x96d   : > { %2894 = vmatpush.bf16.msra.mxu3 %v7080_v30  ;;  %v2297_v35 = vld [vmem:[#allocation5] sm:$0xf] }
 0x96e   : > { %2485 = vmatmul.bf16.gmra.mxu3 %v2263_v49  ;;  %2514 = vmatmul.bf16.gmra.mxu0 %v2263_v49  ;;  %v2218_v43 = vmul.f32 0.5, %v2217_v23  ;;  %v9339_v23 = vperm.slane %v2297_v35, 1  ;;  %v9348_v5 = vperm.slane %v2297_v35, 3 }
 0x96f   : > { %2543 = vmatmul.bf16.gmra.mxu1 %v2263_v49  ;;  %2572 = vmatmul.bf16.gmra.mxu2 %v2263_v49  ;;  %v7095_v49 = vld [vmem:[%s10814_s4 + $0x80] sm:$0xff] }
 0x970   : > { %2919 = vmatpush.bf16.msra.mxu0 %v7092_v24  ;;  %v2219_v48 = vsub.f32 1.5, %v2218_v43  ;;  %2980 = vmatpush.bf16.msrb.mxu2 %v7105_v14 }
 0x971   : > { %2953 = vmatpush.bf16.msrb.mxu1 %v7095_v49  ;;  %2895 = vmatpush.bf16.msra.mxu3 %v7079_v27 }
 0x972   : > { %v2220_v32 = vmul.f32 %v9251_v42, %v2219_v48 }
 0x974   : > { %2920 = vmatpush.bf16.msra.mxu0 %v7091_v39  ;;  %v2224_v25 = vsel %vm2223_vm10, %v9251_v42, %v2220_v32  ;;  %2981 = vmatpush.bf16.msrb.mxu2 %v7104_v33 }
 0x975   : > { %v2241_v55 = vmul.f32 %v2224_v25, %v8986_v12 }
 0x977   : > { %v2250_v59 = vmul.f32 %v9197_v40, %v2241_v55 }
 0x978   : > { %2921 = vmatpush.bf16.msra.mxu0 %v7090_v58  ;;  %2982 = vmatpush.bf16.msrb.mxu2 %v7103_v45 }
 0x979   : > { %v2259_v20 = vadd.f32 %v9204_v2, %v2250_v59 }
 0x97c   : > { %2922 = vmatpush.bf16.msra.mxu0 %v7089_v7 }
 0x980   : > { %2923 = vmatpush.bf16.msra.mxu0 %v7088_v4 }
 0x984   : > { %2924 = vmatpush.bf16.msra.mxu0 %v7087_v61 }
 0x98e   : > { %v2138_v15 = vpop.xlane.xlu1 %2137 }
 0x98f   : > { %v2146_v56 = vmul.f32 %v2138_v15, %v8043_v13  ;;  %v9341_v15 = vperm.slane %v2297_v35, 2 }
 0x991   : > { %v2154_v19 = vadd.f32 1e-05, %v2146_v56 }
 0x993   : > { %7480 = vrsqrt.f32 %v2154_v19  ;;  %vm2231_vm13 = vweird.f32 %v2154_v19 }
 0x999   : > { %v7481_v54 = vpop.eup %7480 }
 0x99a   : > { %v2226_v28 = vmul.f32 %v7481_v54, %v2154_v19  ;;  %vm2232_vm12 = vweird.f32 %v7481_v54 }
 0x99b   : > { %vm2233_vm14 = vmor %vm2231_vm13, %vm2232_vm12 }
 0x99c   : > { %v2227_v29 = vmul.f32 %v7481_v54, %v2226_v28 }
 0x99e   : > { %v2228_v53 = vmul.f32 0.5, %v2227_v29 }
 0x9a0   : > { %v2229_v11 = vsub.f32 1.5, %v2228_v53 }
 0x9a2   : > { %v2230_v24 = vmul.f32 %v7481_v54, %v2229_v11 }
 0x9a4   : > { %v2234_v60 = vsel %vm2233_vm14, %v7481_v54, %v2230_v24 }
 0x9a5   : > { %v2242_v42 = vmul.f32 %v2234_v60, %v9186_v36 }
 0x9a7   : > { %v2251_v12 = vmul.f32 %v9197_v40, %v2242_v42 }
 0x9a9   : > { %v2260_v39 = vadd.f32 %v9204_v2, %v2251_v12  ;;  %v9345_v2 = vperm.slane %v2297_v35, 0 }
 0x9ab   : > { %v2264_v17 = vpack.c.bf16 %v2260_v39, %v2259_v20 }
 0x9ad   : > { %2490 = vmatmul.bf16.gmra.mxu3 %v2264_v17  ;;  %2519 = vmatmul.bf16.gmra.mxu0 %v2264_v17 }
 0x9ae   : > { %2548 = vmatmul.bf16.gmra.mxu1 %v2264_v17  ;;  %2577 = vmatmul.bf16.gmra.mxu2 %v2264_v17 }
 0x9b0   : > { %v2505_v41 = vpop.f32.mrf.mxu0 }
 0x9b1   : > { %v2534_v37 = vpop.f32.mrf.mxu1  ;;  %v2506_v56 = vadd.f32 %v2505_v41, %v9339_v23 }
 0x9b2   : > { %v2535_v58 = vadd.f32 %v2534_v37, %v9341_v15 }
 0x9b3   : > { %v2584_v7 = vmax.f32 %v2506_v56, 0.0 }
 0x9b4   : > { %v2585_v6 = vmax.f32 %v2535_v58, 0.0 }
 0x9b6   : > { %v2476_v36 = vpop.f32.mrf.mxu3 }
 0x9b7   : > { %v2563_v40 = vpop.f32.mrf.mxu2  ;;  %v2477_v48 = vadd.f32 %v2476_v36, %v9345_v2 }
 0x9b8   : > { %v2507_v10 = vpop.f32.mrf.mxu0  ;;  %v2564_v22 = vadd.f32 %v2563_v40, %v9348_v5 }
 0x9b9   : > { %v2508_v19 = vadd.f32 %v2507_v10, %v9339_v23  ;;  %v2536_v26 = vpop.f32.mrf.mxu1  ;;  %v2583_v61 = vmax.f32 %v2477_v48, 0.0 }
 0x9ba   : > { %v2537_v43 = vadd.f32 %v2536_v26, %v9341_v15  ;;  %v2586_v29 = vmax.f32 %v2564_v22, 0.0 }
 0x9bb   : > { %v2588_v34 = vmax.f32 %v2508_v19, 0.0 }
 0x9bc   : > { %v2589_v62 = vmax.f32 %v2537_v43, 0.0 }
 0x9bd   : > { %v2616_v4 = vpack.c.bf16 %v2588_v34, %v2584_v7 }
 0x9be   : > { %v2617_v54 = vpack.c.bf16 %v2589_v62, %v2585_v6  ;;  %v2478_v51 = vpop.f32.mrf.mxu3 }
 0x9bf   : > { %v2479_v14 = vadd.f32 %v2478_v51, %v9345_v2  ;;  %v2565_v32 = vpop.f32.mrf.mxu2  ;;  %2925 = vmatmul.bf16.vlgmr.msra.gmra.mxu0 %v2616_v4 }
 0x9c0   : > { %v2566_v28 = vadd.f32 %v2565_v32, %v9348_v5  ;;  %2954 = vmatmul.bf16.vlgmr.msrb.gmra.mxu1 %v2617_v54 }
 0x9c1   : > { %v2587_v49 = vmax.f32 %v2479_v14, 0.0 }
 0x9c2   : > { %v2590_v30 = vmax.f32 %v2566_v28, 0.0 }
 0x9c3   : > { %v2615_v33 = vpack.c.bf16 %v2587_v49, %v2583_v61  ;;  %v2510_v25 = vpop.f32.mrf.mxu0 }
 0x9c4   : > { %v2618_v53 = vpack.c.bf16 %v2590_v30, %v2586_v29  ;;  %v2539_v11 = vpop.f32.mrf.mxu1  ;;  %v2511_v27 = vadd.f32 %v2510_v25, %v9339_v23 }
 0x9c5   : > { %2896 = vmatmul.bf16.vlgmr.msra.gmra.mxu3 %v2615_v33  ;;  %v2540_v24 = vadd.f32 %v2539_v11, %v9341_v15 }
 0x9c6   : > { %2983 = vmatmul.bf16.vlgmr.msrb.gmra.mxu2 %v2618_v53  ;;  %v2592_v20 = vmax.f32 %v2511_v27, 0.0 }
 0x9c7   : > { %v2593_v17 = vmax.f32 %v2540_v24, 0.0 }
 0x9c9   : > { %v2481_v55 = vpop.f32.mrf.mxu3 }
 0x9ca   : > { %v2568_v45 = vpop.f32.mrf.mxu2  ;;  %v2482_v41 = vadd.f32 %v2481_v55, %v9345_v2 }
 0x9cb   : > { %v2512_v60 = vpop.f32.mrf.mxu0  ;;  %v2569_v36 = vadd.f32 %v2568_v45, %v9348_v5 }
 0x9cc   : > { %v2513_v42 = vadd.f32 %v2512_v60, %v9339_v23  ;;  %v2541_v59 = vpop.f32.mrf.mxu1  ;;  %v2591_v26 = vmax.f32 %v2482_v41, 0.0 }
 0x9cd   : > { %v2542_v12 = vadd.f32 %v2541_v59, %v9341_v15  ;;  %v2594_v7 = vmax.f32 %v2569_v36, 0.0 }
 0x9ce   : > { %v2596_v39 = vmax.f32 %v2513_v42, 0.0 }
 0x9cf   : > { %v2597_v35 = vmax.f32 %v2542_v12, 0.0 }
 0x9d0   : > { %v2620_v37 = vpack.c.bf16 %v2596_v39, %v2592_v20 }
 0x9d1   : > { %v2483_v56 = vpop.f32.mrf.mxu3  ;;  %v2621_v40 = vpack.c.bf16 %v2597_v35, %v2593_v17 }
 0x9d2   : > { %v2484_v58 = vadd.f32 %v2483_v56, %v9345_v2  ;;  %v2570_v10 = vpop.f32.mrf.mxu2  ;;  %2930 = vmatmul.bf16.gmra.mxu0 %v2620_v37 }
 0x9d3   : > { %v2571_v19 = vadd.f32 %v2570_v10, %v9348_v5  ;;  %2959 = vmatmul.bf16.gmra.mxu1 %v2621_v40 }
 0x9d4   : > { %v2595_v43 = vmax.f32 %v2484_v58, 0.0 }
 0x9d5   : > { %v2598_v34 = vmax.f32 %v2571_v19, 0.0 }
 0x9d6   : > { %v2619_v6 = vpack.c.bf16 %v2595_v43, %v2591_v26 }
 0x9d7   : > { %v2622_v62 = vpack.c.bf16 %v2598_v34, %v2594_v7 }
 0x9d8   : > { %2901 = vmatmul.bf16.gmra.mxu3 %v2619_v6 }
 0x9d9   : > { %2988 = vmatmul.bf16.gmra.mxu2 %v2622_v62 }
 0x9eb   : > { %v2515_v48 = vpop.f32.mrf.mxu0 }
 0x9ec   : > { %v2544_v4 = vpop.f32.mrf.mxu1  ;;  %v2516_v54 = vadd.f32 %v2515_v48, %v9339_v23 }
 0x9ed   : > { %v2545_v14 = vadd.f32 %v2544_v4, %v9341_v15 }
 0x9ee   : > { %v2600_v29 = vmax.f32 %v2516_v54, 0.0 }
 0x9ef   : > { %v2601_v33 = vmax.f32 %v2545_v14, 0.0 }
 0x9f1   : > { %v2486_v22 = vpop.f32.mrf.mxu3 }
 0x9f2   : > { %v2573_v51 = vpop.f32.mrf.mxu2  ;;  %v2487_v53 = vadd.f32 %v2486_v22, %v9345_v2 }
 0x9f3   : > { %v2517_v32 = vpop.f32.mrf.mxu0  ;;  %v2574_v55 = vadd.f32 %v2573_v51, %v9348_v5 }
 0x9f4   : > { %v2518_v28 = vadd.f32 %v2517_v32, %v9339_v23  ;;  %v2546_v61 = vpop.f32.mrf.mxu1  ;;  %v2599_v59 = vmax.f32 %v2487_v53, 0.0 }
 0x9f5   : > { %v2547_v49 = vadd.f32 %v2546_v61, %v9341_v15  ;;  %v2602_v20 = vmax.f32 %v2574_v55, 0.0 }
 0x9f6   : > { %v2604_v30 = vmax.f32 %v2518_v28, 0.0 }
 0x9f7   : > { %v2605_v25 = vmax.f32 %v2547_v49, 0.0 }
 0x9f8   : > { %v2624_v11 = vpack.c.bf16 %v2604_v30, %v2600_v29 }
 0x9f9   : > { %v2488_v27 = vpop.f32.mrf.mxu3  ;;  %v2625_v45 = vpack.c.bf16 %v2605_v25, %v2601_v33  ;;  %v9380_v33 = vperm.slane %v9194_v3, 5 }
 0x9fa   : > { %v2489_v24 = vadd.f32 %v2488_v27, %v9345_v2  ;;  %v2575_v60 = vpop.f32.mrf.mxu2  ;;  %2935 = vmatmul.bf16.gmra.mxu0 %v2624_v11 }
 0x9fb   : > { %v2576_v42 = vadd.f32 %v2575_v60, %v9348_v5  ;;  %2964 = vmatmul.bf16.gmra.mxu1 %v2625_v45 }
 0x9fc   : > { %v2603_v12 = vmax.f32 %v2489_v24, 0.0 }
 0x9fd   : > { %v2606_v39 = vmax.f32 %v2576_v42, 0.0 }
 0x9fe   : > { %v2623_v17 = vpack.c.bf16 %v2603_v12, %v2599_v59 }
 0x9ff   : > { %v2626_v35 = vpack.c.bf16 %v2606_v39, %v2602_v20 }
 0xa00   : > { %2906 = vmatmul.bf16.gmra.mxu3 %v2623_v17 }
 0xa01   : > { %2993 = vmatmul.bf16.gmra.mxu2 %v2626_v35 }
 0xa2a   : > { %v2520_v41 = vpop.f32.mrf.mxu0 }
 0xa2b   : > { %v2549_v37 = vpop.f32.mrf.mxu1  ;;  %v2521_v56 = vadd.f32 %v2520_v41, %v9339_v23 }
 0xa2c   : > { %v2550_v58 = vadd.f32 %v2549_v37, %v9341_v15 }
 0xa2d   : > { %v2608_v7 = vmax.f32 %v2521_v56, 0.0 }
 0xa2e   : > { %v2609_v6 = vmax.f32 %v2550_v58, 0.0 }
 0xa30   : > { %v2491_v36 = vpop.f32.mrf.mxu3 }
 0xa31   : > { %v2578_v40 = vpop.f32.mrf.mxu2  ;;  %v2492_v48 = vadd.f32 %v2491_v36, %v9345_v2 }
 0xa32   : > { %v2522_v10 = vpop.f32.mrf.mxu0  ;;  %v2579_v22 = vadd.f32 %v2578_v40, %v9348_v5 }
 0xa33   : > { %v2523_v19 = vadd.f32 %v2522_v10, %v9339_v23  ;;  %v2551_v26 = vpop.f32.mrf.mxu1  ;;  %v2607_v28 = vmax.f32 %v2492_v48, 0.0 }
 0xa34   : > { %v2552_v43 = vadd.f32 %v2551_v26, %v9341_v15  ;;  %v2610_v61 = vmax.f32 %v2579_v22, 0.0 }
 0xa35   : > { %v2612_v34 = vmax.f32 %v2523_v19, 0.0 }
 0xa36   : > { %v2613_v62 = vmax.f32 %v2552_v43, 0.0 }
 0xa37   : > { %v2628_v4 = vpack.c.bf16 %v2612_v34, %v2608_v7 }
 0xa38   : > { %v2493_v54 = vpop.f32.mrf.mxu3  ;;  %v2629_v51 = vpack.c.bf16 %v2613_v62, %v2609_v6 }
 0xa39   : > { %v2494_v14 = vadd.f32 %v2493_v54, %v9345_v2  ;;  %v2580_v32 = vpop.f32.mrf.mxu2  ;;  %2940 = vmatmul.bf16.gmra.mxu0 %v2628_v4 }
 0xa3a   : > { %v2581_v23 = vadd.f32 %v2580_v32, %v9348_v5  ;;  %2969 = vmatmul.bf16.gmra.mxu1 %v2629_v51 }
 0xa3b   : > { %v2611_v15 = vmax.f32 %v2494_v14, 0.0 }
 0xa3c   : > { %v2614_v49 = vmax.f32 %v2581_v23, 0.0  ;;  %v2926_v25 = vpop.f32.mrf.mxu0 }
 0xa3d   : > { %v2627_v29 = vpack.c.bf16 %v2611_v15, %v2607_v28  ;;  %v2955_v11 = vpop.f32.mrf.mxu1 }
 0xa3e   : > { %v2630_v30 = vpack.c.bf16 %v2614_v49, %v2610_v61 }
 0xa3f   : > { %2911 = vmatmul.bf16.gmra.mxu3 %v2627_v29 }
 0xa40   : > { %2998 = vmatmul.bf16.gmra.mxu2 %v2630_v30 }
 0xa44   : > { %v2928_v59 = vpop.f32.mrf.mxu0 }
 0xa45   : > { %v2957_v3 = vpop.f32.mrf.mxu1 }
 0xa48   : > { %v2897_v53 = vpop.f32.mrf.mxu3 }
 0xa49   : > { %v2898_v2 = vadd.f32 %v2897_v53, %v9380_v33  ;;  %v2984_v27 = vpop.f32.mrf.mxu2 }
 0xa4b   : > { %v2927_v55 = vadd.f32 %v2926_v25, %v2898_v2 }
 0xa4d   : > { %v2956_v5 = vadd.f32 %v2955_v11, %v2927_v55 }
 0xa4f   : > { %v2985_v45 = vadd.f32 %v2984_v27, %v2956_v5  ;;  %v2931_v41 = vpop.f32.mrf.mxu0 }
 0xa50   : > { %v2899_v24 = vpop.f32.mrf.mxu3  ;;  %v2960_v36 = vpop.f32.mrf.mxu1 }
 0xa51   : > { %v9384_v60 = vadd.f32 %v2985_v45, %v8908_v1  ;;  %v2900_v42 = vadd.f32 %v2899_v24, %v9380_v33  ;;  %v2986_v39 = vpop.f32.mrf.mxu2 }
 0xa53   : > { %v2929_v12 = vadd.f32 %v2928_v59, %v2900_v42  ;;  %3014 = vadd.xlane.f32.xlu0 %v9384_v60 }
 0xa55   : > { %v2958_v20 = vadd.f32 %v2957_v3, %v2929_v12 }
 0xa57   : > { %v2987_v17 = vadd.f32 %v2986_v39, %v2958_v20  ;;  %v2933_v7 = vpop.f32.mrf.mxu0 }
 0xa58   : > { %v2962_v34 = vpop.f32.mrf.mxu1 }
 0xa59   : > { %v9389_v35 = vadd.f32 %v2987_v17, %v8913_v16 }
 0xa5b   : > { %v2902_v37 = vpop.f32.mrf.mxu3  ;;  %3016 = vadd.xlane.f32.xlu2 %v9389_v35 }
 0xa5c   : > { %v2903_v1 = vadd.f32 %v2902_v37, %v9380_v33  ;;  %v2989_v40 = vpop.f32.mrf.mxu2 }
 0xa5e   : > { %v2932_v56 = vadd.f32 %v2931_v41, %v2903_v1 }
 0xa60   : > { %v2961_v58 = vadd.f32 %v2960_v36, %v2932_v56 }
 0xa62   : > { %v2990_v10 = vadd.f32 %v2989_v40, %v2961_v58 }
 0xa63   : > { %v2904_v19 = vpop.f32.mrf.mxu3 }
 0xa64   : > { %v9394_v26 = vadd.f32 %v2990_v10, %v8919_v47  ;;  %v2905_v43 = vadd.f32 %v2904_v19, %v9380_v33  ;;  %v2991_v62 = vpop.f32.mrf.mxu2 }
 0xa66   : > { %v2934_v16 = vadd.f32 %v2933_v7, %v2905_v43  ;;  %3018 = vadd.xlane.f32.xlu1 %v9394_v26 }
 0xa68   : > { %v2963_v6 = vadd.f32 %v2962_v34, %v2934_v16 }
 0xa6a   : > { %v2992_v48 = vadd.f32 %v2991_v62, %v2963_v6 }
 0xa6c   : > { %v9399_v4 = vadd.f32 %v2992_v48, %v8924_v21 }
 0xa6e   : > { %3020 = vadd.xlane.f32.xlu0 %v9399_v4 }
 0xa77   : > { %v2936_v22 = vpop.f32.mrf.mxu0 }
 0xa78   : > { %v2965_v51 = vpop.f32.mrf.mxu1 }
 0xa7f   : > { %v2938_v29 = vpop.f32.mrf.mxu0 }
 0xa80   : > { %v2967_v30 = vpop.f32.mrf.mxu1 }
 0xa83   : > { %v2907_v54 = vpop.f32.mrf.mxu3 }
 0xa84   : > { %v2908_v47 = vadd.f32 %v2907_v54, %v9380_v33  ;;  %v2994_v32 = vpop.f32.mrf.mxu2 }
 0xa86   : > { %v2937_v14 = vadd.f32 %v2936_v22, %v2908_v47 }
 0xa88   : > { %v2966_v23 = vadd.f32 %v2965_v51, %v2937_v14 }
 0xa8a   : > { %v2995_v28 = vadd.f32 %v2994_v32, %v2966_v23 }
 0xa8b   : > { %v2909_v15 = vpop.f32.mrf.mxu3 }
 0xa8c   : > { %v9404_v61 = vadd.f32 %v2995_v28, %v8930_v46  ;;  %v2910_v49 = vadd.f32 %v2909_v15, %v9380_v33  ;;  %v2996_v53 = vpop.f32.mrf.mxu2 }
 0xa8e   : > { %v2939_v21 = vadd.f32 %v2938_v29, %v2910_v49  ;;  %3022 = vadd.xlane.f32.xlu2 %v9404_v61  ;;  %v6535_v49 = vld [vmem:[%s10811_s1 + $0x168] sm:$0xf]  ;;  %v7133_v29 = vld [vmem:[%s10811_s1 + $0x170] sm:$0xf0] }
 0xa90   : > { %v2968_v25 = vadd.f32 %v2967_v30, %v2939_v21  ;;  %v7132_v21 = vld [vmem:[%s10811_s1 + $0x16c] sm:$0xf]  ;;  %v6536_v30 = vor.u32 %v7133_v29, %v6535_v49  ;;  %v6495_v49 = vld [vmem:[%s10811_s1 + $0x110] sm:$0xf]  ;;  %v7122_v29 = vld [vmem:[%s10811_s1 + $0x118] sm:$0xf0] }
 0xa92   : > { %v2997_v2 = vadd.f32 %v2996_v53, %v2968_v25  ;;  %v6537_v25 = vld [vmem:[%s10811_s1 + $0x174] sm:$0xf0]  ;;  %v6543_v53 = vld [vmem:[%s10811_s1 + $0x170] sm:$0xf]  ;;  %3357 = vmatpush.bf16.msrb.mxu3 %v6536_v30  ;;  %v6496_v30 = vor.u32 %v7122_v29, %v6495_v49 }
 0xa94   : > { %v9409_v11 = vadd.f32 %v2997_v2, %v8935_v0  ;;  %v7134_v2 = vld [vmem:[%s10811_s1 + $0x178] sm:$0xf0] }
 0xa96   : > { %3024 = vadd.xlane.f32.xlu1 %v9409_v11 }
 0xab6   : > { %v2941_v55 = vpop.f32.mrf.mxu0 }
 0xab7   : > { %v2970_v5 = vpop.f32.mrf.mxu1 }
 0xabe   : > { %v2943_v37 = vpop.f32.mrf.mxu0 }
 0xabf   : > { %v2972_v36 = vpop.f32.mrf.mxu1 }
 0xac2   : > { %v2912_v27 = vpop.f32.mrf.mxu3 }
 0xac3   : > { %v2913_v46 = vadd.f32 %v2912_v27, %v9380_v33  ;;  %v2999_v24 = vpop.f32.mrf.mxu2  ;;  %v6544_v27 = vor.u32 %v7134_v2, %v6543_v53  ;;  %v7118_v53 = vld [vmem:[%s10811_s1 + $0xf8] sm:$0xf0]  ;;  %v7117_v2 = vld [vmem:[%s10811_s1 + $0xf4] sm:$0xf] }
 0xac5   : > { %v2942_v45 = vadd.f32 %v2941_v55, %v2913_v46  ;;  %v6540_v55 = vor.u32 %v7132_v21, %v6537_v25  ;;  %3415 = vmatpush.bf16.msra.mxu1 %v6544_v27  ;;  %v6523_v46 = vld [vmem:[%s10811_s1 + $0x150] sm:$0xf]  ;;  %v6477_v27 = vld [vmem:[%s10811_s1 + $0xfc] sm:$0xf0] }
 0xac6   : > { %v3015_v42 = vpop.xlane.xlu0 %3014  ;;  %v6475_v25 = vld [vmem:[%s10811_s1 + $0xf0] sm:$0xf] }
 0xac7   : > { %v2971_v59 = vadd.f32 %v2970_v5, %v2942_v45  ;;  %v3030_v12 = vmul.f32 %v3015_v42, %v8043_v13  ;;  %3386 = vmatpush.bf16.msrb.mxu0 %v6540_v55  ;;  %v7130_v5 = vld [vmem:[%s10811_s1 + $0x158] sm:$0xf0]  ;;  %v7129_v45 = vld [vmem:[%s10811_s1 + $0x154] sm:$0xf]  ;;  %v6525_v42 = vld [vmem:[%s10811_s1 + $0x15c] sm:$0xf0]  ;;  %v6476_v55 = vor.u32 %v7118_v53, %v6475_v25 }
 0xac9   : > { %v3000_v3 = vadd.f32 %v2999_v24, %v2971_v59  ;;  %v9415_v20 = vsub.f32 %v9384_v60, %v3030_v12  ;;  %v6524_v24 = vor.u32 %v7130_v5, %v6523_v46  ;;  %v6531_v59 = vld [vmem:[%s10811_s1 + $0x158] sm:$0xf]  ;;  %v7131_v12 = vld [vmem:[%s10811_s1 + $0x160] sm:$0xf0] }
 0xaca   : > { %v2914_v39 = vpop.f32.mrf.mxu3  ;;  %v6483_v46 = vld [vmem:[%s10811_s1 + $0xf8] sm:$0xf]  ;;  %v7119_v5 = vld [vmem:[%s10811_s1 + $0x100] sm:$0xf0] }
 0xacb   : > { %v9418_v0 = vadd.f32 %v3000_v3, %v8939_v52  ;;  %v2915_v17 = vadd.f32 %v2914_v39, %v9380_v33  ;;  %v3046_v41 = vmul.f32 %v9415_v20, %v9415_v20  ;;  %v3001_v10 = vpop.f32.mrf.mxu2  ;;  %v6528_v3 = vor.u32 %v7129_v45, %v6525_v42  ;;  %3358 = vmatpush.bf16.msrb.mxu3 %v6524_v24  ;;  %v6463_v42 = vld [vmem:[%s10811_s1 + $0xd8] sm:$0xf] }
 0xacc   : > { %v6532_v39 = vor.u32 %v7131_v12, %v6531_v59  ;;  %v6480_v45 = vor.u32 %v7117_v2, %v6477_v27  ;;  %v6484_v24 = vor.u32 %v7119_v5, %v6483_v46  ;;  %v7115_v59 = vld [vmem:[%s10811_s1 + $0xe0] sm:$0xf0]  ;;  %v7114_v12 = vld [vmem:[%s10811_s1 + $0xdc] sm:$0xf] }
 0xacd   : > { %v2944_v1 = vadd.f32 %v2943_v37, %v2915_v17  ;;  %3054 = vadd.xlane.f32.xlu0 %v3046_v41  ;;  %3026 = vadd.xlane.f32.xlu1 %v9418_v0  ;;  %v6511_v17 = vld [vmem:[%s10811_s1 + $0x138] sm:$0xf]  ;;  %v7127_v41 = vld [vmem:[%s10811_s1 + $0x140] sm:$0xf0]  ;;  %v7126_v37 = vld [vmem:[%s10811_s1 + $0x13c] sm:$0xf] }
 0xace   : > { %v3017_v56 = vpop.xlane.xlu2 %3016  ;;  %3387 = vmatpush.bf16.msrb.mxu0 %v6528_v3  ;;  %3416 = vmatpush.bf16.msra.mxu1 %v6532_v39  ;;  %v6464_v3 = vor.u32 %v7115_v59, %v6463_v42  ;;  %v6465_v39 = vld [vmem:[%s10811_s1 + $0xe4] sm:$0xf0] }
 0xacf   : > { %v2973_v40 = vadd.f32 %v2972_v36, %v2944_v1  ;;  %v3031_v58 = vmul.f32 %v3017_v56, %v8043_v13  ;;  %v6512_v1 = vor.u32 %v7127_v41, %v6511_v17  ;;  %v6513_v36 = vld [vmem:[%s10811_s1 + $0x144] sm:$0xf0]  ;;  %v6519_v56 = vld [vmem:[%s10811_s1 + $0x140] sm:$0xf]  ;;  %v7116_v41 = vld [vmem:[%s10811_s1 + $0xe8] sm:$0xf0] }
 0xad0   : > { %v6471_v17 = vld [vmem:[%s10811_s1 + $0xe0] sm:$0xf] }
 0xad1   : > { %v3002_v19 = vadd.f32 %v3001_v10, %v2973_v40  ;;  %v9426_v52 = vsub.f32 %v9389_v35, %v3031_v58  ;;  %v7128_v40 = vld [vmem:[%s10811_s1 + $0x148] sm:$0xf0]  ;;  %v6516_v58 = vor.u32 %v7126_v37, %v6513_v36  ;;  %3359 = vmatpush.bf16.msrb.mxu3 %v6512_v1  ;;  %v6468_v36 = vor.u32 %v7114_v12, %v6465_v39 }
 0xad2   : > { %v6520_v10 = vor.u32 %v7128_v40, %v6519_v56  ;;  %v6472_v56 = vor.u32 %v7116_v41, %v6471_v17  ;;  %v6416_v17 = vld [vmem:[%s10815_s5 + $0x8] sm:$0xff] }
 0xad3   : > { %v9429_v33 = vadd.f32 %v3002_v19, %v8955_v57  ;;  %v3047_v43 = vmul.f32 %v9426_v52, %v9426_v52  ;;  %3388 = vmatpush.bf16.msrb.mxu0 %v6516_v58  ;;  %v6499_v19 = vld [vmem:[%s10811_s1 + $0x120] sm:$0xf] }
 0xad4   : > { %3417 = vmatpush.bf16.msra.mxu1 %v6520_v10  ;;  %v6451_v10 = vld [vmem:[%s10811_s1 + $0xc0] sm:$0xf] }
 0xad5   : > { %3056 = vadd.xlane.f32.xlu2 %v3047_v43  ;;  %3028 = vadd.xlane.f32.xlu0 %v9429_v33  ;;  %v7124_v43 = vld [vmem:[%s10811_s1 + $0x128] sm:$0xf0] }
 0xad9   : > { %v3019_v7 = vpop.xlane.xlu1 %3018 }
 0xada   : > { %v3032_v16 = vmul.f32 %v3019_v7, %v8043_v13  ;;  %v7123_v7 = vld [vmem:[%s10811_s1 + $0x124] sm:$0xf] }
 0xadc   : > { %v9436_v34 = vsub.f32 %v9394_v26, %v3032_v16  ;;  %v6500_v16 = vor.u32 %v7124_v43, %v6499_v19  ;;  %v7112_v19 = vld [vmem:[%s10811_s1 + $0xc8] sm:$0xf0]  ;;  %v7111_v43 = vld [vmem:[%s10811_s1 + $0xc4] sm:$0xf] }
 0xade   : > { %v3048_v6 = vmul.f32 %v9436_v34, %v9436_v34  ;;  %3360 = vmatpush.bf16.msrb.mxu3 %v6500_v16 }
 0xae0   : > { %3058 = vadd.xlane.f32.xlu2 %v3048_v6  ;;  %v6501_v6 = vld [vmem:[%s10811_s1 + $0x12c] sm:$0xf0] }
 0xae1   : > { %v3021_v62 = vpop.xlane.xlu0 %3020 }
 0xae2   : > { %v3033_v57 = vmul.f32 %v3021_v62, %v8043_v13  ;;  %v6507_v62 = vld [vmem:[%s10811_s1 + $0x128] sm:$0xf] }
 0xae4   : > { %v9442_v48 = vsub.f32 %v9399_v4, %v3033_v57  ;;  %v7125_v57 = vld [vmem:[%s10811_s1 + $0x130] sm:$0xf0] }
 0xae6   : > { %v3049_v22 = vmul.f32 %v9442_v48, %v9442_v48 }
 0xae8   : > { %3060 = vadd.xlane.f32.xlu1 %v3049_v22  ;;  %v6504_v22 = vor.u32 %v7123_v7, %v6501_v6  ;;  %v6452_v6 = vor.u32 %v7112_v19, %v6451_v10 }
 0xaea   : > { %3389 = vmatpush.bf16.msrb.mxu0 %v6504_v22 }
 0xb01   : > { %v3023_v54 = vpop.xlane.xlu2 %3022 }
 0xb02   : > { %v3034_v47 = vmul.f32 %v3023_v54, %v8043_v13  ;;  %v6508_v54 = vor.u32 %v7125_v57, %v6507_v62  ;;  %v6453_v62 = vld [vmem:[%s10811_s1 + $0xcc] sm:$0xf0]  ;;  %v6459_v57 = vld [vmem:[%s10811_s1 + $0xc8] sm:$0xf] }
 0xb03   : > { %v6456_v22 = vor.u32 %v7111_v43, %v6453_v62 }
 0xb04   : > { %v9448_v51 = vsub.f32 %v9404_v61, %v3034_v47  ;;  %3418 = vmatpush.bf16.msra.mxu1 %v6508_v54  ;;  %v6487_v47 = vld [vmem:[%s10811_s1 + $0x108] sm:$0xf]  ;;  %v7113_v54 = vld [vmem:[%s10811_s1 + $0xd0] sm:$0xf0] }
 0xb06   : > { %v3050_v14 = vmul.f32 %v9448_v51, %v9448_v51 }
 0xb08   : > { %3062 = vadd.xlane.f32.xlu0 %v3050_v14  ;;  %v7121_v14 = vld [vmem:[%s10811_s1 + $0x110] sm:$0xf0]  ;;  %3419 = vmatpush.bf16.msra.mxu1 %v6496_v30 }
 0xb09   : > { %v3025_v32 = vpop.xlane.xlu1 %3024 }
 0xb0a   : > { %v3035_v23 = vmul.f32 %v3025_v32, %v8043_v13  ;;  %v7120_v32 = vld [vmem:[%s10811_s1 + $0x10c] sm:$0xf] }
 0xb0c   : > { %v9454_v28 = vsub.f32 %v9409_v11, %v3035_v23  ;;  %v6488_v23 = vor.u32 %v7121_v14, %v6487_v47  ;;  %3420 = vmatpush.bf16.msra.mxu1 %v6484_v24  ;;  %v6460_v14 = vor.u32 %v7113_v54, %v6459_v57 }
 0xb0e   : > { %v3051_v15 = vmul.f32 %v9454_v28, %v9454_v28  ;;  %3361 = vmatpush.bf16.msrb.mxu3 %v6488_v23 }
 0xb10   : > { %3064 = vadd.xlane.f32.xlu2 %v3051_v15  ;;  %v6489_v15 = vld [vmem:[%s10811_s1 + $0x114] sm:$0xf0]  ;;  %3421 = vmatpush.bf16.msra.mxu1 %v6472_v56 }
 0xb11   : > { %v6492_v21 = vor.u32 %v7120_v32, %v6489_v15 }
 0xb12   : > { %3362 = vmatpush.bf16.msrb.mxu3 %v6476_v55 }
 0xb13   : > { %3390 = vmatpush.bf16.msrb.mxu0 %v6492_v21 }
 0xb14   : > { %3422 = vmatpush.bf16.msra.mxu1 %v6460_v14 }
 0xb16   : > { %3363 = vmatpush.bf16.msrb.mxu3 %v6464_v3 }
 0xb17   : > { %3391 = vmatpush.bf16.msrb.mxu0 %v6480_v45 }
 0xb1a   : > { %3364 = vmatpush.bf16.msrb.mxu3 %v6452_v6 }
 0xb1b   : > { %3392 = vmatpush.bf16.msrb.mxu0 %v6468_v36 }
 0xb1f   : > { %3393 = vmatpush.bf16.msrb.mxu0 %v6456_v22 }
 0xb40   : > { %v3055_v37 = vpop.xlane.xlu0 %3054  ;;  %v3027_v1 = vpop.xlane.xlu1 %3026 }
 0xb41   : > { %v3070_v40 = vmul.f32 %v3055_v37, %v8043_v13  ;;  %v3036_v58 = vmul.f32 %v3027_v1, %v8043_v13  ;;  %v9620_v37 = vperm.slane %v6416_v17, 0 }
 0xb43   : > { %v3078_v7 = vadd.f32 1e-05, %v3070_v40  ;;  %v9596_v16 = vsub.f32 %v9418_v0, %v3036_v58 }
 0xb45   : > { %7482 = vrsqrt.f32 %v3078_v7  ;;  %v3052_v47 = vmul.f32 %v9596_v16, %v9596_v16  ;;  %vm3092_vm0 = vweird.f32 %v3078_v7 }
 0xb47   : > { %3066 = vadd.xlane.f32.xlu1 %v3052_v47 }
 0xb48   : > { %v3057_v32 = vpop.xlane.xlu2 %3056  ;;  %v3029_v23 = vpop.xlane.xlu0 %3028 }
 0xb49   : > { %v3071_v15 = vmul.f32 %v3057_v32, %v8043_v13  ;;  %v3037_v49 = vmul.f32 %v3029_v23, %v8043_v13 }
 0xb4b   : > { %v7483_v29 = vpop.eup %7482  ;;  %v3079_v21 = vadd.f32 1e-05, %v3071_v15  ;;  %v9612_v30 = vsub.f32 %v9429_v33, %v3037_v49 }
 0xb4c   : > { %v3087_v25 = vmul.f32 %v7483_v29, %v3078_v7  ;;  %vm3093_vm15 = vweird.f32 %v7483_v29  ;;  %v9625_v7 = vperm.slane %v6416_v17, 1 }
 0xb4d   : > { %7484 = vrsqrt.f32 %v3079_v21  ;;  %v3053_v53 = vmul.f32 %v9612_v30, %v9612_v30  ;;  %vm3094_vm1 = vmor %vm3092_vm0, %vm3093_vm15  ;;  %vm3102_vm3 = vweird.f32 %v3079_v21 }
 0xb4e   : > { %v3088_v2 = vmul.f32 %v7483_v29, %v3087_v25 }
 0xb4f   : > { %3068 = vadd.xlane.f32.xlu0 %v3053_v53 }
 0xb50   : > { %v3089_v55 = vmul.f32 0.5, %v3088_v2 }
 0xb52   : > { %v3090_v27 = vsub.f32 1.5, %v3089_v55 }
 0xb53   : > { %v7485_v46 = vpop.eup %7484  ;;  %v3059_v5 = vpop.xlane.xlu2 %3058 }
 0xb54   : > { %v3091_v45 = vmul.f32 %v7483_v29, %v3090_v27  ;;  %v3097_v24 = vmul.f32 %v7485_v46, %v3079_v21  ;;  %v3072_v42 = vmul.f32 %v3059_v5, %v8043_v13  ;;  %vm3103_vm2 = vweird.f32 %v7485_v46 }
 0xb55   : > { %vm3104_vm4 = vmor %vm3102_vm3, %vm3103_vm2 }
 0xb56   : > { %v3098_v59 = vmul.f32 %v7485_v46, %v3097_v24  ;;  %v3080_v12 = vadd.f32 1e-05, %v3072_v42  ;;  %v3095_v3 = vsel %vm3094_vm1, %v7483_v29, %v3091_v45 }
 0xb57   : > { %v3166_v1 = vmul.f32 %v3095_v3, %v9415_v20 }
 0xb58   : > { %v3099_v39 = vmul.f32 0.5, %v3098_v59  ;;  %7486 = vrsqrt.f32 %v3080_v12  ;;  %vm3112_vm6 = vweird.f32 %v3080_v12 }
 0xb59   : > { %v3175_v43 = vmul.f32 %v9620_v37, %v3166_v1 }
 0xb5a   : > { %v3100_v41 = vsub.f32 1.5, %v3099_v39 }
 0xb5b   : > { %v3061_v36 = vpop.xlane.xlu1 %3060  ;;  %v3184_v47 = vadd.f32 %v9625_v7, %v3175_v43 }
 0xb5c   : > { %v3101_v56 = vmul.f32 %v7485_v46, %v3100_v41  ;;  %v3073_v40 = vmul.f32 %v3061_v36, %v8043_v13 }
 0xb5e   : > { %v7487_v58 = vpop.eup %7486  ;;  %v3105_v10 = vsel %vm3104_vm4, %v7485_v46, %v3101_v56  ;;  %v3081_v19 = vadd.f32 1e-05, %v3073_v40 }
 0xb5f   : > { %v3167_v6 = vmul.f32 %v3105_v10, %v9426_v52  ;;  %v3107_v62 = vmul.f32 %v7487_v58, %v3080_v12  ;;  %vm3113_vm5 = vweird.f32 %v7487_v58 }
 0xb60   : > { %7488 = vrsqrt.f32 %v3081_v19  ;;  %vm3114_vm7 = vmor %vm3112_vm6, %vm3113_vm5  ;;  %vm3122_vm10 = vweird.f32 %v3081_v19 }
 0xb61   : > { %v3176_v57 = vmul.f32 %v9620_v37, %v3167_v6  ;;  %v3108_v20 = vmul.f32 %v7487_v58, %v3107_v62 }
 0xb63   : > { %v3185_v22 = vadd.f32 %v9625_v7, %v3176_v57  ;;  %v3109_v54 = vmul.f32 0.5, %v3108_v20 }
 0xb65   : > { %v3110_v14 = vsub.f32 1.5, %v3109_v54  ;;  %v3192_v32 = vpack.c.bf16 %v3185_v22, %v3184_v47 }
 0xb66   : > { %v7489_v23 = vpop.eup %7488 }
 0xb67   : > { %v3111_v15 = vmul.f32 %v7487_v58, %v3110_v14  ;;  %v3117_v49 = vmul.f32 %v7489_v23, %v3081_v19  ;;  %3365 = vmatmul.bf16.vlgmr.msrb.gmra.mxu3 %v3192_v32  ;;  %3394 = vmatmul.bf16.vlgmr.msrb.gmra.mxu0 %v3192_v32  ;;  %vm3123_vm8 = vweird.f32 %v7489_v23 }
 0xb68   : > { %3423 = vmatmul.bf16.vlgmr.msra.gmra.mxu1 %v3192_v32  ;;  %vm3124_vm12 = vmor %vm3122_vm10, %vm3123_vm8 }
 0xb69   : > { %v3118_v52 = vmul.f32 %v7489_v23, %v3117_v49  ;;  %v3115_v29 = vsel %vm3114_vm7, %v7487_v58, %v3111_v15 }
 0xb6a   : > { %v3168_v53 = vmul.f32 %v3115_v29, %v9436_v34 }
 0xb6b   : > { %v3119_v21 = vmul.f32 0.5, %v3118_v52 }
 0xb6c   : > { %v3177_v46 = vmul.f32 %v9620_v37, %v3168_v53 }
 0xb6d   : > { %v3120_v25 = vsub.f32 1.5, %v3119_v21 }
 0xb6e   : > { %v3186_v45 = vadd.f32 %v9625_v7, %v3177_v46 }
 0xb6f   : > { %v3121_v2 = vmul.f32 %v7489_v23, %v3120_v25 }
 0xb71   : > { %v3125_v55 = vsel %vm3124_vm12, %v7489_v23, %v3121_v2 }
 0xb72   : > { %v3169_v27 = vmul.f32 %v3125_v55, %v9442_v48 }
 0xb74   : > { %v3178_v5 = vmul.f32 %v9620_v37, %v3169_v27 }
 0xb76   : > { %v3187_v24 = vadd.f32 %v9625_v7, %v3178_v5 }
 0xb78   : > { %v3193_v42 = vpack.c.bf16 %v3187_v24, %v3186_v45 }
 0xb7a   : > { %3370 = vmatmul.bf16.gmra.mxu3 %v3193_v42  ;;  %3399 = vmatmul.bf16.gmra.mxu0 %v3193_v42 }
 0xb7b   : > { %3428 = vmatmul.bf16.gmra.mxu1 %v3193_v42  ;;  %v3063_v59 = vpop.xlane.xlu0 %3062 }
 0xb7c   : > { %v3074_v34 = vmul.f32 %v3063_v59, %v8043_v13 }
 0xb7e   : > { %v3082_v12 = vadd.f32 1e-05, %v3074_v34 }
 0xb80   : > { %7490 = vrsqrt.f32 %v3082_v12  ;;  %vm3132_vm14 = vweird.f32 %v3082_v12 }
 0xb83   : > { %v3065_v3 = vpop.xlane.xlu2 %3064 }
 0xb84   : > { %v3075_v48 = vmul.f32 %v3065_v3, %v8043_v13 }
 0xb86   : > { %v7491_v39 = vpop.eup %7490  ;;  %v3083_v17 = vadd.f32 1e-05, %v3075_v48 }
 0xb87   : > { %v3127_v41 = vmul.f32 %v7491_v39, %v3082_v12  ;;  %vm3133_vm13 = vweird.f32 %v7491_v39 }
 0xb88   : > { %7492 = vrsqrt.f32 %v3083_v17  ;;  %vm3134_vm15 = vmor %vm3132_vm14, %vm3133_vm13  ;;  %vm3142_vm1 = vweird.f32 %v3083_v17 }
 0xb89   : > { %v3128_v1 = vmul.f32 %v7491_v39, %v3127_v41 }
 0xb8b   : > { %v3129_v36 = vmul.f32 0.5, %v3128_v1 }
 0xb8d   : > { %v3130_v56 = vsub.f32 1.5, %v3129_v36 }
 0xb8e   : > { %v7493_v40 = vpop.eup %7492 }
 0xb8f   : > { %v3131_v58 = vmul.f32 %v7491_v39, %v3130_v56  ;;  %v3137_v10 = vmul.f32 %v7493_v40, %v3083_v17  ;;  %vm3143_vm0 = vweird.f32 %v7493_v40 }
 0xb90   : > { %vm3144_vm2 = vmor %vm3142_vm1, %vm3143_vm0 }
 0xb91   : > { %v3138_v19 = vmul.f32 %v7493_v40, %v3137_v10  ;;  %v3135_v43 = vsel %vm3134_vm15, %v7491_v39, %v3131_v58 }
 0xb92   : > { %v3170_v57 = vmul.f32 %v3135_v43, %v9448_v51 }
 0xb93   : > { %v3139_v6 = vmul.f32 0.5, %v3138_v19 }
 0xb94   : > { %v3179_v47 = vmul.f32 %v9620_v37, %v3170_v57 }
 0xb95   : > { %v3140_v62 = vsub.f32 1.5, %v3139_v6 }
 0xb96   : > { %v3188_v32 = vadd.f32 %v9625_v7, %v3179_v47 }
 0xb97   : > { %v3141_v20 = vmul.f32 %v7493_v40, %v3140_v62 }
 0xb99   : > { %v3145_v22 = vsel %vm3144_vm2, %v7493_v40, %v3141_v20 }
 0xb9a   : > { %v3171_v54 = vmul.f32 %v3145_v22, %v9454_v28 }
 0xb9c   : > { %v3180_v14 = vmul.f32 %v9620_v37, %v3171_v54 }
 0xb9e   : > { %v3189_v23 = vadd.f32 %v9625_v7, %v3180_v14 }
 0xba0   : > { %v3194_v15 = vpack.c.bf16 %v3189_v23, %v3188_v32 }
 0xba2   : > { %3375 = vmatmul.bf16.gmra.mxu3 %v3194_v15  ;;  %3404 = vmatmul.bf16.gmra.mxu0 %v3194_v15 }
 0xba3   : > { %3433 = vmatmul.bf16.gmra.mxu1 %v3194_v15 }
 0xbba   : > { %v3067_v49 = vpop.xlane.xlu1 %3066 }
 0xbbb   : > { %v3076_v51 = vmul.f32 %v3067_v49, %v8043_v13 }
 0xbbd   : > { %v3084_v52 = vadd.f32 1e-05, %v3076_v51 }
 0xbbf   : > { %7494 = vrsqrt.f32 %v3084_v52  ;;  %vm3152_vm4 = vweird.f32 %v3084_v52 }
 0xbc2   : > { %v3069_v29 = vpop.xlane.xlu0 %3068 }
 0xbc3   : > { %v3077_v28 = vmul.f32 %v3069_v29, %v8043_v13 }
 0xbc5   : > { %v7495_v21 = vpop.eup %7494  ;;  %v3085_v25 = vadd.f32 1e-05, %v3077_v28 }
 0xbc6   : > { %v3147_v53 = vmul.f32 %v7495_v21, %v3084_v52  ;;  %vm3153_vm3 = vweird.f32 %v7495_v21 }
 0xbc7   : > { %7496 = vrsqrt.f32 %v3085_v25  ;;  %vm3154_vm5 = vmor %vm3152_vm4, %vm3153_vm3  ;;  %vm3162_vm7 = vweird.f32 %v3085_v25 }
 0xbc8   : > { %v3148_v2 = vmul.f32 %v7495_v21, %v3147_v53 }
 0xbca   : > { %v3149_v55 = vmul.f32 0.5, %v3148_v2 }
 0xbcc   : > { %v3150_v27 = vsub.f32 1.5, %v3149_v55 }
 0xbcd   : > { %v7497_v46 = vpop.eup %7496 }
 0xbce   : > { %v3151_v5 = vmul.f32 %v7495_v21, %v3150_v27  ;;  %v3157_v45 = vmul.f32 %v7497_v46, %v3085_v25  ;;  %vm3163_vm6 = vweird.f32 %v7497_v46 }
 0xbcf   : > { %vm3164_vm8 = vmor %vm3162_vm7, %vm3163_vm6 }
 0xbd0   : > { %v3158_v24 = vmul.f32 %v7497_v46, %v3157_v45  ;;  %v3155_v42 = vsel %vm3154_vm5, %v7495_v21, %v3151_v5 }
 0xbd1   : > { %v3172_v12 = vmul.f32 %v3155_v42, %v9596_v16 }
 0xbd2   : > { %v3159_v59 = vmul.f32 0.5, %v3158_v24 }
 0xbd3   : > { %v3181_v17 = vmul.f32 %v9620_v37, %v3172_v12 }
 0xbd4   : > { %v3160_v34 = vsub.f32 1.5, %v3159_v59 }
 0xbd5   : > { %v3190_v1 = vadd.f32 %v9625_v7, %v3181_v17 }
 0xbd6   : > { %v3161_v3 = vmul.f32 %v7497_v46, %v3160_v34 }
 0xbd8   : > { %v3165_v48 = vsel %vm3164_vm8, %v7497_v46, %v3161_v3 }
 0xbd9   : > { %v3173_v39 = vmul.f32 %v3165_v48, %v9612_v30 }
 0xbdb   : > { %v3182_v41 = vmul.f32 %v9620_v37, %v3173_v39 }
 0xbdd   : > { %v3191_v36 = vadd.f32 %v9625_v7, %v3182_v41 }
 0xbdf   : > { %v3195_v56 = vpack.c.bf16 %v3191_v36, %v3190_v1 }
 0xbe1   : > { %3380 = vmatmul.bf16.gmra.mxu3 %v3195_v56  ;;  %3409 = vmatmul.bf16.gmra.mxu0 %v3195_v56 }
 0xbe2   : > { %3438 = vmatmul.bf16.gmra.mxu1 %v3195_v56 }
 0xbe4   : > { %v3395_v40 = vpop.f32.mrf.mxu0 }
 0xbe5   : > { %v3424_v29 = vpop.f32.mrf.mxu1 }
 0xbea   : > { %v3366_v16 = vpop.f32.mrf.mxu3 }
 0xbeb   : > { %v3444_v58 = vpack.c.bf16 %v3395_v40, %v3366_v16 }
 0xbec   : > { %v3397_v10 = vpop.f32.mrf.mxu0 }
 0xbed   : > { %v3494_v6 = vunpack.c.l.b16 %v3444_v58  ;;  %v3506_v15 = vunpack.c.h.b16 %v3444_v58  ;;  %v3426_v24 = vpop.f32.mrf.mxu1 }
 0xbf2   : > { %v3368_v19 = vpop.f32.mrf.mxu3 }
 0xbf3   : > { %v3446_v43 = vpack.c.bf16 %v3397_v10, %v3368_v19 }
 0xbf5   : > { %v3495_v30 = vunpack.c.l.b16 %v3446_v43  ;;  %v3507_v23 = vunpack.c.h.b16 %v3446_v43 }
 0xbf7   : > { %v9653_v62 = vpack.c.b16 %v3495_v30, %v3494_v6  ;;  %v3400_v57 = vpop.f32.mrf.mxu0  ;;  %v9659_v49 = vpack.c.b16 %v3507_v23, %v3506_v15  ;;  %v3447_v23 = vpack.c.bf16 %v3426_v24, %v3426_v24 }
 0xbf8   : > { %v3429_v12 = vpop.f32.mrf.mxu1 }
 0xbfd   : > { %v3371_v37 = vpop.f32.mrf.mxu3 }
 0xbfe   : > { %v3448_v20 = vpack.c.bf16 %v3400_v57, %v3371_v37 }
 0xbff   : > { %v3402_v22 = vpop.f32.mrf.mxu0 }
 0xc00   : > { %v3508_v47 = vunpack.c.h.b16 %v3448_v20  ;;  %v3496_v59 = vunpack.c.l.b16 %v3448_v20  ;;  %v3431_v3 = vpop.f32.mrf.mxu1 }
 0xc01   : > { %v3451_v6 = vpack.c.bf16 %v3431_v3, %v3431_v3 }
 0xc03   : > { %v3674_v15 = vunpack.c.l.b16 %v3451_v6 }
 0xc05   : > { %v3373_v54 = vpop.f32.mrf.mxu3 }
 0xc06   : > { %v3450_v7 = vpack.c.bf16 %v3402_v22, %v3373_v54  ;;  %v3449_v54 = vpack.c.bf16 %v3429_v12, %v3429_v12  ;;  %v3531_v12 = vsel %vm969_vm9, %v9659_v49, 0 }
 0xc08   : > { %v3509_v14 = vunpack.c.h.b16 %v3450_v7  ;;  %v3497_v42 = vunpack.c.l.b16 %v3450_v7 }
 0xc0a   : > { %v9655_v32 = vpack.c.b16 %v3509_v14, %v3508_v47  ;;  %v9671_v34 = vpack.c.b16 %v3497_v42, %v3496_v59 }
 0xc0c   : > { %3803 = vrot.lane.b32.xlu0 %v9655_v32, %s7873_s11  ;;  %v3534_v59 = vsel %vm969_vm9, %v9655_v32, 0 }
 0xc14   : > { %3801 = vrot.lane.b32.xlu0 %v9659_v49, %s7873_s11 }
 0xc1f   : > { %v3405_v51 = vpop.f32.mrf.mxu0 }
 0xc20   : > { %v3434_v48 = vpop.f32.mrf.mxu1 }
 0xc21   : > { %v3453_v58 = vpack.c.bf16 %v3434_v48, %v3434_v48 }
 0xc23   : > { %v3675_v7 = vunpack.c.l.b16 %v3453_v58 }
 0xc25   : > { %v3376_v52 = vpop.f32.mrf.mxu3 }
 0xc26   : > { %v3452_v28 = vpack.c.bf16 %v3405_v51, %v3376_v52 }
 0xc27   : > { %v3407_v21 = vpop.f32.mrf.mxu0 }
 0xc28   : > { %v3498_v2 = vunpack.c.l.b16 %v3452_v28  ;;  %v3510_v55 = vunpack.c.h.b16 %v3452_v28  ;;  %v3436_v39 = vpop.f32.mrf.mxu1  ;;  %v3445_v28 = vpack.c.bf16 %v3424_v29, %v3424_v29 }
 0xc29   : > { %v3455_v40 = vpack.c.bf16 %v3436_v39, %v3436_v39 }
 0xc2b   : > { %v3676_v30 = vunpack.c.l.b16 %v3455_v40 }
 0xc2d   : > { %v3378_v25 = vpop.f32.mrf.mxu3  ;;  %v9678_v51 = vpack.c.b16 %v3676_v30, %v3675_v7 }
 0xc2e   : > { %v3454_v53 = vpack.c.bf16 %v3407_v21, %v3378_v25  ;;  %v3673_v21 = vunpack.c.l.b16 %v3449_v54 }
 0xc30   : > { %v3499_v27 = vunpack.c.l.b16 %v3454_v53  ;;  %v3511_v46 = vunpack.c.h.b16 %v3454_v53  ;;  %v3672_v53 = vunpack.c.l.b16 %v3447_v23 }
 0xc32   : > { %v9663_v5 = vpack.c.b16 %v3499_v27, %v3498_v2  ;;  %v9665_v45 = vpack.c.b16 %v3511_v46, %v3510_v55  ;;  %v9687_v2 = vpack.c.b16 %v3674_v15, %v3673_v21  ;;  %v3671_v55 = vunpack.c.l.b16 %v3445_v28 }
 0xc34   : > { %3805 = vrot.lane.b32.xlu1 %v9665_v45, %s7873_s11  ;;  %3797 = vrot.lane.b32.xlu0 %v9663_v5, %s7873_s11  ;;  %v9690_v27 = vpack.c.b16 %v3672_v53, %v3671_v55  ;;  %v3537_v29 = vsel %vm969_vm9, %v9665_v45, 0 }
 0xc3c   : > { %3795 = vrot.lane.b32.xlu1 %v9671_v34, %s7873_s11 }
 0xc5e   : > { %v3410_v41 = vpop.f32.mrf.mxu0 }
 0xc5f   : > { %v3439_v17 = vpop.f32.mrf.mxu1 }
 0xc60   : > { %v3457_v36 = vpack.c.bf16 %v3439_v17, %v3439_v17 }
 0xc62   : > { %v3677_v10 = vunpack.c.l.b16 %v3457_v36 }
 0xc64   : > { %v3381_v1 = vpop.f32.mrf.mxu3 }
 0xc65   : > { %v3456_v43 = vpack.c.bf16 %v3410_v41, %v3381_v1 }
 0xc66   : > { %v3412_v57 = vpop.f32.mrf.mxu0 }
 0xc67   : > { %v3441_v56 = vpop.f32.mrf.mxu1  ;;  %v3512_v47 = vunpack.c.h.b16 %v3456_v43  ;;  %v3500_v24 = vunpack.c.l.b16 %v3456_v43 }
 0xc68   : > { %v3459_v16 = vpack.c.bf16 %v3441_v56, %v3441_v56 }
 0xc6a   : > { %v3678_v19 = vunpack.c.l.b16 %v3459_v16 }
 0xc6c   : > { %v9675_v37 = vpack.c.b16 %v3678_v19, %v3677_v10  ;;  %v3383_v20 = vpop.f32.mrf.mxu3 }
 0xc6d   : > { %v3458_v22 = vpack.c.bf16 %v3412_v57, %v3383_v20 }
 0xc6e   : > { %3703 = vmatpush.bf16.msra.mxu3 %v9675_v37 }
 0xc6f   : > { %v3513_v14 = vunpack.c.h.b16 %v3458_v22  ;;  %v3501_v46 = vunpack.c.l.b16 %v3458_v22 }
 0xc71   : > { %v9680_v52 = vpack.c.b16 %v3513_v14, %v3512_v47  ;;  %v9697_v42 = vpack.c.b16 %v3501_v46, %v3500_v24 }
 0xc72   : > { %3704 = vmatpush.bf16.msra.mxu3 %v9678_v51 }
 0xc73   : > { %3807 = vrot.lane.b32.xlu2 %v9680_v52, %s7873_s11  ;;  %v3540_v25 = vsel %vm969_vm9, %v9680_v52, 0 }
 0xc74   : > { %3546 = vmatpush.bf16.xpose.msra.mxu2 %v3540_v25 }
 0xc76   : > { %3705 = vmatpush.bf16.msra.mxu3 %v9687_v2 }
 0xc7a   : > { %3706 = vmatpush.bf16.msra.mxu3 %v9690_v27 }
 0xc7b   : > { %3793 = vrot.lane.b32.xlu2 %v9653_v62, %s7873_s11 }
 0xc7c   : > { %3547 = vmatpush.bf16.xpose.msra.mxu2 %v3537_v29 }
 0xc7e   : > { %v3804_v1 = vpop.permute.xlu0 %3803 }
 0xc7f   : > { %v3825_v56 = vsel %vm969_vm9, %v3804_v1, 0 }
 0xc83   : > { %3799 = vrot.lane.b32.xlu2 %v9697_v42, %s7873_s11 }
 0xc84   : > { %3548 = vmatpush.bf16.xpose.msra.mxu2 %v3534_v59 }
 0xc86   : > { %v3802_v40 = vpop.permute.xlu0 %3801 }
 0xc87   : > { %v3822_v58 = vsel %vm969_vm9, %v3802_v40, 0 }
 0xc8b   : > { %3960 = vrot.lane.b32.xlu2 %v9675_v37, %s7873_s11 }
 0xc8c   : > { %3549 = vmatpush.bf16.xpose.msra.mxu2 %v3531_v12 }
 0xc93   : > { %6545 = vmatmul.msk.bf16.vlgmr.msra.gmra.mxu2 %vm969_vm9, %v9653_v62 }
 0xca3   : > { %6546 = vmatmul.msk.bf16.gmra.mxu2 %vm969_vm9, %v9671_v34 }
 0xca6   : > { %v3806_v39 = vpop.permute.xlu1 %3805  ;;  %v3798_v19 = vpop.permute.xlu0 %3797 }
 0xca7   : > { %v3828_v41 = vsel %vm969_vm9, %v3806_v39, 0 }
 0xcae   : > { %v3796_v10 = vpop.permute.xlu1 %3795 }
 0xcb3   : > { %6547 = vmatmul.msk.bf16.gmra.mxu2 %vm969_vm9, %v9663_v5 }
 0xcc3   : > { %6548 = vmatmul.msk.bf16.gmra.mxu2 %vm969_vm9, %v9697_v42 }
 0xccd   : > { %v3808_v3 = vpop.permute.xlu2 %3807 }
 0xcce   : > { %v3831_v48 = vsel %vm969_vm9, %v3808_v3, 0 }
 0xccf   : > { %3837 = vmatpush.bf16.xpose.msrb.mxu1 %v3831_v48 }
 0xcd5   : > { %v3794_v17 = vpop.permute.xlu2 %3793 }
 0xcd7   : > { %3838 = vmatpush.bf16.xpose.msrb.mxu1 %v3828_v41 }
 0xcdd   : > { %v3800_v36 = vpop.permute.xlu2 %3799 }
 0xcdf   : > { %3839 = vmatpush.bf16.xpose.msrb.mxu1 %v3825_v56 }
 0xce5   : > { %v3961_v16 = vpop.permute.xlu2 %3960 }
 0xce6   : > { %3982 = vmatpush.bf16.msrb.mxu2 %v3961_v16 }
 0xce7   : > { %3840 = vmatpush.bf16.xpose.msrb.mxu1 %v3822_v58 }
 0xcee   : > { %6565 = vmatmul.msk.bf16.vlgmr.msrb.gmra.mxu1 %vm969_vm9, %v3794_v17 }
 0xcfe   : > { %6566 = vmatmul.msk.bf16.gmra.mxu1 %vm969_vm9, %v3796_v10 }
 0xd0e   : > { %6567 = vmatmul.msk.bf16.gmra.mxu1 %vm969_vm9, %v3798_v19 }
 0xd16   : > { %v3551_v43 = vpop.f32.mrf.mxu2 }
 0xd17   : > { %v3552_v6 = vadd.f32 %v3551_v43, %v8397_v31 }
 0xd19   : > { %v3571_v30 = vsel %vm1023_vm11, %v3552_v6, -inf }
 0xd1a   : > { %3572 = vmax.xlane.f32.xlu1 %v3571_v30 }
 0xd1e   : > { %v3553_v57 = vpop.f32.mrf.mxu2  ;;  %6568 = vmatmul.msk.bf16.gmra.mxu1 %vm969_vm9, %v3800_v36 }
 0xd1f   : > { %v3554_v20 = vadd.f32 %v3553_v57, %v8402_v38 }
 0xd21   : > { %v3574_v22 = vsel %vm1023_vm11, %v3554_v20, -inf }
 0xd22   : > { %3575 = vmax.xlane.f32.xlu0 %v3574_v22 }
 0xd26   : > { %v3556_v54 = vpop.f32.mrf.mxu2 }
 0xd27   : > { %v9728_v7 = vadd.f32 %v3556_v54, %v8406_v44 }
 0xd29   : > { %v3577_v47 = vsel %vm1023_vm11, %v9728_v7, -inf }
 0xd2a   : > { %3578 = vmax.xlane.f32.xlu2 %v3577_v47 }
 0xd2e   : > { %v3558_v14 = vpop.f32.mrf.mxu2 }
 0xd2f   : > { %v9733_v23 = vadd.f32 %v3558_v14, %v8410_v50 }
 0xd31   : > { %v3580_v15 = vsel %vm1023_vm11, %v9733_v23, -inf }
 0xd32   : > { %3581 = vmax.xlane.f32.xlu0 %v3580_v15 }
 0xd36   : > { %v3561_v28 = vpop.f32.mrf.mxu2 }
 0xd37   : > { %v9738_v21 = vadd.f32 %v3561_v28, %v8417_v18 }
 0xd39   : > { %v3583_v25 = vsel %vm1023_vm11, %v9738_v21, -inf }
 0xd3a   : > { %3584 = vmax.xlane.f32.xlu0 %v3583_v25 }
 0xd3e   : > { %v3563_v53 = vpop.f32.mrf.mxu2 }
 0xd3f   : > { %v9743_v55 = vadd.f32 %v3563_v53, %v8424_v8 }
 0xd41   : > { %v3586_v29 = vsel %vm1023_vm11, %v9743_v55, -inf }
 0xd42   : > { %3587 = vmax.xlane.f32.xlu1 %v3586_v29 }
 0xd46   : > { %v3566_v46 = vpop.f32.mrf.mxu2 }
 0xd47   : > { %v9748_v24 = vadd.f32 %v3566_v46, %v8431_v63 }
 0xd49   : > { %v3589_v59 = vsel %vm1023_vm11, %v9748_v24, -inf }
 0xd4a   : > { %3590 = vmax.xlane.f32.xlu1 %v3589_v59 }
 0xd4e   : > { %v3568_v12 = vpop.f32.mrf.mxu2 }
 0xd4f   : > { %v9753_v3 = vadd.f32 %v3568_v12, %v8438_v9 }
 0xd51   : > { %v3592_v48 = vsel %vm1023_vm11, %v9753_v3, -inf }
 0xd52   : > { %3593 = vmax.xlane.f32.xlu2 %v3592_v48 }
 0xd6b   : > { %v3842_v39 = vpop.f32.mrf.mxu1 }
 0xd6c   : > { %v3843_v17 = vadd.f32 %v3842_v39, %v8397_v31 }
 0xd6e   : > { %v3862_v41 = vsel %vm1023_vm11, %v3843_v17, -inf }
 0xd6f   : > { %3863 = vmax.xlane.f32.xlu2 %v3862_v41 }
 0xd73   : > { %v3844_v1 = vpop.f32.mrf.mxu1 }
 0xd74   : > { %v3845_v36 = vadd.f32 %v3844_v1, %v8402_v38 }
 0xd76   : > { %v3865_v56 = vsel %vm1023_vm11, %v3845_v36, -inf }
 0xd77   : > { %3866 = vmax.xlane.f32.xlu1 %v3865_v56 }
 0xd7b   : > { %v3847_v40 = vpop.f32.mrf.mxu1 }
 0xd7c   : > { %v9762_v16 = vadd.f32 %v3847_v40, %v8406_v44 }
 0xd7e   : > { %v3868_v58 = vsel %vm1023_vm11, %v9762_v16, -inf }
 0xd7f   : > { %3869 = vmax.xlane.f32.xlu1 %v3868_v58 }
 0xd83   : > { %v3849_v10 = vpop.f32.mrf.mxu1 }
 0xd84   : > { %v3850_v19 = vadd.f32 %v3849_v10, %v8410_v50 }
 0xd86   : > { %v3871_v43 = vsel %vm1023_vm11, %v3850_v19, -inf }
 0xd87   : > { %3872 = vmax.xlane.f32.xlu2 %v3871_v43 }
 0xd8b   : > { %v3852_v30 = vpop.f32.mrf.mxu1 }
 0xd8c   : > { %v9769_v57 = vadd.f32 %v3852_v30, %v8417_v18 }
 0xd8d   : > { %v3573_v22 = vpop.xlane.xlu1 %3572 }
 0xd8e   : > { %v3595_v54 = vsub.f32 %v3552_v6, %v3573_v22  ;;  %v3874_v47 = vsel %vm1023_vm11, %v9769_v57, -inf }
 0xd8f   : > { %3875 = vmax.xlane.f32.xlu2 %v3874_v47 }
 0xd90   : > { %v3603_v14 = vmul.f32 1.442695, %v3595_v54 }
 0xd92   : > { %7498 = vpow2.f32 %v3603_v14 }
 0xd93   : > { %v3854_v15 = vpop.f32.mrf.mxu1 }
 0xd94   : > { %v9778_v6 = vadd.f32 %v3854_v15, %v8424_v8 }
 0xd95   : > { %v3576_v28 = vpop.xlane.xlu0 %3575 }
 0xd96   : > { %v3596_v25 = vsub.f32 %v3554_v20, %v3576_v28  ;;  %v3877_v20 = vsel %vm1023_vm11, %v9778_v6, -inf }
 0xd98   : > { %v9773_v53 = vpop.eup %7498  ;;  %v3605_v29 = vmul.f32 1.442695, %v3596_v25 }
 0xd99   : > { %v3619_v46 = vsel %vm1023_vm11, %v9773_v53, 0.0 }
 0xd9a   : > { %7500 = vpow2.f32 %v3605_v29  ;;  %3620 = vadd.xlane.f32.xlu0 %v3619_v46 }
 0xd9b   : > { %v3857_v59 = vpop.f32.mrf.mxu1 }
 0xd9c   : > { %v9787_v41 = vadd.f32 %v3857_v59, %v8431_v63 }
 0xd9d   : > { %v3579_v58 = vpop.xlane.xlu2 %3578 }
 0xd9e   : > { %v3880_v40 = vsel %vm1023_vm11, %v9787_v41, -inf  ;;  %v3597_v10 = vsub.f32 %v9728_v7, %v3579_v58 }
 0xda0   : > { %v9780_v12 = vpop.eup %7500  ;;  %v3607_v43 = vmul.f32 1.442695, %v3597_v10 }
 0xda1   : > { %v3622_v48 = vsel %vm1023_vm11, %v9780_v12, 0.0 }
 0xda2   : > { %3623 = vadd.xlane.f32.xlu1 %v3622_v48  ;;  %3878 = vmax.xlane.f32.xlu0 %v3877_v20  ;;  %7502 = vpow2.f32 %v3607_v43 }
 0xda3   : > { %v3859_v39 = vpop.f32.mrf.mxu1 }
 0xda4   : > { %v9790_v1 = vadd.f32 %v3859_v39, %v8438_v9 }
 0xda6   : > { %v3883_v56 = vsel %vm1023_vm11, %v9790_v1, -inf }
 0xda7   : > { %3954 = vrot.lane.b32.xlu2 %v9690_v27, %s7873_s11 }
 0xda8   : > { %v9799_v30 = vpop.eup %7502 }
 0xda9   : > { %v3625_v22 = vsel %vm1023_vm11, %v9799_v30, 0.0 }
 0xdaa   : > { %3884 = vmax.xlane.f32.xlu1 %v3883_v56  ;;  %3881 = vmax.xlane.f32.xlu0 %v3880_v40 }
 0xdb5   : > { %v3588_v54 = vpop.xlane.xlu1 %3587 }
 0xdb6   : > { %v3600_v40 = vsub.f32 %v9743_v55, %v3588_v54 }
 0xdb8   : > { %v3613_v10 = vmul.f32 1.442695, %v3600_v40 }
 0xdbd   : > { %v3591_v14 = vpop.xlane.xlu1 %3590 }
 0xdc5   : > { %v9803_v47 = vpop.xlane.xlu2 %3593 }
 0xdd0   : > { %3626 = vadd.xlane.f32.xlu2 %v3625_v22  ;;  %v3601_v22 = vsub.f32 %v9748_v24, %v3591_v14 }
 0xde2   : > { %v3864_v15 = vpop.xlane.xlu2 %3863 }
 0xde3   : > { %v3886_v28 = vsub.f32 %v3843_v17, %v3864_v15 }
 0xde5   : > { %v3894_v25 = vmul.f32 1.442695, %v3886_v28 }
 0xde7   : > { %7504 = vpow2.f32 %v3894_v25 }
 0xdea   : > { %v3867_v29 = vpop.xlane.xlu1 %3866 }
 0xdeb   : > { %v3887_v46 = vsub.f32 %v3845_v36, %v3867_v29  ;;  %v3582_v36 = vpop.xlane.xlu0 %3581 }
 0xded   : > { %v9805_v59 = vpop.eup %7504  ;;  %v3896_v7 = vmul.f32 1.442695, %v3887_v46 }
 0xdee   : > { %v3910_v48 = vsel %vm1023_vm11, %v9805_v59, 0.0 }
 0xdef   : > { %7506 = vpow2.f32 %v3896_v7  ;;  %3911 = vadd.xlane.f32.xlu0 %v3910_v48  ;;  %v3598_v48 = vsub.f32 %v9733_v23, %v3582_v36 }
 0xdf2   : > { %v3870_v55 = vpop.xlane.xlu1 %3869 }
 0xdf3   : > { %v3585_v28 = vpop.xlane.xlu0 %3584  ;;  %v3888_v23 = vsub.f32 %v9762_v16, %v3870_v55 }
 0xdf5   : > { %v9809_v20 = vpop.eup %7506 }
 0xdf6   : > { %v3913_v39 = vsel %vm1023_vm11, %v9809_v20, 0.0 }
 0xdf7   : > { %3914 = vadd.xlane.f32.xlu1 %v3913_v39 }
 0xdfa   : > { %v3873_v56 = vpop.xlane.xlu2 %3872 }
 0xdfb   : > { %v3889_v17 = vsub.f32 %v3850_v19, %v3873_v56  ;;  %v3615_v19 = vmul.f32 1.442695, %v3601_v22 }
 0xdfd   : > { %v3900_v58 = vmul.f32 1.442695, %v3889_v17 }
 0xdff   : > { %7508 = vpow2.f32 %v3900_v58  ;;  %v3609_v58 = vmul.f32 1.442695, %v3598_v48 }
 0xe00   : > { %7510 = vpow2.f32 %v3613_v10 }
 0xe01   : > { %7512 = vpow2.f32 %v3615_v19  ;;  %v3599_v19 = vsub.f32 %v9738_v21, %v3585_v28 }
 0xe03   : > { %3958 = vrot.lane.b32.xlu0 %v9678_v51, %s7873_s11 }
 0xe05   : > { %v9816_v43 = vpop.eup %7508 }
 0xe06   : > { %v3919_v15 = vsel %vm1023_vm11, %v9816_v43, 0.0  ;;  %v9821_v25 = vpop.eup %7510 }
 0xe07   : > { %3920 = vadd.xlane.f32.xlu2 %v3919_v15  ;;  %v3634_v54 = vsel %vm1023_vm11, %v9821_v25, 0.0  ;;  %v9827_v46 = vpop.eup %7512 }
 0xe08   : > { %v3637_v14 = vsel %vm1023_vm11, %v9827_v46, 0.0 }
 0xe0d   : > { %v3621_v29 = vpop.xlane.xlu0 %3620 }
 0xe0e   : > { %7514 = vrcp.f32 %v3621_v29 }
 0xe0f   : > { %3635 = vadd.xlane.f32.xlu2 %v3634_v54  ;;  %v3611_v54 = vmul.f32 1.442695, %v3599_v19 }
 0xe10   : > { %3956 = vrot.lane.b32.xlu1 %v9687_v2, %s7873_s11  ;;  %s5862_s11 = scalar_lea.hbm %s10820_s10, %s7215_s19 }
 0xe14   : > { %v7515_v7 = vpop.eup %7514 }
 0xe15   : > { %v3624_v24 = vpop.xlane.xlu1 %3623  ;;  %v3651_v56 = vmul.f32 %v7515_v7, %v9773_v53  ;;  %v3876_v53 = vpop.xlane.xlu2 %3875  ;;  %v3602_v7 = vsub.f32 %v9753_v3, %v9803_v47 }
 0xe16   : > { %7516 = vrcp.f32 %v3624_v24  ;;  %v3879_v24 = vpop.xlane.xlu0 %3878 }
 0xe17   : > { %3638 = vadd.xlane.f32.xlu2 %v3637_v14  ;;  %7518 = vpow2.f32 %v3609_v58  ;;  %v3898_v14 = vmul.f32 1.442695, %v3888_v23  ;;  %v3891_v16 = vsub.f32 %v9778_v6, %v3879_v24 }
 0xe19   : > { %v3904_v48 = vmul.f32 1.442695, %v3891_v16 }
 0xe1c   : > { %v7517_v39 = vpop.eup %7516 }
 0xe1d   : > { %v3652_v17 = vmul.f32 %v7517_v39, %v9780_v12  ;;  %v3885_v40 = vpop.xlane.xlu1 %3884  ;;  %v9837_v29 = vpop.eup %7518 }
 0xe1e   : > { %v3893_v10 = vsub.f32 %v9790_v1, %v3885_v40  ;;  %v3890_v1 = vsub.f32 %v9769_v57, %v3876_v53  ;;  %v3628_v21 = vsel %vm1023_vm11, %v9837_v29, 0.0  ;;  %v3882_v39 = vpop.xlane.xlu0 %3881 }
 0xe1f   : > { %v3659_v22 = vpack.c.bf16 %v3652_v17, %v3651_v56  ;;  %v3617_v17 = vmul.f32 1.442695, %v3602_v7  ;;  %v3892_v40 = vsub.f32 %v9787_v41, %v3882_v39 }
 0xe20   : > { %v3908_v15 = vmul.f32 1.442695, %v3893_v10  ;;  %v3902_v28 = vmul.f32 1.442695, %v3890_v1 }
 0xe21   : > { %6549 = vmatmul.msk.bf16.vlgmr.msra.gmra.mxu3 %vm1023_vm11, %v3659_v22  ;;  %v3906_v3 = vmul.f32 1.442695, %v3892_v40 }
 0xe22   : > { %7520 = vpow2.f32 %v3908_v15 }
 0xe23   : > { %7522 = vpow2.f32 %v3611_v54 }
 0xe24   : > { %7524 = vpow2.f32 %v3898_v14 }
 0xe25   : > { %7526 = vpow2.f32 %v3902_v28 }
 0xe26   : > { %7528 = vpow2.f32 %v3904_v48 }
 0xe27   : > { %7530 = vpow2.f32 %v3617_v17 }
 0xe28   : > { %v9840_v36 = vpop.eup %7520  ;;  %7532 = vpow2.f32 %v3906_v3 }
 0xe29   : > { %v3931_v12 = vsel %vm1023_vm11, %v9840_v36, 0.0  ;;  %v9848_v55 = vpop.eup %7522 }
 0xe2a   : > { %3932 = vadd.xlane.f32.xlu2 %v3931_v12  ;;  %v3631_v57 = vsel %vm1023_vm11, %v9848_v55, 0.0  ;;  %v9854_v56 = vpop.eup %7524 }
 0xe2b   : > { %v9857_v58 = vpop.eup %7526  ;;  %v3916_v6 = vsel %vm1023_vm11, %v9854_v56, 0.0 }
 0xe2c   : > { %v3922_v47 = vsel %vm1023_vm11, %v9857_v58, 0.0  ;;  %v9863_v10 = vpop.eup %7528 }
 0xe2d   : > { %3629 = vadd.xlane.f32.xlu0 %v3628_v21  ;;  %v9865_v22 = vpop.eup %7530  ;;  %v3925_v41 = vsel %vm1023_vm11, %v9863_v10, 0.0  ;;  %v7136_v21 = vld [vmem:[#allocation2 + $0x48] sm:$0xff] }
 0xe2e   : > { %v3640_v15 = vsel %vm1023_vm11, %v9865_v22, 0.0  ;;  %v9873_v19 = vpop.eup %7532  ;;  %3762 = vmatpush.bf16.msra.mxu0 %v7136_v21 }
 0xe2f   : > { %v3928_v54 = vsel %vm1023_vm11, %v9873_v19, 0.0 }
 0xe35   : > { %3632 = vadd.xlane.f32.xlu0 %v3631_v57 }
 0xe3a   : > { %3917 = vadd.xlane.f32.xlu1 %v3916_v6 }
 0xe3d   : > { %3923 = vadd.xlane.f32.xlu0 %v3922_v47 }
 0xe42   : > { %3926 = vadd.xlane.f32.xlu1 %v3925_v41  ;;  %4084 = vrot.lane.b32.xlu2 %v9665_v45, %s7875_s12  ;;  %v7138_v41 = vld [vmem:[#allocation2 + $0x58] sm:$0xff] }
 0xe43   : > { %4041 = vmatpush.bf16.msrb.mxu3 %v7138_v41 }
 0xe45   : > { %3641 = vadd.xlane.f32.xlu0 %v3640_v15 }
 0xe4a   : > { %3929 = vadd.xlane.f32.xlu1 %v3928_v54  ;;  %4361 = vrot.lane.b32.xlu2 %v9655_v32, %s7876_s21 }
 0xe52   : > { %4072 = vrot.lane.b32.xlu2 %v9653_v62, %s7875_s12 }
 0xe59   : > { %4086 = vrot.lane.b32.xlu0 %v9680_v52, %s7875_s12 }
 0xe5a   : > { %4353 = vrot.lane.b32.xlu2 %v9671_v34, %s7876_s21 }
 0xe61   : > { %4363 = vrot.lane.b32.xlu0 %v9665_v45, %s7876_s21  ;;  %v3955_v45 = vpop.permute.xlu2 %3954 }
 0xe62   : > { %4078 = vrot.lane.b32.xlu2 %v9697_v42, %s7875_s12  ;;  %v3912_v23 = vpop.xlane.xlu0 %3911 }
 0xe63   : > { %4365 = vrot.lane.b32.xlu1 %v9680_v52, %s7876_s21 }
 0xe69   : > { %4080 = vrot.lane.b32.xlu0 %v9659_v49, %s7875_s12 }
 0xe6a   : > { %4237 = vrot.lane.b32.xlu2 %v9678_v51, %s7875_s12  ;;  %v3915_v53 = vpop.xlane.xlu1 %3914 }
 0xe6b   : > { %4082 = vrot.lane.b32.xlu1 %v9655_v32, %s7875_s12  ;;  %7534 = vrcp.f32 %v3915_v53  ;;  %v3627_v32 = vpop.xlane.xlu2 %3626 }
 0xe6c   : > { %7536 = vrcp.f32 %v3912_v23 }
 0xe6d   : > { %7538 = vrcp.f32 %v3627_v32  ;;  %v7137_v32 = vld [vmem:[#allocation2 + $0x50] sm:$0xff] }
 0xe6e   : > { %4042 = vmatpush.bf16.msrb.mxu3 %v7137_v32 }
 0xe71   : > { %4351 = vrot.lane.b32.xlu0 %v9653_v62, %s7876_s21  ;;  %v7535_v62 = vpop.eup %7534 }
 0xe72   : > { %4518 = vrot.lane.b32.xlu2 %v9675_v37, %s7876_s21  ;;  %v7537_v1 = vpop.eup %7536 }
 0xe73   : > { %4359 = vrot.lane.b32.xlu1 %v9659_v49, %s7876_s21  ;;  %v3943_v49 = vmul.f32 %v7535_v62, %v9809_v20  ;;  %v3942_v14 = vmul.f32 %v7537_v1, %v9805_v59  ;;  %v7539_v7 = vpop.eup %7538 }
 0xe74   : > { %v3653_v48 = vmul.f32 %v7539_v7, %v9799_v30 }
 0xe75   : > { %v3959_v52 = vpop.permute.xlu0 %3958 }
 0xe76   : > { %3983 = vmatpush.bf16.msrb.mxu2 %v3959_v52 }
 0xe79   : > { %4076 = vrot.lane.b32.xlu0 %v9663_v5, %s7875_s12 }
 0xe7a   : > { %v3921_v24 = vpop.xlane.xlu2 %3920 }
 0xe7b   : > { %4074 = vrot.lane.b32.xlu1 %v9671_v34, %s7875_s12  ;;  %v3950_v34 = vpack.c.bf16 %v3943_v49, %v3942_v14 }
 0xe81   : > { %4357 = vrot.lane.b32.xlu0 %v9697_v42, %s7876_s21  ;;  %v7135_v42 = vld [vmem:[#allocation2 + $0x40] sm:$0xff] }
 0xe82   : > { %v3957_v12 = vpop.permute.xlu1 %3956  ;;  %3763 = vmatpush.bf16.msra.mxu0 %v7135_v42 }
 0xe83   : > { %4355 = vrot.lane.b32.xlu1 %v9663_v5, %s7876_s21  ;;  %3984 = vmatpush.bf16.msrb.mxu2 %v3957_v12  ;;  %v3636_v5 = vpop.xlane.xlu2 %3635 }
 0xe87   : > { %3985 = vmatpush.bf16.msrb.mxu2 %v3955_v45 }
 0xe89   : > { %4239 = vrot.lane.b32.xlu0 %v9675_v37, %s7875_s12 }
 0xe8a   : > { %6569 = vmatmul.msk.bf16.vlgmr.msrb.gmra.mxu2 %vm1023_vm11, %v3950_v34 }
 0xe8b   : > { %4235 = vrot.lane.b32.xlu1 %v9687_v2, %s7875_s12  ;;  %v3639_v20 = vpop.xlane.xlu2 %3638 }
 0xe91   : > { %4233 = vrot.lane.b32.xlu0 %v9690_v27, %s7875_s12  ;;  %s5863_s12 = sshll.u32 %s417_s15, 4  ;;  %s5864_s12 = int_to_ptr.vmem [resolvable:$true] %s5863_s12 }
 0xe9d   : > { %v3933_v28 = vpop.xlane.xlu2 %3932 }
 0xea0   : > { %v3630_v59 = vpop.xlane.xlu0 %3629 }
 0xea1   : > { %7540 = vrcp.f32 %v3630_v59 }
 0xea2   : > { %7542 = vrcp.f32 %v3921_v24 }
 0xea4   : > { %v3708_v16 = vpop.f32.mrf.mxu3 }
 0xea5   : > { %v4085_v40 = vpop.permute.xlu2 %4084 }
 0xea7   : > { %v7541_v37 = vpop.eup %7540 }
 0xea8   : > { %v3654_v57 = vmul.f32 %v7541_v37, %v9837_v29  ;;  %v3633_v39 = vpop.xlane.xlu0 %3632  ;;  %v7543_v30 = vpop.eup %7542 }
 0xea9   : > { %7544 = vrcp.f32 %v3633_v39  ;;  %v3945_v45 = vmul.f32 %v7543_v30, %v9816_v43 }
 0xeaa   : > { %v3660_v17 = vpack.c.bf16 %v3654_v57, %v3653_v48 }
 0xeac   : > { %v3710_v6 = vpop.f32.mrf.mxu3  ;;  %6550 = vmatmul.msk.bf16.gmra.mxu3 %vm1023_vm11, %v3660_v17  ;;  %v4107_v17 = vsel %vm969_vm9, %v4085_v40, 0 }
 0xead   : > { %v3728_v3 = vpack.c.bf16 %v3710_v6, %v3708_v16  ;;  %v3918_v47 = vpop.xlane.xlu1 %3917  ;;  %v4362_v52 = vpop.permute.xlu2 %4361 }
 0xeae   : > { %7546 = vrcp.f32 %v3918_v47 }
 0xeaf   : > { %7548 = vrcp.f32 %v3636_v5  ;;  %6561 = vmatmul.msk.bf16.vlgmr.msra.gmra.mxu0 %vm969_vm9, %v3728_v3  ;;  %v7545_v54 = vpop.eup %7544 }
 0xeb0   : > { %v3924_v15 = vpop.xlane.xlu0 %3923  ;;  %v3655_v62 = vmul.f32 %v7545_v54, %v9848_v55 }
 0xeb4   : > { %v7547_v29 = vpop.eup %7546 }
 0xeb5   : > { %v7549_v23 = vpop.eup %7548  ;;  %v3944_v53 = vmul.f32 %v7547_v29, %v9854_v56  ;;  %v3927_v12 = vpop.xlane.xlu1 %3926 }
 0xeb6   : > { %v3656_v49 = vmul.f32 %v7549_v23, %v9821_v25  ;;  %7550 = vrcp.f32 %v3927_v12  ;;  %v9930_v43 = vpop.permute.xlu2 %4072 }
 0xeb7   : > { %v3951_v1 = vpack.c.bf16 %v3945_v45, %v3944_v53  ;;  %7552 = vrcp.f32 %v3924_v15 }
 0xeb8   : > { %v3642_v24 = vpop.xlane.xlu0 %3641  ;;  %v3661_v14 = vpack.c.bf16 %v3656_v49, %v3655_v62 }
 0xeb9   : > { %6570 = vmatmul.msk.bf16.gmra.mxu2 %vm1023_vm11, %v3951_v1  ;;  %7554 = vrcp.f32 %v3642_v24 }
 0xeba   : > { %7556 = vrcp.f32 %v3639_v20 }
 0xebc   : > { %6551 = vmatmul.msk.bf16.gmra.mxu3 %vm1023_vm11, %v3661_v14  ;;  %v7551_v56 = vpop.eup %7550 }
 0xebd   : > { %v7553_v21 = vpop.eup %7552  ;;  %v3947_v34 = vmul.f32 %v7551_v56, %v9863_v10  ;;  %v3930_v59 = vpop.xlane.xlu1 %3929 }
 0xebe   : > { %v3946_v25 = vmul.f32 %v7553_v21, %v9857_v58  ;;  %v9936_v37 = vpop.permute.xlu2 %4353  ;;  %7558 = vrcp.f32 %v3930_v59 }
 0xebf   : > { %v7555_v55 = vpop.eup %7554  ;;  %7560 = vrcp.f32 %v3933_v28 }
 0xec0   : > { %v7557_v42 = vpop.eup %7556  ;;  %v3658_v5 = vmul.f32 %v7555_v55, %v9865_v22  ;;  %v3952_v16 = vpack.c.bf16 %v3947_v34, %v3946_v25 }
 0xec1   : > { %v3657_v7 = vmul.f32 %v7557_v42, %v9827_v46 }
 0xec3   : > { %v3662_v20 = vpack.c.bf16 %v3658_v5, %v3657_v7 }
 0xec4   : > { %v7559_v58 = vpop.eup %7558 }
 0xec5   : > { %v7561_v10 = vpop.eup %7560  ;;  %v3948_v22 = vmul.f32 %v7559_v58, %v9873_v19 }
 0xec6   : > { %v9942_v39 = vpop.permute.xlu2 %4078  ;;  %v3949_v6 = vmul.f32 %v7561_v10, %v9840_v36  ;;  %v4383_v36 = vsel %vm969_vm9, %v4362_v52, 0 }
 0xec8   : > { %v3953_v47 = vpack.c.bf16 %v3949_v6, %v3948_v22 }
 0xec9   : > { %6571 = vmatmul.msk.bf16.gmra.mxu2 %vm1023_vm11, %v3952_v16 }
 0xecb   : > { %v4087_v48 = vpop.permute.xlu0 %4086 }
 0xecc   : > { %v4110_v57 = vsel %vm969_vm9, %v4087_v48, 0  ;;  %6552 = vmatmul.msk.bf16.gmra.mxu3 %vm1023_vm11, %v3662_v20 }
 0xecd   : > { %4116 = vmatpush.bf16.xpose.msrb.mxu0 %v4110_v57 }
 0xece   : > { %v4238_v15 = vpop.permute.xlu2 %4237 }
 0xed3   : > { %v4364_v46 = vpop.permute.xlu0 %4363 }
 0xed4   : > { %v4386_v19 = vsel %vm969_vm9, %v4364_v46, 0 }
 0xed5   : > { %4117 = vmatpush.bf16.xpose.msrb.mxu0 %v4107_v17  ;;  %v4366_v3 = vpop.permute.xlu1 %4365 }
 0xed6   : > { %v4389_v28 = vsel %vm969_vm9, %v4366_v3, 0  ;;  %v4519_v45 = vpop.permute.xlu2 %4518 }
 0xed7   : > { %4395 = vmatpush.bf16.xpose.msra.mxu3 %v4389_v28  ;;  %v7668_v28 = vld [vmem:[%s10815_s5 + $0x8] sm:$0xff] }
 0xed9   : > { %6572 = vmatmul.msk.bf16.gmra.mxu2 %vm1023_vm11, %v3953_v47  ;;  %v9970_v47 = vperm.slane %v7668_v28, 4 }
 0xedb   : > { %v4081_v41 = vpop.permute.xlu0 %4080 }
 0xedc   : > { %v4101_v23 = vsel %vm969_vm9, %v4081_v41, 0 }
 0xedd   : > { %v4083_v30 = vpop.permute.xlu1 %4082 }
 0xede   : > { %v4104_v54 = vsel %vm969_vm9, %v4083_v30, 0 }
 0xedf   : > { %4118 = vmatpush.bf16.xpose.msrb.mxu0 %v4104_v54  ;;  %4396 = vmatpush.bf16.xpose.msra.mxu3 %v4386_v19 }
 0xee3   : > { %v4352_v40 = vpop.permute.xlu0 %4351 }
 0xee5   : > { %v4360_v29 = vpop.permute.xlu1 %4359 }
 0xee6   : > { %v4380_v32 = vsel %vm969_vm9, %v4360_v29, 0 }
 0xee7   : > { %4119 = vmatpush.bf16.xpose.msrb.mxu0 %v4101_v23  ;;  %4397 = vmatpush.bf16.xpose.msra.mxu3 %v4383_v36  ;;  %v3480_v36 = vadd.f32 %v9970_v47, %v9394_v26 }
 0xeeb   : > { %v4077_v53 = vpop.permute.xlu0 %4076 }
 0xeed   : > { %v4075_v62 = vpop.permute.xlu1 %4074 }
 0xeef   : > { %4540 = vmatpush.bf16.msra.mxu0 %v4519_v45  ;;  %4398 = vmatpush.bf16.xpose.msra.mxu3 %v4380_v32 }
 0xef3   : > { %v4358_v12 = vpop.permute.xlu0 %4357 }
 0xef5   : > { %v4356_v1 = vpop.permute.xlu1 %4355 }
 0xefb   : > { %v4240_v49 = vpop.permute.xlu0 %4239 }
 0xefc   : > { %4261 = vmatpush.bf16.msra.mxu1 %v4240_v49 }
 0xefd   : > { %v4236_v24 = vpop.permute.xlu1 %4235 }
 0xf00   : > { %4262 = vmatpush.bf16.msra.mxu1 %v4238_v15 }
 0xf03   : > { %v4234_v14 = vpop.permute.xlu0 %4233 }
 0xf04   : > { %4263 = vmatpush.bf16.msra.mxu1 %v4236_v24 }
 0xf08   : > { %4264 = vmatpush.bf16.msra.mxu1 %v4234_v14 }
 0xf0d   : > { %v3987_v52 = vpop.f32.mrf.mxu2 }
 0xf15   : > { %v3989_v56 = vpop.f32.mrf.mxu2 }
 0xf16   : > { %v4007_v21 = vpack.c.bf16 %v3989_v56, %v3987_v52  ;;  %v3484_v52 = vadd.f32 %v9970_v47, %v9418_v0 }
 0xf18   : > { %6581 = vmatmul.msk.bf16.vlgmr.msrb.gmra.mxu3 %vm969_vm9, %v4007_v21 }
 0xf2c   : > { %v3765_v41 = vpop.f32.mrf.mxu0 }
 0xf2f   : > { %v3713_v55 = vpop.f32.mrf.mxu3 }
 0xf34   : > { %v9980_v19 = vpop.f32.mrf.mxu0 }
 0xf37   : > { %v3715_v34 = vpop.f32.mrf.mxu3 }
 0xf38   : > { %v3729_v42 = vpack.c.bf16 %v3715_v34, %v3713_v55 }
 0xf3a   : > { %6562 = vmatmul.msk.bf16.gmra.mxu0 %vm969_vm9, %v3729_v42 }
 0xf3c   : > { %v3992_v25 = vpop.f32.mrf.mxu2 }
 0xf3f   : > { %v3718_v5 = vpop.f32.mrf.mxu3 }
 0xf44   : > { %v3994_v59 = vpop.f32.mrf.mxu2 }
 0xf45   : > { %v4008_v16 = vpack.c.bf16 %v3994_v59, %v3992_v25 }
 0xf47   : > { %v3720_v7 = vpop.f32.mrf.mxu3  ;;  %6582 = vmatmul.msk.bf16.gmra.mxu3 %vm969_vm9, %v4008_v16 }
 0xf48   : > { %v3730_v20 = vpack.c.bf16 %v3720_v7, %v3718_v5 }
 0xf4a   : > { %6563 = vmatmul.msk.bf16.gmra.mxu0 %vm969_vm9, %v3730_v20 }
 0xf4c   : > { %v3997_v48 = vpop.f32.mrf.mxu2 }
 0xf4f   : > { %v3723_v57 = vpop.f32.mrf.mxu3 }
 0xf54   : > { %v3999_v58 = vpop.f32.mrf.mxu2 }
 0xf55   : > { %v4009_v10 = vpack.c.bf16 %v3999_v58, %v3997_v48 }
 0xf57   : > { %v3725_v22 = vpop.f32.mrf.mxu3  ;;  %6583 = vmatmul.msk.bf16.gmra.mxu3 %vm969_vm9, %v4009_v10 }
 0xf58   : > { %v3731_v46 = vpack.c.bf16 %v3725_v22, %v3723_v57 }
 0xf5a   : > { %6564 = vmatmul.msk.bf16.gmra.mxu0 %vm969_vm9, %v3731_v46 }
 0xf5c   : > { %v4002_v17 = vpop.f32.mrf.mxu2 }
 0xf64   : > { %v4004_v6 = vpop.f32.mrf.mxu2 }
 0xf65   : > { %v4010_v3 = vpack.c.bf16 %v4004_v6, %v4002_v17 }
 0xf67   : > { %6584 = vmatmul.msk.bf16.gmra.mxu3 %vm969_vm9, %v4010_v3 }
 0xf6a   : > { %6585 = vmatmul.msk.bf16.vlgmr.msrb.gmra.mxu0 %vm969_vm9, %v9930_v43  ;;  %v3478_v43 = vadd.f32 %v9970_v47, %v9384_v60 }
 0xf6c   : > { %v3785_v15 = vadd.f32 %v3765_v41, %v3478_v43 }
 0xf77   : > { %6605 = vmatmul.msk.bf16.vlgmr.msra.gmra.mxu3 %vm969_vm9, %v4352_v40 }
 0xf7a   : > { %6586 = vmatmul.msk.bf16.gmra.mxu0 %vm969_vm9, %v4075_v62  ;;  %v3482_v62 = vadd.f32 %v9970_v47, %v9404_v61 }
 0xf87   : > { %6606 = vmatmul.msk.bf16.gmra.mxu3 %vm969_vm9, %v9936_v37 }
 0xf8a   : > { %6587 = vmatmul.msk.bf16.gmra.mxu0 %vm969_vm9, %v4077_v53 }
 0xf97   : > { %6607 = vmatmul.msk.bf16.gmra.mxu3 %vm969_vm9, %v4356_v1 }
 0xf9a   : > { %6588 = vmatmul.msk.bf16.gmra.mxu0 %vm969_vm9, %v9942_v39 }
 0xf9b   : > { %v4044_v30 = vpop.f32.mrf.mxu3 }
 0xf9c   : > { %v9977_v37 = vadd.f32 %v4044_v30, %v3785_v15 }
 0xfa3   : > { %v9984_v29 = vpop.f32.mrf.mxu3 }
 0xfa7   : > { %6608 = vmatmul.msk.bf16.gmra.mxu3 %vm969_vm9, %v4358_v12 }
 0xfb7   : > { %v3770_v54 = vpop.f32.mrf.mxu0 }
 0xfb8   : > { %v3787_v23 = vadd.f32 %v3770_v54, %v3480_v36 }
 0xfbf   : > { %v9982_v40 = vpop.f32.mrf.mxu0 }
 0xfc7   : > { %v3775_v60 = vpop.f32.mrf.mxu0 }
 0xfc8   : > { %v3789_v1 = vadd.f32 %v3775_v60, %v3482_v62 }
 0xfca   : > { %v4049_v45 = vpop.f32.mrf.mxu3 }
 0xfcb   : > { %v9988_v53 = vadd.f32 %v4049_v45, %v3787_v23 }
 0xfcf   : > { %v9990_v39 = vpop.f32.mrf.mxu0 }
 0xfd2   : > { %v9992_v32 = vpop.f32.mrf.mxu3 }
 0xfd7   : > { %v3780_v12 = vpop.f32.mrf.mxu0 }
 0xfd8   : > { %v3791_v55 = vadd.f32 %v3780_v12, %v3484_v52 }
 0xfda   : > { %v4054_v49 = vpop.f32.mrf.mxu3 }
 0xfdb   : > { %v9996_v24 = vadd.f32 %v4054_v49, %v3789_v1 }
 0xfdf   : > { %v9998_v14 = vpop.f32.mrf.mxu0 }
 0xfe2   : > { %v10000_v26 = vpop.f32.mrf.mxu3 }
 0xfe7   : > { %v4121_v56 = vpop.f32.mrf.mxu0 }
 0xfe8   : > { %v4122_v21 = vadd.f32 %v4121_v56, %v8397_v31 }
 0xfea   : > { %v4059_v34 = vpop.f32.mrf.mxu3  ;;  %v4141_v42 = vsel %vm1023_vm11, %v4122_v21, -inf }
 0xfeb   : > { %v10006_v61 = vadd.f32 %v4059_v34, %v3791_v55  ;;  %4142 = vmax.xlane.f32.xlu1 %v4141_v42 }
 0xfef   : > { %v4123_v25 = vpop.f32.mrf.mxu0 }
 0xff0   : > { %v4124_v5 = vadd.f32 %v4123_v25, %v8402_v38 }
 0xff2   : > { %v10009_v59 = vpop.f32.mrf.mxu3  ;;  %v4144_v16 = vsel %vm1023_vm11, %v4124_v5, -inf }
 0xff3   : > { %4145 = vmax.xlane.f32.xlu2 %v4144_v16 }
 0xff7   : > { %v4126_v7 = vpop.f32.mrf.mxu0 }
 0xff8   : > { %v10013_v0 = vadd.f32 %v4126_v7, %v8406_v44 }
 0xffa   : > { %v4400_v20 = vpop.f32.mrf.mxu3  ;;  %v4147_v48 = vsel %vm1023_vm11, %v10013_v0, -inf }
 0xffb   : > { %4148 = vmax.xlane.f32.xlu1 %v4147_v48  ;;  %v10025_v28 = vadd.f32 %v4400_v20, %v8397_v31 }
 0xffd   : > { %v4420_v54 = vsel %vm1023_vm11, %v10025_v28, -inf }
 0xfff   : > { %v4128_v57 = vpop.f32.mrf.mxu0 }
0x1000   : > { %v4129_v58 = vadd.f32 %v4128_v57, %v8410_v50 }
0x1002   : > { %v4402_v10 = vpop.f32.mrf.mxu3  ;;  %v4150_v22 = vsel %vm1023_vm11, %v4129_v58, -inf }
0x1003   : > { %4151 = vmax.xlane.f32.xlu0 %v4150_v22  ;;  %v10040_v45 = vadd.f32 %v4402_v10, %v8402_v38 }
0x1005   : > { %v4423_v49 = vsel %vm1023_vm11, %v10040_v45, -inf }
0x1007   : > { %v4131_v46 = vpop.f32.mrf.mxu0 }
0x1008   : > { %v10020_v17 = vadd.f32 %v4131_v46, %v8417_v18 }
0x100a   : > { %v4405_v6 = vpop.f32.mrf.mxu3  ;;  %v4153_v3 = vsel %vm1023_vm11, %v10020_v17, -inf }
0x100b   : > { %4154 = vmax.xlane.f32.xlu0 %v4153_v3  ;;  %v10066_v22 = vadd.f32 %v4405_v6, %v8406_v44 }
0x100f   : > { %v4133_v41 = vpop.f32.mrf.mxu0 }
0x1010   : > { %v10028_v43 = vadd.f32 %v4133_v41, %v8424_v8 }
0x1012   : > { %v4407_v15 = vpop.f32.mrf.mxu3  ;;  %v4156_v30 = vsel %vm1023_vm11, %v10028_v43, -inf }
0x1013   : > { %4157 = vmax.xlane.f32.xlu2 %v4156_v30  ;;  %4421 = vmax.xlane.f32.xlu0 %v4420_v54 }
0x1017   : > { %v4136_v36 = vpop.f32.mrf.mxu0 }
0x1018   : > { %v10035_v60 = vadd.f32 %v4136_v36, %v8431_v63 }
0x101a   : > { %v4410_v23 = vpop.f32.mrf.mxu3  ;;  %v4159_v31 = vsel %vm1023_vm11, %v10035_v60, -inf }
0x101b   : > { %4160 = vmax.xlane.f32.xlu2 %v4159_v31  ;;  %v10080_v6 = vadd.f32 %v4410_v23, %v8417_v18 }
0x101f   : > { %v4138_v62 = vpop.f32.mrf.mxu0 }
0x1020   : > { %v10043_v12 = vadd.f32 %v4138_v62, %v8438_v9 }
0x1022   : > { %v4412_v1 = vpop.f32.mrf.mxu3  ;;  %v4162_v52 = vsel %vm1023_vm11, %v10043_v12, -inf }
0x1023   : > { %v10050_v56 = vadd.f32 %v4412_v1, %v8424_v8  ;;  %4424 = vmax.xlane.f32.xlu2 %v4423_v49  ;;  %4163 = vmax.xlane.f32.xlu1 %v4162_v52  ;;  %v4432_v1 = vsel %vm1023_vm11, %v10080_v6, -inf }
0x1025   : > { %v4435_v38 = vsel %vm1023_vm11, %v10050_v56, -inf }
0x1026   : > { %4436 = vmax.xlane.f32.xlu0 %v4435_v38 }
0x102a   : > { %v4415_v55 = vpop.f32.mrf.mxu3 }
0x102b   : > { %v10091_v23 = vadd.f32 %v4415_v55, %v8431_v63 }
0x1032   : > { %v4417_v34 = vpop.f32.mrf.mxu3 }
0x1033   : > { %v10055_v42 = vadd.f32 %v4417_v34, %v8438_v9 }
0x1035   : > { %v4441_v25 = vsel %vm1023_vm11, %v10055_v42, -inf }
0x1036   : > { %4442 = vmax.xlane.f32.xlu0 %v4441_v25 }
0x104a   : > { %4516 = vrot.lane.b32.xlu0 %v9678_v51, %s7876_s21 }
0x105e   : > { %v4143_v8 = vpop.xlane.xlu1 %4142 }
0x105f   : > { %v4165_v16 = vsub.f32 %v4122_v21, %v4143_v8  ;;  %v4426_v21 = vsel %vm1023_vm11, %v10066_v22, -inf }
0x1061   : > { %v4173_v7 = vmul.f32 1.442695, %v4165_v16  ;;  %v4438_v16 = vsel %vm1023_vm11, %v10091_v23, -inf }
0x1063   : > { %7562 = vpow2.f32 %v4173_v7 }
0x1066   : > { %v4146_v20 = vpop.xlane.xlu2 %4145 }
0x1067   : > { %v4166_v48 = vsub.f32 %v4124_v5, %v4146_v20  ;;  %v10075_v5 = vadd.f32 %v4407_v15, %v8410_v50 }
0x1069   : > { %v10061_v57 = vpop.eup %7562  ;;  %v4175_v10 = vmul.f32 1.442695, %v4166_v48  ;;  %v4429_v44 = vsel %vm1023_vm11, %v10075_v5, -inf }
0x106a   : > { %v4189_v9 = vsel %vm1023_vm11, %v10061_v57, 0.0 }
0x106b   : > { %7564 = vpow2.f32 %v4175_v10  ;;  %4190 = vadd.xlane.f32.xlu2 %v4189_v9 }
0x106e   : > { %v4149_v54 = vpop.xlane.xlu1 %4148 }
0x106f   : > { %v4167_v50 = vsub.f32 %v10013_v0, %v4149_v54 }
0x1071   : > { %v10068_v46 = vpop.eup %7564  ;;  %v4177_v18 = vmul.f32 1.442695, %v4167_v50 }
0x1072   : > { %v4192_v51 = vsel %vm1023_vm11, %v10068_v46, 0.0 }
0x1073   : > { %4193 = vadd.xlane.f32.xlu1 %v4192_v51  ;;  %4427 = vmax.xlane.f32.xlu2 %v4426_v21 }
0x1076   : > { %v4152_v3 = vpop.xlane.xlu0 %4151 }
0x1077   : > { %v4168_v41 = vsub.f32 %v4129_v58, %v4152_v3 }
0x1079   : > { %v4179_v30 = vmul.f32 1.442695, %v4168_v41 }
0x107b   : > { %7566 = vpow2.f32 %v4179_v30  ;;  %4430 = vmax.xlane.f32.xlu1 %v4429_v44 }
0x107e   : > { %v4155_v36 = vpop.xlane.xlu0 %4154 }
0x107f   : > { %v4169_v31 = vsub.f32 %v10020_v17, %v4155_v36 }
0x1081   : > { %v10083_v62 = vpop.eup %7566  ;;  %v4181_v15 = vmul.f32 1.442695, %v4169_v31 }
0x1082   : > { %v4198_v58 = vsel %vm1023_vm11, %v10083_v62, 0.0 }
0x1083   : > { %7568 = vpow2.f32 %v4181_v15  ;;  %4199 = vadd.xlane.f32.xlu0 %v4198_v58  ;;  %4433 = vmax.xlane.f32.xlu1 %v4432_v1 }
0x1084   : > { %7570 = vpow2.f32 %v4177_v18 }
0x1086   : > { %v4158_v49 = vpop.xlane.xlu2 %4157  ;;  %v4422_v17 = vpop.xlane.xlu0 %4421 }
0x1087   : > { %v4170_v52 = vsub.f32 %v10028_v43, %v4158_v49  ;;  %v4444_v0 = vsub.f32 %v10025_v28, %v4422_v17 }
0x1089   : > { %v10095_v38 = vpop.eup %7568  ;;  %v4183_v34 = vmul.f32 1.442695, %v4170_v52  ;;  %v4452_v25 = vmul.f32 1.442695, %v4444_v0 }
0x108a   : > { %v4201_v8 = vsel %vm1023_vm11, %v10095_v38, 0.0  ;;  %v10103_v43 = vpop.eup %7570 }
0x108b   : > { %7572 = vpow2.f32 %v4183_v34  ;;  %4202 = vadd.xlane.f32.xlu0 %v4201_v8  ;;  %4439 = vmax.xlane.f32.xlu1 %v4438_v16  ;;  %v4195_v20 = vsel %vm1023_vm11, %v10103_v43, 0.0 }
0x108c   : > { %7574 = vpow2.f32 %v4452_v25 }
0x108e   : > { %v10101_v63 = vpop.xlane.xlu2 %4160 }
0x1091   : > { %v10105_v28 = vpop.eup %7572 }
0x1092   : > { %v10107_v55 = vpop.eup %7574  ;;  %v4204_v7 = vsel %vm1023_vm11, %v10105_v28, 0.0 }
0x1093   : > { %4205 = vadd.xlane.f32.xlu0 %v4204_v7  ;;  %v4468_v48 = vsel %vm1023_vm11, %v10107_v55, 0.0  ;;  %4196 = vadd.xlane.f32.xlu1 %v4195_v20 }
0x1094   : > { %4469 = vadd.xlane.f32.xlu2 %v4468_v48 }
0x1096   : > { %v4425_v10 = vpop.xlane.xlu2 %4424  ;;  %v4164_v54 = vpop.xlane.xlu1 %4163 }
0x1097   : > { %v4445_v9 = vsub.f32 %v10040_v45, %v4425_v10  ;;  %v4172_v0 = vsub.f32 %v10043_v12, %v4164_v54 }
0x1099   : > { %v4454_v51 = vmul.f32 1.442695, %v4445_v9  ;;  %v4437_v41 = vpop.xlane.xlu0 %4436 }
0x109a   : > { %v4449_v15 = vsub.f32 %v10050_v56, %v4437_v41 }
0x109b   : > { %7576 = vpow2.f32 %v4454_v51 }
0x109c   : > { %v4462_v18 = vmul.f32 1.442695, %v4449_v15 }
0x10a1   : > { %v10116_v21 = vpop.eup %7576 }
0x10a2   : > { %v4471_v3 = vsel %vm1023_vm11, %v10116_v21, 0.0 }
0x10a3   : > { %4472 = vadd.xlane.f32.xlu1 %v4471_v3 }
0x10a9   : > { %v4443_v30 = vpop.xlane.xlu0 %4442 }
0x10aa   : > { %v4451_v56 = vsub.f32 %v10055_v42, %v4443_v30  ;;  %v4171_v42 = vsub.f32 %v10035_v60, %v10101_v63 }
0x10ac   : > { %4514 = vrot.lane.b32.xlu2 %v9687_v2, %s7876_s21  ;;  %v4185_v9 = vmul.f32 1.442695, %v4171_v42 }
0x10bc   : > { %v4517_v44 = vpop.permute.xlu0 %4516  ;;  %4512 = vrot.lane.b32.xlu1 %v9690_v27, %s7876_s21  ;;  %s5865_s21 = sshll.u32 %s5862_s11, 4  ;;  %s5866_s21 = int_to_ptr.hbm [resolvable:$true] %s5865_s21 }
0x10bd   : > { %4541 = vmatpush.bf16.msra.mxu0 %v4517_v44  ;;  %s7804_s27 = sshra.s32 %s5866_s21, 4  ;;  %s7805_s27 = int_to_ptr.hbm [resolvable:$true] %s7804_s27 }
0x10be   : > { %s7806_s22 = scalar_lea.hbm %s7805_s27, 64  ;;  %p7811_p3 = scmp.lt.s32.totalorder %s7805_s27, %s10820_s10 }
0x10bf   : > { %p7807_p0 = scmp.ne.s32.totalorder %s7805_s27, %s7806_s22  ;;  %p7812_p4 = scmp.lt.s32.totalorder %s7810_s30, %s7806_s22 }
0x10c1   : > { %p7808_p1 = pnand %p7807_p0, %p7972_p5  ;;  %p7813_p7 = por %p7812_p4, %p7811_p3 }
0x10c3   : > { %p7809_p2 = pneg %p7808_p1 }
0x10c5   : > { %p7814_p8 = pnand %p7813_p7, %p7809_p2 }
0x10de   : > { %v4191_v45 = vpop.xlane.xlu2 %4190 }
0x10df   : > { %7578 = vrcp.f32 %v4191_v45 }
0x10e5   : > { %v7579_v1 = vpop.eup %7578 }
0x10e6   : > { %v4428_v36 = vpop.xlane.xlu2 %4427  ;;  %v4194_v31 = vpop.xlane.xlu1 %4193  ;;  %v4221_v49 = vmul.f32 %v7579_v1, %v10061_v57  ;;  %v4187_v57 = vmul.f32 1.442695, %v4172_v0 }
0x10e7   : > { %v4446_v50 = vsub.f32 %v10066_v22, %v4428_v36  ;;  %7580 = vrcp.f32 %v4194_v31 }
0x10e9   : > { %v4456_v58 = vmul.f32 1.442695, %v4446_v50 }
0x10eb   : > { %7582 = vpow2.f32 %v4456_v58 }
0x10ec   : > { %7584 = vpow2.f32 %v4462_v18 }
0x10ed   : > { %v7581_v2 = vpop.eup %7580 }
0x10ee   : > { %v4222_v27 = vmul.f32 %v7581_v2, %v10068_v46  ;;  %v4431_v17 = vpop.xlane.xlu1 %4430  ;;  %v4466_v46 = vmul.f32 1.442695, %v4451_v56 }
0x10ef   : > { %v4447_v52 = vsub.f32 %v10075_v5, %v4431_v17 }
0x10f0   : > { %v4229_v34 = vpack.c.bf16 %v4222_v27, %v4221_v49 }
0x10f1   : > { %v10130_v25 = vpop.eup %7582  ;;  %v4458_v22 = vmul.f32 1.442695, %v4447_v52 }
0x10f2   : > { %6589 = vmatmul.msk.bf16.vlgmr.msra.gmra.mxu1 %vm1023_vm11, %v4229_v34  ;;  %v4474_v8 = vsel %vm1023_vm11, %v10130_v25, 0.0  ;;  %v10136_v5 = vpop.eup %7584 }
0x10f3   : > { %7586 = vpow2.f32 %v4458_v22  ;;  %4475 = vadd.xlane.f32.xlu2 %v4474_v8  ;;  %v4483_v48 = vsel %vm1023_vm11, %v10136_v5, 0.0 }
0x10f4   : > { %7588 = vpow2.f32 %v4187_v57 }
0x10f5   : > { %7590 = vpow2.f32 %v4466_v46 }
0x10f6   : > { %v4434_v16 = vpop.xlane.xlu1 %4433 }
0x10f7   : > { %v4448_v12 = vsub.f32 %v10080_v6, %v4434_v16  ;;  %v4200_v6 = vpop.xlane.xlu0 %4199 }
0x10f9   : > { %v10139_v7 = vpop.eup %7586  ;;  %v4460_v20 = vmul.f32 1.442695, %v4448_v12 }
0x10fa   : > { %v4477_v10 = vsel %vm1023_vm11, %v10139_v7, 0.0  ;;  %v10147_v51 = vpop.eup %7588 }
0x10fb   : > { %7592 = vpow2.f32 %v4460_v20  ;;  %4484 = vadd.xlane.f32.xlu2 %v4483_v48  ;;  %4478 = vadd.xlane.f32.xlu1 %v4477_v10  ;;  %v10149_v41 = vpop.eup %7590  ;;  %v4210_v63 = vsel %vm1023_vm11, %v10147_v51, 0.0 }
0x10fc   : > { %7594 = vpow2.f32 %v4185_v9  ;;  %v4489_v44 = vsel %vm1023_vm11, %v10149_v41, 0.0 }
0x10fd   : > { %7596 = vrcp.f32 %v4200_v6 }
0x10fe   : > { %v4440_v3 = vpop.xlane.xlu1 %4439 }
0x10ff   : > { %v4450_v60 = vsub.f32 %v10091_v23, %v4440_v3  ;;  %v4203_v15 = vpop.xlane.xlu0 %4202 }
0x1101   : > { %v10151_v30 = vpop.eup %7592  ;;  %v4464_v45 = vmul.f32 1.442695, %v4450_v60 }
0x1102   : > { %v4480_v54 = vsel %vm1023_vm11, %v10151_v30, 0.0  ;;  %v10160_v31 = vpop.eup %7594 }
0x1103   : > { %4211 = vadd.xlane.f32.xlu2 %v4210_v63  ;;  %4490 = vadd.xlane.f32.xlu1 %v4489_v44  ;;  %v4207_v23 = vsel %vm1023_vm11, %v10160_v31, 0.0  ;;  %v7597_v58 = vpop.eup %7596 }
0x1104   : > { %4481 = vadd.xlane.f32.xlu0 %v4480_v54  ;;  %v4224_v49 = vmul.f32 %v7597_v58, %v10083_v62 }
0x1106   : > { %v4197_v36 = vpop.xlane.xlu1 %4196 }
0x1107   : > { %v4470_v50 = vpop.xlane.xlu2 %4469  ;;  %7598 = vrcp.f32 %v4197_v36  ;;  %v4206_v17 = vpop.xlane.xlu0 %4205 }
0x1108   : > { %7600 = vpow2.f32 %v4464_v45 }
0x1109   : > { %7602 = vrcp.f32 %v4206_v17 }
0x110a   : > { %7604 = vrcp.f32 %v4203_v15 }
0x110c   : > { %4208 = vadd.xlane.f32.xlu0 %v4207_v23 }
0x110d   : > { %v7599_v1 = vpop.eup %7598 }
0x110e   : > { %v10164_v18 = vpop.eup %7600  ;;  %v4223_v27 = vmul.f32 %v7599_v1, %v10103_v43 }
0x110f   : > { %v4515_v2 = vpop.permute.xlu2 %4514  ;;  %v4486_v0 = vsel %vm1023_vm11, %v10164_v18, 0.0  ;;  %v7603_v34 = vpop.eup %7602 }
0x1110   : > { %4542 = vmatpush.bf16.msra.mxu0 %v4515_v2  ;;  %v4230_v52 = vpack.c.bf16 %v4224_v49, %v4223_v27  ;;  %v7605_v56 = vpop.eup %7604  ;;  %v4226_v22 = vmul.f32 %v7603_v34, %v10105_v28  ;;  %v7140_v28 = vld [vmem:[#allocation2 + $0x68] sm:$0xff] }
0x1111   : > { %v4225_v8 = vmul.f32 %v7605_v56, %v10095_v38  ;;  %4320 = vmatpush.bf16.msra.mxu2 %v7140_v28  ;;  %v7139_v38 = vld [vmem:[#allocation2 + $0x60] sm:$0xff] }
0x1112   : > { %6590 = vmatmul.msk.bf16.gmra.mxu1 %vm1023_vm11, %v4230_v52 }
0x1113   : > { %v4231_v57 = vpack.c.bf16 %v4226_v22, %v4225_v8 }
0x1114   : > { %4487 = vadd.xlane.f32.xlu0 %v4486_v0 }
0x1115   : > { %4321 = vmatpush.bf16.msra.mxu2 %v7139_v38 }
0x1116   : > { %v4473_v62 = vpop.xlane.xlu1 %4472 }
0x1117   : > { %7606 = vrcp.f32 %v4473_v62 }
0x1118   : > { %7608 = vrcp.f32 %v4470_v50  ;;  %v7142_v50 = vld [vmem:[#allocation2 + $0x78] sm:$0xff] }
0x1119   : > { %4599 = vmatpush.bf16.msrb.mxu1 %v7142_v50 }
0x111d   : > { %v7607_v43 = vpop.eup %7606 }
0x111e   : > { %v7609_v46 = vpop.eup %7608  ;;  %v4501_v16 = vmul.f32 %v7607_v43, %v10116_v21 }
0x111f   : > { %v4500_v12 = vmul.f32 %v7609_v46, %v10107_v55 }
0x1121   : > { %v4508_v20 = vpack.c.bf16 %v4501_v16, %v4500_v12 }
0x1122   : > { %6591 = vmatmul.msk.bf16.gmra.mxu1 %vm1023_vm11, %v4231_v57 }
0x112e   : > { %v4513_v42 = vpop.permute.xlu1 %4512 }
0x112f   : > { %4543 = vmatpush.bf16.msra.mxu0 %v4513_v42 }
0x1132   : > { %6609 = vmatmul.msk.bf16.vlgmr.msra.gmra.mxu0 %vm1023_vm11, %v4508_v20 }
0x1166   : > { %v4476_v48 = vpop.xlane.xlu2 %4475 }
0x1167   : > { %7610 = vrcp.f32 %v4476_v48 }
0x116d   : > { %v7611_v3 = vpop.eup %7610 }
0x116e   : > { %v4479_v10 = vpop.xlane.xlu1 %4478  ;;  %v4485_v6 = vpop.xlane.xlu2 %4484  ;;  %v4502_v21 = vmul.f32 %v7611_v3, %v10130_v25 }
0x116f   : > { %v4266_v9 = vpop.f32.mrf.mxu1  ;;  %7612 = vrcp.f32 %v4479_v10 }
0x1175   : > { %v7613_v60 = vpop.eup %7612 }
0x1176   : > { %v4503_v55 = vmul.f32 %v7613_v60, %v10139_v7  ;;  %v4212_v36 = vpop.xlane.xlu2 %4211  ;;  %v4491_v34 = vpop.xlane.xlu1 %4490 }
0x1177   : > { %v4482_v63 = vpop.xlane.xlu0 %4481  ;;  %v4268_v44 = vpop.f32.mrf.mxu1 }
0x1178   : > { %v4286_v54 = vpack.c.bf16 %v4268_v44, %v4266_v9  ;;  %v4509_v45 = vpack.c.bf16 %v4503_v55, %v4502_v21  ;;  %7614 = vrcp.f32 %v4482_v63 }
0x1179   : > { %7616 = vrcp.f32 %v4485_v6 }
0x117a   : > { %6601 = vmatmul.msk.bf16.vlgmr.msra.gmra.mxu2 %vm969_vm9, %v4286_v54  ;;  %6610 = vmatmul.msk.bf16.gmra.mxu0 %vm1023_vm11, %v4509_v45  ;;  %7618 = vrcp.f32 %v4212_v36  ;;  %v3479_v45 = vadd.f32 %v9970_v47, %v9389_v35 }
0x117c   : > { %v3786_v50 = vadd.f32 %v9980_v19, %v3479_v45  ;;  %v7173_v45 = vld [vmem:[%s10813_s3 + $0x1ec] sm:$0xf0] }
0x117e   : > { %v7615_v23 = vpop.eup %7614 }
0x117f   : > { %v4209_v15 = vpop.xlane.xlu0 %4208  ;;  %v7617_v25 = vpop.eup %7616  ;;  %v4504_v7 = vmul.f32 %v7615_v23, %v10151_v30  ;;  %v4065_v23 = vadd.f32 %v9984_v29, %v3786_v50  ;;  %v7171_v50 = vld [vmem:[%s10813_s3 + $0x1e4] sm:$0xf] }
0x1180   : > { %7620 = vrcp.f32 %v4209_v15  ;;  %v7619_v58 = vpop.eup %7618  ;;  %v4505_v2 = vmul.f32 %v7617_v25, %v10136_v5 }
0x1181   : > { %v4228_v49 = vmul.f32 %v7619_v58, %v10147_v51  ;;  %v7141_v51 = vld [vmem:[#allocation2 + $0x70] sm:$0xff] }
0x1182   : > { %v4510_v0 = vpack.c.bf16 %v4505_v2, %v4504_v7  ;;  %4600 = vmatpush.bf16.msrb.mxu1 %v7141_v51 }
0x1186   : > { %v7621_v1 = vpop.eup %7620 }
0x1187   : > { %v4227_v27 = vmul.f32 %v7621_v1, %v10160_v31  ;;  %v4488_v17 = vpop.xlane.xlu0 %4487 }
0x1188   : > { %7622 = vrcp.f32 %v4488_v17 }
0x1189   : > { %v4232_v52 = vpack.c.bf16 %v4228_v49, %v4227_v27  ;;  %7624 = vrcp.f32 %v4491_v34  ;;  %v3481_v49 = vadd.f32 %v9970_v47, %v9399_v4  ;;  %v3483_v4 = vadd.f32 %v9970_v47, %v9409_v11 }
0x118a   : > { %6611 = vmatmul.msk.bf16.gmra.mxu0 %vm1023_vm11, %v4510_v0 }
0x118b   : > { %6592 = vmatmul.msk.bf16.gmra.mxu1 %vm1023_vm11, %v4232_v52  ;;  %v3788_v27 = vadd.f32 %v9982_v40, %v3481_v49  ;;  %v3790_v40 = vadd.f32 %v9990_v39, %v3483_v4  ;;  %v6781_v49 = vld [vmem:[%s10813_s3 + $0x1f8] sm:$0xf0]  ;;  %v6757_v4 = vld [vmem:[%s10813_s3 + $0x1d0] sm:$0xf0] }
0x118d   : > { %v4067_v29 = vadd.f32 %v9992_v32, %v3788_v27 }
0x118e   : > { %v7623_v22 = vpop.eup %7622 }
0x118f   : > { %v4271_v56 = vpop.f32.mrf.mxu1  ;;  %v7625_v30 = vpop.eup %7624  ;;  %v4506_v8 = vmul.f32 %v7623_v22, %v10164_v18 }
0x1190   : > { %v4507_v5 = vmul.f32 %v7625_v30, %v10149_v41  ;;  %v4069_v30 = vadd.f32 %v10000_v26, %v3790_v40  ;;  %v3485_v26 = vadd.f32 %v9970_v47, %v9429_v33  ;;  %v6763_v40 = vld [vmem:[%s10813_s3 + $0x1c8] sm:$0xf] }
0x1192   : > { %v4511_v31 = vpack.c.bf16 %v4507_v5, %v4506_v8 }
0x1197   : > { %v4273_v62 = vpop.f32.mrf.mxu1 }
0x1198   : > { %v4287_v57 = vpack.c.bf16 %v4273_v62, %v4271_v56 }
0x119a   : > { %6612 = vmatmul.msk.bf16.gmra.mxu0 %vm1023_vm11, %v4511_v31  ;;  %6602 = vmatmul.msk.bf16.gmra.mxu2 %vm969_vm9, %v4287_v57 }
0x119f   : > { %v4276_v43 = vpop.f32.mrf.mxu1 }
0x11a7   : > { %v4278_v46 = vpop.f32.mrf.mxu1 }
0x11a8   : > { %v4288_v16 = vpack.c.bf16 %v4278_v46, %v4276_v43 }
0x11aa   : > { %6603 = vmatmul.msk.bf16.gmra.mxu2 %vm969_vm9, %v4288_v16  ;;  %v3792_v16 = vadd.f32 %v9998_v14, %v3485_v26  ;;  %v7163_v26 = vld [vmem:[%s10813_s3 + $0x1a4] sm:$0xf] }
0x11af   : > { %v4545_v12 = vpop.f32.mrf.mxu0 }
0x11b7   : > { %v4547_v42 = vpop.f32.mrf.mxu0 }
0x11b8   : > { %v4565_v20 = vpack.c.bf16 %v4547_v42, %v4545_v12  ;;  %v4071_v42 = vadd.f32 %v10009_v59, %v3792_v16 }
0x11ba   : > { %6621 = vmatmul.msk.bf16.vlgmr.msrb.gmra.mxu1 %vm969_vm9, %v4565_v20 }
0x11f7   : > { %v4550_v41 = vpop.f32.mrf.mxu0 }
0x11fd   : > { %v4323_v63 = vpop.f32.mrf.mxu2 }
0x11fe   : > { %v4343_v44 = vadd.f32 %v4323_v63, %v9977_v37 }
0x11ff   : > { %v4552_v18 = vpop.f32.mrf.mxu0 }
0x1200   : > { %v4566_v28 = vpack.c.bf16 %v4552_v18, %v4550_v41 }
0x1202   : > { %6622 = vmatmul.msk.bf16.gmra.mxu1 %vm969_vm9, %v4566_v28 }
0x1205   : > { %v4325_v15 = vpop.f32.mrf.mxu2 }
0x1206   : > { %v4344_v25 = vadd.f32 %v4325_v15, %v4065_v23 }
0x1207   : > { %v4555_v48 = vpop.f32.mrf.mxu0 }
0x1208   : > { %v4281_v38 = vpop.f32.mrf.mxu1 }
0x120f   : > { %v4557_v9 = vpop.f32.mrf.mxu0 }
0x1210   : > { %v4283_v10 = vpop.f32.mrf.mxu1  ;;  %v4567_v3 = vpack.c.bf16 %v4557_v9, %v4555_v48 }
0x1211   : > { %v4289_v6 = vpack.c.bf16 %v4283_v10, %v4281_v38 }
0x1212   : > { %6623 = vmatmul.msk.bf16.gmra.mxu1 %vm969_vm9, %v4567_v3 }
0x1213   : > { %6604 = vmatmul.msk.bf16.gmra.mxu2 %vm969_vm9, %v4289_v6 }
0x1217   : > { %v4560_v60 = vpop.f32.mrf.mxu0 }
0x121d   : > { %v4328_v37 = vpop.f32.mrf.mxu2 }
0x121e   : > { %v4345_v1 = vadd.f32 %v4328_v37, %v9988_v53  ;;  %v7174_v37 = vld [vmem:[%s10813_s3 + $0x1f4] sm:$0xf0] }
0x121f   : > { %v4562_v21 = vpop.f32.mrf.mxu0 }
0x1220   : > { %v4568_v55 = vpack.c.bf16 %v4562_v21, %v4560_v60 }
0x1222   : > { %6624 = vmatmul.msk.bf16.gmra.mxu1 %vm969_vm9, %v4568_v55 }
0x1225   : > { %v4330_v2 = vpop.f32.mrf.mxu2 }
0x1226   : > { %v4346_v17 = vadd.f32 %v4330_v2, %v4067_v29 }
0x122d   : > { %v4333_v34 = vpop.f32.mrf.mxu2 }
0x122e   : > { %v4347_v53 = vadd.f32 %v4333_v34, %v9996_v24  ;;  %v7167_v34 = vld [vmem:[%s10813_s3 + $0x1c4] sm:$0xf] }
0x1235   : > { %v4335_v32 = vpop.f32.mrf.mxu2 }
0x1236   : > { %v4348_v8 = vadd.f32 %v4335_v32, %v4069_v30  ;;  %v7170_v32 = vld [vmem:[%s10813_s3 + $0x1d4] sm:$0xf0]  ;;  %v6760_v30 = vor.u32 %v7167_v34, %v6757_v4  ;;  %v6717_v34 = vld [vmem:[%s10813_s3 + $0x178] sm:$0xf0]  ;;  %v7153_v4 = vld [vmem:[%s10813_s3 + $0x14c] sm:$0xf0] }
0x1237   : > { %v4602_v54 = vpop.f32.mrf.mxu1 }
0x1238   : > { %v10200_v36 = vadd.f32 %v4602_v54, %v4343_v44  ;;  %v6771_v54 = vld [vmem:[%s10813_s3 + $0x1e0] sm:$0xf] }
0x1239   : > { %v6772_v23 = vor.u32 %v7173_v45, %v6771_v54 }
0x123a   : > { %4630 = vadd.xlane.f32.xlu2 %v10200_v36 }
0x123b   : > { %5016 = vmatpush.bf16.msrb.mxu2 %v6772_v23 }
0x123f   : > { %v4604_v58 = vpop.f32.mrf.mxu1 }
0x1240   : > { %v10205_v7 = vadd.f32 %v4604_v58, %v4344_v25  ;;  %v6773_v25 = vld [vmem:[%s10813_s3 + $0x1f0] sm:$0xf0]  ;;  %v6779_v58 = vld [vmem:[%s10813_s3 + $0x1e8] sm:$0xf] }
0x1241   : > { %v6780_v2 = vor.u32 %v7174_v37, %v6779_v58  ;;  %v7157_v58 = vld [vmem:[%s10813_s3 + $0x16c] sm:$0xf0]  ;;  %v7155_v37 = vld [vmem:[%s10813_s3 + $0x164] sm:$0xf] }
0x1242   : > { %4632 = vadd.xlane.f32.xlu0 %v10205_v7 }
0x1243   : > { %5074 = vmatpush.bf16.msrb.mxu0 %v6780_v2  ;;  %v6709_v2 = vld [vmem:[%s10813_s3 + $0x170] sm:$0xf0] }
0x127f   : > { %v4607_v35 = vpop.f32.mrf.mxu1 }
0x1280   : > { %v10211_v19 = vadd.f32 %v4607_v35, %v4345_v1  ;;  %v6776_v1 = vor.u32 %v7171_v50, %v6773_v25  ;;  %v7172_v35 = vld [vmem:[%s10813_s3 + $0x1ec] sm:$0xf]  ;;  %v6707_v25 = vld [vmem:[%s10813_s3 + $0x160] sm:$0xf] }
0x1281   : > { %v6784_v29 = vor.u32 %v7172_v35, %v6781_v49  ;;  %v7160_v50 = vld [vmem:[%s10813_s3 + $0x18c] sm:$0xf]  ;;  %v6715_v35 = vld [vmem:[%s10813_s3 + $0x168] sm:$0xf]  ;;  %v7158_v49 = vld [vmem:[%s10813_s3 + $0x174] sm:$0xf0] }
0x1282   : > { %4634 = vadd.xlane.f32.xlu1 %v10211_v19  ;;  %5045 = vmatpush.bf16.msrb.mxu3 %v6776_v1  ;;  %v6708_v1 = vor.u32 %v7157_v58, %v6707_v25  ;;  %v6669_v25 = vld [vmem:[%s10813_s3 + $0x118] sm:$0xf0] }
0x1283   : > { %5103 = vmatpush.bf16.msra.mxu1 %v6784_v29  ;;  %v6712_v29 = vor.u32 %v7155_v37, %v6709_v2 }
0x1286   : > { %5046 = vmatpush.bf16.msrb.mxu3 %v6760_v30  ;;  %v6693_v30 = vld [vmem:[%s10813_s3 + $0x150] sm:$0xf0] }
0x1287   : > { %v4609_v52 = vpop.f32.mrf.mxu1 }
0x1288   : > { %v10216_v0 = vadd.f32 %v4609_v52, %v4346_v17  ;;  %v6755_v17 = vld [vmem:[%s10813_s3 + $0x1c0] sm:$0xf]  ;;  %v7169_v52 = vld [vmem:[%s10813_s3 + $0x1cc] sm:$0xf0] }
0x128a   : > { %4636 = vadd.xlane.f32.xlu2 %v10216_v0 }
0x128f   : > { %v4612_v56 = vpop.f32.mrf.mxu1 }
0x1290   : > { %v10222_v22 = vadd.f32 %v4612_v56, %v4347_v53  ;;  %v6756_v56 = vor.u32 %v7169_v52, %v6755_v17  ;;  %v6716_v17 = vor.u32 %v7158_v49, %v6715_v35  ;;  %v7156_v52 = vld [vmem:[%s10813_s3 + $0x16c] sm:$0xf] }
0x1292   : > { %4638 = vadd.xlane.f32.xlu0 %v10222_v22  ;;  %5017 = vmatpush.bf16.msrb.mxu2 %v6756_v56  ;;  %v6691_v56 = vld [vmem:[%s10813_s3 + $0x140] sm:$0xf] }
0x1296   : > { %v4338_v24 = vpop.f32.mrf.mxu2 }
0x1297   : > { %v4614_v5 = vpop.f32.mrf.mxu1  ;;  %v4349_v62 = vadd.f32 %v4338_v24, %v10006_v61  ;;  %v6765_v24 = vld [vmem:[%s10813_s3 + $0x1d8] sm:$0xf0] }
0x1298   : > { %v10227_v51 = vadd.f32 %v4614_v5, %v4348_v8  ;;  %v6764_v8 = vor.u32 %v7170_v32, %v6763_v40  ;;  %v7168_v5 = vld [vmem:[%s10813_s3 + $0x1cc] sm:$0xf]  ;;  %v7151_v40 = vld [vmem:[%s10813_s3 + $0x144] sm:$0xf]  ;;  %v6692_v32 = vor.u32 %v7153_v4, %v6691_v56 }
0x129a   : > { %4640 = vadd.xlane.f32.xlu1 %v10227_v51  ;;  %5075 = vmatpush.bf16.msrb.mxu0 %v6764_v8  ;;  %v6699_v8 = vld [vmem:[%s10813_s3 + $0x148] sm:$0xf] }
0x129e   : > { %v4340_v61 = vpop.f32.mrf.mxu2 }
0x129f   : > { %v4617_v31 = vpop.f32.mrf.mxu1  ;;  %v4350_v18 = vadd.f32 %v4340_v61, %v4071_v42  ;;  %v6741_v61 = vld [vmem:[%s10813_s3 + $0x1b0] sm:$0xf0]  ;;  %v7166_v42 = vld [vmem:[%s10813_s3 + $0x1b4] sm:$0xf0] }
0x12a0   : > { %v10231_v11 = vadd.f32 %v4617_v31, %v4349_v62  ;;  %v6768_v62 = vor.u32 %v7168_v5, %v6765_v24  ;;  %v7154_v5 = vld [vmem:[%s10813_s3 + $0x154] sm:$0xf0]  ;;  %v6696_v24 = vor.u32 %v7151_v40, %v6693_v30 }
0x12a2   : > { %4642 = vadd.xlane.f32.xlu1 %v10231_v11  ;;  %5104 = vmatpush.bf16.msra.mxu1 %v6768_v62  ;;  %v6700_v62 = vor.u32 %v7154_v5, %v6699_v8 }
0x12a7   : > { %v4619_v41 = vpop.f32.mrf.mxu1 }
0x12a8   : > { %v10248_v38 = vadd.f32 %v4619_v41, %v4350_v18  ;;  %v7164_v18 = vld [vmem:[%s10813_s3 + $0x1ac] sm:$0xf] }
0x12ad   : > { %v4631_v39 = vpop.xlane.xlu2 %4630 }
0x12ae   : > { %v4646_v57 = vmul.f32 %v4631_v39, %v8043_v13  ;;  %v6739_v39 = vld [vmem:[%s10813_s3 + $0x1a0] sm:$0xf] }
0x12b0   : > { %v10236_v43 = vsub.f32 %v10200_v36, %v4646_v57  ;;  %v7165_v57 = vld [vmem:[%s10813_s3 + $0x1ac] sm:$0xf0] }
0x12b1   : > { %v6740_v16 = vor.u32 %v7165_v57, %v6739_v39  ;;  %v6701_v39 = vld [vmem:[%s10813_s3 + $0x158] sm:$0xf0] }
0x12b2   : > { %v4662_v46 = vmul.f32 %v10236_v43, %v10236_v43 }
0x12b3   : > { %5018 = vmatpush.bf16.msrb.mxu2 %v6740_v16  ;;  %v7147_v16 = vld [vmem:[%s10813_s3 + $0x124] sm:$0xf] }
0x12b4   : > { %4670 = vadd.xlane.f32.xlu2 %v4662_v46 }
0x12b5   : > { %v4633_v12 = vpop.xlane.xlu0 %4632 }
0x12b6   : > { %v4647_v20 = vmul.f32 %v4633_v12, %v8043_v13  ;;  %v6747_v12 = vld [vmem:[%s10813_s3 + $0x1a8] sm:$0xf] }
0x12b7   : > { %v6748_v41 = vor.u32 %v7166_v42, %v6747_v12  ;;  %v6677_v42 = vld [vmem:[%s10813_s3 + $0x130] sm:$0xf0] }
0x12b8   : > { %v10246_v28 = vsub.f32 %v10205_v7, %v4647_v20  ;;  %v6744_v20 = vor.u32 %v7163_v26, %v6741_v61  ;;  %v6675_v26 = vld [vmem:[%s10813_s3 + $0x120] sm:$0xf] }
0x12b9   : > { %5076 = vmatpush.bf16.msrb.mxu0 %v6748_v41  ;;  %v7150_v41 = vld [vmem:[%s10813_s3 + $0x134] sm:$0xf0] }
0x12ba   : > { %v4663_v33 = vmul.f32 %v10246_v28, %v10246_v28  ;;  %5047 = vmatpush.bf16.msrb.mxu3 %v6744_v20  ;;  %v6683_v20 = vld [vmem:[%s10813_s3 + $0x128] sm:$0xf] }
0x12bc   : > { %4672 = vadd.xlane.f32.xlu0 %v4663_v33  ;;  %4644 = vadd.xlane.f32.xlu2 %v10248_v38  ;;  %v6749_v33 = vld [vmem:[%s10813_s3 + $0x1b8] sm:$0xf0] }
0x12f5   : > { %v4635_v47 = vpop.xlane.xlu1 %4634 }
0x12f6   : > { %v4648_v14 = vmul.f32 %v4635_v47, %v8043_v13 }
0x12f8   : > { %v10255_v59 = vsub.f32 %v10211_v19, %v4648_v14  ;;  %v6752_v14 = vor.u32 %v7164_v18, %v6749_v33  ;;  %v6680_v33 = vor.u32 %v7147_v16, %v6677_v42 }
0x12fa   : > { %v4664_v48 = vmul.f32 %v10255_v59, %v10255_v59  ;;  %5105 = vmatpush.bf16.msra.mxu1 %v6752_v14  ;;  %v6684_v14 = vor.u32 %v7150_v41, %v6683_v20 }
0x12fc   : > { %4674 = vadd.xlane.f32.xlu0 %v4664_v48  ;;  %v6723_v48 = vld [vmem:[%s10813_s3 + $0x180] sm:$0xf] }
0x12fd   : > { %v4637_v10 = vpop.xlane.xlu2 %4636 }
0x12fe   : > { %v4649_v9 = vmul.f32 %v4637_v10, %v8043_v13  ;;  %v7161_v10 = vld [vmem:[%s10813_s3 + $0x18c] sm:$0xf0] }
0x1300   : > { %v10261_v6 = vsub.f32 %v10216_v0, %v4649_v9  ;;  %v7159_v9 = vld [vmem:[%s10813_s3 + $0x184] sm:$0xf] }
0x1302   : > { %v4665_v3 = vmul.f32 %v10261_v6, %v10261_v6 }
0x1304   : > { %4676 = vadd.xlane.f32.xlu1 %v4665_v3 }
0x1305   : > { %v4639_v60 = vpop.xlane.xlu0 %4638 }
0x1306   : > { %v4650_v21 = vmul.f32 %v4639_v60, %v8043_v13  ;;  %v6724_v60 = vor.u32 %v7161_v10, %v6723_v48  ;;  %v7148_v48 = vld [vmem:[%s10813_s3 + $0x12c] sm:$0xf]  ;;  %v6685_v10 = vld [vmem:[%s10813_s3 + $0x138] sm:$0xf0] }
0x1308   : > { %v10267_v55 = vsub.f32 %v10222_v22, %v4650_v21  ;;  %v6725_v21 = vld [vmem:[%s10813_s3 + $0x190] sm:$0xf0]  ;;  %5019 = vmatpush.bf16.msrb.mxu2 %v6724_v60  ;;  %v6659_v60 = vld [vmem:[%s10813_s3 + $0x100] sm:$0xf] }
0x1309   : > { %v6728_v54 = vor.u32 %v7159_v9, %v6725_v21  ;;  %v6688_v9 = vor.u32 %v7148_v48, %v6685_v10  ;;  %v7145_v21 = vld [vmem:[%s10813_s3 + $0x10c] sm:$0xf0] }
0x130a   : > { %v4666_v63 = vmul.f32 %v10267_v55, %v10267_v55 }
0x130b   : > { %5048 = vmatpush.bf16.msrb.mxu3 %v6728_v54  ;;  %v6661_v54 = vld [vmem:[%s10813_s3 + $0x110] sm:$0xf0] }
0x130c   : > { %4678 = vadd.xlane.f32.xlu2 %v4666_v63  ;;  %v6731_v63 = vld [vmem:[%s10813_s3 + $0x188] sm:$0xf]  ;;  %5020 = vmatpush.bf16.msrb.mxu2 %v6708_v1 }
0x130d   : > { %v4641_v44 = vpop.xlane.xlu1 %4640 }
0x130e   : > { %v4651_v15 = vmul.f32 %v4641_v44, %v8043_v13  ;;  %v7162_v44 = vld [vmem:[%s10813_s3 + $0x194] sm:$0xf0] }
0x130f   : > { %v6732_v45 = vor.u32 %v7162_v44, %v6731_v63  ;;  %5049 = vmatpush.bf16.msrb.mxu3 %v6712_v29  ;;  %v6660_v63 = vor.u32 %v7145_v21, %v6659_v60  ;;  %v7143_v44 = vld [vmem:[%s10813_s3 + $0x104] sm:$0xf] }
0x1310   : > { %v10297_v27 = vsub.f32 %v10227_v51, %v4651_v15  ;;  %v6733_v15 = vld [vmem:[%s10813_s3 + $0x198] sm:$0xf0]  ;;  %5021 = vmatpush.bf16.msrb.mxu2 %v6692_v32 }
0x1311   : > { %v6736_v23 = vor.u32 %v7160_v50, %v6733_v15  ;;  %5077 = vmatpush.bf16.msrb.mxu0 %v6732_v45  ;;  %v6667_v45 = vld [vmem:[%s10813_s3 + $0x108] sm:$0xf]  ;;  %v6664_v50 = vor.u32 %v7143_v44, %v6661_v54  ;;  %v7146_v15 = vld [vmem:[%s10813_s3 + $0x114] sm:$0xf0] }
0x1312   : > { %v4667_v53 = vmul.f32 %v10297_v27, %v10297_v27  ;;  %v6668_v58 = vor.u32 %v7146_v15, %v6667_v45 }
0x1313   : > { %5106 = vmatpush.bf16.msra.mxu1 %v6736_v23  ;;  %5050 = vmatpush.bf16.msrb.mxu3 %v6696_v24  ;;  %v7144_v23 = vld [vmem:[%s10813_s3 + $0x10c] sm:$0xf] }
0x1314   : > { %4680 = vadd.xlane.f32.xlu0 %v4667_v53  ;;  %v6720_v53 = vor.u32 %v7156_v52, %v6717_v34  ;;  %v6672_v37 = vor.u32 %v7144_v23, %v6669_v25 }
0x1315   : > { %v4643_v31 = vpop.xlane.xlu1 %4642  ;;  %5078 = vmatpush.bf16.msrb.mxu0 %v6716_v17 }
0x1316   : > { %v4652_v46 = vmul.f32 %v4643_v31, %v8043_v13  ;;  %v7152_v31 = vld [vmem:[%s10813_s3 + $0x14c] sm:$0xf] }
0x1317   : > { %5107 = vmatpush.bf16.msra.mxu1 %v6720_v53  ;;  %v6704_v57 = vor.u32 %v7152_v31, %v6701_v39  ;;  %5051 = vmatpush.bf16.msrb.mxu3 %v6680_v33  ;;  %v10486_v39 = vld [vmem:[%s10815_s5 + $0x8] sm:$0xff] }
0x1318   : > { %v10351_v47 = vsub.f32 %v10231_v11, %v4652_v46  ;;  %v7149_v46 = vld [vmem:[%s10813_s3 + $0x12c] sm:$0xf0] }
0x1319   : > { %5079 = vmatpush.bf16.msrb.mxu0 %v6700_v62  ;;  %v6676_v12 = vor.u32 %v7149_v46, %v6675_v26 }
0x131a   : > { %v4668_v3 = vmul.f32 %v10351_v47, %v10351_v47 }
0x131b   : > { %5108 = vmatpush.bf16.msra.mxu1 %v6704_v57  ;;  %5022 = vmatpush.bf16.msrb.mxu2 %v6676_v12  ;;  %v10489_v57 = vperm.slane %v10486_v39, 2 }
0x131c   : > { %4682 = vadd.xlane.f32.xlu1 %v4668_v3  ;;  %5052 = vmatpush.bf16.msrb.mxu3 %v6664_v50 }
0x131d   : > { %5080 = vmatpush.bf16.msrb.mxu0 %v6684_v14 }
0x131f   : > { %5109 = vmatpush.bf16.msra.mxu1 %v6688_v9  ;;  %5023 = vmatpush.bf16.msrb.mxu2 %v6660_v63 }
0x1321   : > { %5081 = vmatpush.bf16.msrb.mxu0 %v6668_v58 }
0x1323   : > { %5110 = vmatpush.bf16.msra.mxu1 %v6672_v37 }
0x1327   : > { %v4671_v61 = vpop.xlane.xlu2 %4670 }
0x1328   : > { %v4686_v18 = vmul.f32 %v4671_v61, %v8043_v13  ;;  %v10493_v61 = vperm.slane %v10486_v39, 3 }
0x132a   : > { %v4694_v3 = vadd.f32 1e-05, %v4686_v18 }
0x132c   : > { %7626 = vrsqrt.f32 %v4694_v3  ;;  %vm4708_vm11 = vweird.f32 %v4694_v3 }
0x132f   : > { %v4673_v1 = vpop.xlane.xlu0 %4672  ;;  %v4645_v2 = vpop.xlane.xlu2 %4644 }
0x1330   : > { %v4687_v35 = vmul.f32 %v4673_v1, %v8043_v13  ;;  %v4653_v49 = vmul.f32 %v4645_v2, %v8043_v13 }
0x1332   : > { %v7627_v29 = vpop.eup %7626  ;;  %v4695_v17 = vadd.f32 1e-05, %v4687_v35  ;;  %v10479_v52 = vsub.f32 %v10248_v38, %v4653_v49 }
0x1333   : > { %v4703_v34 = vmul.f32 %v7627_v29, %v4694_v3  ;;  %vm4709_vm9 = vweird.f32 %v7627_v29 }
0x1334   : > { %7628 = vrsqrt.f32 %v4695_v17  ;;  %v4669_v53 = vmul.f32 %v10479_v52, %v10479_v52  ;;  %vm4710_vm10 = vmor %vm4708_vm11, %vm4709_vm9  ;;  %vm4718_vm13 = vweird.f32 %v4695_v17 }
0x1335   : > { %v4704_v56 = vmul.f32 %v7627_v29, %v4703_v34 }
0x1336   : > { %4684 = vadd.xlane.f32.xlu2 %v4669_v53 }
0x1337   : > { %v4705_v4 = vmul.f32 0.5, %v4704_v56 }
0x1339   : > { %v4706_v40 = vsub.f32 1.5, %v4705_v4 }
0x133a   : > { %v7629_v32 = vpop.eup %7628 }
0x133b   : > { %v4707_v30 = vmul.f32 %v7627_v29, %v4706_v40  ;;  %v4713_v8 = vmul.f32 %v7629_v32, %v4695_v17  ;;  %vm4719_vm12 = vweird.f32 %v7629_v32 }
0x133c   : > { %vm4720_vm14 = vmor %vm4718_vm13, %vm4719_vm12 }
0x133d   : > { %v4714_v5 = vmul.f32 %v7629_v32, %v4713_v8  ;;  %v4711_v24 = vsel %vm4710_vm10, %v7627_v29, %v4707_v30 }
0x133e   : > { %v4782_v26 = vmul.f32 %v4711_v24, %v10236_v43 }
0x133f   : > { %v4715_v62 = vmul.f32 0.5, %v4714_v5 }
0x1340   : > { %v4791_v12 = vmul.f32 %v10489_v57, %v4782_v26 }
0x1341   : > { %v4716_v31 = vsub.f32 1.5, %v4715_v62 }
0x1342   : > { %v4800_v41 = vadd.f32 %v10493_v61, %v4791_v12 }
0x1343   : > { %v4717_v46 = vmul.f32 %v7629_v32, %v4716_v31 }
0x1345   : > { %v4721_v16 = vsel %vm4720_vm14, %v7629_v32, %v4717_v46 }
0x1346   : > { %v4783_v42 = vmul.f32 %v4721_v16, %v10246_v28 }
0x1348   : > { %v4792_v20 = vmul.f32 %v10489_v57, %v4783_v42 }
0x134a   : > { %v4801_v18 = vadd.f32 %v10493_v61, %v4792_v20 }
0x134c   : > { %v4808_v33 = vpack.c.bf16 %v4801_v18, %v4800_v41 }
0x134e   : > { %5024 = vmatmul.bf16.vlgmr.msrb.gmra.mxu2 %v4808_v33  ;;  %5053 = vmatmul.bf16.vlgmr.msrb.gmra.mxu3 %v4808_v33 }
0x134f   : > { %5082 = vmatmul.bf16.vlgmr.msrb.gmra.mxu0 %v4808_v33  ;;  %5111 = vmatmul.bf16.vlgmr.msra.gmra.mxu1 %v4808_v33 }
0x136f   : > { %v4675_v43 = vpop.xlane.xlu0 %4674 }
0x1370   : > { %v4688_v14 = vmul.f32 %v4675_v43, %v8043_v13 }
0x1372   : > { %v4696_v48 = vadd.f32 1e-05, %v4688_v14  ;;  %v7198_v14 = vld [vmem:[%s10814_s4 + $0x1b8] sm:$0xff] }
0x1373   : > { %5496 = vmatpush.bf16.msra.mxu0 %v7198_v14 }
0x1374   : > { %7630 = vrsqrt.f32 %v4696_v48  ;;  %vm4728_vm0 = vweird.f32 %v4696_v48 }
0x1377   : > { %v4677_v10 = vpop.xlane.xlu1 %4676 }
0x1378   : > { %v4689_v9 = vmul.f32 %v4677_v10, %v8043_v13 }
0x137a   : > { %v7631_v28 = vpop.eup %7630  ;;  %v4697_v3 = vadd.f32 1e-05, %v4689_v9 }
0x137b   : > { %v4723_v60 = vmul.f32 %v7631_v28, %v4696_v48  ;;  %vm4729_vm15 = vweird.f32 %v7631_v28  ;;  %v7206_v48 = vld [vmem:[%s10814_s4 + $0x1f8] sm:$0xff] }
0x137c   : > { %7632 = vrsqrt.f32 %v4697_v3  ;;  %vm4730_vm1 = vmor %vm4728_vm0, %vm4729_vm15  ;;  %vm4738_vm3 = vweird.f32 %v4697_v3  ;;  %5525 = vmatpush.bf16.msrb.mxu1 %v7206_v48  ;;  %v7184_v48 = vld [vmem:[%s10814_s4 + $0x148] sm:$0xff] }
0x137d   : > { %v4724_v21 = vmul.f32 %v7631_v28, %v4723_v60  ;;  %v7205_v60 = vld [vmem:[%s10814_s4 + $0x1f0] sm:$0xff] }
0x137f   : > { %v4725_v63 = vmul.f32 0.5, %v4724_v21  ;;  %v4679_v44 = vpop.xlane.xlu2 %4678  ;;  %v7182_v21 = vld [vmem:[%s10814_s4 + $0x138] sm:$0xff] }
0x1380   : > { %v4690_v54 = vmul.f32 %v4679_v44, %v8043_v13  ;;  %5526 = vmatpush.bf16.msrb.mxu1 %v7205_v60  ;;  %v7196_v44 = vld [vmem:[%s10814_s4 + $0x1a8] sm:$0xff]  ;;  %5438 = vmatpush.bf16.msra.mxu2 %v7182_v21 }
0x1381   : > { %v4726_v45 = vsub.f32 1.5, %v4725_v63  ;;  %v7190_v63 = vld [vmem:[%s10814_s4 + $0x178] sm:$0xff] }
0x1382   : > { %v7633_v50 = vpop.eup %7632  ;;  %v4698_v15 = vadd.f32 1e-05, %v4690_v54  ;;  %v7204_v54 = vld [vmem:[%s10814_s4 + $0x1e8] sm:$0xff]  ;;  %5467 = vmatpush.bf16.msra.mxu3 %v7190_v63 }
0x1383   : > { %v4727_v23 = vmul.f32 %v7631_v28, %v4726_v45  ;;  %v4733_v25 = vmul.f32 %v7633_v50, %v4697_v3  ;;  %vm4739_vm2 = vweird.f32 %v7633_v50  ;;  %v7197_v3 = vld [vmem:[%s10814_s4 + $0x1b0] sm:$0xff] }
0x1384   : > { %7634 = vrsqrt.f32 %v4698_v15  ;;  %vm4740_vm4 = vmor %vm4738_vm3, %vm4739_vm2  ;;  %vm4748_vm6 = vweird.f32 %v4698_v15  ;;  %5497 = vmatpush.bf16.msra.mxu0 %v7197_v3  ;;  %5527 = vmatpush.bf16.msrb.mxu1 %v7204_v54  ;;  %v7183_v3 = vld [vmem:[%s10814_s4 + $0x140] sm:$0xff] }
0x1385   : > { %v4734_v58 = vmul.f32 %v7633_v50, %v4733_v25  ;;  %v4731_v37 = vsel %vm4730_vm1, %v7631_v28, %v4727_v23 }
0x1386   : > { %v4784_v17 = vmul.f32 %v4731_v37, %v10255_v59 }
0x1387   : > { %v4735_v1 = vmul.f32 0.5, %v4734_v58  ;;  %v4681_v2 = vpop.xlane.xlu0 %4680 }
0x1388   : > { %v4691_v35 = vmul.f32 %v4681_v2, %v8043_v13  ;;  %v4793_v30 = vmul.f32 %v10489_v57, %v4784_v17  ;;  %5498 = vmatpush.bf16.msra.mxu0 %v7196_v44  ;;  %v7203_v2 = vld [vmem:[%s10814_s4 + $0x1e0] sm:$0xff]  ;;  %v7188_v17 = vld [vmem:[%s10814_s4 + $0x168] sm:$0xff] }
0x1389   : > { %v4736_v49 = vsub.f32 1.5, %v4735_v1  ;;  %v7195_v1 = vld [vmem:[%s10814_s4 + $0x1a0] sm:$0xff]  ;;  %5528 = vmatpush.bf16.msrb.mxu1 %v7203_v2 }
0x138a   : > { %v7635_v29 = vpop.eup %7634  ;;  %v4699_v34 = vadd.f32 1e-05, %v4691_v35  ;;  %v4802_v59 = vadd.f32 %v10493_v61, %v4793_v30  ;;  %v7187_v30 = vld [vmem:[%s10814_s4 + $0x160] sm:$0xff] }
0x138b   : > { %v4737_v53 = vmul.f32 %v7633_v50, %v4736_v49  ;;  %v4743_v56 = vmul.f32 %v7635_v29, %v4698_v15  ;;  %vm4749_vm5 = vweird.f32 %v7635_v29  ;;  %v7189_v15 = vld [vmem:[%s10814_s4 + $0x170] sm:$0xff] }
0x138c   : > { %7636 = vrsqrt.f32 %v4699_v34  ;;  %vm4750_vm7 = vmor %vm4748_vm6, %vm4749_vm5  ;;  %vm4758_vm9 = vweird.f32 %v4699_v34  ;;  %5468 = vmatpush.bf16.msra.mxu3 %v7189_v15  ;;  %5499 = vmatpush.bf16.msra.mxu0 %v7195_v1 }
0x138d   : > { %v4741_v4 = vsel %vm4740_vm4, %v7633_v50, %v4737_v53  ;;  %v4744_v40 = vmul.f32 %v7635_v29, %v4743_v56  ;;  %v7181_v50 = vld [vmem:[%s10814_s4 + $0x130] sm:$0xff]  ;;  %v7194_v53 = vld [vmem:[%s10814_s4 + $0x198] sm:$0xff] }
0x138e   : > { %v4785_v32 = vmul.f32 %v4741_v4, %v10261_v6  ;;  %5439 = vmatpush.bf16.msra.mxu2 %v7181_v50  ;;  %v7202_v56 = vld [vmem:[%s10814_s4 + $0x1d8] sm:$0xff] }
0x138f   : > { %v4745_v8 = vmul.f32 0.5, %v4744_v40  ;;  %v4683_v5 = vpop.xlane.xlu1 %4682  ;;  %5529 = vmatpush.bf16.msrb.mxu1 %v7202_v56 }
0x1390   : > { %v4794_v24 = vmul.f32 %v10489_v57, %v4785_v32  ;;  %v4692_v12 = vmul.f32 %v4683_v5, %v8043_v13  ;;  %5469 = vmatpush.bf16.msra.mxu3 %v7188_v17  ;;  %5500 = vmatpush.bf16.msra.mxu0 %v7194_v53  ;;  %v7179_v32 = vld [vmem:[%s10814_s4 + $0x120] sm:$0xff]  ;;  %v7201_v5 = vld [vmem:[%s10814_s4 + $0x1d0] sm:$0xff] }
0x1391   : > { %v4746_v62 = vsub.f32 1.5, %v4745_v8  ;;  %v7193_v8 = vld [vmem:[%s10814_s4 + $0x190] sm:$0xff] }
0x1392   : > { %v7637_v31 = vpop.eup %7636  ;;  %v4803_v26 = vadd.f32 %v10493_v61, %v4794_v24  ;;  %v10511_v18 = vadd.f32 1e-05, %v4692_v12 }
0x1393   : > { %v4747_v46 = vmul.f32 %v7635_v29, %v4746_v62  ;;  %v4753_v16 = vmul.f32 %v7637_v31, %v4699_v34  ;;  %vm4759_vm8 = vweird.f32 %v7637_v31  ;;  %5530 = vmatpush.bf16.msrb.mxu1 %v7201_v5  ;;  %v7178_v62 = vld [vmem:[%s10814_s4 + $0x118] sm:$0xff] }
0x1394   : > { %v4809_v42 = vpack.c.bf16 %v4803_v26, %v4802_v59  ;;  %7638 = vrsqrt.f32 %v10511_v18  ;;  %vm4760_vm11 = vmor %vm4758_vm9, %vm4759_vm8  ;;  %5470 = vmatpush.bf16.msra.mxu3 %v7187_v30  ;;  %5501 = vmatpush.bf16.msra.mxu0 %v7193_v8  ;;  %v7192_v59 = vld [vmem:[%s10814_s4 + $0x188] sm:$0xff]  ;;  %vm4768_vm12 = vweird.f32 %v10511_v18 }
0x1395   : > { %v4754_v6 = vmul.f32 %v7637_v31, %v4753_v16  ;;  %v4751_v20 = vsel %vm4750_vm7, %v7635_v29, %v4747_v46  ;;  %v7180_v29 = vld [vmem:[%s10814_s4 + $0x128] sm:$0xff] }
0x1396   : > { %5029 = vmatmul.bf16.gmra.mxu2 %v4809_v42  ;;  %5058 = vmatmul.bf16.gmra.mxu3 %v4809_v42  ;;  %v4786_v43 = vmul.f32 %v4751_v20, %v10267_v55  ;;  %v7200_v26 = vld [vmem:[%s10814_s4 + $0x1c8] sm:$0xff] }
0x1397   : > { %v4755_v41 = vmul.f32 0.5, %v4754_v6  ;;  %5087 = vmatmul.bf16.gmra.mxu0 %v4809_v42  ;;  %5116 = vmatmul.bf16.gmra.mxu1 %v4809_v42  ;;  %v7177_v42 = vld [vmem:[%s10814_s4 + $0x110] sm:$0xff] }
0x1398   : > { %v4795_v55 = vmul.f32 %v10489_v57, %v4786_v43  ;;  %5440 = vmatpush.bf16.msra.mxu2 %v7180_v29  ;;  %5502 = vmatpush.bf16.msra.mxu0 %v7192_v59  ;;  %v7185_v6 = vld [vmem:[%s10814_s4 + $0x150] sm:$0xff] }
0x1399   : > { %v4756_v33 = vsub.f32 1.5, %v4755_v41  ;;  %5531 = vmatpush.bf16.msrb.mxu1 %v7200_v26  ;;  %v7191_v41 = vld [vmem:[%s10814_s4 + $0x180] sm:$0xff] }
0x139a   : > { %v10542_v45 = vpop.eup %7638  ;;  %v4804_v23 = vadd.f32 %v10493_v61, %v4795_v55  ;;  %v7175_v55 = vld [vmem:[%s10814_s4 + $0x100] sm:$0xff] }
0x139b   : > { %v4757_v10 = vmul.f32 %v7637_v31, %v4756_v33  ;;  %v4763_v58 = vmul.f32 %v10542_v45, %v10511_v18  ;;  %vm4769_vm10 = vweird.f32 %v10542_v45  ;;  %v7199_v33 = vld [vmem:[%s10814_s4 + $0x1c0] sm:$0xff]  ;;  %v7176_v18 = vld [vmem:[%s10814_s4 + $0x108] sm:$0xff] }
0x139c   : > { %5441 = vmatpush.bf16.msra.mxu2 %v7179_v32  ;;  %vm4770_vm13 = vmor %vm4768_vm12, %vm4769_vm10  ;;  %5503 = vmatpush.bf16.msra.mxu0 %v7191_v41 }
0x139d   : > { %v4761_v9 = vsel %vm4760_vm11, %v7637_v31, %v4757_v10  ;;  %v4764_v35 = vmul.f32 %v10542_v45, %v4763_v58  ;;  %v7186_v31 = vld [vmem:[%s10814_s4 + $0x158] sm:$0xff]  ;;  %5532 = vmatpush.bf16.msrb.mxu1 %v7199_v33 }
0x139e   : > { %v4787_v28 = vmul.f32 %v4761_v9, %v10297_v27  ;;  %5471 = vmatpush.bf16.msra.mxu3 %v7186_v31 }
0x139f   : > { %v4765_v40 = vmul.f32 0.5, %v4764_v35 }
0x13a0   : > { %v4796_v27 = vmul.f32 %v10489_v57, %v4787_v28  ;;  %5442 = vmatpush.bf16.msra.mxu2 %v7178_v62 }
0x13a1   : > { %v4766_v24 = vsub.f32 1.5, %v4765_v40 }
0x13a2   : > { %v4805_v25 = vadd.f32 %v10493_v61, %v4796_v27  ;;  %5472 = vmatpush.bf16.msra.mxu3 %v7185_v6 }
0x13a3   : > { %v4767_v16 = vmul.f32 %v10542_v45, %v4766_v24 }
0x13a4   : > { %v4810_v37 = vpack.c.bf16 %v4805_v25, %v4804_v23  ;;  %5443 = vmatpush.bf16.msra.mxu2 %v7177_v42 }
0x13a5   : > { %v4771_v43 = vsel %vm4770_vm13, %v10542_v45, %v4767_v16  ;;  %v4846_v45 = vld [vmem:[#allocation5 + $0x4] sm:$0xf] }
0x13a6   : > { %5034 = vmatmul.bf16.gmra.mxu2 %v4810_v37  ;;  %5063 = vmatmul.bf16.gmra.mxu3 %v4810_v37  ;;  %v4788_v9 = vmul.f32 %v4771_v43, %v10351_v47  ;;  %v10632_v23 = vperm.slane %v4846_v45, 2  ;;  %v10634_v25 = vperm.slane %v4846_v45, 3  ;;  %v10638_v1 = vperm.slane %v4846_v45, 0 }
0x13a7   : > { %5092 = vmatmul.bf16.gmra.mxu0 %v4810_v37  ;;  %5121 = vmatmul.bf16.gmra.mxu1 %v4810_v37 }
0x13a8   : > { %5444 = vmatpush.bf16.msra.mxu2 %v7176_v18  ;;  %5473 = vmatpush.bf16.msra.mxu3 %v7184_v48  ;;  %v4797_v63 = vmul.f32 %v10489_v57, %v4788_v9 }
0x13a9   : > { %v4685_v49 = vpop.xlane.xlu2 %4684 }
0x13aa   : > { %v4693_v34 = vmul.f32 %v4685_v49, %v8043_v13  ;;  %v4806_v27 = vadd.f32 %v10493_v61, %v4797_v63 }
0x13ac   : > { %v4701_v4 = vadd.f32 1e-05, %v4693_v34  ;;  %5445 = vmatpush.bf16.msra.mxu2 %v7175_v55  ;;  %5474 = vmatpush.bf16.msra.mxu3 %v7183_v3 }
0x13ae   : > { %7640 = vrsqrt.f32 %v4701_v4  ;;  %vm4778_vm15 = vweird.f32 %v4701_v4 }
0x13b4   : > { %v7641_v46 = vpop.eup %7640 }
0x13b5   : > { %v4773_v12 = vmul.f32 %v7641_v46, %v4701_v4  ;;  %vm4779_vm14 = vweird.f32 %v7641_v46 }
0x13b6   : > { %vm4780_vm0 = vmor %vm4778_vm15, %vm4779_vm14 }
0x13b7   : > { %v4774_v20 = vmul.f32 %v7641_v46, %v4773_v12 }
0x13b9   : > { %v4775_v14 = vmul.f32 0.5, %v4774_v20 }
0x13bb   : > { %v4776_v10 = vsub.f32 1.5, %v4775_v14 }
0x13bd   : > { %v4777_v28 = vmul.f32 %v7641_v46, %v4776_v10 }
0x13bf   : > { %v4781_v60 = vsel %vm4780_vm0, %v7641_v46, %v4777_v28 }
0x13c0   : > { %v4789_v21 = vmul.f32 %v4781_v60, %v10479_v52 }
0x13c2   : > { %v4798_v47 = vmul.f32 %v10489_v57, %v4789_v21 }
0x13c4   : > { %v4807_v44 = vadd.f32 %v10493_v61, %v4798_v47  ;;  %v10640_v61 = vperm.slane %v4846_v45, 1 }
0x13c6   : > { %v4811_v54 = vpack.c.bf16 %v4807_v44, %v4806_v27 }
0x13c8   : > { %5039 = vmatmul.bf16.gmra.mxu2 %v4811_v54  ;;  %5068 = vmatmul.bf16.gmra.mxu3 %v4811_v54 }
0x13c9   : > { %5097 = vmatmul.bf16.gmra.mxu0 %v4811_v54  ;;  %5126 = vmatmul.bf16.gmra.mxu1 %v4811_v54 }
0x13cc   : > { %v5083_v50 = vpop.f32.mrf.mxu0  ;;  %v5112_v15 = vpop.f32.mrf.mxu1 }
0x13cd   : > { %v5084_v57 = vadd.f32 %v5083_v50, %v10632_v23  ;;  %v5113_v37 = vadd.f32 %v5112_v15, %v10634_v25 }
0x13cf   : > { %v5134_v17 = vmax.f32 %v5084_v57, 0.0  ;;  %v5135_v34 = vmax.f32 %v5113_v37, 0.0 }
0x13d1   : > { %v5025_v52 = vpop.f32.mrf.mxu2  ;;  %v5054_v58 = vpop.f32.mrf.mxu3 }
0x13d2   : > { %v5026_v4 = vadd.f32 %v5025_v52, %v10638_v1  ;;  %v5055_v40 = vadd.f32 %v5054_v58, %v10640_v61 }
0x13d4   : > { %v5085_v2 = vpop.f32.mrf.mxu0  ;;  %v5114_v35 = vpop.f32.mrf.mxu1  ;;  %v5132_v31 = vmax.f32 %v5026_v4, 0.0  ;;  %v5133_v59 = vmax.f32 %v5055_v40, 0.0 }
0x13d5   : > { %v5086_v49 = vadd.f32 %v5085_v2, %v10632_v23  ;;  %v5115_v29 = vadd.f32 %v5114_v35, %v10634_v25 }
0x13d7   : > { %v5138_v53 = vmax.f32 %v5086_v49, 0.0  ;;  %v5139_v56 = vmax.f32 %v5115_v29, 0.0 }
0x13d9   : > { %v5166_v32 = vpack.c.bf16 %v5138_v53, %v5134_v17  ;;  %v5167_v30 = vpack.c.bf16 %v5139_v56, %v5135_v34  ;;  %v5027_v8 = vpop.f32.mrf.mxu2  ;;  %v5056_v5 = vpop.f32.mrf.mxu3 }
0x13da   : > { %v5028_v24 = vadd.f32 %v5027_v8, %v10638_v1  ;;  %v5057_v62 = vadd.f32 %v5056_v5, %v10640_v61 }
0x13db   : > { %5504 = vmatmul.bf16.vlgmr.msra.gmra.mxu0 %v5166_v32  ;;  %5533 = vmatmul.bf16.vlgmr.msrb.gmra.mxu1 %v5167_v30 }
0x13dc   : > { %v5136_v26 = vmax.f32 %v5028_v24, 0.0  ;;  %v5137_v46 = vmax.f32 %v5057_v62, 0.0 }
0x13de   : > { %v5164_v16 = vpack.c.bf16 %v5136_v26, %v5132_v31  ;;  %v5165_v12 = vpack.c.bf16 %v5137_v46, %v5133_v59 }
0x13e0   : > { %5446 = vmatmul.bf16.vlgmr.msra.gmra.mxu2 %v5164_v16  ;;  %5475 = vmatmul.bf16.vlgmr.msra.gmra.mxu3 %v5165_v12 }
0x1414   : > { %v5088_v42 = vpop.f32.mrf.mxu0  ;;  %v5117_v6 = vpop.f32.mrf.mxu1 }
0x1415   : > { %v5089_v33 = vadd.f32 %v5088_v42, %v10632_v23  ;;  %v5118_v43 = vadd.f32 %v5117_v6, %v10634_v25 }
0x1417   : > { %v5142_v9 = vmax.f32 %v5089_v33, 0.0  ;;  %v5143_v28 = vmax.f32 %v5118_v43, 0.0 }
0x1419   : > { %v5030_v20 = vpop.f32.mrf.mxu2  ;;  %v5059_v41 = vpop.f32.mrf.mxu3 }
0x141a   : > { %v5031_v60 = vadd.f32 %v5030_v20, %v10638_v1  ;;  %v5060_v21 = vadd.f32 %v5059_v41, %v10640_v61 }
0x141c   : > { %v5090_v14 = vpop.f32.mrf.mxu0  ;;  %v5119_v18 = vpop.f32.mrf.mxu1  ;;  %v5140_v50 = vmax.f32 %v5031_v60, 0.0  ;;  %v5141_v15 = vmax.f32 %v5060_v21, 0.0 }
0x141d   : > { %v5091_v48 = vadd.f32 %v5090_v14, %v10632_v23  ;;  %v5120_v10 = vadd.f32 %v5119_v18, %v10634_v25 }
0x141f   : > { %v5146_v55 = vmax.f32 %v5091_v48, 0.0  ;;  %v5147_v3 = vmax.f32 %v5120_v10, 0.0 }
0x1421   : > { %v5170_v63 = vpack.c.bf16 %v5146_v55, %v5142_v9  ;;  %v5171_v47 = vpack.c.bf16 %v5147_v3, %v5143_v28  ;;  %v5032_v27 = vpop.f32.mrf.mxu2  ;;  %v5061_v44 = vpop.f32.mrf.mxu3 }
0x1422   : > { %v5033_v54 = vadd.f32 %v5032_v27, %v10638_v1  ;;  %v5062_v45 = vadd.f32 %v5061_v44, %v10640_v61 }
0x1423   : > { %5509 = vmatmul.bf16.gmra.mxu0 %v5170_v63  ;;  %5538 = vmatmul.bf16.gmra.mxu1 %v5171_v47 }
0x1424   : > { %v5144_v52 = vmax.f32 %v5033_v54, 0.0  ;;  %v5145_v58 = vmax.f32 %v5062_v45, 0.0  ;;  %v5093_v57 = vpop.f32.mrf.mxu0  ;;  %v5122_v37 = vpop.f32.mrf.mxu1 }
0x1425   : > { %v5094_v17 = vadd.f32 %v5093_v57, %v10632_v23  ;;  %v5123_v34 = vadd.f32 %v5122_v37, %v10634_v25 }
0x1426   : > { %v5168_v2 = vpack.c.bf16 %v5144_v52, %v5140_v50  ;;  %v5169_v35 = vpack.c.bf16 %v5145_v58, %v5141_v15 }
0x1427   : > { %v5150_v32 = vmax.f32 %v5094_v17, 0.0  ;;  %v5151_v30 = vmax.f32 %v5123_v34, 0.0  ;;  %v10673_v17 = vperm.slane %v10486_v39, 5 }
0x1428   : > { %5451 = vmatmul.bf16.gmra.mxu2 %v5168_v2  ;;  %5480 = vmatmul.bf16.gmra.mxu3 %v5169_v35 }
0x1429   : > { %v5035_v49 = vpop.f32.mrf.mxu2  ;;  %v5064_v29 = vpop.f32.mrf.mxu3 }
0x142a   : > { %v5036_v24 = vadd.f32 %v5035_v49, %v10638_v1  ;;  %v5065_v62 = vadd.f32 %v5064_v29, %v10640_v61 }
0x142c   : > { %v5095_v53 = vpop.f32.mrf.mxu0  ;;  %v5124_v56 = vpop.f32.mrf.mxu1  ;;  %v5148_v42 = vmax.f32 %v5036_v24, 0.0  ;;  %v5149_v6 = vmax.f32 %v5065_v62, 0.0 }
0x142d   : > { %v5096_v4 = vadd.f32 %v5095_v53, %v10632_v23  ;;  %v5125_v40 = vadd.f32 %v5124_v56, %v10634_v25 }
0x142f   : > { %v5154_v8 = vmax.f32 %v5096_v4, 0.0  ;;  %v5155_v5 = vmax.f32 %v5125_v40, 0.0 }
0x1431   : > { %v5174_v31 = vpack.c.bf16 %v5154_v8, %v5150_v32  ;;  %v5175_v59 = vpack.c.bf16 %v5155_v5, %v5151_v30  ;;  %v5037_v26 = vpop.f32.mrf.mxu2  ;;  %v5066_v46 = vpop.f32.mrf.mxu3 }
0x1432   : > { %v5038_v16 = vadd.f32 %v5037_v26, %v10638_v1  ;;  %v5067_v12 = vadd.f32 %v5066_v46, %v10640_v61 }
0x1433   : > { %5514 = vmatmul.bf16.gmra.mxu0 %v5174_v31  ;;  %5543 = vmatmul.bf16.gmra.mxu1 %v5175_v59 }
0x1434   : > { %v5152_v20 = vmax.f32 %v5038_v16, 0.0  ;;  %v5153_v41 = vmax.f32 %v5067_v12, 0.0 }
0x1436   : > { %v5172_v33 = vpack.c.bf16 %v5152_v20, %v5148_v42  ;;  %v5173_v43 = vpack.c.bf16 %v5153_v41, %v5149_v6 }
0x1438   : > { %5456 = vmatmul.bf16.gmra.mxu2 %v5172_v33  ;;  %5485 = vmatmul.bf16.gmra.mxu3 %v5173_v43 }
0x1446   : > { %v5098_v14 = vpop.f32.mrf.mxu0  ;;  %v5127_v18 = vpop.f32.mrf.mxu1 }
0x1447   : > { %v5099_v9 = vadd.f32 %v5098_v14, %v10632_v23  ;;  %v5128_v28 = vadd.f32 %v5127_v18, %v10634_v25 }
0x1449   : > { %v5158_v63 = vmax.f32 %v5099_v9, 0.0  ;;  %v5159_v47 = vmax.f32 %v5128_v28, 0.0 }
0x144b   : > { %v5040_v48 = vpop.f32.mrf.mxu2  ;;  %v5069_v10 = vpop.f32.mrf.mxu3 }
0x144c   : > { %v5041_v54 = vadd.f32 %v5040_v48, %v10638_v1  ;;  %v5070_v45 = vadd.f32 %v5069_v10, %v10640_v61 }
0x144e   : > { %v5100_v55 = vpop.f32.mrf.mxu0  ;;  %v5129_v3 = vpop.f32.mrf.mxu1 }
0x144f   : > { %v5101_v60 = vadd.f32 %v5100_v55, %v10632_v23  ;;  %v5130_v21 = vadd.f32 %v5129_v3, %v10634_v25  ;;  %v5156_v23 = vmax.f32 %v5041_v54, 0.0  ;;  %v5157_v25 = vmax.f32 %v5070_v45, 0.0 }
0x1451   : > { %v5162_v27 = vmax.f32 %v5101_v60, 0.0  ;;  %v5163_v44 = vmax.f32 %v5130_v21, 0.0 }
0x1453   : > { %v5178_v50 = vpack.c.bf16 %v5162_v27, %v5158_v63  ;;  %v5179_v15 = vpack.c.bf16 %v5163_v44, %v5159_v47  ;;  %v5042_v52 = vpop.f32.mrf.mxu2  ;;  %v5071_v58 = vpop.f32.mrf.mxu3 }
0x1454   : > { %v5043_v57 = vadd.f32 %v5042_v52, %v10638_v1  ;;  %v5072_v37 = vadd.f32 %v5071_v58, %v10640_v61 }
0x1455   : > { %5519 = vmatmul.bf16.gmra.mxu0 %v5178_v50  ;;  %5548 = vmatmul.bf16.gmra.mxu1 %v5179_v15 }
0x1456   : > { %v5160_v2 = vmax.f32 %v5043_v57, 0.0  ;;  %v5161_v35 = vmax.f32 %v5072_v37, 0.0 }
0x1458   : > { %v5176_v49 = vpack.c.bf16 %v5160_v2, %v5156_v23  ;;  %v5177_v29 = vpack.c.bf16 %v5161_v35, %v5157_v25  ;;  %v5505_v1 = vpop.f32.mrf.mxu0  ;;  %v5534_v61 = vpop.f32.mrf.mxu1 }
0x145a   : > { %5461 = vmatmul.bf16.gmra.mxu2 %v5176_v49  ;;  %5490 = vmatmul.bf16.gmra.mxu3 %v5177_v29 }
0x1460   : > { %v5507_v31 = vpop.f32.mrf.mxu0  ;;  %v5536_v59 = vpop.f32.mrf.mxu1 }
0x1463   : > { %v5447_v34 = vpop.f32.mrf.mxu2  ;;  %v5476_v53 = vpop.f32.mrf.mxu3 }
0x1464   : > { %v5448_v56 = vadd.f32 %v5447_v34, %v10673_v17 }
0x1466   : > { %v5477_v4 = vadd.f32 %v5476_v53, %v5448_v56 }
0x1468   : > { %v5506_v40 = vadd.f32 %v5505_v1, %v5477_v4 }
0x146a   : > { %v5535_v32 = vadd.f32 %v5534_v61, %v5506_v40 }
0x146b   : > { %v5449_v30 = vpop.f32.mrf.mxu2  ;;  %v5478_v24 = vpop.f32.mrf.mxu3 }
0x146c   : > { %v5450_v8 = vadd.f32 %v5449_v30, %v10673_v17  ;;  %v5554_v5 = vadd.f32 %v5535_v32, %v10200_v36 }
0x146e   : > { %v5479_v62 = vadd.f32 %v5478_v24, %v5450_v8  ;;  %5563 = vadd.xlane.f32.xlu0 %v5554_v5 }
0x1470   : > { %v5508_v39 = vadd.f32 %v5507_v31, %v5479_v62 }
0x1472   : > { %v5537_v26 = vadd.f32 %v5536_v59, %v5508_v39 }
0x1474   : > { %v10679_v46 = vadd.f32 %v5537_v26, %v10205_v7 }
0x1476   : > { %5565 = vadd.xlane.f32.xlu1 %v10679_v46 }
0x14a0   : > { %v5510_v16 = vpop.f32.mrf.mxu0  ;;  %v5539_v12 = vpop.f32.mrf.mxu1 }
0x14a8   : > { %v5512_v33 = vpop.f32.mrf.mxu0  ;;  %v5541_v7 = vpop.f32.mrf.mxu1 }
0x14ab   : > { %v5452_v42 = vpop.f32.mrf.mxu2  ;;  %v5481_v6 = vpop.f32.mrf.mxu3 }
0x14ac   : > { %v5453_v20 = vadd.f32 %v5452_v42, %v10673_v17 }
0x14ae   : > { %v5482_v41 = vadd.f32 %v5481_v6, %v5453_v20 }
0x14b0   : > { %v5511_v36 = vadd.f32 %v5510_v16, %v5482_v41  ;;  %v5515_v47 = vpop.f32.mrf.mxu0  ;;  %v5544_v44 = vpop.f32.mrf.mxu1 }
0x14b2   : > { %v5540_v43 = vadd.f32 %v5539_v12, %v5511_v36 }
0x14b3   : > { %v5454_v14 = vpop.f32.mrf.mxu2  ;;  %v5483_v18 = vpop.f32.mrf.mxu3 }
0x14b4   : > { %v5455_v48 = vadd.f32 %v5454_v14, %v10673_v17  ;;  %v5556_v10 = vadd.f32 %v5540_v43, %v10211_v19 }
0x14b6   : > { %v5484_v9 = vadd.f32 %v5483_v18, %v5455_v48  ;;  %5567 = vadd.xlane.f32.xlu2 %v5556_v10 }
0x14b8   : > { %v5513_v28 = vadd.f32 %v5512_v33, %v5484_v9  ;;  %v5517_v57 = vpop.f32.mrf.mxu0  ;;  %v5546_v23 = vpop.f32.mrf.mxu1 }
0x14ba   : > { %v5542_v55 = vadd.f32 %v5541_v7, %v5513_v28  ;;  %v7214_v7 = vld [vmem:[#allocation8 + $0x38] sm:$0xff] }
0x14bb   : > { %v5457_v3 = vpop.f32.mrf.mxu2  ;;  %v5486_v60 = vpop.f32.mrf.mxu3  ;;  %5813 = vmatpush.bf16.msrb.mxu2 %v7214_v7 }
0x14bc   : > { %v5458_v21 = vadd.f32 %v5457_v3, %v10673_v17  ;;  %v5557_v63 = vadd.f32 %v5542_v55, %v10216_v0  ;;  %v7213_v55 = vld [vmem:[#allocation8 + $0x30] sm:$0xff]  ;;  %v7212_v3 = vld [vmem:[#allocation8 + $0x28] sm:$0xff] }
0x14be   : > { %v5487_v27 = vadd.f32 %v5486_v60, %v5458_v21  ;;  %5569 = vadd.xlane.f32.xlu0 %v5557_v63  ;;  %v7211_v60 = vld [vmem:[#allocation8 + $0x20] sm:$0xff]  ;;  %v7210_v21 = vld [vmem:[#allocation8 + $0x18] sm:$0xff] }
0x14bf   : > { %5814 = vmatpush.bf16.msrb.mxu2 %v7213_v55 }
0x14c0   : > { %v5516_v54 = vadd.f32 %v5515_v47, %v5487_v27 }
0x14c2   : > { %v5545_v45 = vadd.f32 %v5544_v44, %v5516_v54  ;;  %v7208_v44 = vld [vmem:[#allocation8 + $0x8] sm:$0xff] }
0x14c3   : > { %v5459_v50 = vpop.f32.mrf.mxu2  ;;  %v5488_v52 = vpop.f32.mrf.mxu3  ;;  %5815 = vmatpush.bf16.msrb.mxu2 %v7212_v3 }
0x14c4   : > { %v5460_v19 = vadd.f32 %v5459_v50, %v10673_v17  ;;  %v5558_v15 = vadd.f32 %v5545_v45, %v10222_v22 }
0x14c6   : > { %v5489_v58 = vadd.f32 %v5488_v52, %v5460_v19  ;;  %5571 = vadd.xlane.f32.xlu1 %v5558_v15 }
0x14c7   : > { %5816 = vmatpush.bf16.msrb.mxu2 %v7211_v60 }
0x14c8   : > { %v5518_v37 = vadd.f32 %v5517_v57, %v5489_v58 }
0x14ca   : > { %v5547_v25 = vadd.f32 %v5546_v23, %v5518_v37 }
0x14cb   : > { %5817 = vmatpush.bf16.msrb.mxu2 %v7210_v21 }
0x14cc   : > { %v5559_v0 = vadd.f32 %v5547_v25, %v10227_v51 }
0x14ce   : > { %5573 = vadd.xlane.f32.xlu2 %v5559_v0 }
0x14d2   : > { %v5520_v29 = vpop.f32.mrf.mxu0  ;;  %v5549_v53 = vpop.f32.mrf.mxu1 }
0x14da   : > { %v5522_v62 = vpop.f32.mrf.mxu0  ;;  %v5551_v26 = vpop.f32.mrf.mxu1 }
0x14dd   : > { %v5462_v2 = vpop.f32.mrf.mxu2  ;;  %v5491_v35 = vpop.f32.mrf.mxu3 }
0x14de   : > { %v5463_v49 = vadd.f32 %v5462_v2, %v10673_v17 }
0x14e0   : > { %v5492_v34 = vadd.f32 %v5491_v35, %v5463_v49 }
0x14e1   : > { %v5564_v56 = vpop.xlane.xlu0 %5563 }
0x14e2   : > { %v5521_v1 = vadd.f32 %v5520_v29, %v5492_v34  ;;  %v5579_v22 = vmul.f32 %v5564_v56, %v8043_v13 }
0x14e4   : > { %v5550_v4 = vadd.f32 %v5549_v53, %v5521_v1  ;;  %v10692_v61 = vsub.f32 %v5554_v5, %v5579_v22 }
0x14e5   : > { %v5464_v40 = vpop.f32.mrf.mxu2  ;;  %v5493_v8 = vpop.f32.mrf.mxu3 }
0x14e6   : > { %v5465_v32 = vadd.f32 %v5464_v40, %v10673_v17  ;;  %v5595_v51 = vmul.f32 %v10692_v61, %v10692_v61  ;;  %v5560_v30 = vadd.f32 %v5550_v4, %v10231_v11  ;;  %v5562_v40 = vld [vmem:[#allocation7] sm:$0xff] }
0x14e8   : > { %v5494_v24 = vadd.f32 %v5493_v8, %v5465_v32  ;;  %5603 = vadd.xlane.f32.xlu0 %v5595_v51  ;;  %5575 = vadd.xlane.f32.xlu2 %v5560_v30  ;;  %v10737_v8 = vperm.slane %v5562_v40, 0 }
0x14e9   : > { %v5566_v31 = vpop.xlane.xlu1 %5565 }
0x14ea   : > { %v5523_v39 = vadd.f32 %v5522_v62, %v5494_v24  ;;  %v5580_v59 = vmul.f32 %v5566_v31, %v8043_v13 }
0x14ec   : > { %v5552_v5 = vadd.f32 %v5551_v26, %v5523_v39  ;;  %v10700_v16 = vsub.f32 %v10679_v46, %v5580_v59  ;;  %v10740_v39 = vperm.slane %v5562_v40, 1 }
0x14ee   : > { %v5596_v17 = vmul.f32 %v10700_v16, %v10700_v16  ;;  %v5561_v12 = vadd.f32 %v5552_v5, %v10248_v38 }
0x14f0   : > { %5605 = vadd.xlane.f32.xlu1 %v5596_v17  ;;  %5577 = vadd.xlane.f32.xlu0 %v5561_v12 }
0x1529   : > { %v5568_v11 = vpop.xlane.xlu2 %5567 }
0x152a   : > { %v5581_v42 = vmul.f32 %v5568_v11, %v8043_v13 }
0x152c   : > { %v10706_v6 = vsub.f32 %v5556_v10, %v5581_v42 }
0x152e   : > { %v5597_v20 = vmul.f32 %v10706_v6, %v10706_v6 }
0x1530   : > { %5607 = vadd.xlane.f32.xlu1 %v5597_v20 }
0x1531   : > { %v5570_v41 = vpop.xlane.xlu0 %5569 }
0x1532   : > { %v5582_v46 = vmul.f32 %v5570_v41, %v8043_v13 }
0x1534   : > { %v10711_v36 = vsub.f32 %v5557_v63, %v5582_v46  ;;  %v7209_v63 = vld [vmem:[#allocation8 + $0x10] sm:$0xff] }
0x1535   : > { %5818 = vmatpush.bf16.msrb.mxu2 %v7209_v63 }
0x1536   : > { %v5598_v33 = vmul.f32 %v10711_v36, %v10711_v36 }
0x1538   : > { %5609 = vadd.xlane.f32.xlu2 %v5598_v33 }
0x1539   : > { %v5572_v38 = vpop.xlane.xlu1 %5571  ;;  %5819 = vmatpush.bf16.msrb.mxu2 %v7208_v44 }
0x153a   : > { %v5583_v43 = vmul.f32 %v5572_v38, %v8043_v13 }
0x153c   : > { %v10716_v14 = vsub.f32 %v5558_v15, %v5583_v43  ;;  %v7207_v15 = vld [vmem:[#allocation8] sm:$0xff] }
0x153d   : > { %5820 = vmatpush.bf16.msrb.mxu2 %v7207_v15 }
0x153e   : > { %v5599_v18 = vmul.f32 %v10716_v14, %v10716_v14 }
0x1540   : > { %5611 = vadd.xlane.f32.xlu0 %v5599_v18 }
0x1541   : > { %v5574_v48 = vpop.xlane.xlu2 %5573 }
0x1542   : > { %v5584_v10 = vmul.f32 %v5574_v48, %v8043_v13 }
0x1544   : > { %v10721_v9 = vsub.f32 %v5559_v0, %v5584_v10 }
0x1546   : > { %v5600_v28 = vmul.f32 %v10721_v9, %v10721_v9 }
0x1548   : > { %5613 = vadd.xlane.f32.xlu1 %v5600_v28 }
0x155b   : > { %v5604_v47 = vpop.xlane.xlu0 %5603  ;;  %v5576_v27 = vpop.xlane.xlu2 %5575 }
0x155c   : > { %v5619_v54 = vmul.f32 %v5604_v47, %v8043_v13  ;;  %v5585_v45 = vmul.f32 %v5576_v27, %v8043_v13 }
0x155e   : > { %v5627_v50 = vadd.f32 1e-05, %v5619_v54  ;;  %v10727_v19 = vsub.f32 %v5560_v30, %v5585_v45 }
0x1560   : > { %7642 = vrsqrt.f32 %v5627_v50  ;;  %v5601_v52 = vmul.f32 %v10727_v19, %v10727_v19  ;;  %vm5641_vm2 = vweird.f32 %v5627_v50 }
0x1562   : > { %5615 = vadd.xlane.f32.xlu2 %v5601_v52 }
0x1563   : > { %v5606_v58 = vpop.xlane.xlu1 %5605  ;;  %v5578_v57 = vpop.xlane.xlu0 %5577 }
0x1564   : > { %v5620_v37 = vmul.f32 %v5606_v58, %v8043_v13  ;;  %v5586_v23 = vmul.f32 %v5578_v57, %v8043_v13 }
0x1566   : > { %v7643_v25 = vpop.eup %7642  ;;  %v5628_v0 = vadd.f32 1e-05, %v5620_v37  ;;  %v10733_v2 = vsub.f32 %v5561_v12, %v5586_v23 }
0x1567   : > { %v5636_v35 = vmul.f32 %v7643_v25, %v5627_v50  ;;  %vm5642_vm1 = vweird.f32 %v7643_v25 }
0x1568   : > { %7644 = vrsqrt.f32 %v5628_v0  ;;  %v5602_v49 = vmul.f32 %v10733_v2, %v10733_v2  ;;  %vm5643_vm3 = vmor %vm5641_vm2, %vm5642_vm1  ;;  %vm5651_vm5 = vweird.f32 %v5628_v0 }
0x1569   : > { %v5637_v29 = vmul.f32 %v7643_v25, %v5636_v35 }
0x156a   : > { %5617 = vadd.xlane.f32.xlu0 %v5602_v49 }
0x156b   : > { %v5638_v34 = vmul.f32 0.5, %v5637_v29 }
0x156d   : > { %v5639_v53 = vsub.f32 1.5, %v5638_v34 }
0x156e   : > { %v7645_v56 = vpop.eup %7644 }
0x156f   : > { %v5640_v1 = vmul.f32 %v7643_v25, %v5639_v53  ;;  %v5646_v22 = vmul.f32 %v7645_v56, %v5628_v0  ;;  %vm5652_vm4 = vweird.f32 %v7645_v56 }
0x1570   : > { %vm5653_vm6 = vmor %vm5651_vm5, %vm5652_vm4 }
0x1571   : > { %v5647_v4 = vmul.f32 %v7645_v56, %v5646_v22  ;;  %v5644_v32 = vsel %vm5643_vm3, %v7643_v25, %v5640_v1 }
0x1572   : > { %v5715_v24 = vmul.f32 %v5644_v32, %v10692_v61 }
0x1573   : > { %v5648_v51 = vmul.f32 0.5, %v5647_v4 }
0x1574   : > { %v5724_v59 = vmul.f32 %v10737_v8, %v5715_v24 }
0x1575   : > { %v5649_v30 = vsub.f32 1.5, %v5648_v51 }
0x1576   : > { %v5733_v17 = vadd.f32 %v10740_v39, %v5724_v59 }
0x1577   : > { %v5650_v62 = vmul.f32 %v7645_v56, %v5649_v30 }
0x1579   : > { %v5654_v31 = vsel %vm5653_vm6, %v7645_v56, %v5650_v62 }
0x157a   : > { %v5716_v26 = vmul.f32 %v5654_v31, %v10700_v16 }
0x157c   : > { %v5725_v5 = vmul.f32 %v10737_v8, %v5716_v26 }
0x157e   : > { %v5734_v12 = vadd.f32 %v10740_v39, %v5725_v5 }
0x1580   : > { %v5741_v11 = vpack.c.bf16 %v5734_v12, %v5733_v17 }
0x1582   : > { %5821 = vmatmul.bf16.vlgmr.msrb.gmra.mxu2 %v5741_v11 }
0x15a3   : > { %v5608_v42 = vpop.xlane.xlu1 %5607 }
0x15a4   : > { %v5621_v61 = vmul.f32 %v5608_v42, %v8043_v13 }
0x15a6   : > { %v5629_v20 = vadd.f32 1e-05, %v5621_v61 }
0x15a8   : > { %7646 = vrsqrt.f32 %v5629_v20  ;;  %vm5661_vm8 = vweird.f32 %v5629_v20 }
0x15ab   : > { %v5610_v41 = vpop.xlane.xlu2 %5609 }
0x15ac   : > { %v5622_v46 = vmul.f32 %v5610_v41, %v8043_v13 }
0x15ae   : > { %v7647_v33 = vpop.eup %7646  ;;  %v5630_v38 = vadd.f32 1e-05, %v5622_v46 }
0x15af   : > { %v5656_v43 = vmul.f32 %v7647_v33, %v5629_v20  ;;  %vm5662_vm7 = vweird.f32 %v7647_v33 }
0x15b0   : > { %7648 = vrsqrt.f32 %v5630_v38  ;;  %vm5663_vm9 = vmor %vm5661_vm8, %vm5662_vm7  ;;  %vm5671_vm10 = vweird.f32 %v5630_v38 }
0x15b1   : > { %v5657_v16 = vmul.f32 %v7647_v33, %v5656_v43 }
0x15b3   : > { %v5658_v18 = vmul.f32 0.5, %v5657_v16  ;;  %v5612_v48 = vpop.xlane.xlu0 %5611 }
0x15b4   : > { %v5623_v10 = vmul.f32 %v5612_v48, %v8043_v13 }
0x15b5   : > { %v5659_v7 = vsub.f32 1.5, %v5658_v18 }
0x15b6   : > { %v7649_v28 = vpop.eup %7648  ;;  %v5631_v55 = vadd.f32 1e-05, %v5623_v10 }
0x15b7   : > { %v5660_v3 = vmul.f32 %v7647_v33, %v5659_v7  ;;  %v5666_v60 = vmul.f32 %v7649_v28, %v5630_v38  ;;  %vm5672_vm11 = vweird.f32 %v7649_v28 }
0x15b8   : > { %7650 = vrsqrt.f32 %v5631_v55  ;;  %vm5673_vm12 = vmor %vm5671_vm10, %vm5672_vm11  ;;  %vm5681_vm14 = vweird.f32 %v5631_v55 }
0x15b9   : > { %v5667_v21 = vmul.f32 %v7649_v28, %v5666_v60  ;;  %v5664_v63 = vsel %vm5663_vm9, %v7647_v33, %v5660_v3 }
0x15ba   : > { %v5717_v50 = vmul.f32 %v5664_v63, %v10706_v6 }
0x15bb   : > { %v5668_v47 = vmul.f32 0.5, %v5667_v21  ;;  %v5614_v27 = vpop.xlane.xlu1 %5613 }
0x15bc   : > { %v5624_v44 = vmul.f32 %v5614_v27, %v8043_v13  ;;  %v5726_v25 = vmul.f32 %v10737_v8, %v5717_v50 }
0x15bd   : > { %v5669_v54 = vsub.f32 1.5, %v5668_v47 }
0x15be   : > { %v7651_v45 = vpop.eup %7650  ;;  %v5632_v15 = vadd.f32 1e-05, %v5624_v44  ;;  %v5735_v34 = vadd.f32 %v10740_v39, %v5726_v25 }
0x15bf   : > { %v5670_v52 = vmul.f32 %v7649_v28, %v5669_v54  ;;  %v5676_v58 = vmul.f32 %v7651_v45, %v5631_v55  ;;  %vm5682_vm13 = vweird.f32 %v7651_v45 }
0x15c0   : > { %7652 = vrsqrt.f32 %v5632_v15  ;;  %vm5683_vm15 = vmor %vm5681_vm14, %vm5682_vm13  ;;  %vm5691_vm1 = vweird.f32 %v5632_v15 }
0x15c1   : > { %v5674_v57 = vsel %vm5673_vm12, %v7649_v28, %v5670_v52  ;;  %v5677_v37 = vmul.f32 %v7651_v45, %v5676_v58 }
0x15c2   : > { %v5718_v23 = vmul.f32 %v5674_v57, %v10711_v36 }
0x15c3   : > { %v5678_v0 = vmul.f32 0.5, %v5677_v37 }
0x15c4   : > { %v5727_v35 = vmul.f32 %v10737_v8, %v5718_v23 }
0x15c5   : > { %v5679_v49 = vsub.f32 1.5, %v5678_v0 }
0x15c6   : > { %v7653_v29 = vpop.eup %7652  ;;  %v5736_v6 = vadd.f32 %v10740_v39, %v5727_v35 }
0x15c7   : > { %v5680_v53 = vmul.f32 %v7651_v45, %v5679_v49  ;;  %v5686_v56 = vmul.f32 %v7653_v29, %v5632_v15  ;;  %vm5692_vm0 = vweird.f32 %v7653_v29 }
0x15c8   : > { %v5742_v1 = vpack.c.bf16 %v5736_v6, %v5735_v34  ;;  %vm5693_vm2 = vmor %vm5691_vm1, %vm5692_vm0 }
0x15c9   : > { %v5687_v22 = vmul.f32 %v7653_v29, %v5686_v56  ;;  %v5684_v36 = vsel %vm5683_vm15, %v7651_v45, %v5680_v53 }
0x15ca   : > { %5826 = vmatmul.bf16.gmra.mxu2 %v5742_v1  ;;  %v5719_v32 = vmul.f32 %v5684_v36, %v10716_v14 }
0x15cb   : > { %v5688_v4 = vmul.f32 0.5, %v5687_v22 }
0x15cc   : > { %v5728_v62 = vmul.f32 %v10737_v8, %v5719_v32 }
0x15cd   : > { %v5689_v40 = vsub.f32 1.5, %v5688_v4 }
0x15ce   : > { %v5737_v5 = vadd.f32 %v10740_v39, %v5728_v62 }
0x15cf   : > { %v5690_v51 = vmul.f32 %v7653_v29, %v5689_v40 }
0x15d1   : > { %v5694_v30 = vsel %vm5693_vm2, %v7653_v29, %v5690_v51 }
0x15d2   : > { %v5720_v24 = vmul.f32 %v5694_v30, %v10721_v9 }
0x15d4   : > { %v5729_v59 = vmul.f32 %v10737_v8, %v5720_v24 }
0x15d5   : > { %v5616_v31 = vpop.xlane.xlu2 %5615 }
0x15d6   : > { %v5625_v26 = vmul.f32 %v5616_v31, %v8043_v13  ;;  %v5738_v17 = vadd.f32 %v10740_v39, %v5729_v59 }
0x15d8   : > { %v5633_v12 = vadd.f32 1e-05, %v5625_v26  ;;  %v5743_v11 = vpack.c.bf16 %v5738_v17, %v5737_v5 }
0x15da   : > { %7654 = vrsqrt.f32 %v5633_v12  ;;  %5831 = vmatmul.bf16.gmra.mxu2 %v5743_v11  ;;  %vm5701_vm4 = vweird.f32 %v5633_v12 }
0x15dd   : > { %v5618_v14 = vpop.xlane.xlu0 %5617 }
0x15de   : > { %v5626_v42 = vmul.f32 %v5618_v14, %v8043_v13 }
0x15e0   : > { %v7655_v61 = vpop.eup %7654  ;;  %v5634_v9 = vadd.f32 1e-05, %v5626_v42 }
0x15e1   : > { %v5696_v20 = vmul.f32 %v7655_v61, %v5633_v12  ;;  %vm5702_vm3 = vweird.f32 %v7655_v61 }
0x15e2   : > { %7656 = vrsqrt.f32 %v5634_v9  ;;  %vm5703_vm5 = vmor %vm5701_vm4, %vm5702_vm3  ;;  %vm5711_vm7 = vweird.f32 %v5634_v9 }
0x15e3   : > { %v5697_v41 = vmul.f32 %v7655_v61, %v5696_v20 }
0x15e5   : > { %v5698_v46 = vmul.f32 0.5, %v5697_v41 }
0x15e7   : > { %v5699_v33 = vsub.f32 1.5, %v5698_v46 }
0x15e8   : > { %v7657_v38 = vpop.eup %7656 }
0x15e9   : > { %v5700_v43 = vmul.f32 %v7655_v61, %v5699_v33  ;;  %v5706_v16 = vmul.f32 %v7657_v38, %v5634_v9  ;;  %vm5712_vm6 = vweird.f32 %v7657_v38 }
0x15ea   : > { %vm5713_vm8 = vmor %vm5711_vm7, %vm5712_vm6 }
0x15eb   : > { %v5707_v18 = vmul.f32 %v7657_v38, %v5706_v16  ;;  %v5704_v48 = vsel %vm5703_vm5, %v7655_v61, %v5700_v43 }
0x15ec   : > { %v5721_v13 = vmul.f32 %v5704_v48, %v10727_v19  ;;  %v7319_v19 = vld [vmem:[%s10819_s9] ss:$0 sm:$0xff] }
0x15ed   : > { %v5708_v10 = vmul.f32 0.5, %v5707_v18 }
0x15ee   : > { %v5730_v60 = vmul.f32 %v10737_v8, %v5721_v13 }
0x15ef   : > { %v5709_v7 = vsub.f32 1.5, %v5708_v10 }
0x15f0   : > { %v5739_v63 = vadd.f32 %v10740_v39, %v5730_v60 }
0x15f1   : > { %v5710_v28 = vmul.f32 %v7657_v38, %v5709_v7 }
0x15f3   : > { %v5714_v55 = vsel %vm5713_vm8, %v7657_v38, %v5710_v28 }
0x15f4   : > { %v5722_v3 = vmul.f32 %v5714_v55, %v10733_v2 }
0x15f6   : > { %v5731_v21 = vmul.f32 %v10737_v8, %v5722_v3 }
0x15f8   : > { %v5740_v47 = vadd.f32 %v10740_v39, %v5731_v21 }
0x15fa   : > { %v5744_v27 = vpack.c.bf16 %v5740_v47, %v5739_v63 }
0x15fc   : > { %5836 = vmatmul.bf16.gmra.mxu2 %v5744_v27 }
0x1605   : > { %v5822_v44 = vpop.f32.mrf.mxu2 }
0x1606   : > { %v5823_v54 = vadd.f32 %v7319_v19, %v5822_v44 }
0x1608   : > { %5842 = vst [vmem:[%s417_s15] sm:$0xff] %v5823_v54 }
0x160d   : > { %v5824_v2 = vpop.f32.mrf.mxu2 }
0x160e   : > { %v5825_v8 = vadd.f32 %v7319_v19, %v5824_v2 }
0x1610   : > { %5843 = vst [vmem:[%s417_s15 + $0x8] sm:$0xff] %v5825_v8 }
0x164d   : > { %v5827_v45 = vpop.f32.mrf.mxu2 }
0x164e   : > { %v5828_v50 = vadd.f32 %v7319_v19, %v5827_v45 }
0x1650   : > { %5844 = vst [vmem:[%s417_s15 + $0x10] sm:$0xff] %v5828_v50 }
0x1655   : > { %v5829_v39 = vpop.f32.mrf.mxu2 }
0x1656   : > { %v5830_v15 = vadd.f32 %v7319_v19, %v5829_v39 }
0x1658   : > { %5845 = vst [vmem:[%s417_s15 + $0x18] sm:$0xff] %v5830_v15 }
0x165d   : > { %v5832_v52 = vpop.f32.mrf.mxu2 }
0x165e   : > { %v5833_v58 = vadd.f32 %v7319_v19, %v5832_v52 }
0x1660   : > { %5846 = vst [vmem:[%s417_s15 + $0x20] sm:$0xff] %v5833_v58 }
0x1665   : > { %v5834_v57 = vpop.f32.mrf.mxu2 }
0x1666   : > { %v5835_v37 = vadd.f32 %v7319_v19, %v5834_v57 }
0x1668   : > { %5847 = vst [vmem:[%s417_s15 + $0x28] sm:$0xff] %v5835_v37 }
0x167f   : > { %v5837_v23 = vpop.f32.mrf.mxu2 }
0x1680   : > { %v5838_v25 = vadd.f32 %v7319_v19, %v5837_v23 }
0x1682   : > { %5848 = vst [vmem:[%s417_s15 + $0x30] sm:$0xff] %v5838_v25 }
0x1687   : > { %v5839_v0 = vpop.f32.mrf.mxu2 }
0x1688   : > { %v5840_v35 = vadd.f32 %v7319_v19, %v5839_v0 }
0x168a   : > { %5849 = vst [vmem:[%s417_s15 + $0x38] sm:$0xff] %v5840_v35 }
0x168b   : > { %7817 = shalt.err (!%p7814_p8)
}
0x168c   : > { %s7877_s28 = smov 128   ;;  %s7878_s2 = smov 8  }
0x168d   : > { %7246 = dma.vmem_to_hbm [thread:$0]  (%p7972_p5), %s5864_s12, 1024, %s5866_s21, %s5851_s26, %s7877_s28, %s7877_s28, %s7878_s2  }
0x168e PF: > { %p7273_p9 = scmp.ge.s32.totalorder %s7864_s16, 2  ;;  %s5880_s15 = sand.u32 1, %s7852_s13  }
0x168f   : > { %s5881_s19 = scalar_lea.sflag [#allocation4], %s5880_s15 }
0x1690   : > { %p7262_p10 = pnand %p7273_p9, %p7976_p6 }
0x1692   : > { %p7263_p11 = pneg %p7262_p10 }
0x1694   : > { %7847 = dma.done.wait (%p7263_p11), %s5881_s19, 1024  }
0x1695   : > { %7849 = vsyncadd (%p7263_p11), %s5881_s19, 4294966272  ;;  %s10842_s16 = sld [smem:[#allocation16_spill]]  ;;  %s10845_s13 = smov %s7856_s14 }
0x1696   : > { %s10843_s24 = sld [smem:[#allocation15_spill]] }
0x1697   : > { %s10844_s15 = sld [smem:[#allocation17_spill]] }
0x169b   : > { %p23_p12 = scmp.ge.s32.totalorder %s10842_s16, 4  }
0x169c   : > { %s10846_s14 = smov %s10843_s24 }
0x169d   :  { %25 = sbr.rel (!%p23_p12) target bundleno = 9 (0x9), region = 118 }
0x16a2   :  { %5887 = vsyncpa [#allocation3], 1 }
0x16a3   :  { %5889 = vsyncpa [#allocation3 + $0x1], 1 }
0x16a4   :  { %5890 = vsyncpa [#allocation6], 1 }
0x16a5   :  { %5891 = vsyncpa [#allocation9], 1 }
0x16a6   :  { %5892 = vsyncpa [#allocation4], 1 }
0x16a7   :  { %5894 = vsyncpa [#allocation4 + $0x1], 1 }

</bundles_post_ra>
